<compile_context>
chip_gen: v6e
topology: v6e:2x2x1
jax: 0.10.0
libtpu: 0.0.40
codegen_flags: <defaults>
</compile_context>

<pallas_src>
import functools

import jax
import jax.numpy as jnp
from jax.experimental import pallas as pl
from jax.experimental.pallas import tpu as pltpu


# ----------------------------- Pallas kernel --------------------------------

def _tmatmul_bias_kernel(w_ref, a_ref, b_ref, o_ref, *, apply_relu):
    # out tile (rt, ct) = W tile (rt, K) @ A tile (K, ct) + bias column (rt, 1)
    acc = jnp.dot(w_ref[...], a_ref[...], preferred_element_type=jnp.float32)
    acc = acc + b_ref[...]                      # lane-broadcast of bias column
    if apply_relu:
        acc = jnp.maximum(acc, 0.0)
    o_ref[...] = acc.astype(o_ref.dtype)


def tmatmul_bias(w, a, bias, *, apply_relu=False, out_dtype=jnp.float32,
                 row_tile=None, col_tile=None):
    """out = w @ a + bias[:, None] (optionally ReLU), tiled over (rows, cols).

    w: (N, K) in native PyTorch (out, in) layout, a: (K, M), bias: (N,).
    Output: (N, M) in `out_dtype`.  The last (lane) axis of the output is M,
    which for the conv layers is the large im2col patch axis -> lane-dense,
    unmasked stores.
    """
    N, K = w.shape
    K2, M = a.shape
    assert K == K2, (K, K2)
    rt = N if row_tile is None else row_tile
    ct = M if col_tile is None else col_tile
    # Explicit divisibility check instead of a silent whole-matrix fallback.
    assert N % rt == 0 and M % ct == 0, ("tile must divide output", N, rt, M, ct)

    kernel = functools.partial(_tmatmul_bias_kernel, apply_relu=apply_relu)
    return pl.pallas_call(
        kernel,
        out_shape=jax.ShapeDtypeStruct((N, M), out_dtype),
        grid_spec=pltpu.PrefetchScalarGridSpec(
            num_scalar_prefetch=0,
            grid=(N // rt, M // ct),
            in_specs=[
                pl.BlockSpec((rt, K), lambda i, j: (i, 0)),   # weight rows
                pl.BlockSpec((K, ct), lambda i, j: (0, j)),   # activation cols
                pl.BlockSpec((rt, 1), lambda i, j: (i, 0)),   # bias column
            ],
            out_specs=pl.BlockSpec((rt, ct), lambda i, j: (i, j)),
        ),
        compiler_params=pltpu.CompilerParams(
            dimension_semantics=("parallel", "parallel")),
    )(w, a, bias.reshape(N, 1).astype(jnp.float32))


# ------------------------ FeatureExtractor.forward ---------------------------

def feature_extractor_forward(x, params, extracted_layers="fc1"):
    B, Ho1, Wo1 = 32, 20, 133          # conv1 output spatial (stride == kernel)
    Ho2, Wo2 = 4, 19                   # conv2 output spatial

    x = x.reshape((32, 1, 60, 399)).astype(jnp.float32)

    # ---- block1: Conv2d(1, 8, k=3, s=3) + ReLU, as transposed im2col matmul ----
    # A1^T: (K=kh*kw=9, M=B*Ho1*Wo1=85120); bf16 operands, f32 accumulation.
    a1t = (x.reshape(B, Ho1, 3, Wo1, 3)
            .transpose(2, 4, 0, 1, 3)                 # (kh, kw, B, Ho1, Wo1)
            .reshape(9, B * Ho1 * Wo1)
            .astype(jnp.bfloat16))
    w1 = params["w1"].reshape(8, 9).astype(jnp.bfloat16)
    # grid = (1, 19): 19 lane-tiles of 4480 -> big tiles, >=2 steps for megacore.
    y1t = tmatmul_bias(w1, a1t, params["b1"], apply_relu=True,
                       out_dtype=jnp.bfloat16, col_tile=4480)   # (8, 85120) = (C, B, H, W)
    if extracted_layers == "block1":
        return (y1t.reshape(8, B, Ho1, Wo1)
                   .transpose(1, 0, 2, 3).astype(jnp.float32))  # NCHW, like PyTorch

    # ---- block2: Conv2d(8, 64, k=(5,7), s=(5,7)) + ReLU ----
    # A2^T: (K=Cin*kh*kw=280, M=Ho2*Wo2*B=2432).  Built directly from the
    # C-major conv1 output (no NCHW round trip).  M is ordered (Ho2, Wo2, B)
    # so conv2's output reshapes into fc1's RHS with zero transposes.
    a2t = (y1t.reshape(8, B, Ho2, 5, Wo2, 7)
              .transpose(0, 3, 5, 2, 4, 1)            # (Cin, kh, kw, Ho2, Wo2, B)
              .reshape(280, Ho2 * Wo2 * B))           # stays bf16
    w2 = params["w2"].reshape(64, 280).astype(jnp.bfloat16)
    y2t = tmatmul_bias(w2, a2t, params["b2"], apply_relu=True,
                       out_dtype=jnp.float32)          # (64, 2432) = (C, Ho2, Wo2, B)

    # Free reshape (row-major): rows ordered (c, h, w) == PyTorch flatten order.
    x_t = y2t.reshape(64 * Ho2 * Wo2, B)               # (4864, 32) == flat(32,4864)^T
    if extracted_layers == "block2":
        return x_t.T                                   # (32, 4864), like PyTorch reshape

    # ---- fc1: Linear(4864, 128), weight used untransposed: out^T = W @ x^T ----
    fc1t = tmatmul_bias(params["wfc1"], x_t, params["bfc1"],
                        apply_relu=False, out_dtype=jnp.float32,
                        row_tile=64)                   # grid (2,1) -> both v7x TCs
    if extracted_layers == "fc1":
        return fc1t.T                                  # (32, 128)

    # ---- relu3 / fc2 (only reached when extracting deeper layers) ----
    r3t = jnp.maximum(fc1t, 0.0)
    if extracted_layers == "relu3":
        return r3t.T
    fc2t = tmatmul_bias(params["wfc2"], r3t, params["bfc2"],
                        apply_relu=False, out_dtype=jnp.float32)   # (10, 32)
    if extracted_layers == "fc2":
        return fc2t.T

    # Mirrors PyTorch's `outputs = 0` fallback, but as a well-typed array.
    return jnp.zeros((), jnp.float32)


# ---------------------------------- main -------------------------------------

if __name__ == "__main__":
    key = jax.random.PRNGKey(0)
    kx, k1, k2, k3, k4, k5, k6, k7, k8 = jax.random.split(key, 9)

    # deterministic synthetic parameters (PyTorch weight layouts)
    params = {
        "w1":   jax.random.normal(k1, (8, 1, 3, 3), jnp.float32) * 0.10,
        "b1":   jax.random.normal(k2, (8,), jnp.float32) * 0.10,
        "w2":   jax.random.normal(k3, (64, 8, 5, 7), jnp.float32) * 0.05,
        "b2":   jax.random.normal(k4, (64,), jnp.float32) * 0.05,
        "wfc1": jax.random.normal(k5, (128, 4864), jnp.float32) * 0.02,
        "bfc1": jax.random.normal(k6, (128,), jnp.float32) * 0.02,
        "wfc2": jax.random.normal(k7, (10, 128), jnp.float32) * 0.05,
        "bfc2": jax.random.normal(k8, (10,), jnp.float32) * 0.05,
    }

    # input: the module's forward hard-codes reshape to (32, 1, 60, 399)
    x = jax.random.normal(kx, (32, 1, 60, 399), jnp.float32)

    fwd = jax.jit(feature_extractor_forward, static_argnames=("extracted_layers",))
    out = fwd(x, params, extracted_layers="fc1")
    out = jax.block_until_ready(out)

    assert out.shape == (32, 128), out.shape
    assert out.dtype == jnp.float32, out.dtype
    assert bool(jnp.all(jnp.isfinite(out)))
    print("KERNEL_OK")
</pallas_src>

<mosaic_0001>
module attributes {stable_mosaic.version = 11 : i64} {
  func.func @_tmatmul_bias_kernel(%arg0: i32, %arg1: i32, %arg2: memref<8x9xbf16, #tpu.memory_space<vmem>>, %arg3: memref<9x4480xbf16, #tpu.memory_space<vmem>>, %arg4: memref<8x1xf32, #tpu.memory_space<vmem>>, %arg5: memref<8x4480xbf16, #tpu.memory_space<vmem>>) attributes {dimension_semantics = [#tpu.dimension_semantics<parallel>, #tpu.dimension_semantics<parallel>], iteration_bounds = array<i64: 1, 19>, scalar_prefetch = 0 : i64, scratch_operands = 0 : i64, tpu.core_type = #tpu.core_type<tc>, window_params = [{transform_indices = @transform_0, window_bounds = array<i64: 8, 9>}, {transform_indices = @transform_1, window_bounds = array<i64: 9, 4480>}, {transform_indices = @transform_2, window_bounds = array<i64: 8, 1>}, {transform_indices = @transform_3, window_bounds = array<i64: 8, 4480>}]} {
    %c0 = arith.constant 0 : index
    %c0_0 = arith.constant 0 : index
    %0 = vector.load %arg2[%c0, %c0_0] : memref<8x9xbf16, #tpu.memory_space<vmem>>, vector<8x9xbf16>
    %c0_1 = arith.constant 0 : index
    %c0_2 = arith.constant 0 : index
    %1 = vector.load %arg3[%c0_1, %c0_2] : memref<9x4480xbf16, #tpu.memory_space<vmem>>, vector<9x4480xbf16>
    %cst = arith.constant dense<0.000000e+00> : vector<8x4480xf32>
    %2 = tpu.matmul %0, %1, %cst {dimension_numbers = #tpu.dot_dimension_numbers<[1], [0], [0], [1], [0, 0, 1, 1], [], []>} : vector<8x9xbf16>, vector<9x4480xbf16>, vector<8x4480xf32> -> vector<8x4480xf32>
    %c0_3 = arith.constant 0 : index
    %c0_4 = arith.constant 0 : index
    %3 = vector.load %arg4[%c0_3, %c0_4] : memref<8x1xf32, #tpu.memory_space<vmem>>, vector<8x1xf32>
    %4 = vector.broadcast %3 : vector<8x1xf32> to vector<8x4480xf32>
    %5 = arith.addf %2, %4 : vector<8x4480xf32>
    %cst_5 = arith.constant 0.000000e+00 : f32
    %6 = vector.broadcast %cst_5 : f32 to vector<8x4480xf32>
    %7 = arith.maximumf %5, %6 : vector<8x4480xf32>
    %8 = arith.truncf %7 : vector<8x4480xf32> to vector<8x4480xbf16>
    %c0_6 = arith.constant 0 : index
    %c0_7 = arith.constant 0 : index
    %9 = vector.load %arg5[%c0_6, %c0_7] : memref<8x4480xbf16, #tpu.memory_space<vmem>>, vector<8x4480xbf16>
    tpu.vector_store %arg5[%c0_6, %c0_7], %8 {strides = array<i32>} : memref<8x4480xbf16, #tpu.memory_space<vmem>>, vector<8x4480xbf16>,
    return
  }
  func.func @transform_0(%arg0: i32, %arg1: i32) -> (i32, i32) {
    %c0_i32 = arith.constant 0 : i32
    %c0_i32_0 = arith.constant 0 : i32
    return %arg0, %c0_i32 : i32, i32
  }
  func.func @transform_1(%arg0: i32, %arg1: i32) -> (i32, i32) {
    %c0_i32 = arith.constant 0 : i32
    %c0_i32_0 = arith.constant 0 : i32
    return %c0_i32, %arg1 : i32, i32
  }
  func.func @transform_2(%arg0: i32, %arg1: i32) -> (i32, i32) {
    %c0_i32 = arith.constant 0 : i32
    %c0_i32_0 = arith.constant 0 : i32
    return %arg0, %c0_i32 : i32, i32
  }
  func.func @transform_3(%arg0: i32, %arg1: i32) -> (i32, i32) {
    %c0_i32 = arith.constant 0 : i32
    return %arg0, %arg1 : i32, i32
  }
}

module attributes {stable_mosaic.version = 11 : i64} {
  func.func @_tmatmul_bias_kernel(%arg0: i32, %arg1: i32, %arg2: memref<64x280xbf16, #tpu.memory_space<vmem>>, %arg3: memref<280x2432xbf16, #tpu.memory_space<vmem>>, %arg4: memref<64x1xf32, #tpu.memory_space<vmem>>, %arg5: memref<64x2432xf32, #tpu.memory_space<vmem>>) attributes {dimension_semantics = [#tpu.dimension_semantics<parallel>, #tpu.dimension_semantics<parallel>], iteration_bounds = array<i64: 1, 1>, scalar_prefetch = 0 : i64, scratch_operands = 0 : i64, tpu.core_type = #tpu.core_type<tc>, window_params = [{transform_indices = @transform_0, window_bounds = array<i64: 64, 280>}, {transform_indices = @transform_1, window_bounds = array<i64: 280, 2432>}, {transform_indices = @transform_2, window_bounds = array<i64: 64, 1>}, {transform_indices = @transform_3, window_bounds = array<i64: 64, 2432>}]} {
    %c0 = arith.constant 0 : index
    %c0_0 = arith.constant 0 : index
    %0 = vector.load %arg2[%c0, %c0_0] : memref<64x280xbf16, #tpu.memory_space<vmem>>, vector<64x280xbf16>
    %c0_1 = arith.constant 0 : index
    %c0_2 = arith.constant 0 : index
    %1 = vector.load %arg3[%c0_1, %c0_2] : memref<280x2432xbf16, #tpu.memory_space<vmem>>, vector<280x2432xbf16>
    %cst = arith.constant dense<0.000000e+00> : vector<64x2432xf32>
    %2 = tpu.matmul %0, %1, %cst {dimension_numbers = #tpu.dot_dimension_numbers<[1], [0], [0], [1], [0, 0, 1, 1], [], []>} : vector<64x280xbf16>, vector<280x2432xbf16>, vector<64x2432xf32> -> vector<64x2432xf32>
    %c0_3 = arith.constant 0 : index
    %c0_4 = arith.constant 0 : index
    %3 = vector.load %arg4[%c0_3, %c0_4] : memref<64x1xf32, #tpu.memory_space<vmem>>, vector<64x1xf32>
    %4 = vector.broadcast %3 : vector<64x1xf32> to vector<64x2432xf32>
    %5 = arith.addf %2, %4 : vector<64x2432xf32>
    %cst_5 = arith.constant 0.000000e+00 : f32
    %6 = vector.broadcast %cst_5 : f32 to vector<64x2432xf32>
    %7 = arith.maximumf %5, %6 : vector<64x2432xf32>
    %c0_6 = arith.constant 0 : index
    %c0_7 = arith.constant 0 : index
    %8 = vector.load %arg5[%c0_6, %c0_7] : memref<64x2432xf32, #tpu.memory_space<vmem>>, vector<64x2432xf32>
    tpu.vector_store %arg5[%c0_6, %c0_7], %7 {strides = array<i32>} : memref<64x2432xf32, #tpu.memory_space<vmem>>, vector<64x2432xf32>,
    return
  }
  func.func @transform_0(%arg0: i32, %arg1: i32) -> (i32, i32) {
    %c0_i32 = arith.constant 0 : i32
    %c0_i32_0 = arith.constant 0 : i32
    return %arg0, %c0_i32 : i32, i32
  }
  func.func @transform_1(%arg0: i32, %arg1: i32) -> (i32, i32) {
    %c0_i32 = arith.constant 0 : i32
    %c0_i32_0 = arith.constant 0 : i32
    return %c0_i32, %arg1 : i32, i32
  }
  func.func @transform_2(%arg0: i32, %arg1: i32) -> (i32, i32) {
    %c0_i32 = arith.constant 0 : i32
    %c0_i32_0 = arith.constant 0 : i32
    return %arg0, %c0_i32 : i32, i32
  }
  func.func @transform_3(%arg0: i32, %arg1: i32) -> (i32, i32) {
    %c0_i32 = arith.constant 0 : i32
    return %arg0, %arg1 : i32, i32
  }
}

module attributes {stable_mosaic.version = 11 : i64} {
  func.func @_tmatmul_bias_kernel(%arg0: i32, %arg1: i32, %arg2: memref<64x4864xf32, #tpu.memory_space<vmem>>, %arg3: memref<4864x32xf32, #tpu.memory_space<vmem>>, %arg4: memref<64x1xf32, #tpu.memory_space<vmem>>, %arg5: memref<64x32xf32, #tpu.memory_space<vmem>>) attributes {dimension_semantics = [#tpu.dimension_semantics<parallel>, #tpu.dimension_semantics<parallel>], iteration_bounds = array<i64: 2, 1>, scalar_prefetch = 0 : i64, scratch_operands = 0 : i64, tpu.core_type = #tpu.core_type<tc>, window_params = [{transform_indices = @transform_0, window_bounds = array<i64: 64, 4864>}, {transform_indices = @transform_1, window_bounds = array<i64: 4864, 32>}, {transform_indices = @transform_2, window_bounds = array<i64: 64, 1>}, {transform_indices = @transform_3, window_bounds = array<i64: 64, 32>}]} {
    %c0 = arith.constant 0 : index
    %c0_0 = arith.constant 0 : index
    %0 = vector.load %arg2[%c0, %c0_0] : memref<64x4864xf32, #tpu.memory_space<vmem>>, vector<64x4864xf32>
    %c0_1 = arith.constant 0 : index
    %c0_2 = arith.constant 0 : index
    %1 = vector.load %arg3[%c0_1, %c0_2] : memref<4864x32xf32, #tpu.memory_space<vmem>>, vector<4864x32xf32>
    %cst = arith.constant dense<0.000000e+00> : vector<64x32xf32>
    %2 = tpu.matmul %0, %1, %cst {dimension_numbers = #tpu.dot_dimension_numbers<[1], [0], [0], [1], [0, 0, 1, 1], [], []>} : vector<64x4864xf32>, vector<4864x32xf32>, vector<64x32xf32> -> vector<64x32xf32>
    %c0_3 = arith.constant 0 : index
    %c0_4 = arith.constant 0 : index
    %3 = vector.load %arg4[%c0_3, %c0_4] : memref<64x1xf32, #tpu.memory_space<vmem>>, vector<64x1xf32>
    %4 = vector.broadcast %3 : vector<64x1xf32> to vector<64x32xf32>
    %5 = arith.addf %2, %4 : vector<64x32xf32>
    %c0_5 = arith.constant 0 : index
    %c0_6 = arith.constant 0 : index
    %6 = vector.load %arg5[%c0_5, %c0_6] : memref<64x32xf32, #tpu.memory_space<vmem>>, vector<64x32xf32>
    tpu.vector_store %arg5[%c0_5, %c0_6], %5 {strides = array<i32>} : memref<64x32xf32, #tpu.memory_space<vmem>>, vector<64x32xf32>,
    return
  }
  func.func @transform_0(%arg0: i32, %arg1: i32) -> (i32, i32) {
    %c0_i32 = arith.constant 0 : i32
    %c0_i32_0 = arith.constant 0 : i32
    return %arg0, %c0_i32 : i32, i32
  }
  func.func @transform_1(%arg0: i32, %arg1: i32) -> (i32, i32) {
    %c0_i32 = arith.constant 0 : i32
    %c0_i32_0 = arith.constant 0 : i32
    return %c0_i32, %arg1 : i32, i32
  }
  func.func @transform_2(%arg0: i32, %arg1: i32) -> (i32, i32) {
    %c0_i32 = arith.constant 0 : i32
    %c0_i32_0 = arith.constant 0 : i32
    return %arg0, %c0_i32 : i32, i32
  }
  func.func @transform_3(%arg0: i32, %arg1: i32) -> (i32, i32) {
    %c0_i32 = arith.constant 0 : i32
    return %arg0, %arg1 : i32, i32
  }
}

</mosaic_0001>

<bundles_post_ra>
// kernel: feature_extractor_forward.3
= control target key start
LH: loop header
LB: loop body
LE: loop exit
PB: predicated region body
PF: predicated region fallthrough
CT: control target
= control target key end

     0   :  { %s1955_s12 = smov 0   ;;  %s1957_s13 = smov 0   ;;  %s2289_s0 = inlined_call_operand.vmem [shape: bf16[8,9], index: 0, kind: input, shape index: {}]   ;;  %s2290_s1 = inlined_call_operand.vmem [shape: bf16[9,85120], index: 1, kind: input, shape index: {}]   ;;  %s2291_s2 = inlined_call_operand.vmem [shape: f32[8,1], index: 2, kind: input, shape index: {}]   ;;  %s2292_s3 = inlined_call_operand.vmem [shape: bf16[8,85120], index: 3, kind: output, shape index: {}]  }
   0x1   :  { %s1959_s14 = smov 0   ;;  %s1961_s15 = smov 0  }
   0x2   :  { %s1963_s16 = smov 0  }
   0x3 LB: > { %s22_s17 = sadd.s32 1, %s1925_s15  ;;  %p65_p1 = scmp.ne.s32.totalorder %s1917_s13, %s1913_s12  ;;  %s1929_s16 = sphi %s1963_s16, %s13_s16   ;;  %s1925_s15 = sphi %s1961_s15, %s2296_s15   ;;  %s1921_s14 = sphi %s1959_s14, %s2295_s14   ;;  %s1917_s13 = sphi %s1957_s13, %s2294_s13   ;;  %s1913_s12 = sphi %s1955_s12, %s2293_s12  }
   0x4   : > { %p23_p0 = scmp.ge.s32.totalorder %s22_s17, 19  ;;  %p66_p2 = scmp.eq.s32.totalorder %s1929_s16, 0 }
   0x5   : > { %s58_s19 = sadd.s32 1, %s1917_s13  ;;  %p1684_p5 = scmp.ge.s32.totalorder %s1929_s16, 19 }
   0x6   : > { %s2298_s17 = smov (%p23_p0, %s22_s17), 0  ;;  %p67_p3 = por %p66_p2, %p65_p1 }
   0x7   : > { %s55_s18 = ssub.s32 %s1925_s15, %s2298_s17  ;;  %159 = sbr.rel (%p1684_p5) target bundleno = 35 (0x23), region = 24 }
   0x8   : > { %p56_p4 = scmp.eq.s32.totalorder %s55_s18, 0 }
   0xa   : > { %s1990_s20 = scalar_select %p56_p4, %s1917_s13, %s58_s19  }
   0xc   : > { %162 = sbr.rel (!%p67_p3) target bundleno = 35 (0x23), region = 28  ;;  %s164_s21 = sand.u32 (%p67_p3), 1, %s1917_s13  }
   0xd   : > { %s1765_s22 = smul.u32 (%p67_p3), 140, %s1925_s15 }
   0xe   : > { %s1792_s23 = smul.u32 (%p67_p3), 280, %s164_s21 }
   0xf   : > { %s1998_s26 = scalar_lea.vmem (%p67_p3), %s2290_s1, %s1765_s22 }
  0x10   : > { %v184_v0 = vld [vmem:[%s1998_s26] sm:$0xff] (%p67_p3)  ;;  %v186_v1 = vld [vmem:[%s1998_s26 + $0x8] sm:$0xff] (%p67_p3)  ;;  %v188_v2 = vld [vmem:[%s1998_s26 + $0x10] sm:$0xff] (%p67_p3)  ;;  %s2003_s27 = scalar_lea.vmem (%p67_p3), [#allocation2], %s1792_s23 }
  0x11   : > { %185 = vst [vmem:[%s2003_s27] sm:$0xff] %v184_v0  ;;  %187 = vst [vmem:[%s2003_s27 + $0x8] sm:$0xff] %v186_v1  ;;  %v190_v3 = vld [vmem:[%s1998_s26 + $0x18] sm:$0xff]  ;;  %v192_v4 = vld [vmem:[%s1998_s26 + $0x20] sm:$0xff] }
  0x12   : > { %189 = vst [vmem:[%s2003_s27 + $0x10] sm:$0xff] %v188_v2  ;;  %v194_v5 = vld [vmem:[%s1998_s26 + $0x28] sm:$0xff]  ;;  %191 = vst [vmem:[%s2003_s27 + $0x18] sm:$0xff] %v190_v3  ;;  %v196_v6 = vld [vmem:[%s1998_s26 + $0x30] sm:$0xff] }
  0x13   : > { %193 = vst [vmem:[%s2003_s27 + $0x20] sm:$0xff] %v192_v4  ;;  %195 = vst [vmem:[%s2003_s27 + $0x28] sm:$0xff] %v194_v5  ;;  %v198_v7 = vld [vmem:[%s1998_s26 + $0x38] sm:$0xff]  ;;  %v200_v8 = vld [vmem:[%s1998_s26 + $0x40] sm:$0xff] }
  0x14   : > { %197 = vst [vmem:[%s2003_s27 + $0x30] sm:$0xff] %v196_v6  ;;  %199 = vst [vmem:[%s2003_s27 + $0x38] sm:$0xff] %v198_v7  ;;  %v202_v9 = vld [vmem:[%s1998_s26 + $0x48] sm:$0xff]  ;;  %v204_v10 = vld [vmem:[%s1998_s26 + $0x50] sm:$0xff] }
  0x15   : > { %201 = vst [vmem:[%s2003_s27 + $0x40] sm:$0xff] %v200_v8  ;;  %v206_v11 = vld [vmem:[%s1998_s26 + $0x58] sm:$0xff]  ;;  %203 = vst [vmem:[%s2003_s27 + $0x48] sm:$0xff] %v202_v9  ;;  %v208_v12 = vld [vmem:[%s1998_s26 + $0x60] sm:$0xff] }
  0x16   : > { %205 = vst [vmem:[%s2003_s27 + $0x50] sm:$0xff] %v204_v10  ;;  %207 = vst [vmem:[%s2003_s27 + $0x58] sm:$0xff] %v206_v11  ;;  %v210_v13 = vld [vmem:[%s1998_s26 + $0x68] sm:$0xff]  ;;  %v212_v14 = vld [vmem:[%s1998_s26 + $0x70] sm:$0xff] }
  0x17   : > { %209 = vst [vmem:[%s2003_s27 + $0x60] sm:$0xff] %v208_v12  ;;  %211 = vst [vmem:[%s2003_s27 + $0x68] sm:$0xff] %v210_v13  ;;  %v214_v15 = vld [vmem:[%s1998_s26 + $0x78] sm:$0xff]  ;;  %v216_v16 = vld [vmem:[%s1998_s26 + $0x80] sm:$0xff] }
  0x18   : > { %213 = vst [vmem:[%s2003_s27 + $0x70] sm:$0xff] %v212_v14  ;;  %v218_v17 = vld [vmem:[%s1998_s26 + $0xa64] sm:$0xff]  ;;  %215 = vst [vmem:[%s2003_s27 + $0x78] sm:$0xff] %v214_v15  ;;  %v220_v18 = vld [vmem:[%s1998_s26 + $0xa6c] sm:$0xff] }
  0x19   : > { %217 = vst [vmem:[%s2003_s27 + $0x80] sm:$0xff] %v216_v16  ;;  %219 = vst [vmem:[%s2003_s27 + $0x8c] sm:$0xff] %v218_v17  ;;  %v222_v19 = vld [vmem:[%s1998_s26 + $0xa74] sm:$0xff]  ;;  %v224_v20 = vld [vmem:[%s1998_s26 + $0xa7c] sm:$0xff] }
  0x1a   : > { %221 = vst [vmem:[%s2003_s27 + $0x94] sm:$0xff] %v220_v18  ;;  %223 = vst [vmem:[%s2003_s27 + $0x9c] sm:$0xff] %v222_v19  ;;  %v226_v21 = vld [vmem:[%s1998_s26 + $0xa84] sm:$0xff]  ;;  %v228_v22 = vld [vmem:[%s1998_s26 + $0xa8c] sm:$0xff] }
  0x1b   : > { %225 = vst [vmem:[%s2003_s27 + $0xa4] sm:$0xff] %v224_v20  ;;  %v230_v23 = vld [vmem:[%s1998_s26 + $0xa94] sm:$0xff]  ;;  %227 = vst [vmem:[%s2003_s27 + $0xac] sm:$0xff] %v226_v21  ;;  %v232_v24 = vld [vmem:[%s1998_s26 + $0xa9c] sm:$0xff] }
  0x1c   : > { %229 = vst [vmem:[%s2003_s27 + $0xb4] sm:$0xff] %v228_v22  ;;  %231 = vst [vmem:[%s2003_s27 + $0xbc] sm:$0xff] %v230_v23  ;;  %v234_v25 = vld [vmem:[%s1998_s26 + $0xaa4] sm:$0xff]  ;;  %v236_v26 = vld [vmem:[%s1998_s26 + $0xaac] sm:$0xff] }
  0x1d   : > { %233 = vst [vmem:[%s2003_s27 + $0xc4] sm:$0xff] %v232_v24  ;;  %235 = vst [vmem:[%s2003_s27 + $0xcc] sm:$0xff] %v234_v25  ;;  %v238_v27 = vld [vmem:[%s1998_s26 + $0xab4] sm:$0xff]  ;;  %v240_v28 = vld [vmem:[%s1998_s26 + $0xabc] sm:$0xff] }
  0x1e   : > { %237 = vst [vmem:[%s2003_s27 + $0xd4] sm:$0xff] %v236_v26  ;;  %v242_v29 = vld [vmem:[%s1998_s26 + $0xac4] sm:$0xff]  ;;  %239 = vst [vmem:[%s2003_s27 + $0xdc] sm:$0xff] %v238_v27  ;;  %v244_v30 = vld [vmem:[%s1998_s26 + $0xacc] sm:$0xff] }
  0x1f   : > { %241 = vst [vmem:[%s2003_s27 + $0xe4] sm:$0xff] %v240_v28  ;;  %243 = vst [vmem:[%s2003_s27 + $0xec] sm:$0xff] %v242_v29  ;;  %v246_v31 = vld [vmem:[%s1998_s26 + $0xad4] sm:$0xff]  ;;  %v248_v32 = vld [vmem:[%s1998_s26 + $0xadc] sm:$0xff] }
  0x20   : > { %245 = vst [vmem:[%s2003_s27 + $0xf4] sm:$0xff] %v244_v30  ;;  %247 = vst [vmem:[%s2003_s27 + $0xfc] sm:$0xff] %v246_v31  ;;  %v250_v33 = vld [vmem:[%s1998_s26 + $0xae4] sm:$0xff]  ;;  %v1688_v35 = vld [vmem:[%s1998_s26 + $0xaec] sm:$0xf] }
  0x21   : > { %249 = vst [vmem:[%s2003_s27 + $0x104] sm:$0xff] %v248_v32  ;;  %v1686_v34 = vld [vmem:[%s1998_s26 + $0x88] sm:$0xf]  ;;  %251 = vst [vmem:[%s2003_s27 + $0x10c] sm:$0xff] %v250_v33 }
  0x22   : > { %1687 = vst [vmem:[%s2003_s27 + $0x88] sm:$0xf] %v1686_v34  ;;  %1689 = vst [vmem:[%s2003_s27 + $0x114] sm:$0xf] %v1688_v35 }
  0x23 PF: > { %p1690_p6 = scmp.ge.s32.totalorder %s1929_s16, 1  ;;  %p268_p7 = scmp.lt.s32.totalorder %s1929_s16, 20 }
  0x25   : > { %p269_p8 = pnand %p1690_p6, %p268_p7 }
  0x26   : > { %s275_s28 = sand.u32 (!%p269_p8), 1, %s1913_s12   ;;  %s319_s8 = smul.u32 (!%p269_p8), 35, %s1921_s14 }
  0x27   : > { %272 = sbr.rel (%p269_p8) target bundleno = 319 (0x13f), region = 54 }
  0x28   : > { %s1793_s4 = smul.u32 (!%p269_p8), 280, %s275_s28  ;;  %p322_p9 = scmp.lt.s32.totalorder (!%p269_p8), %s319_s8, 664 }
  0x2a   : > { %s2085_s5 = scalar_lea.vmem (!%p269_p8), [#allocation2], %s1793_s4 }
  0x2c   : > { %vm518_vm0 = vcmask 1043456   ;;  %vm519_vm1 = vcmask 1044480   ;;  %v367_v36 = vld [vmem:[%s2291_s2] sm:$0xff]  ;;  %v1931_v37 = vmov 65535   ;;  %v1932_v39 = vmov 0   ;;  %s2300_s8 = smov (!%p322_p9, %s319_s8), 664 }
  0x2d   : > { %v520_v38 = vsel %vm518_vm0, 4294967295, %v1931_v37  ;;  %659 = vmatprep.mubr.bf16.mxu0 %v1932_v39  ;;  %700 = vmatprep.mubr.bf16.mxu1 %v1932_v39  ;;  %v1839_v41 = vld [vmem:[%s2085_s5 + $0x4] ss:$140 sps:$4 sm:$0x1f]   ;;  %v2102_v53 = vld [vmem:[%s2289_s0] sm:$0xf] }
  0x2e   : > { %1838 = vset.pattern.permute.xlu0 %v1932_v39  ;;  %v2083_v40 = vsel %vm519_vm1, %v520_v38, 0  ;;  %v1841_v42 = vld [vmem:[%s2085_s5 + $0xc] ss:$140 sps:$4 sm:$0x1f]   ;;  %vm514_vm2 = vcmask 72704   ;;  %vm1934_vm3 = vmmov 0  }
  0x2f   : > { %370 = vperm.xlu0 %1838, %v367_v36   ;;  %v526_v43 = vand.u32 %v1839_v41, %v2083_v40  ;;  %v1843_v44 = vld [vmem:[%s2085_s5] ss:$140 sps:$4 sm:$0x1f]   ;;  %v1844_v45 = vld [vmem:[%s2085_s5 + $0x8] ss:$140 sps:$4 sm:$0x1f]   ;;  %v532_v46 = vand.u32 %v1841_v42, %v2083_v40 }
  0x30   : > { %v1845_v47 = vld [vmem:[%s2085_s5 + $0x10] ss:$140 sps:$4 sm:$0x1f]   ;;  %v523_v48 = vand.u32 %v1843_v44, %v2083_v40  ;;  %v529_v49 = vand.u32 %v1844_v45, %v2083_v40  ;;  %v1847_v50 = vld [vmem:[%s2085_s5 + $0x14] ss:$140 sps:$4 sm:$0x1f]  }
  0x31   : > { %641 = vmatprep.subr.bf16.mxu0 %v526_v43  ;;  %682 = vmatprep.subr.bf16.mxu1 %v532_v46  ;;  %v1848_v51 = vld [vmem:[%s2085_s5 + $0x18] ss:$140 sps:$4 sm:$0x1f]   ;;  %v1850_v52 = vld [vmem:[%s2085_s5 + $0x1c] ss:$140 sps:$4 sm:$0x1f]   ;;  %v538_v54 = vand.u32 %v1847_v50, %v2083_v40  ;;  %v535_v55 = vand.u32 %v1845_v47, %v2083_v40 }
  0x32   : > { %642 = vmatpush1.bf16.msra.mxu0 %v523_v48  ;;  %683 = vmatpush1.bf16.msra.mxu1 %v529_v49  ;;  %v544_v56 = vand.u32 %v1850_v52, %v2083_v40  ;;  %v541_v57 = vand.u32 %v1848_v51, %v2083_v40  ;;  %v1853_v58 = vld [vmem:[%s2085_s5 + $0x24] ss:$140 sps:$4 sm:$0x1f]   ;;  %v1856_v59 = vld [vmem:[%s2085_s5 + $0x2c] ss:$140 sps:$4 sm:$0x1f]  }
  0x33   : > { %723 = vmatprep.subr.bf16.mxu0 %v538_v54  ;;  %v1851_v60 = vld [vmem:[%s2085_s5 + $0x20] ss:$140 sps:$4 sm:$0x1f]   ;;  %v550_v61 = vand.u32 %v1853_v58, %v2083_v40  ;;  %v1854_v62 = vld [vmem:[%s2085_s5 + $0x28] ss:$140 sps:$4 sm:$0x1f]   ;;  %v556_v63 = vand.u32 %v1856_v59, %v2083_v40 }
  0x34   : > { %764 = vmatprep.subr.bf16.mxu1 %v544_v56  ;;  %v1859_v0 = vld [vmem:[%s2085_s5 + $0x34] ss:$140 sps:$4 sm:$0x1f]   ;;  %v1862_v1 = vld [vmem:[%s2085_s5 + $0x3c] ss:$140 sps:$4 sm:$0x1f]   ;;  %v547_v2 = vand.u32 %v1851_v60, %v2083_v40  ;;  %v553_v3 = vand.u32 %v1854_v62, %v2083_v40 }
  0x35   : > { %1727 = vmatmul.mubr.msk.bf16.vlgmr.msra.gmra.mxu0 %vm514_vm2, %v2102_v53  ;;  %1728 = vmatmul.mubr.msk.bf16.vlgmr.msra.gmra.mxu1 %vm514_vm2, %v2102_v53  ;;  %v562_v4 = vand.u32 %v1859_v0, %v2083_v40  ;;  %v568_v5 = vand.u32 %v1862_v1, %v2083_v40  ;;  %v1857_v6 = vld [vmem:[%s2085_s5 + $0x30] ss:$140 sps:$4 sm:$0x1f]   ;;  %v1860_v7 = vld [vmem:[%s2085_s5 + $0x38] ss:$140 sps:$4 sm:$0x1f]  }
  0x36   : > { %724 = vmatpush1.bf16.msra.mxu0 %v535_v55  ;;  %765 = vmatpush1.bf16.msra.mxu1 %v541_v57  ;;  %v1865_v8 = vld [vmem:[%s2085_s5 + $0x44] ss:$140 sps:$4 sm:$0x1f]   ;;  %v1868_v9 = vld [vmem:[%s2085_s5 + $0x4c] ss:$140 sps:$4 sm:$0x1f]   ;;  %v559_v10 = vand.u32 %v1857_v6, %v2083_v40  ;;  %v565_v11 = vand.u32 %v1860_v7, %v2083_v40 }
  0x37   : > { %741 = vmatprep.mubr.bf16.mxu0 %v1932_v39  ;;  %782 = vmatprep.mubr.bf16.mxu1 %v1932_v39  ;;  %v574_v12 = vand.u32 %v1865_v8, %v2083_v40  ;;  %v580_v13 = vand.u32 %v1868_v9, %v2083_v40  ;;  %v1863_v14 = vld [vmem:[%s2085_s5 + $0x40] ss:$140 sps:$4 sm:$0x1f]   ;;  %v1866_v15 = vld [vmem:[%s2085_s5 + $0x48] ss:$140 sps:$4 sm:$0x1f]  }
  0x38   : > { %805 = vmatprep.subr.bf16.mxu0 %v550_v61  ;;  %846 = vmatprep.subr.bf16.mxu1 %v556_v63  ;;  %v1871_v16 = vld [vmem:[%s2085_s5 + $0x54] ss:$140 sps:$4 sm:$0x1f]   ;;  %v1874_v17 = vld [vmem:[%s2085_s5 + $0x5c] ss:$140 sps:$4 sm:$0x1f]   ;;  %v571_v18 = vand.u32 %v1863_v14, %v2083_v40  ;;  %v577_v19 = vand.u32 %v1866_v15, %v2083_v40 }
  0x39   : > { %v586_v20 = vand.u32 %v1871_v16, %v2083_v40  ;;  %v592_v21 = vand.u32 %v1874_v17, %v2083_v40  ;;  %v1869_v22 = vld [vmem:[%s2085_s5 + $0x50] ss:$140 sps:$4 sm:$0x1f]   ;;  %v1872_v23 = vld [vmem:[%s2085_s5 + $0x58] ss:$140 sps:$4 sm:$0x1f]  }
  0x3a   : > { %v1877_v24 = vld [vmem:[%s2085_s5 + $0x64] ss:$140 sps:$4 sm:$0x1f]   ;;  %v1880_v25 = vld [vmem:[%s2085_s5 + $0x6c] ss:$140 sps:$4 sm:$0x1f]   ;;  %v583_v26 = vand.u32 %v1869_v22, %v2083_v40  ;;  %v589_v27 = vand.u32 %v1872_v23, %v2083_v40 }
  0x3b   : > { %v598_v28 = vand.u32 %v1877_v24, %v2083_v40  ;;  %v604_v29 = vand.u32 %v1880_v25, %v2083_v40  ;;  %v1875_v30 = vld [vmem:[%s2085_s5 + $0x60] ss:$140 sps:$4 sm:$0x1f]   ;;  %v1878_v31 = vld [vmem:[%s2085_s5 + $0x68] ss:$140 sps:$4 sm:$0x1f]  }
  0x3c   : > { %v1883_v32 = vld [vmem:[%s2085_s5 + $0x74] ss:$140 sps:$4 sm:$0x1f]   ;;  %v1886_v33 = vld [vmem:[%s2085_s5 + $0x7c] ss:$140 sps:$4 sm:$0x1f]   ;;  %v595_v34 = vand.u32 %v1875_v30, %v2083_v40  ;;  %v601_v35 = vand.u32 %v1878_v31, %v2083_v40 }
  0x3d   : > { %1729 = vmatmul.mubr.msk.bf16.vlgmr.msra.gmra.mxu0 %vm514_vm2, %v2102_v53  ;;  %1730 = vmatmul.mubr.msk.bf16.vlgmr.msra.gmra.mxu1 %vm514_vm2, %v2102_v53  ;;  %v610_v36 = vand.u32 %v1883_v32, %v2083_v40  ;;  %v616_v37 = vand.u32 %v1886_v33, %v2083_v40  ;;  %v1881_v38 = vld [vmem:[%s2085_s5 + $0x70] ss:$140 sps:$4 sm:$0x1f]   ;;  %v1884_v41 = vld [vmem:[%s2085_s5 + $0x78] ss:$140 sps:$4 sm:$0x1f]  }
  0x3e   : > { %806 = vmatpush1.bf16.msra.mxu0 %v547_v2  ;;  %847 = vmatpush1.bf16.msra.mxu1 %v553_v3  ;;  %v1889_v42 = vld [vmem:[%s2085_s5 + $0x84] ss:$140 sps:$4 sm:$0x1f]   ;;  %v607_v43 = vand.u32 %v1881_v38, %v2083_v40  ;;  %v613_v44 = vand.u32 %v1884_v41, %v2083_v40  ;;  %v1887_v46 = vld [vmem:[%s2085_s5 + $0x80] ss:$140 sps:$4 sm:$0x1f]  }
  0x3f   : > { %823 = vmatprep.mubr.bf16.mxu0 %v1932_v39  ;;  %864 = vmatprep.mubr.bf16.mxu1 %v1932_v39  ;;  %v622_v45 = vand.u32 %v1889_v42, %v2083_v40  ;;  %v1890_v47 = vld [vmem:[%s2085_s5 + $0x88] ss:$140 sps:$4 sm:$0x1f]   ;;  %v1933_v48 = vmov 0.0   ;;  %v619_v49 = vand.u32 %v1887_v46, %v2083_v40  ;;  %s1691_s9 = sshll.u32 %s2300_s8, 2 }
  0x40   : > { %887 = vmatprep.subr.bf16.mxu0 %v562_v4  ;;  %928 = vmatprep.subr.bf16.mxu1 %v568_v5  ;;  %v625_v50 = vand.u32 %v1890_v47, %v2083_v40  ;;  %s2223_s12 = scalar_lea.vmem %s2292_s3, %s1691_s9 }
  0x45   : > { %1731 = vmatmul.mubr.msk.bf16.vlgmr.msra.gmra.mxu0 %vm514_vm2, %v2102_v53  ;;  %1732 = vmatmul.mubr.msk.bf16.vlgmr.msra.gmra.mxu1 %vm514_vm2, %v2102_v53 }
  0x46   : > { %888 = vmatpush1.bf16.msra.mxu0 %v559_v10  ;;  %929 = vmatpush1.bf16.msra.mxu1 %v565_v11 }
  0x47   : > { %905 = vmatprep.mubr.bf16.mxu0 %v1932_v39  ;;  %946 = vmatprep.mubr.bf16.mxu1 %v1932_v39 }
  0x48   : > { %969 = vmatprep.subr.bf16.mxu0 %v574_v12  ;;  %1010 = vmatprep.subr.bf16.mxu1 %v580_v13 }
  0x4d   : > { %1733 = vmatmul.mubr.msk.bf16.vlgmr.msra.gmra.mxu0 %vm514_vm2, %v2102_v53  ;;  %1734 = vmatmul.mubr.msk.bf16.vlgmr.msra.gmra.mxu1 %vm514_vm2, %v2102_v53 }
  0x4e   : > { %970 = vmatpush1.bf16.msra.mxu0 %v571_v18  ;;  %1011 = vmatpush1.bf16.msra.mxu1 %v577_v19 }
  0x4f   : > { %987 = vmatprep.mubr.bf16.mxu0 %v1932_v39  ;;  %1028 = vmatprep.mubr.bf16.mxu1 %v1932_v39 }
  0x50   : > { %1051 = vmatprep.subr.bf16.mxu0 %v586_v20  ;;  %1092 = vmatprep.subr.bf16.mxu1 %v592_v21 }
  0x55   : > { %1735 = vmatmul.mubr.msk.bf16.vlgmr.msra.gmra.mxu0 %vm514_vm2, %v2102_v53  ;;  %1736 = vmatmul.mubr.msk.bf16.vlgmr.msra.gmra.mxu1 %vm514_vm2, %v2102_v53 }
  0x56   : > { %1052 = vmatpush1.bf16.msra.mxu0 %v583_v26  ;;  %1093 = vmatpush1.bf16.msra.mxu1 %v589_v27 }
  0x57   : > { %1069 = vmatprep.mubr.bf16.mxu0 %v1932_v39  ;;  %1110 = vmatprep.mubr.bf16.mxu1 %v1932_v39 }
  0x58   : > { %1133 = vmatprep.subr.bf16.mxu0 %v598_v28  ;;  %1174 = vmatprep.subr.bf16.mxu1 %v604_v29 }
  0x5d   : > { %1737 = vmatmul.mubr.msk.bf16.vlgmr.msra.gmra.mxu0 %vm514_vm2, %v2102_v53  ;;  %1738 = vmatmul.mubr.msk.bf16.vlgmr.msra.gmra.mxu1 %vm514_vm2, %v2102_v53 }
  0x5e   : > { %1134 = vmatpush1.bf16.msra.mxu0 %v595_v34  ;;  %1175 = vmatpush1.bf16.msra.mxu1 %v601_v35 }
  0x5f   : > { %1151 = vmatprep.mubr.bf16.mxu0 %v1932_v39  ;;  %1192 = vmatprep.mubr.bf16.mxu1 %v1932_v39 }
  0x60   : > { %1215 = vmatprep.subr.bf16.mxu0 %v610_v36  ;;  %1256 = vmatprep.subr.bf16.mxu1 %v616_v37 }
  0x65   : > { %1739 = vmatmul.mubr.msk.bf16.vlgmr.msra.gmra.mxu0 %vm514_vm2, %v2102_v53  ;;  %1740 = vmatmul.mubr.msk.bf16.vlgmr.msra.gmra.mxu1 %vm514_vm2, %v2102_v53 }
  0x66   : > { %1216 = vmatpush1.bf16.msra.mxu0 %v607_v43  ;;  %1257 = vmatpush1.bf16.msra.mxu1 %v613_v44 }
  0x67   : > { %1233 = vmatprep.mubr.bf16.mxu0 %v1932_v39  ;;  %1274 = vmatprep.mubr.bf16.mxu1 %v1932_v39 }
  0x68   : > { %1297 = vmatprep.subr.bf16.mxu0 %v622_v45  ;;  %1786 = vmatprep.subr.bf16.mxu1 %v1933_v48 }
  0x6d   : > { %1741 = vmatmul.mubr.msk.bf16.vlgmr.msra.gmra.mxu0 %vm514_vm2, %v2102_v53  ;;  %1742 = vmatmul.mubr.msk.bf16.vlgmr.msra.gmra.mxu1 %vm514_vm2, %v2102_v53 }
  0x6e   : > { %1298 = vmatpush1.bf16.msra.mxu0 %v619_v49  ;;  %1787 = vmatpush3.bf16.msra.mxu1 %v625_v50 }
  0x6f   : > { %1315 = vmatprep.mubr.bf16.mxu0 %v1932_v39  ;;  %1788 = vmatprep.mubr.msk.bf16.mxu1 %vm1934_vm3, %v1933_v48 }
  0x75   : > { %1743 = vmatmul.mubr.msk.bf16.vlgmr.msra.gmra.mxu0 %vm514_vm2, %v2102_v53  ;;  %1789 = vmatmul.mubr.msk.bf16.vlgmr.msra.gmra.mxu1 %vm514_vm2, %v2102_v53 }
  0xaa   : > { %v2214_v40 = vpop.permute.xlu0 %370 }
  0xf5   : > { %v661_v51 = vpop.f32.mrf.mxu0  ;;  %v702_v52 = vpop.f32.mrf.mxu1 }
  0xf6   : > { %v662_v54 = vadd.f32 %v661_v51, %v2214_v40  ;;  %v703_v55 = vadd.f32 %v702_v52, %v2214_v40 }
  0xf7   : > { %v663_v39 = vpop.f32.mrf.mxu0  ;;  %v704_v56 = vpop.f32.mrf.mxu1 }
  0xf8   : > { %v664_v57 = vadd.f32 %v663_v39, %v2214_v40  ;;  %v705_v58 = vadd.f32 %v704_v56, %v2214_v40  ;;  %v1366_v59 = vmax.f32 %v703_v55, 0.0  ;;  %v1364_v61 = vmax.f32 %v662_v54, 0.0 }
  0xf9   : > { %v665_v53 = vpop.f32.mrf.mxu0  ;;  %v706_v60 = vpop.f32.mrf.mxu1 }
  0xfa   : > { %v1365_v62 = vmax.f32 %v664_v57, 0.0  ;;  %v1367_v63 = vmax.f32 %v705_v58, 0.0 }
  0xfb   : > { %v666_v0 = vpop.f32.mrf.mxu0  ;;  %v707_v1 = vpop.f32.mrf.mxu1 }
  0xfc   : > { %v1766_v2 = vpack.c.bf16 %v1365_v62, %v1364_v61  ;;  %v1767_v3 = vpack.c.bf16 %v1367_v63, %v1366_v59 }
  0xfd   : > { %v743_v4 = vpop.f32.mrf.mxu0  ;;  %v784_v5 = vpop.f32.mrf.mxu1 }
  0xfe   : > { %1540 = vst [vmem:[%s2223_s12] sm:$0xff] %v1766_v2  ;;  %1541 = vst [vmem:[%s2223_s12 + $0x8] sm:$0xff] %v1767_v3  ;;  %v744_v6 = vadd.f32 %v743_v4, %v2214_v40  ;;  %v785_v7 = vadd.f32 %v784_v5, %v2214_v40 }
  0xff   : > { %v745_v8 = vpop.f32.mrf.mxu0  ;;  %v786_v9 = vpop.f32.mrf.mxu1 }
 0x100   : > { %v1370_v10 = vmax.f32 %v785_v7, 0.0  ;;  %v746_v11 = vadd.f32 %v745_v8, %v2214_v40  ;;  %v787_v12 = vadd.f32 %v786_v9, %v2214_v40  ;;  %v1368_v15 = vmax.f32 %v744_v6, 0.0 }
 0x101   : > { %v747_v13 = vpop.f32.mrf.mxu0  ;;  %v788_v14 = vpop.f32.mrf.mxu1 }
 0x102   : > { %v1369_v16 = vmax.f32 %v746_v11, 0.0  ;;  %v1371_v17 = vmax.f32 %v787_v12, 0.0 }
 0x103   : > { %v748_v18 = vpop.f32.mrf.mxu0  ;;  %v789_v19 = vpop.f32.mrf.mxu1 }
 0x104   : > { %v1768_v20 = vpack.c.bf16 %v1369_v16, %v1368_v15  ;;  %v1769_v21 = vpack.c.bf16 %v1371_v17, %v1370_v10 }
 0x105   : > { %v825_v22 = vpop.f32.mrf.mxu0  ;;  %v866_v23 = vpop.f32.mrf.mxu1 }
 0x106   : > { %1542 = vst [vmem:[%s2223_s12 + $0x10] sm:$0xff] %v1768_v20  ;;  %1543 = vst [vmem:[%s2223_s12 + $0x18] sm:$0xff] %v1769_v21  ;;  %v826_v24 = vadd.f32 %v825_v22, %v2214_v40  ;;  %v867_v25 = vadd.f32 %v866_v23, %v2214_v40 }
 0x107   : > { %v827_v26 = vpop.f32.mrf.mxu0  ;;  %v868_v27 = vpop.f32.mrf.mxu1 }
 0x108   : > { %v1374_v28 = vmax.f32 %v867_v25, 0.0  ;;  %v828_v29 = vadd.f32 %v827_v26, %v2214_v40  ;;  %v869_v30 = vadd.f32 %v868_v27, %v2214_v40  ;;  %v1372_v33 = vmax.f32 %v826_v24, 0.0 }
 0x109   : > { %v829_v31 = vpop.f32.mrf.mxu0  ;;  %v870_v32 = vpop.f32.mrf.mxu1 }
 0x10a   : > { %v1373_v34 = vmax.f32 %v828_v29, 0.0  ;;  %v1375_v35 = vmax.f32 %v869_v30, 0.0 }
 0x10b   : > { %v830_v36 = vpop.f32.mrf.mxu0  ;;  %v871_v37 = vpop.f32.mrf.mxu1 }
 0x10c   : > { %v1770_v38 = vpack.c.bf16 %v1373_v34, %v1372_v33  ;;  %v1771_v41 = vpack.c.bf16 %v1375_v35, %v1374_v28 }
 0x10d   : > { %v907_v42 = vpop.f32.mrf.mxu0  ;;  %v948_v43 = vpop.f32.mrf.mxu1 }
 0x10e   : > { %1544 = vst [vmem:[%s2223_s12 + $0x20] sm:$0xff] %v1770_v38  ;;  %1545 = vst [vmem:[%s2223_s12 + $0x28] sm:$0xff] %v1771_v41  ;;  %v908_v44 = vadd.f32 %v907_v42, %v2214_v40  ;;  %v949_v45 = vadd.f32 %v948_v43, %v2214_v40 }
 0x10f   : > { %v909_v46 = vpop.f32.mrf.mxu0  ;;  %v950_v47 = vpop.f32.mrf.mxu1 }
 0x110   : > { %v1378_v48 = vmax.f32 %v949_v45, 0.0  ;;  %v910_v49 = vadd.f32 %v909_v46, %v2214_v40  ;;  %v951_v50 = vadd.f32 %v950_v47, %v2214_v40  ;;  %v1376_v54 = vmax.f32 %v908_v44, 0.0 }
 0x111   : > { %v911_v51 = vpop.f32.mrf.mxu0  ;;  %v952_v52 = vpop.f32.mrf.mxu1 }
 0x112   : > { %v1377_v55 = vmax.f32 %v910_v49, 0.0  ;;  %v1379_v39 = vmax.f32 %v951_v50, 0.0 }
 0x113   : > { %v912_v56 = vpop.f32.mrf.mxu0  ;;  %v953_v57 = vpop.f32.mrf.mxu1 }
 0x114   : > { %v1772_v58 = vpack.c.bf16 %v1377_v55, %v1376_v54  ;;  %v1773_v59 = vpack.c.bf16 %v1379_v39, %v1378_v48 }
 0x115   : > { %v989_v53 = vpop.f32.mrf.mxu0  ;;  %v1030_v60 = vpop.f32.mrf.mxu1 }
 0x116   : > { %1546 = vst [vmem:[%s2223_s12 + $0x30] sm:$0xff] %v1772_v58  ;;  %1547 = vst [vmem:[%s2223_s12 + $0x38] sm:$0xff] %v1773_v59  ;;  %v990_v61 = vadd.f32 %v989_v53, %v2214_v40  ;;  %v1031_v62 = vadd.f32 %v1030_v60, %v2214_v40 }
 0x117   : > { %v991_v63 = vpop.f32.mrf.mxu0  ;;  %v1032_v0 = vpop.f32.mrf.mxu1 }
 0x118   : > { %v1382_v1 = vmax.f32 %v1031_v62, 0.0  ;;  %v992_v2 = vadd.f32 %v991_v63, %v2214_v40  ;;  %v1033_v3 = vadd.f32 %v1032_v0, %v2214_v40  ;;  %v1380_v6 = vmax.f32 %v990_v61, 0.0 }
 0x119   : > { %v993_v4 = vpop.f32.mrf.mxu0  ;;  %v1034_v5 = vpop.f32.mrf.mxu1 }
 0x11a   : > { %v1381_v7 = vmax.f32 %v992_v2, 0.0  ;;  %v1383_v8 = vmax.f32 %v1033_v3, 0.0 }
 0x11b   : > { %v994_v9 = vpop.f32.mrf.mxu0  ;;  %v1035_v10 = vpop.f32.mrf.mxu1 }
 0x11c   : > { %v1774_v11 = vpack.c.bf16 %v1381_v7, %v1380_v6  ;;  %v1775_v12 = vpack.c.bf16 %v1383_v8, %v1382_v1 }
 0x11d   : > { %v1071_v13 = vpop.f32.mrf.mxu0  ;;  %v1112_v14 = vpop.f32.mrf.mxu1 }
 0x11e   : > { %1548 = vst [vmem:[%s2223_s12 + $0x40] sm:$0xff] %v1774_v11  ;;  %1549 = vst [vmem:[%s2223_s12 + $0x48] sm:$0xff] %v1775_v12  ;;  %v1072_v15 = vadd.f32 %v1071_v13, %v2214_v40  ;;  %v1113_v16 = vadd.f32 %v1112_v14, %v2214_v40 }
 0x11f   : > { %v1073_v17 = vpop.f32.mrf.mxu0  ;;  %v1114_v18 = vpop.f32.mrf.mxu1 }
 0x120   : > { %v1386_v19 = vmax.f32 %v1113_v16, 0.0  ;;  %v1074_v20 = vadd.f32 %v1073_v17, %v2214_v40  ;;  %v1115_v21 = vadd.f32 %v1114_v18, %v2214_v40  ;;  %v1384_v24 = vmax.f32 %v1072_v15, 0.0 }
 0x121   : > { %v1075_v22 = vpop.f32.mrf.mxu0  ;;  %v1116_v23 = vpop.f32.mrf.mxu1 }
 0x122   : > { %v1385_v25 = vmax.f32 %v1074_v20, 0.0  ;;  %v1387_v26 = vmax.f32 %v1115_v21, 0.0 }
 0x123   : > { %v1076_v27 = vpop.f32.mrf.mxu0  ;;  %v1117_v28 = vpop.f32.mrf.mxu1 }
 0x124   : > { %v1776_v29 = vpack.c.bf16 %v1385_v25, %v1384_v24  ;;  %v1777_v30 = vpack.c.bf16 %v1387_v26, %v1386_v19 }
 0x125   : > { %v1153_v31 = vpop.f32.mrf.mxu0  ;;  %v1194_v32 = vpop.f32.mrf.mxu1 }
 0x126   : > { %1550 = vst [vmem:[%s2223_s12 + $0x50] sm:$0xff] %v1776_v29  ;;  %1551 = vst [vmem:[%s2223_s12 + $0x58] sm:$0xff] %v1777_v30  ;;  %v1154_v33 = vadd.f32 %v1153_v31, %v2214_v40  ;;  %v1195_v34 = vadd.f32 %v1194_v32, %v2214_v40 }
 0x127   : > { %v1155_v35 = vpop.f32.mrf.mxu0  ;;  %v1196_v36 = vpop.f32.mrf.mxu1 }
 0x128   : > { %v1390_v37 = vmax.f32 %v1195_v34, 0.0  ;;  %v1156_v38 = vadd.f32 %v1155_v35, %v2214_v40  ;;  %v1197_v41 = vadd.f32 %v1196_v36, %v2214_v40  ;;  %v1388_v44 = vmax.f32 %v1154_v33, 0.0 }
 0x129   : > { %v1157_v42 = vpop.f32.mrf.mxu0  ;;  %v1198_v43 = vpop.f32.mrf.mxu1 }
 0x12a   : > { %v1389_v45 = vmax.f32 %v1156_v38, 0.0  ;;  %v1391_v46 = vmax.f32 %v1197_v41, 0.0 }
 0x12b   : > { %v1158_v47 = vpop.f32.mrf.mxu0  ;;  %v1199_v48 = vpop.f32.mrf.mxu1 }
 0x12c   : > { %v1778_v49 = vpack.c.bf16 %v1389_v45, %v1388_v44  ;;  %v1779_v50 = vpack.c.bf16 %v1391_v46, %v1390_v37 }
 0x12d   : > { %v1235_v51 = vpop.f32.mrf.mxu0  ;;  %v1276_v52 = vpop.f32.mrf.mxu1 }
 0x12e   : > { %1552 = vst [vmem:[%s2223_s12 + $0x60] sm:$0xff] %v1778_v49  ;;  %1553 = vst [vmem:[%s2223_s12 + $0x68] sm:$0xff] %v1779_v50  ;;  %v1236_v54 = vadd.f32 %v1235_v51, %v2214_v40  ;;  %v1277_v55 = vadd.f32 %v1276_v52, %v2214_v40 }
 0x12f   : > { %v1237_v39 = vpop.f32.mrf.mxu0  ;;  %v1278_v56 = vpop.f32.mrf.mxu1 }
 0x130   : > { %v1394_v57 = vmax.f32 %v1277_v55, 0.0  ;;  %v1238_v58 = vadd.f32 %v1237_v39, %v2214_v40  ;;  %v1279_v59 = vadd.f32 %v1278_v56, %v2214_v40  ;;  %v1392_v61 = vmax.f32 %v1236_v54, 0.0 }
 0x131   : > { %v1239_v53 = vpop.f32.mrf.mxu0  ;;  %v1280_v60 = vpop.f32.mrf.mxu1 }
 0x132   : > { %v1393_v62 = vmax.f32 %v1238_v58, 0.0  ;;  %v1395_v63 = vmax.f32 %v1279_v59, 0.0 }
 0x133   : > { %v1240_v0 = vpop.f32.mrf.mxu0  ;;  %v1281_v1 = vpop.f32.mrf.mxu1 }
 0x134   : > { %v1780_v2 = vpack.c.bf16 %v1393_v62, %v1392_v61  ;;  %v1781_v3 = vpack.c.bf16 %v1395_v63, %v1394_v57 }
 0x135   : > { %v1317_v4 = vpop.f32.mrf.mxu0  ;;  %v1358_v5 = vpop.f32.mrf.mxu1 }
 0x136   : > { %1554 = vst [vmem:[%s2223_s12 + $0x70] sm:$0xff] %v1780_v2  ;;  %1555 = vst [vmem:[%s2223_s12 + $0x78] sm:$0xff] %v1781_v3  ;;  %v1318_v6 = vadd.f32 %v1317_v4, %v2214_v40  ;;  %v1359_v7 = vadd.f32 %v1358_v5, %v2214_v40 }
 0x137   : > { %v1319_v8 = vpop.f32.mrf.mxu0  ;;  %v1790_v9 = vpop.f32.mrf.mxu1 }
 0x138   : > { %v1398_v10 = vmax.f32 %v1359_v7, 0.0  ;;  %v1320_v11 = vadd.f32 %v1319_v8, %v2214_v40  ;;  %v1396_v14 = vmax.f32 %v1318_v6, 0.0 }
 0x139   : > { %v1321_v12 = vpop.f32.mrf.mxu0  ;;  %v1361_v13 = vpop.f32.mrf.mxu1 }
 0x13a   : > { %v1783_v15 = vpack.c.bf16 %v1398_v10, %v1398_v10  ;;  %v1397_v16 = vmax.f32 %v1320_v11, 0.0 }
 0x13b   : > { %v1322_v17 = vpop.f32.mrf.mxu0  ;;  %v1791_v18 = vpop.f32.mrf.mxu1 }
 0x13c   : > { %1557 = vst [vmem:[%s2223_s12 + $0x88] sm:$0xf] %v1783_v15  ;;  %v1782_v19 = vpack.c.bf16 %v1397_v16, %v1396_v14 }
 0x13e   : > { %1556 = vst [vmem:[%s2223_s12 + $0x80] sm:$0xff] %v1782_v19 }
 0x13f PF: > { %s13_s16 = sadd.s32 1, %s1929_s16   ;;  %s2293_s12 = smov %s1917_s13 }
 0x140   : > { %p10_p10 = scmp.ge.s32.totalorder %s13_s16, 21   ;;  %s2294_s13 = smov %s1990_s20 }
 0x141   : > { %s2295_s14 = smov %s1925_s15  ;;  %s2296_s15 = smov %s2298_s17 }
 0x142   :  { %12 = sbr.rel (!%p10_p10) target bundleno = 3 (0x3), region = 105 }

// kernel: feature_extractor_forward.4
= control target key start
LH: loop header
LB: loop body
LE: loop exit
PB: predicated region body
PF: predicated region fallthrough
CT: control target
= control target key end

     0   :  { %v4992_v1 = vmov 0   ;;  %vm2182_vm0 = vcmask 1043456   ;;  %vm2169_vm1 = vcmask 195584   ;;  %s7172_s1 = inlined_call_operand.vmem [shape: bf16[280,2432], index: 1, kind: input, shape index: {}]   ;;  %s7173_s0 = inlined_call_operand.vmem [shape: bf16[64,280], index: 0, kind: input, shape index: {}]   ;;  %s7174_s2 = inlined_call_operand.vmem [shape: f32[64,1], index: 2, kind: input, shape index: {}]   ;;  %s7175_s3 = inlined_call_operand.vmem [shape: f32[64,2432], index: 3, kind: output, shape index: {}]  }
   0x1   :  { %v4457_v0 = vld [vmem:[%s7172_s1 + $0x42c] ss:$76 sps:$4 sm:$0xff]   ;;  %2345 = vmatprep.mubr.bf16.mxu1 %v4992_v1  ;;  %4455 = vset.pattern.permute.xlu0 %v4992_v1  ;;  %v4460_v3 = vld [vmem:[%s7172_s1 + $0x428] ss:$76 sps:$4 sm:$0xff]   ;;  %v4464_v7 = vld [vmem:[%s7172_s1 + $0x984] ss:$76 sps:$4 sm:$0xff]  }
   0x2   :  { %v371_v2 = vld [vmem:[%s7172_s1 + $0xa18] sm:$0xff]  ;;  %4456 = vset.pattern.permute.xlu1 %v4992_v1  ;;  %2240 = vmatprep.subr.bf16.mxu0 %v4457_v0  ;;  %v4462_v6 = vld [vmem:[%s7172_s1 + $0x394] ss:$76 sps:$4 sm:$0xff]   ;;  %v4475_v15 = vld [vmem:[%s7172_s1 + $0x264] ss:$76 sps:$4 sm:$0xff]  }
   0x3   :  { %v4328_v4 = vcombine.high %v371_v2, %v371_v2  ;;  %v4327_v5 = vcombine.low %v371_v2, %v371_v2  ;;  %2241 = vmatpush1.bf16.msra.mxu0 %v4460_v3  ;;  %v4466_v8 = vld [vmem:[%s7172_s1 + $0x390] ss:$76 sps:$4 sm:$0xff]   ;;  %v4467_v10 = vld [vmem:[%s7172_s1 + $0x980] ss:$76 sps:$4 sm:$0xff]   ;;  %v4473_v13 = vld [vmem:[%s7172_s1 + $0x2f8] ss:$76 sps:$4 sm:$0xff]  }
   0x4   :  { %2242 = vmatprep.subr.bf16.mxu0 %v4462_v6  ;;  %v4468_v11 = vld [vmem:[%s7172_s1 + $0x2fc] ss:$76 sps:$4 sm:$0xff]   ;;  %v4472_v12 = vld [vmem:[%s7172_s1 + $0x434] ss:$76 sps:$4 sm:$0xff]   ;;  %v4481_v19 = vld [vmem:[%s7172_s1 + $0x1cc] ss:$76 sps:$4 sm:$0xff]  }
   0x5   :  { %4346 = vmatprep.subr.msk.bf16.mxu1 %vm2182_vm0, %v4328_v4  ;;  %v2184_v9 = vsel %vm2182_vm0, %v4327_v5, 0  ;;  %v5051_v14 = vld [vmem:[%s7173_s0 + $0x8] ss:$12 sps:$4 sm:$0xff]   ;;  %v4470_v16 = vld [vmem:[%s7172_s1 + $0x430] ss:$76 sps:$4 sm:$0xff]   ;;  %v372_v6 = vld [vmem:[%s7172_s1 + $0xa20] sm:$0xff] }
   0x6   :  { %2326 = vmatpush1.bf16.msra.mxu1 %v2184_v9  ;;  %v4479_v17 = vld [vmem:[%s7172_s1 + $0x39c] ss:$76 sps:$4 sm:$0xff]   ;;  %v4480_v18 = vld [vmem:[%s7172_s1 + $0x260] ss:$76 sps:$4 sm:$0xff]   ;;  %v4477_v20 = vld [vmem:[%s7172_s1 + $0x398] ss:$76 sps:$4 sm:$0xff]   ;;  %v4330_v9 = vcombine.high %v372_v6, %v372_v6 }
   0x7   :  { %2327 = vmatprep.subr.bf16.mxu1 %v4464_v7  ;;  %2243 = vmatpush1.bf16.msra.mxu0 %v4466_v8  ;;  %v4485_v21 = vld [vmem:[%s7172_s1 + $0x304] ss:$76 sps:$4 sm:$0xff]   ;;  %v4486_v22 = vld [vmem:[%s7172_s1 + $0x1c8] ss:$76 sps:$4 sm:$0xff]   ;;  %v4483_v24 = vld [vmem:[%s7172_s1 + $0x300] ss:$76 sps:$4 sm:$0xff]  }
   0x8   :  { %2244 = vmatprep.subr.bf16.mxu0 %v4468_v11  ;;  %v4487_v23 = vld [vmem:[%s7172_s1 + $0x134] ss:$76 sps:$4 sm:$0xff]   ;;  %v4491_v25 = vld [vmem:[%s7172_s1 + $0x26c] ss:$76 sps:$4 sm:$0xff]   ;;  %v4492_v26 = vld [vmem:[%s7172_s1 + $0x130] ss:$76 sps:$4 sm:$0xff]  }
   0x9   :  { %v4493_v27 = vld [vmem:[%s7172_s1 + $0x9c] ss:$76 sps:$4 sm:$0xff]   ;;  %v4497_v29 = vld [vmem:[%s7172_s1 + $0x1d4] ss:$76 sps:$4 sm:$0xff]   ;;  %v4498_v30 = vld [vmem:[%s7172_s1 + $0x98] ss:$76 sps:$4 sm:$0xff]  }
   0xa   :  { %2328 = vmatpush1.bf16.msra.mxu1 %v4467_v10  ;;  %v4489_v28 = vld [vmem:[%s7172_s1 + $0x268] ss:$76 sps:$4 sm:$0xff]   ;;  %v4499_v31 = vld [vmem:[%s7172_s1 + $0x4] ss:$76 sps:$4 sm:$0xff]   ;;  %v4504_v34 = vld [vmem:[%s7172_s1] ss:$76 sps:$4 sm:$0xff]   ;;  %v4329_v10 = vcombine.low %v372_v6, %v372_v6 }
   0xb   :  { %2386 = vmatprep.subr.bf16.mxu1 %v4472_v12  ;;  %2245 = vmatpush1.bf16.msra.mxu0 %v4473_v13  ;;  %v4495_v32 = vld [vmem:[%s7172_s1 + $0x1d0] ss:$76 sps:$4 sm:$0xff]   ;;  %v4505_v35 = vld [vmem:[%s7172_s1 + $0x8ec] ss:$76 sps:$4 sm:$0xff]   ;;  %v4510_v38 = vld [vmem:[%s7172_s1 + $0x8e8] ss:$76 sps:$4 sm:$0xff]  }
   0xc   :  { %2246 = vmatprep.subr.bf16.mxu0 %v4475_v15  ;;  %v4503_v33 = vld [vmem:[%s7172_s1 + $0x13c] ss:$76 sps:$4 sm:$0xff]   ;;  %v4501_v36 = vld [vmem:[%s7172_s1 + $0x138] ss:$76 sps:$4 sm:$0xff]   ;;  %v4511_v39 = vld [vmem:[%s7172_s1 + $0x854] ss:$76 sps:$4 sm:$0xff]  }
   0xd   :  { %4347 = vmatmul.mubr.msk.bf16.vlgmr.msra.gmra.mxu1 %vm2169_vm1, %v5051_v14  ;;  %v4509_v37 = vld [vmem:[%s7172_s1 + $0xa4] ss:$76 sps:$4 sm:$0xff]   ;;  %v4507_v40 = vld [vmem:[%s7172_s1 + $0xa0] ss:$76 sps:$4 sm:$0xff]   ;;  %v4517_v44 = vld [vmem:[%s7172_s1 + $0x7bc] ss:$76 sps:$4 sm:$0xff]  }
   0xe   :  { %2387 = vmatpush1.bf16.msra.mxu1 %v4470_v16  ;;  %2355 = vmatprep.mubr.bf16.mxu1 %v4992_v1  ;;  %v4515_v41 = vld [vmem:[%s7172_s1 + $0xc] ss:$76 sps:$4 sm:$0xff]   ;;  %v4516_v42 = vld [vmem:[%s7172_s1 + $0x850] ss:$76 sps:$4 sm:$0xff]   ;;  %v4513_v45 = vld [vmem:[%s7172_s1 + $0x8] ss:$76 sps:$4 sm:$0xff]  }
   0xf   :  { %2388 = vmatprep.subr.bf16.mxu1 %v4479_v17  ;;  %2247 = vmatpush1.bf16.msra.mxu0 %v4480_v18  ;;  %v5143_v43 = vld [vmem:[%s7173_s0 + $0x20] ss:$12 sps:$4 sm:$0xff]   ;;  %v4522_v47 = vld [vmem:[%s7172_s1 + $0x7b8] ss:$76 sps:$4 sm:$0xff]   ;;  %v4519_v48 = vld [vmem:[%s7172_s1 + $0x8f0] ss:$76 sps:$4 sm:$0xff]  }
  0x10   :  { %2248 = vmatprep.subr.bf16.mxu0 %v4481_v19  ;;  %v4521_v46 = vld [vmem:[%s7172_s1 + $0x8f4] ss:$76 sps:$4 sm:$0xff]   ;;  %v4523_v49 = vld [vmem:[%s7172_s1 + $0x724] ss:$76 sps:$4 sm:$0xff]   ;;  %v4527_v50 = vld [vmem:[%s7172_s1 + $0x85c] ss:$76 sps:$4 sm:$0xff]  }
  0x11   :  { %v5172_v51 = vld [vmem:[%s7173_s0 + $0x38] ss:$12 sps:$4 sm:$0xff]   ;;  %v4528_v52 = vld [vmem:[%s7172_s1 + $0x720] ss:$76 sps:$4 sm:$0xff]   ;;  %v4534_v57 = vld [vmem:[%s7172_s1 + $0x688] ss:$76 sps:$4 sm:$0xff]  }
  0x12   :  { %2389 = vmatpush1.bf16.msra.mxu1 %v4477_v20  ;;  %v4529_v53 = vld [vmem:[%s7172_s1 + $0x68c] ss:$76 sps:$4 sm:$0xff]   ;;  %v5186_v55 = vld [vmem:[%s7173_s0 + $0x4] ss:$12 sps:$4 sm:$0xff]   ;;  %v4536_v58 = vld [vmem:[%s7172_s1 + $0x5f4] ss:$76 sps:$4 sm:$0xff]  }
  0x13   :  { %2390 = vmatprep.subr.bf16.mxu1 %v4485_v21  ;;  %2249 = vmatpush1.bf16.msra.mxu0 %v4486_v22  ;;  %v4525_v54 = vld [vmem:[%s7172_s1 + $0x858] ss:$76 sps:$4 sm:$0xff]   ;;  %v4531_v59 = vld [vmem:[%s7172_s1 + $0x7c0] ss:$76 sps:$4 sm:$0xff]   ;;  %v5210_v61 = vld [vmem:[%s7173_s0 + $0x50] ss:$12 sps:$4 sm:$0xff]  }
  0x14   :  { %2250 = vmatprep.subr.bf16.mxu0 %v4487_v23  ;;  %v4533_v56 = vld [vmem:[%s7172_s1 + $0x7c4] ss:$76 sps:$4 sm:$0xff]   ;;  %2272 = vmatprep.mubr.bf16.mxu0 %v5186_v55  ;;  %v4540_v60 = vld [vmem:[%s7172_s1 + $0x72c] ss:$76 sps:$4 sm:$0xff]   ;;  %v4542_v63 = vld [vmem:[%s7172_s1 + $0x55c] ss:$76 sps:$4 sm:$0xff]  }
  0x15   :  { %4348 = vmatmul.mubr.msk.bf16.gmra.mxu1 %vm2169_vm1, %v5143_v43  ;;  %v4541_v62 = vld [vmem:[%s7172_s1 + $0x5f0] ss:$76 sps:$4 sm:$0xff]   ;;  %v4538_v0 = vld [vmem:[%s7172_s1 + $0x728] ss:$76 sps:$4 sm:$0xff]   ;;  %v4547_v3 = vld [vmem:[%s7172_s1 + $0x558] ss:$76 sps:$4 sm:$0xff]  }
  0x16   :  { %2391 = vmatpush1.bf16.msra.mxu1 %v4483_v24  ;;  %2365 = vmatprep.mubr.bf16.mxu1 %v4992_v1  ;;  %v4546_v2 = vld [vmem:[%s7172_s1 + $0x694] ss:$76 sps:$4 sm:$0xff]   ;;  %v4549_v4 = vld [vmem:[%s7172_s1 + $0x4c4] ss:$76 sps:$4 sm:$0xff]   ;;  %v4553_v7 = vld [vmem:[%s7172_s1 + $0x5fc] ss:$76 sps:$4 sm:$0xff]  }
  0x17   :  { %2392 = vmatprep.subr.bf16.mxu1 %v4491_v25  ;;  %2251 = vmatpush1.bf16.msra.mxu0 %v4492_v26  ;;  %v4544_v5 = vld [vmem:[%s7172_s1 + $0x690] ss:$76 sps:$4 sm:$0xff]   ;;  %v4554_v8 = vld [vmem:[%s7172_s1 + $0x4c0] ss:$76 sps:$4 sm:$0xff]   ;;  %v4551_v11 = vld [vmem:[%s7172_s1 + $0x5f8] ss:$76 sps:$4 sm:$0xff]  }
  0x18   :  { %2252 = vmatprep.subr.bf16.mxu0 %v4493_v27  ;;  %v5251_v12 = vld [vmem:[%s7173_s0] ss:$12 sps:$4 sm:$0xff]   ;;  %v4560_v13 = vld [vmem:[%s7172_s1 + $0x564] ss:$76 sps:$4 sm:$0xff]   ;;  %v5259_v15 = vld [vmem:[%s7173_s0 + $0x1c] ss:$12 sps:$4 sm:$0xff]  }
  0x19   :  { %v4558_v16 = vld [vmem:[%s7172_s1 + $0x560] ss:$76 sps:$4 sm:$0xff]   ;;  %v2190_v17 = vsel %vm2182_vm0, %v4329_v10, 0  ;;  %v4579_v21 = vld [vmem:[%s7172_s1 + $0x988] ss:$76 sps:$4 sm:$0xff]  }
  0x1a   :  { %2393 = vmatpush1.bf16.msra.mxu1 %v4489_v28  ;;  %v4581_v18 = vld [vmem:[%s7172_s1 + $0x98c] ss:$76 sps:$4 sm:$0xff]   ;;  %v4564_v22 = vld [vmem:[%s7172_s1 + $0x4c8] ss:$76 sps:$4 sm:$0xff]   ;;  %v4575_v28 = vld [vmem:[%s7172_s1 + $0x3a4] ss:$76 sps:$4 sm:$0xff]  }
  0x1b   :  { %2394 = vmatprep.subr.bf16.mxu1 %v4497_v29  ;;  %2253 = vmatpush1.bf16.msra.mxu0 %v4498_v30  ;;  %v5272_v19 = vld [vmem:[%s7172_s1 + $0xa28] sm:$0xff]  ;;  %v5290_v24 = vld [vmem:[%s7173_s0 + $0x18] ss:$12 sps:$4 sm:$0xff]   ;;  %v5298_v26 = vld [vmem:[%s7173_s0 + $0x34] ss:$12 sps:$4 sm:$0xff]  }
  0x1c   :  { %2254 = vmatprep.subr.bf16.mxu0 %v4499_v31  ;;  %v4566_v20 = vld [vmem:[%s7172_s1 + $0x4cc] ss:$76 sps:$4 sm:$0xff]   ;;  %v4332_v23 = vcombine.high %v5272_v19, %v5272_v19  ;;  %v4572_v25 = vld [vmem:[%s7172_s1 + $0x43c] ss:$76 sps:$4 sm:$0xff]  }
  0x1d   :  { %4349 = vmatmul.mubr.msk.bf16.gmra.mxu1 %vm2169_vm1, %v5172_v51  ;;  %v4570_v27 = vld [vmem:[%s7172_s1 + $0x438] ss:$76 sps:$4 sm:$0xff]   ;;  %v4573_v29 = vld [vmem:[%s7172_s1 + $0x3a0] ss:$76 sps:$4 sm:$0xff]   ;;  %v5316_v30 = vld [vmem:[%s7173_s0 + $0x30] ss:$12 sps:$4 sm:$0xff]  }
  0x1e   :  { %2395 = vmatpush1.bf16.msra.mxu1 %v4495_v32  ;;  %2375 = vmatprep.mubr.bf16.mxu1 %v4992_v1  ;;  %v4584_v31 = vld [vmem:[%s7172_s1 + $0x30c] ss:$76 sps:$4 sm:$0xff]   ;;  %v4617_v6 = vld [vmem:[%s7172_s1 + $0x730] ss:$76 sps:$4 sm:$0xff]  }
  0x1f   :  { %2396 = vmatprep.subr.bf16.mxu1 %v4503_v33  ;;  %2255 = vmatpush1.bf16.msra.mxu0 %v4504_v34  ;;  %v5325_v32 = vld [vmem:[%s7173_s0 + $0x4c] ss:$12 sps:$4 sm:$0xff]   ;;  %v4582_v33 = vld [vmem:[%s7172_s1 + $0x308] ss:$76 sps:$4 sm:$0xff]   ;;  %v381_v34 = vld [vmem:[%s7174_s2] sm:$0xff] }
  0x20   :  { %2256 = vmatprep.subr.bf16.mxu0 %v4505_v35  ;;  %v4587_v35 = vld [vmem:[%s7172_s1 + $0x274] ss:$76 sps:$4 sm:$0xff]   ;;  %391 = vperm.xlu0 %4455, %v381_v34   ;;  %v4672_v34 = vld [vmem:[%s7172_s1 + $0x44c] ss:$76 sps:$4 sm:$0xff]  }
  0x21   :  { %v4623_v10 = vld [vmem:[%s7172_s1 + $0x600] ss:$76 sps:$4 sm:$0xff]  }
  0x22   :  { %2397 = vmatpush1.bf16.msra.mxu1 %v4501_v36  ;;  %v382_v36 = vld [vmem:[%s7174_s2 + $0x8] sm:$0xff] }
  0x23   :  { %2398 = vmatprep.subr.bf16.mxu1 %v4509_v37  ;;  %2257 = vmatpush2.bf16.msra.mxu0 %v4510_v38  ;;  %v383_v37 = vld [vmem:[%s7174_s2 + $0x10] sm:$0xff] }
  0x24   :  { %2258 = vmatprep.subr.bf16.mxu0 %v4511_v39  ;;  %v4585_v38 = vld [vmem:[%s7172_s1 + $0x270] ss:$76 sps:$4 sm:$0xff]   ;;  %v5351_v39 = vld [vmem:[%s7173_s0 + $0x48] ss:$12 sps:$4 sm:$0xff]   ;;  %401 = vperm.xlu1 %4456, %v383_v37  }
  0x25   :  { %4350 = vmatmul.mubr.msk.bf16.gmra.mxu1 %vm2169_vm1, %v5210_v61  ;;  %396 = vperm.xlu0 %4455, %v382_v36   ;;  %v4649_v36 = vld [vmem:[%s7172_s1 + $0x14c] ss:$76 sps:$4 sm:$0xff]   ;;  %v4647_v37 = vld [vmem:[%s7172_s1 + $0x148] ss:$76 sps:$4 sm:$0xff]  }
  0x26   :  { %2399 = vmatpush1.bf16.msra.mxu1 %v4507_v40  ;;  %2418 = vmatprep.mubr.bf16.mxu1 %v5186_v55  ;;  %v4593_v40 = vld [vmem:[%s7172_s1 + $0x1dc] ss:$76 sps:$4 sm:$0xff]  }
  0x27   :  { %2400 = vmatprep.subr.bf16.mxu1 %v4515_v41  ;;  %2259 = vmatpush2.bf16.msra.mxu0 %v4516_v42  ;;  %v384_v41 = vld [vmem:[%s7174_s2 + $0x18] sm:$0xff] }
  0x28   :  { %2260 = vmatprep.subr.bf16.mxu0 %v4517_v44  ;;  %v4591_v42 = vld [vmem:[%s7172_s1 + $0x1d8] ss:$76 sps:$4 sm:$0xff]   ;;  %406 = vperm.xlu1 %4456, %v384_v41  }
  0x29   :  { %v385_v44 = vld [vmem:[%s7174_s2 + $0x20] sm:$0xff] }
  0x2a   :  { %2401 = vmatpush1.bf16.msra.mxu1 %v4513_v45  ;;  %v4596_v45 = vld [vmem:[%s7172_s1 + $0x144] ss:$76 sps:$4 sm:$0xff]   ;;  %411 = vperm.xlu0 %4455, %v385_v44   ;;  %v4658_v44 = vld [vmem:[%s7172_s1 + $0x900] ss:$76 sps:$4 sm:$0xff]  }
  0x2b   :  { %2402 = vmatprep.subr.bf16.mxu1 %v4521_v46  ;;  %2261 = vmatpush2.bf16.msra.mxu0 %v4522_v47  ;;  %v4594_v46 = vld [vmem:[%s7172_s1 + $0x140] ss:$76 sps:$4 sm:$0xff]   ;;  %v4331_v47 = vcombine.low %v5272_v19, %v5272_v19  ;;  %v4655_v41 = vld [vmem:[%s7172_s1 + $0x18] ss:$76 sps:$4 sm:$0xff]  }
  0x2c   :  { %2262 = vmatprep.subr.bf16.mxu0 %v4523_v49  ;;  %v387_v49 = vld [vmem:[%s7174_s2 + $0x30] sm:$0xff] }
  0x2d   :  { %v4637_v19 = vld [vmem:[%s7172_s1 + $0x4d4] ss:$76 sps:$4 sm:$0xff]  }
  0x2e   :  { %2403 = vmatpush2.bf16.msra.mxu1 %v4519_v48  ;;  %v386_v48 = vld [vmem:[%s7174_s2 + $0x28] sm:$0xff]  ;;  %421 = vperm.xlu0 %4455, %v387_v49   ;;  %v4673_v49 = vld [vmem:[%s7172_s1 + $0x738] ss:$76 sps:$4 sm:$0xff]  }
  0x2f   :  { %2404 = vmatprep.subr.bf16.mxu1 %v4527_v50  ;;  %2263 = vmatpush2.bf16.msra.mxu0 %v4528_v52  ;;  %v4599_v50 = vld [vmem:[%s7172_s1 + $0xac] ss:$76 sps:$4 sm:$0xff]   ;;  %v2196_v52 = vsel %vm2182_vm0, %v4331_v47, 0  ;;  %v4670_v47 = vld [vmem:[%s7172_s1 + $0x448] ss:$76 sps:$4 sm:$0xff]  }
  0x30   :  { %2264 = vmatprep.subr.bf16.mxu0 %v4529_v53  ;;  %416 = vperm.xlu1 %4456, %v386_v48   ;;  %v4616_v53 = vld [vmem:[%s7172_s1 + $0x994] ss:$76 sps:$4 sm:$0xff]   ;;  %v4675_v48 = vld [vmem:[%s7172_s1 + $0x73c] ss:$76 sps:$4 sm:$0xff]  }
  0x32   :  { %2405 = vmatpush2.bf16.msra.mxu1 %v4525_v54  ;;  %v4597_v54 = vld [vmem:[%s7172_s1 + $0xa8] ss:$76 sps:$4 sm:$0xff]  }
  0x33   :  { %2406 = vmatprep.subr.bf16.mxu1 %v4533_v56  ;;  %2265 = vmatpush2.bf16.msra.mxu0 %v4534_v57  ;;  %v4604_v56 = vld [vmem:[%s7172_s1 + $0x14] ss:$76 sps:$4 sm:$0xff]   ;;  %v4614_v57 = vld [vmem:[%s7172_s1 + $0x990] ss:$76 sps:$4 sm:$0xff]  }
  0x34   :  { %2266 = vmatprep.subr.bf16.mxu0 %v4536_v58  ;;  %v388_v58 = vld [vmem:[%s7174_s2 + $0x38] sm:$0xff] }
  0x35   :  { %426 = vperm.xlu1 %4456, %v388_v58   ;;  %v4682_v58 = vld [vmem:[%s7172_s1 + $0x318] ss:$76 sps:$4 sm:$0xff]  }
  0x36   :  { %2407 = vmatpush2.bf16.msra.mxu1 %v4531_v59  ;;  %v4628_v59 = vld [vmem:[%s7172_s1 + $0x444] ss:$76 sps:$4 sm:$0xff]  }
  0x37   :  { %2408 = vmatprep.subr.bf16.mxu1 %v4540_v60  ;;  %2267 = vmatpush2.bf16.msra.mxu0 %v4541_v62  ;;  %v4602_v60 = vld [vmem:[%s7172_s1 + $0x10] ss:$76 sps:$4 sm:$0xff]  }
  0x38   :  { %2268 = vmatprep.subr.bf16.mxu0 %v4542_v63  ;;  %v4607_v62 = vld [vmem:[%s7172_s1 + $0x8fc] ss:$76 sps:$4 sm:$0xff]   ;;  %v4605_v63 = vld [vmem:[%s7172_s1 + $0x8f8] ss:$76 sps:$4 sm:$0xff]  }
  0x3a   :  { %2409 = vmatpush2.bf16.msra.mxu1 %v4538_v0  ;;  %v4610_v0 = vld [vmem:[%s7172_s1 + $0x864] ss:$76 sps:$4 sm:$0xff]  }
  0x3b   :  { %2410 = vmatprep.subr.bf16.mxu1 %v4546_v2  ;;  %2269 = vmatpush2.bf16.msra.mxu0 %v4547_v3  ;;  %v4608_v2 = vld [vmem:[%s7172_s1 + $0x860] ss:$76 sps:$4 sm:$0xff]  }
  0x3c   :  { %2270 = vmatprep.subr.bf16.mxu0 %v4549_v4  ;;  %v4613_v3 = vld [vmem:[%s7172_s1 + $0x7cc] ss:$76 sps:$4 sm:$0xff]   ;;  %v4611_v4 = vld [vmem:[%s7172_s1 + $0x7c8] ss:$76 sps:$4 sm:$0xff]  }
  0x3e   :  { %2411 = vmatpush2.bf16.msra.mxu1 %v4544_v5  ;;  %v4619_v5 = vld [vmem:[%s7172_s1 + $0x734] ss:$76 sps:$4 sm:$0xff]  }
  0x3f   :  { %2412 = vmatprep.subr.bf16.mxu1 %v4553_v7  ;;  %2271 = vmatpush2.bf16.msra.mxu0 %v4554_v8  ;;  %v4622_v7 = vld [vmem:[%s7172_s1 + $0x69c] ss:$76 sps:$4 sm:$0xff]   ;;  %v4620_v8 = vld [vmem:[%s7172_s1 + $0x698] ss:$76 sps:$4 sm:$0xff]  }
  0x40   :  { %4351 = vmatprep.subr.msk.bf16.mxu0 %vm2182_vm0, %v4330_v9  ;;  %v4625_v9 = vld [vmem:[%s7172_s1 + $0x604] ss:$76 sps:$4 sm:$0xff]  }
  0x42   :  { %2413 = vmatpush2.bf16.msra.mxu1 %v4551_v11  ;;  %2273 = vmatmul.mubr.bf16.vlgmr.msra.gmra.mxu0 %v5251_v12  ;;  %v4631_v11 = vld [vmem:[%s7172_s1 + $0x56c] ss:$76 sps:$4 sm:$0xff]  }
  0x43   :  { %2414 = vmatprep.subr.bf16.mxu1 %v4560_v13  ;;  %2472 = vmatpush1.bf16.msra.mxu0 %v2190_v17  ;;  %v4626_v13 = vld [vmem:[%s7172_s1 + $0x440] ss:$76 sps:$4 sm:$0xff]   ;;  %v4629_v17 = vld [vmem:[%s7172_s1 + $0x568] ss:$76 sps:$4 sm:$0xff]  }
  0x44   :  { %2282 = vmatprep.mubr.bf16.mxu0 %v5259_v15  ;;  %2473 = vmatprep.subr.bf16.mxu0 %v4581_v18  ;;  %v4632_v18 = vld [vmem:[%s7172_s1 + $0x3a8] ss:$76 sps:$4 sm:$0xff]  }
  0x46   :  { %2415 = vmatpush2.bf16.msra.mxu1 %v4558_v16  ;;  %v4634_v16 = vld [vmem:[%s7172_s1 + $0x3ac] ss:$76 sps:$4 sm:$0xff]  }
  0x47   :  { %2416 = vmatprep.subr.bf16.mxu1 %v4566_v20  ;;  %2474 = vmatpush1.bf16.msra.mxu0 %v4579_v21  ;;  %v374_v20 = vld [vmem:[%s7172_s1 + $0xa30] sm:$0xff] }
  0x48   :  { %4356 = vmatprep.subr.msk.bf16.mxu0 %vm2182_vm0, %v4332_v23  ;;  %v4635_v21 = vld [vmem:[%s7172_s1 + $0x4d0] ss:$76 sps:$4 sm:$0xff]   ;;  %v4333_v23 = vcombine.low %v374_v20, %v374_v20 }
  0x4a   :  { %2417 = vmatpush2.bf16.msra.mxu1 %v4564_v22  ;;  %2283 = vmatmul.mubr.bf16.gmra.mxu0 %v5290_v24  ;;  %v4334_v22 = vcombine.high %v374_v20, %v374_v20  ;;  %v4703_v20 = vld [vmem:[%s7172_s1 + $0xb8] ss:$76 sps:$4 sm:$0xff]  }
  0x4b   :  { %2532 = vmatprep.subr.bf16.mxu1 %v4572_v25  ;;  %2292 = vmatprep.mubr.bf16.mxu0 %v5298_v26  ;;  %v4638_v25 = vld [vmem:[%s7172_s1 + $0x310] ss:$76 sps:$4 sm:$0xff]  }
  0x4d   :  { %2419 = vmatmul.mubr.bf16.vlgmr.msra.gmra.mxu1 %v5251_v12 }
  0x4e   :  { %2533 = vmatpush1.bf16.msra.mxu1 %v4570_v27  ;;  %2428 = vmatprep.mubr.bf16.mxu1 %v5259_v15  ;;  %v4643_v27 = vld [vmem:[%s7172_s1 + $0x27c] ss:$76 sps:$4 sm:$0xff]  }
  0x4f   :  { %2534 = vmatprep.subr.bf16.mxu1 %v4575_v28  ;;  %v2202_v28 = vsel %vm2182_vm0, %v4333_v23, 0  ;;  %v4713_v23 = vld [vmem:[%s7172_s1 + $0x90c] ss:$76 sps:$4 sm:$0xff]  }
  0x52   :  { %2535 = vmatpush1.bf16.msra.mxu1 %v4573_v29  ;;  %2293 = vmatmul.mubr.bf16.gmra.mxu0 %v5316_v30  ;;  %v4666_v29 = vld [vmem:[%s7172_s1 + $0x99c] ss:$76 sps:$4 sm:$0xff]  }
  0x53   :  { %2536 = vmatprep.subr.bf16.mxu1 %v4584_v31  ;;  %2302 = vmatprep.mubr.bf16.mxu0 %v5325_v32  ;;  %v4641_v31 = vld [vmem:[%s7172_s1 + $0x278] ss:$76 sps:$4 sm:$0xff]  }
  0x55   :  { %2429 = vmatmul.mubr.bf16.gmra.mxu1 %v5290_v24 }
  0x56   :  { %2537 = vmatpush1.bf16.msra.mxu1 %v4582_v33  ;;  %2438 = vmatprep.mubr.bf16.mxu1 %v5298_v26  ;;  %v4646_v33 = vld [vmem:[%s7172_s1 + $0x1e4] ss:$76 sps:$4 sm:$0xff]  }
  0x57   :  { %2538 = vmatprep.subr.bf16.mxu1 %v4587_v35  ;;  %v4644_v35 = vld [vmem:[%s7172_s1 + $0x1e0] ss:$76 sps:$4 sm:$0xff]  }
  0x5a   :  { %2539 = vmatpush1.bf16.msra.mxu1 %v4585_v38  ;;  %2303 = vmatmul.mubr.bf16.gmra.mxu0 %v5351_v39  ;;  %v4654_v38 = vld [vmem:[%s7172_s1 + $0xb4] ss:$76 sps:$4 sm:$0xff]  }
  0x5b   :  { %2540 = vmatprep.subr.bf16.mxu1 %v4593_v40  ;;  %2491 = vmatprep.mubr.bf16.mxu0 %v4992_v1  ;;  %v4657_v40 = vld [vmem:[%s7172_s1 + $0x1c] ss:$76 sps:$4 sm:$0xff]  }
  0x5d   :  { %2439 = vmatmul.mubr.bf16.gmra.mxu1 %v5316_v30 }
  0x5e   :  { %2541 = vmatpush1.bf16.msra.mxu1 %v4591_v42  ;;  %2448 = vmatprep.mubr.bf16.mxu1 %v5325_v32  ;;  %v4660_v42 = vld [vmem:[%s7172_s1 + $0x904] ss:$76 sps:$4 sm:$0xff]  }
  0x5f   :  { %2542 = vmatprep.subr.bf16.mxu1 %v4596_v45  ;;  %v4661_v45 = vld [vmem:[%s7172_s1 + $0x868] ss:$76 sps:$4 sm:$0xff]  }
  0x62   :  { %2543 = vmatpush1.bf16.msra.mxu1 %v4594_v46  ;;  %4352 = vmatmul.mubr.msk.bf16.vlgmr.msra.gmra.mxu0 %vm2169_vm1, %v5051_v14  ;;  %v4667_v46 = vld [vmem:[%s7172_s1 + $0x7d0] ss:$76 sps:$4 sm:$0xff]  }
  0x63   :  { %2544 = vmatprep.subr.bf16.mxu1 %v4599_v50  ;;  %2618 = vmatpush1.bf16.msra.mxu0 %v2196_v52  ;;  %v4678_v50 = vld [vmem:[%s7172_s1 + $0x3b4] ss:$76 sps:$4 sm:$0xff]   ;;  %v4676_v52 = vld [vmem:[%s7172_s1 + $0x3b0] ss:$76 sps:$4 sm:$0xff]  }
  0x64   :  { %2501 = vmatprep.mubr.bf16.mxu0 %v4992_v1  ;;  %2619 = vmatprep.subr.bf16.mxu0 %v4616_v53  ;;  %v4681_v53 = vld [vmem:[%s7172_s1 + $0x6a4] ss:$76 sps:$4 sm:$0xff]  }
  0x65   :  { %2449 = vmatmul.mubr.bf16.gmra.mxu1 %v5351_v39 }
  0x66   :  { %2545 = vmatpush1.bf16.msra.mxu1 %v4597_v54  ;;  %2564 = vmatprep.mubr.bf16.mxu1 %v5186_v55  ;;  %v5589_v54 = vld [vmem:[%s7173_s0 + $0x8] ss:$12 sps:$4 sm:$0xff]  }
  0x67   :  { %2546 = vmatprep.subr.bf16.mxu1 %v4604_v56  ;;  %2620 = vmatpush1.bf16.msra.mxu0 %v4614_v57  ;;  %v4679_v56 = vld [vmem:[%s7172_s1 + $0x6a0] ss:$76 sps:$4 sm:$0xff]   ;;  %v4684_v57 = vld [vmem:[%s7172_s1 + $0x31c] ss:$76 sps:$4 sm:$0xff]  }
  0x68   :  { %2678 = vmatprep.subr.bf16.mxu0 %v4628_v59  ;;  %v4687_v59 = vld [vmem:[%s7172_s1 + $0x60c] ss:$76 sps:$4 sm:$0xff]  }
  0x6a   :  { %2547 = vmatpush1.bf16.msra.mxu1 %v4602_v60  ;;  %4353 = vmatmul.mubr.msk.bf16.gmra.mxu0 %vm2169_vm1, %v5143_v43  ;;  %v4685_v60 = vld [vmem:[%s7172_s1 + $0x608] ss:$76 sps:$4 sm:$0xff]  }
  0x6b   :  { %2548 = vmatprep.subr.bf16.mxu1 %v4607_v62  ;;  %2511 = vmatprep.mubr.bf16.mxu0 %v4992_v1  ;;  %v4690_v62 = vld [vmem:[%s7172_s1 + $0x284] ss:$76 sps:$4 sm:$0xff]  }
  0x6e   :  { %2549 = vmatpush2.bf16.msra.mxu1 %v4605_v63  ;;  %v4688_v63 = vld [vmem:[%s7172_s1 + $0x280] ss:$76 sps:$4 sm:$0xff]  }
  0x6f   :  { %2550 = vmatprep.subr.bf16.mxu1 %v4610_v0  ;;  %v4693_v0 = vld [vmem:[%s7172_s1 + $0x574] ss:$76 sps:$4 sm:$0xff]  }
  0x72   :  { %2551 = vmatpush2.bf16.msra.mxu1 %v4608_v2  ;;  %4354 = vmatmul.mubr.msk.bf16.gmra.mxu0 %vm2169_vm1, %v5172_v51  ;;  %v5621_v2 = vld [vmem:[%s7173_s0 + $0x20] ss:$12 sps:$4 sm:$0xff]  }
  0x73   :  { %2552 = vmatprep.subr.bf16.mxu1 %v4613_v3  ;;  %2521 = vmatprep.mubr.bf16.mxu0 %v4992_v1  ;;  %v4691_v3 = vld [vmem:[%s7172_s1 + $0x570] ss:$76 sps:$4 sm:$0xff]  }
  0x76   :  { %2553 = vmatpush2.bf16.msra.mxu1 %v4611_v4  ;;  %v4696_v4 = vld [vmem:[%s7172_s1 + $0x1ec] ss:$76 sps:$4 sm:$0xff]  }
  0x77   :  { %2554 = vmatprep.subr.bf16.mxu1 %v4619_v5  ;;  %v4699_v5 = vld [vmem:[%s7172_s1 + $0x4dc] ss:$76 sps:$4 sm:$0xff]  }
  0x7a   :  { %2555 = vmatpush2.bf16.msra.mxu1 %v4617_v6  ;;  %4355 = vmatmul.mubr.msk.bf16.gmra.mxu0 %vm2169_vm1, %v5210_v61  ;;  %v4694_v6 = vld [vmem:[%s7172_s1 + $0x1e8] ss:$76 sps:$4 sm:$0xff]  }
  0x7b   :  { %2556 = vmatprep.subr.bf16.mxu1 %v4622_v7  ;;  %2637 = vmatprep.mubr.bf16.mxu0 %v4992_v1  ;;  %v375_v7 = vld [vmem:[%s7172_s1 + $0xa38] sm:$0xff] }
  0x7e   :  { %2557 = vmatpush2.bf16.msra.mxu1 %v4620_v8  ;;  %v4697_v8 = vld [vmem:[%s7172_s1 + $0x4d8] ss:$76 sps:$4 sm:$0xff]  }
  0x7f   :  { %2558 = vmatprep.subr.bf16.mxu1 %v4625_v9  ;;  %v4702_v9 = vld [vmem:[%s7172_s1 + $0x154] ss:$76 sps:$4 sm:$0xff]  }
  0x82   :  { %2559 = vmatpush2.bf16.msra.mxu1 %v4623_v10  ;;  %4357 = vmatmul.mubr.msk.bf16.vlgmr.msra.gmra.mxu0 %vm2169_vm1, %v5051_v14  ;;  %v4640_v14 = vld [vmem:[%s7172_s1 + $0x314] ss:$76 sps:$4 sm:$0xff]   ;;  %v4700_v10 = vld [vmem:[%s7172_s1 + $0x150] ss:$76 sps:$4 sm:$0xff]  }
  0x83   :  { %2560 = vmatprep.subr.bf16.mxu1 %v4631_v11  ;;  %2679 = vmatpush1.bf16.msra.mxu0 %v4626_v13  ;;  %v4336_v11 = vcombine.high %v375_v7, %v375_v7  ;;  %v4335_v13 = vcombine.low %v375_v7, %v375_v7 }
  0x84   :  { %2647 = vmatprep.mubr.bf16.mxu0 %v4992_v1  ;;  %2680 = vmatprep.subr.bf16.mxu0 %v4634_v16  ;;  %v5653_v16 = vld [vmem:[%s7173_s0 + $0x38] ss:$12 sps:$4 sm:$0xff]  }
  0x86   :  { %2561 = vmatpush2.bf16.msra.mxu1 %v4629_v17  ;;  %v4705_v17 = vld [vmem:[%s7172_s1 + $0xbc] ss:$76 sps:$4 sm:$0xff]  }
  0x87   :  { %2562 = vmatprep.subr.bf16.mxu1 %v4637_v19  ;;  %2681 = vmatpush1.bf16.msra.mxu0 %v4632_v18  ;;  %v2208_v18 = vsel %vm2182_vm0, %v4335_v13, 0  ;;  %v4722_v19 = vld [vmem:[%s7172_s1 + $0x9a4] ss:$76 sps:$4 sm:$0xff]   ;;  %v5852_v13 = vld [vmem:[%s7173_s0 + $0x34] ss:$12 sps:$4 sm:$0xff]  }
  0x88   :  { %2682 = vmatprep.subr.bf16.mxu0 %v4640_v14  ;;  %v4710_v14 = vld [vmem:[%s7172_s1 + $0x24] ss:$76 sps:$4 sm:$0xff]  }
  0x8a   :  { %2563 = vmatpush2.bf16.msra.mxu1 %v4635_v21  ;;  %4358 = vmatmul.mubr.msk.bf16.gmra.mxu0 %vm2169_vm1, %v5143_v43  ;;  %v4664_v43 = vld [vmem:[%s7172_s1 + $0x998] ss:$76 sps:$4 sm:$0xff]   ;;  %v4720_v21 = vld [vmem:[%s7172_s1 + $0x9a0] ss:$76 sps:$4 sm:$0xff]  }
  0x8b   :  { %4361 = vmatprep.subr.msk.bf16.mxu1 %vm2182_vm0, %v4334_v22  ;;  %2683 = vmatpush1.bf16.msra.mxu0 %v4638_v25  ;;  %v5680_v22 = vld [vmem:[%s7173_s0 + $0x50] ss:$12 sps:$4 sm:$0xff]  }
  0x8c   :  { %2657 = vmatprep.mubr.bf16.mxu0 %v4992_v1  ;;  %2684 = vmatprep.subr.bf16.mxu0 %v4643_v27  ;;  %v5696_v25 = vld [vmem:[%s7173_s0 + $0x4] ss:$12 sps:$4 sm:$0xff]   ;;  %v4711_v27 = vld [vmem:[%s7172_s1 + $0x908] ss:$76 sps:$4 sm:$0xff]  }
  0x8d   :  { %2565 = vmatmul.mubr.bf16.vlgmr.msra.gmra.mxu1 %v5251_v12 }
  0x8e   :  { %2574 = vmatprep.mubr.bf16.mxu1 %v5259_v15  ;;  %2764 = vmatpush1.bf16.msra.mxu1 %v2202_v28  ;;  %v4716_v28 = vld [vmem:[%s7172_s1 + $0x874] ss:$76 sps:$4 sm:$0xff]  }
  0x8f   :  { %2765 = vmatprep.subr.bf16.mxu1 %v4666_v29  ;;  %2685 = vmatpush1.bf16.msra.mxu0 %v4641_v31  ;;  %v4714_v29 = vld [vmem:[%s7172_s1 + $0x870] ss:$76 sps:$4 sm:$0xff]  }
  0x90   :  { %2686 = vmatprep.subr.bf16.mxu0 %v4646_v33  ;;  %v4719_v31 = vld [vmem:[%s7172_s1 + $0x7dc] ss:$76 sps:$4 sm:$0xff]   ;;  %v4717_v33 = vld [vmem:[%s7172_s1 + $0x7d8] ss:$76 sps:$4 sm:$0xff]  }
  0x92   :  { %2766 = vmatpush1.bf16.msra.mxu1 %v4664_v43  ;;  %4359 = vmatmul.mubr.msk.bf16.gmra.mxu0 %vm2169_vm1, %v5172_v51  ;;  %v4652_v51 = vld [vmem:[%s7172_s1 + $0xb0] ss:$76 sps:$4 sm:$0xff]   ;;  %v4728_v43 = vld [vmem:[%s7172_s1 + $0x6ac] ss:$76 sps:$4 sm:$0xff]  }
  0x93   :  { %2824 = vmatprep.subr.bf16.mxu1 %v4672_v34  ;;  %2687 = vmatpush1.bf16.msra.mxu0 %v4644_v35 }
  0x94   :  { %2667 = vmatprep.mubr.bf16.mxu0 %v4992_v1  ;;  %2688 = vmatprep.subr.bf16.mxu0 %v4649_v36  ;;  %v4729_v36 = vld [vmem:[%s7172_s1 + $0x610] ss:$76 sps:$4 sm:$0xff]  }
  0x95   :  { %2575 = vmatmul.mubr.bf16.gmra.mxu1 %v5290_v24 }
  0x96   :  { %2584 = vmatprep.mubr.bf16.mxu1 %v5298_v26 }
  0x97   :  { %2689 = vmatpush1.bf16.msra.mxu0 %v4647_v37  ;;  %v4737_v37 = vld [vmem:[%s7172_s1 + $0x57c] ss:$76 sps:$4 sm:$0xff]  }
  0x98   :  { %2690 = vmatprep.subr.bf16.mxu0 %v4654_v38 }
  0x9a   :  { %4360 = vmatmul.mubr.msk.bf16.gmra.mxu0 %vm2169_vm1, %v5210_v61  ;;  %v4663_v61 = vld [vmem:[%s7172_s1 + $0x86c] ss:$76 sps:$4 sm:$0xff]  }
  0x9b   :  { %2691 = vmatpush1.bf16.msra.mxu0 %v4652_v51  ;;  %2710 = vmatprep.mubr.bf16.mxu0 %v5186_v55  ;;  %v4669_v55 = vld [vmem:[%s7172_s1 + $0x7d4] ss:$76 sps:$4 sm:$0xff]   ;;  %v4740_v51 = vld [vmem:[%s7172_s1 + $0x3bc] ss:$76 sps:$4 sm:$0xff]  }
  0x9c   :  { %2692 = vmatprep.subr.bf16.mxu0 %v4657_v40  ;;  %v4735_v40 = vld [vmem:[%s7172_s1 + $0x578] ss:$76 sps:$4 sm:$0xff]  }
  0x9d   :  { %2585 = vmatmul.mubr.bf16.gmra.mxu1 %v5316_v30 }
  0x9e   :  { %2594 = vmatprep.mubr.bf16.mxu1 %v5325_v32 }
  0x9f   :  { %2693 = vmatpush1.bf16.msra.mxu0 %v4655_v41  ;;  %v4743_v41 = vld [vmem:[%s7172_s1 + $0x4e4] ss:$76 sps:$4 sm:$0xff]  }
  0xa0   :  { %2694 = vmatprep.subr.bf16.mxu0 %v4660_v42  ;;  %v4738_v42 = vld [vmem:[%s7172_s1 + $0x3b8] ss:$76 sps:$4 sm:$0xff]  }
  0xa3   :  { %2695 = vmatpush2.bf16.msra.mxu0 %v4658_v44  ;;  %v376_v44 = vld [vmem:[%s7172_s1 + $0xa40] sm:$0xff] }
  0xa4   :  { %2696 = vmatprep.subr.bf16.mxu0 %v4663_v61 }
  0xa5   :  { %2595 = vmatmul.mubr.bf16.gmra.mxu1 %v5351_v39 }
  0xa6   :  { %2783 = vmatprep.mubr.bf16.mxu1 %v4992_v1 }
  0xa7   :  { %2697 = vmatpush2.bf16.msra.mxu0 %v4661_v45  ;;  %v4746_v45 = vld [vmem:[%s7172_s1 + $0x324] ss:$76 sps:$4 sm:$0xff]  }
  0xa8   :  { %2698 = vmatprep.subr.bf16.mxu0 %v4669_v55  ;;  %v4741_v55 = vld [vmem:[%s7172_s1 + $0x4e0] ss:$76 sps:$4 sm:$0xff]  }
  0xab   :  { %2699 = vmatpush2.bf16.msra.mxu0 %v4667_v46  ;;  %v4338_v46 = vcombine.high %v376_v44, %v376_v44 }
  0xac   :  { %2700 = vmatprep.subr.bf16.mxu0 %v4675_v48 }
  0xad   :  { %4362 = vmatmul.mubr.msk.bf16.vlgmr.msra.gmra.mxu1 %vm2169_vm1, %v5589_v54 }
  0xae   :  { %2825 = vmatpush1.bf16.msra.mxu1 %v4670_v47  ;;  %2793 = vmatprep.mubr.bf16.mxu1 %v4992_v1  ;;  %v4337_v47 = vcombine.low %v376_v44, %v376_v44 }
  0xaf   :  { %2826 = vmatprep.subr.bf16.mxu1 %v4678_v50  ;;  %2701 = vmatpush2.bf16.msra.mxu0 %v4673_v49  ;;  %v4744_v49 = vld [vmem:[%s7172_s1 + $0x320] ss:$76 sps:$4 sm:$0xff]  }
  0xb0   :  { %2702 = vmatprep.subr.bf16.mxu0 %v4681_v53  ;;  %v4749_v50 = vld [vmem:[%s7172_s1 + $0x28c] ss:$76 sps:$4 sm:$0xff]   ;;  %v2214_v53 = vsel %vm2182_vm0, %v4337_v47, 0 }
  0xb2   :  { %2827 = vmatpush1.bf16.msra.mxu1 %v4676_v52 }
  0xb3   :  { %2828 = vmatprep.subr.bf16.mxu1 %v4684_v57  ;;  %2703 = vmatpush2.bf16.msra.mxu0 %v4679_v56  ;;  %v4772_v57 = vld [vmem:[%s7172_s1 + $0x9ac] ss:$76 sps:$4 sm:$0xff]  }
  0xb4   :  { %2704 = vmatprep.subr.bf16.mxu0 %v4687_v59  ;;  %v5802_v59 = vld [vmem:[%s7173_s0] ss:$12 sps:$4 sm:$0xff]  }
  0xb5   :  { %4363 = vmatmul.mubr.msk.bf16.gmra.mxu1 %vm2169_vm1, %v5621_v2 }
  0xb6   :  { %2829 = vmatpush1.bf16.msra.mxu1 %v4682_v58  ;;  %2803 = vmatprep.mubr.bf16.mxu1 %v4992_v1  ;;  %v4747_v58 = vld [vmem:[%s7172_s1 + $0x288] ss:$76 sps:$4 sm:$0xff]  }
  0xb7   :  { %2830 = vmatprep.subr.bf16.mxu1 %v4690_v62  ;;  %2705 = vmatpush2.bf16.msra.mxu0 %v4685_v60  ;;  %v4752_v60 = vld [vmem:[%s7172_s1 + $0x1f4] ss:$76 sps:$4 sm:$0xff]  }
  0xb8   :  { %2706 = vmatprep.subr.bf16.mxu0 %v4693_v0  ;;  %v4770_v0 = vld [vmem:[%s7172_s1 + $0x9a8] ss:$76 sps:$4 sm:$0xff]  }
  0xba   :  { %2831 = vmatpush1.bf16.msra.mxu1 %v4688_v63  ;;  %v5813_v63 = vld [vmem:[%s7173_s0 + $0x1c] ss:$12 sps:$4 sm:$0xff]  }
  0xbb   :  { %2832 = vmatprep.subr.bf16.mxu1 %v4696_v4  ;;  %2707 = vmatpush2.bf16.msra.mxu0 %v4691_v3  ;;  %v4778_v4 = vld [vmem:[%s7172_s1 + $0x45c] ss:$76 sps:$4 sm:$0xff]  }
  0xbc   :  { %2708 = vmatprep.subr.bf16.mxu0 %v4699_v5  ;;  %v4750_v5 = vld [vmem:[%s7172_s1 + $0x1f0] ss:$76 sps:$4 sm:$0xff]  }
  0xbd   :  { %4364 = vmatmul.mubr.msk.bf16.gmra.mxu1 %vm2169_vm1, %v5653_v16 }
  0xbe   :  { %2833 = vmatpush1.bf16.msra.mxu1 %v4694_v6  ;;  %2813 = vmatprep.mubr.bf16.mxu1 %v4992_v1  ;;  %v4755_v6 = vld [vmem:[%s7172_s1 + $0x15c] ss:$76 sps:$4 sm:$0xff]  }
  0xbf   :  { %2834 = vmatprep.subr.bf16.mxu1 %v4702_v9  ;;  %2709 = vmatpush2.bf16.msra.mxu0 %v4697_v8  ;;  %v4753_v8 = vld [vmem:[%s7172_s1 + $0x158] ss:$76 sps:$4 sm:$0xff]  }
  0xc0   :  { %4366 = vmatprep.subr.msk.bf16.mxu0 %vm2182_vm0, %v4336_v11  ;;  %v5841_v9 = vld [vmem:[%s7173_s0 + $0x18] ss:$12 sps:$4 sm:$0xff]  }
  0xc2   :  { %2835 = vmatpush1.bf16.msra.mxu1 %v4700_v10  ;;  %2711 = vmatmul.mubr.bf16.vlgmr.msra.gmra.mxu0 %v5251_v12  ;;  %v4734_v12 = vld [vmem:[%s7172_s1 + $0x454] ss:$76 sps:$4 sm:$0xff]   ;;  %v4760_v10 = vld [vmem:[%s7172_s1 + $0xc4] ss:$76 sps:$4 sm:$0xff]  }
  0xc3   :  { %2836 = vmatprep.subr.bf16.mxu1 %v4705_v17  ;;  %2910 = vmatpush1.bf16.msra.mxu0 %v2208_v18  ;;  %v4758_v17 = vld [vmem:[%s7172_s1 + $0xc0] ss:$76 sps:$4 sm:$0xff]  }
  0xc4   :  { %2720 = vmatprep.mubr.bf16.mxu0 %v5259_v15  ;;  %2911 = vmatprep.subr.bf16.mxu0 %v4722_v19  ;;  %v4708_v15 = vld [vmem:[%s7172_s1 + $0x20] ss:$76 sps:$4 sm:$0xff]  }
  0xc5   :  { %4365 = vmatmul.mubr.msk.bf16.gmra.mxu1 %vm2169_vm1, %v5680_v22  ;;  %v4763_v18 = vld [vmem:[%s7172_s1 + $0x2c] ss:$76 sps:$4 sm:$0xff]  }
  0xc6   :  { %2837 = vmatpush1.bf16.msra.mxu1 %v4703_v20  ;;  %2856 = vmatprep.mubr.bf16.mxu1 %v5696_v25  ;;  %v4761_v20 = vld [vmem:[%s7172_s1 + $0x28] ss:$76 sps:$4 sm:$0xff]  }
  0xc7   :  { %2838 = vmatprep.subr.bf16.mxu1 %v4710_v14  ;;  %2912 = vmatpush1.bf16.msra.mxu0 %v4720_v21  ;;  %v5872_v14 = vld [vmem:[%s7173_s0 + $0x30] ss:$12 sps:$4 sm:$0xff]   ;;  %v4766_v21 = vld [vmem:[%s7172_s1 + $0x914] ss:$76 sps:$4 sm:$0xff]  }
  0xc8   :  { %2970 = vmatprep.subr.bf16.mxu0 %v4734_v12 }
  0xca   :  { %2839 = vmatpush1.bf16.msra.mxu1 %v4708_v15  ;;  %2721 = vmatmul.mubr.bf16.gmra.mxu0 %v5290_v24  ;;  %v4725_v24 = vld [vmem:[%s7172_s1 + $0x744] ss:$76 sps:$4 sm:$0xff]   ;;  %v5883_v15 = vld [vmem:[%s7173_s0 + $0x4c] ss:$12 sps:$4 sm:$0xff]  }
  0xcb   :  { %2840 = vmatprep.subr.bf16.mxu1 %v4713_v23  ;;  %2730 = vmatprep.mubr.bf16.mxu0 %v5298_v26  ;;  %v4723_v26 = vld [vmem:[%s7172_s1 + $0x740] ss:$76 sps:$4 sm:$0xff]   ;;  %v5886_v23 = vpop.permute.xlu0 %391 }
  0xcd   :  { %v5727_v34 = vpop.f32.mrf.mxu1 }
  0xce   :  { %2841 = vmatpush2.bf16.msra.mxu1 %v4711_v27  ;;  %v4764_v27 = vld [vmem:[%s7172_s1 + $0x910] ss:$76 sps:$4 sm:$0xff]  }
  0xcf   :  { %2842 = vmatprep.subr.bf16.mxu1 %v4716_v28  ;;  %v5737_v35 = vpop.f32.mrf.mxu1  ;;  %v4769_v28 = vld [vmem:[%s7172_s1 + $0x87c] ss:$76 sps:$4 sm:$0xff]  }
  0xd1   :  { %v5748_v38 = vpop.f32.mrf.mxu1 }
  0xd2   :  { %2843 = vmatpush2.bf16.msra.mxu1 %v4714_v29  ;;  %2731 = vmatmul.mubr.bf16.gmra.mxu0 %v5316_v30  ;;  %v4726_v30 = vld [vmem:[%s7172_s1 + $0x6a8] ss:$76 sps:$4 sm:$0xff]  }
  0xd3   :  { %2844 = vmatprep.subr.bf16.mxu1 %v4719_v31  ;;  %2740 = vmatprep.mubr.bf16.mxu0 %v5325_v32  ;;  %v4731_v32 = vld [vmem:[%s7172_s1 + $0x614] ss:$76 sps:$4 sm:$0xff]   ;;  %v5768_v61 = vpop.f32.mrf.mxu1 }
  0xd5   :  { %v5776_v48 = vpop.f32.mrf.mxu1 }
  0xd6   :  { %2845 = vmatpush2.bf16.msra.mxu1 %v4717_v33 }
  0xd7   :  { %2846 = vmatprep.subr.bf16.mxu1 %v4725_v24  ;;  %v5784_v52 = vpop.f32.mrf.mxu1  ;;  %v4767_v24 = vld [vmem:[%s7172_s1 + $0x878] ss:$76 sps:$4 sm:$0xff]  }
  0xd9   :  { %v5790_v56 = vpop.f32.mrf.mxu1 }
  0xda   :  { %2847 = vmatpush2.bf16.msra.mxu1 %v4723_v26  ;;  %2741 = vmatmul.mubr.bf16.gmra.mxu0 %v5351_v39  ;;  %v4732_v39 = vld [vmem:[%s7172_s1 + $0x450] ss:$76 sps:$4 sm:$0xff]   ;;  %v5900_v26 = vpop.permute.xlu0 %396 }
  0xdb   :  { %2848 = vmatprep.subr.bf16.mxu1 %v4728_v43  ;;  %2929 = vmatprep.mubr.bf16.mxu0 %v4992_v1  ;;  %v5808_v62 = vpop.f32.mrf.mxu1  ;;  %v5905_v43 = vld [vmem:[%s7173_s0 + $0x48] ss:$12 sps:$4 sm:$0xff]  }
  0xdd   :  { %v5819_v3 = vpop.f32.mrf.mxu1 }
  0xde   :  { %2849 = vmatpush2.bf16.msra.mxu1 %v4726_v30 }
  0xdf   :  { %2850 = vmatprep.subr.bf16.mxu1 %v4731_v32  ;;  %v5830_v7 = vpop.f32.mrf.mxu1  ;;  %v4775_v32 = vld [vmem:[%s7172_s1 + $0x7e4] ss:$76 sps:$4 sm:$0xff]  }
  0xe1   :  { %v5847_v11 = vpop.f32.mrf.mxu1 }
  0xe2   :  { %2851 = vmatpush2.bf16.msra.mxu1 %v4729_v36  ;;  %4367 = vmatmul.mubr.msk.bf16.vlgmr.msra.gmra.mxu0 %vm2169_vm1, %v5589_v54 }
  0xe3   :  { %2852 = vmatprep.subr.bf16.mxu1 %v4737_v37  ;;  %2971 = vmatpush1.bf16.msra.mxu0 %v4732_v39  ;;  %v5861_v19 = vpop.f32.mrf.mxu1 }
  0xe4   :  { %2939 = vmatprep.mubr.bf16.mxu0 %v4992_v1  ;;  %2972 = vmatprep.subr.bf16.mxu0 %v4740_v51  ;;  %v5916_v51 = vpop.permute.xlu1 %401 }
  0xe5   :  { %v5878_v12 = vpop.f32.mrf.mxu1 }
  0xe6   :  { %2853 = vmatpush2.bf16.msra.mxu1 %v4735_v40 }
  0xe7   :  { %2854 = vmatprep.subr.bf16.mxu1 %v4743_v41  ;;  %2973 = vmatpush1.bf16.msra.mxu0 %v4738_v42  ;;  %v5894_v29 = vpop.f32.mrf.mxu1 }
  0xe8   :  { %2974 = vmatprep.subr.bf16.mxu0 %v4746_v45  ;;  %v4773_v45 = vld [vmem:[%s7172_s1 + $0x7e0] ss:$76 sps:$4 sm:$0xff]  }
  0xe9   :  { %v5911_v36 = vpop.f32.mrf.mxu1 }
  0xea   :  { %2855 = vmatpush2.bf16.msra.mxu1 %v4741_v55  ;;  %4368 = vmatmul.mubr.msk.bf16.gmra.mxu0 %vm2169_vm1, %v5621_v2 }
  0xeb   :  { %4371 = vmatprep.subr.msk.bf16.mxu1 %vm2182_vm0, %v4338_v46  ;;  %2975 = vmatpush1.bf16.msra.mxu0 %v4744_v49  ;;  %v5926_v46 = vpop.f32.mrf.mxu1 }
  0xec   :  { %2949 = vmatprep.mubr.bf16.mxu0 %v4992_v1  ;;  %2976 = vmatprep.subr.bf16.mxu0 %v4749_v50  ;;  %v4776_v50 = vld [vmem:[%s7172_s1 + $0x458] ss:$76 sps:$4 sm:$0xff]  }
  0xed   :  { %2857 = vmatmul.mubr.bf16.vlgmr.msra.gmra.mxu1 %v5802_v59 }
  0xee   :  { %2866 = vmatprep.mubr.bf16.mxu1 %v5813_v63  ;;  %3056 = vmatpush1.bf16.msra.mxu1 %v2214_v53 }
  0xef   :  { %3057 = vmatprep.subr.bf16.mxu1 %v4772_v57  ;;  %2977 = vmatpush1.bf16.msra.mxu0 %v4747_v58  ;;  %v4784_v57 = vld [vmem:[%s7172_s1 + $0x3c4] ss:$76 sps:$4 sm:$0xff]  }
  0xf0   :  { %2978 = vmatprep.subr.bf16.mxu0 %v4752_v60 }
  0xf2   :  { %3058 = vmatpush1.bf16.msra.mxu1 %v4770_v0  ;;  %4369 = vmatmul.mubr.msk.bf16.gmra.mxu0 %vm2169_vm1, %v5653_v16  ;;  %v4779_v0 = vld [vmem:[%s7172_s1 + $0x748] ss:$76 sps:$4 sm:$0xff]  }
  0xf3   :  { %3116 = vmatprep.subr.bf16.mxu1 %v4778_v4  ;;  %2979 = vmatpush1.bf16.msra.mxu0 %v4750_v5  ;;  %v5947_v4 = vpop.permute.xlu1 %406 }
  0xf4   :  { %2959 = vmatprep.mubr.bf16.mxu0 %v4992_v1  ;;  %2980 = vmatprep.subr.bf16.mxu0 %v4755_v6  ;;  %v4787_v6 = vld [vmem:[%s7172_s1 + $0x6b4] ss:$76 sps:$4 sm:$0xff]  }
  0xf5   :  { %2867 = vmatmul.mubr.bf16.gmra.mxu1 %v5841_v9 }
  0xf6   :  { %2876 = vmatprep.mubr.bf16.mxu1 %v5852_v13 }
  0xf7   :  { %2981 = vmatpush1.bf16.msra.mxu0 %v4753_v8 }
  0xf8   :  { %2982 = vmatprep.subr.bf16.mxu0 %v4760_v10 }
  0xfa   :  { %4370 = vmatmul.mubr.msk.bf16.gmra.mxu0 %vm2169_vm1, %v5680_v22 }
  0xfb   :  { %2983 = vmatpush1.bf16.msra.mxu0 %v4758_v17  ;;  %3002 = vmatprep.mubr.bf16.mxu0 %v5696_v25 }
  0xfc   :  { %2984 = vmatprep.subr.bf16.mxu0 %v4763_v18 }
  0xfd   :  { %2877 = vmatmul.mubr.bf16.gmra.mxu1 %v5872_v14 }
  0xfe   :  { %2886 = vmatprep.mubr.bf16.mxu1 %v5883_v15 }
  0xff   :  { %2985 = vmatpush1.bf16.msra.mxu0 %v4761_v20  ;;  %v4790_v20 = vld [vmem:[%s7172_s1 + $0x32c] ss:$76 sps:$4 sm:$0xff]  }
 0x100   :  { %2986 = vmatprep.subr.bf16.mxu0 %v4766_v21 }
 0x102   :  { %v2274_v31 = vpop.f32.mrf.mxu0 }
 0x103   :  { %2987 = vmatpush2.bf16.msra.mxu0 %v4764_v27  ;;  %v2275_v33 = vadd.f32 %v2274_v31, %v5886_v23  ;;  %v4785_v31 = vld [vmem:[%s7172_s1 + $0x6b0] ss:$76 sps:$4 sm:$0xff]  }
 0x104   :  { %v2276_v30 = vpop.f32.mrf.mxu0  ;;  %2988 = vmatprep.subr.bf16.mxu0 %v4769_v28 }
 0x105   :  { %2887 = vmatmul.mubr.bf16.gmra.mxu1 %v5905_v43  ;;  %v2348_v37 = vadd.f32 %v5727_v34, %v2275_v33  ;;  %v2277_v39 = vadd.f32 %v2276_v30, %v5886_v23  ;;  %v4781_v34 = vld [vmem:[%s7172_s1 + $0x74c] ss:$76 sps:$4 sm:$0xff]   ;;  %v5978_v33 = vpop.permute.xlu0 %411  ;;  %v4793_v30 = vld [vmem:[%s7172_s1 + $0x61c] ss:$76 sps:$4 sm:$0xff]  }
 0x106   :  { %3075 = vmatprep.mubr.bf16.mxu1 %v4992_v1  ;;  %v2278_v40 = vpop.f32.mrf.mxu0 }
 0x107   :  { %v3684_v41 = vmax.f32 %v2348_v37, 0.0  ;;  %v2350_v42 = vadd.f32 %v5737_v35, %v2277_v39  ;;  %2989 = vmatpush2.bf16.msra.mxu0 %v4767_v24  ;;  %v2279_v44 = vadd.f32 %v2278_v40, %v5900_v26  ;;  %v4788_v40 = vld [vmem:[%s7172_s1 + $0x328] ss:$76 sps:$4 sm:$0xff]  }
 0x108   :  { %v2280_v55 = vpop.f32.mrf.mxu0  ;;  %2990 = vmatprep.subr.bf16.mxu0 %v4775_v32 }
 0x109   :  { %3836 = vst [vmem:[%s7175_s3] sm:$0xff] %v3684_v41  ;;  %v3685_v35 = vmax.f32 %v2350_v42, 0.0  ;;  %v2352_v47 = vadd.f32 %v5748_v38, %v2279_v44  ;;  %v2281_v49 = vadd.f32 %v2280_v55, %v5900_v26  ;;  %v4796_v42 = vld [vmem:[%s7172_s1 + $0x294] ss:$76 sps:$4 sm:$0xff]  }
 0x10a   :  { %v2284_v53 = vpop.f32.mrf.mxu0 }
 0x10b   :  { %3837 = vst [vmem:[%s7175_s3 + $0x8] sm:$0xff] %v3685_v35  ;;  %v3703_v58 = vmax.f32 %v2352_v47, 0.0  ;;  %v2354_v60 = vadd.f32 %v5768_v61, %v2281_v49  ;;  %2991 = vmatpush2.bf16.msra.mxu0 %v4773_v45  ;;  %v2285_v38 = vadd.f32 %v2284_v53, %v5916_v51  ;;  %v6006_v35 = vpop.permute.xlu1 %416  ;;  %v4799_v49 = vld [vmem:[%s7172_s1 + $0x584] ss:$76 sps:$4 sm:$0xff]  }
 0x10c   :  { %v2286_v5 = vpop.f32.mrf.mxu0  ;;  %2992 = vmatprep.subr.bf16.mxu0 %v4781_v34  ;;  %v4791_v34 = vld [vmem:[%s7172_s1 + $0x618] ss:$76 sps:$4 sm:$0xff]  }
 0x10d   :  { %4372 = vmatmul.mubr.msk.bf16.vlgmr.msra.gmra.mxu1 %vm2169_vm1, %v5589_v54  ;;  %v5954_v8 = vpop.f32.mrf.mxu1  ;;  %3855 = vst [vmem:[%s7175_s3 + $0x98] sm:$0xff] %v3703_v58  ;;  %v3704_v61 = vmax.f32 %v2354_v60, 0.0  ;;  %v2358_v10 = vadd.f32 %v5776_v48, %v2285_v38  ;;  %v2287_v17 = vadd.f32 %v2286_v5, %v5916_v51  ;;  %v4782_v54 = vld [vmem:[%s7172_s1 + $0x3c0] ss:$76 sps:$4 sm:$0xff]   ;;  %v4794_v58 = vld [vmem:[%s7172_s1 + $0x290] ss:$76 sps:$4 sm:$0xff]  }
 0x10e   :  { %3117 = vmatpush1.bf16.msra.mxu1 %v4776_v50  ;;  %3085 = vmatprep.mubr.bf16.mxu1 %v4992_v1  ;;  %v2288_v18 = vpop.f32.mrf.mxu0 }
 0x10f   :  { %3118 = vmatprep.subr.bf16.mxu1 %v4784_v57  ;;  %v5968_v21 = vpop.f32.mrf.mxu1  ;;  %3856 = vst [vmem:[%s7175_s3 + $0xa0] sm:$0xff] %v3704_v61  ;;  %v3722_v48 = vmax.f32 %v2358_v10, 0.0  ;;  %v2360_v27 = vadd.f32 %v5784_v52, %v2287_v17  ;;  %2993 = vmatpush2.bf16.msra.mxu0 %v4779_v0  ;;  %v2289_v28 = vadd.f32 %v2288_v18, %v5947_v4  ;;  %v6037_v61 = vpop.permute.xlu0 %421  ;;  %v4805_v17 = vld [vmem:[%s7172_s1 + $0x4ec] ss:$76 sps:$4 sm:$0xff]  }
 0x110   :  { %v2290_v24 = vpop.f32.mrf.mxu0  ;;  %2994 = vmatprep.subr.bf16.mxu0 %v4787_v6  ;;  %v4797_v6 = vld [vmem:[%s7172_s1 + $0x580] ss:$76 sps:$4 sm:$0xff]  }
 0x111   :  { %v5983_v32 = vpop.f32.mrf.mxu1  ;;  %3874 = vst [vmem:[%s7175_s3 + $0x130] sm:$0xff] %v3722_v48  ;;  %v3723_v52 = vmax.f32 %v2360_v27, 0.0  ;;  %v2362_v37 = vadd.f32 %v5790_v56, %v2289_v28  ;;  %v2291_v39 = vadd.f32 %v2290_v24, %v5947_v4  ;;  %v4800_v48 = vld [vmem:[%s7172_s1 + $0x1f8] ss:$76 sps:$4 sm:$0xff]   ;;  %v377_v27 = vld [vmem:[%s7172_s1 + $0xa48] sm:$0xff] }
 0x112   :  { %3119 = vmatpush1.bf16.msra.mxu1 %v4782_v54  ;;  %v2294_v41 = vpop.f32.mrf.mxu0 }
 0x113   :  { %3120 = vmatprep.subr.bf16.mxu1 %v4790_v20  ;;  %v5996_v44 = vpop.f32.mrf.mxu1  ;;  %3875 = vst [vmem:[%s7175_s3 + $0x138] sm:$0xff] %v3723_v52  ;;  %v3741_v45 = vmax.f32 %v2362_v37, 0.0  ;;  %v2364_v56 = vadd.f32 %v5808_v62, %v2291_v39  ;;  %2995 = vmatpush2.bf16.msra.mxu0 %v4785_v31  ;;  %v2295_v55 = vadd.f32 %v2294_v41, %v5978_v33  ;;  %v4808_v31 = vld [vmem:[%s7172_s1 + $0x164] ss:$76 sps:$4 sm:$0xff]   ;;  %v4803_v37 = vld [vmem:[%s7172_s1 + $0x4e8] ss:$76 sps:$4 sm:$0xff]  }
 0x114   :  { %v2296_v47 = vpop.f32.mrf.mxu0  ;;  %2996 = vmatprep.subr.bf16.mxu0 %v4793_v30  ;;  %v4340_v41 = vcombine.high %v377_v27, %v377_v27 }
 0x115   :  { %v6011_v50 = vpop.f32.mrf.mxu1  ;;  %4373 = vmatmul.mubr.msk.bf16.gmra.mxu1 %vm2169_vm1, %v5621_v2  ;;  %3893 = vst [vmem:[%s7175_s3 + $0x1c8] sm:$0xff] %v3741_v45  ;;  %v3742_v62 = vmax.f32 %v2364_v56, 0.0  ;;  %v2368_v53 = vadd.f32 %v5819_v3, %v2295_v55  ;;  %v2297_v57 = vadd.f32 %v2296_v47, %v5978_v33  ;;  %v4802_v2 = vld [vmem:[%s7172_s1 + $0x1fc] ss:$76 sps:$4 sm:$0xff]   ;;  %v4806_v55 = vld [vmem:[%s7172_s1 + $0x160] ss:$76 sps:$4 sm:$0xff]  }
 0x116   :  { %3121 = vmatpush1.bf16.msra.mxu1 %v4788_v40  ;;  %3095 = vmatprep.mubr.bf16.mxu1 %v4992_v1  ;;  %v2298_v60 = vpop.f32.mrf.mxu0  ;;  %v6068_v40 = vpop.permute.xlu1 %426 }
 0x117   :  { %3122 = vmatprep.subr.bf16.mxu1 %v4796_v42  ;;  %v6027_v38 = vpop.f32.mrf.mxu1  ;;  %3894 = vst [vmem:[%s7175_s3 + $0x1d0] sm:$0xff] %v3742_v62  ;;  %v3760_v3 = vmax.f32 %v2368_v53, 0.0  ;;  %v2370_v0 = vadd.f32 %v5830_v7, %v2297_v57  ;;  %2997 = vmatpush2.bf16.msra.mxu0 %v4791_v34  ;;  %v2299_v5 = vadd.f32 %v2298_v60, %v6006_v35 }
 0x118   :  { %v2300_v10 = vpop.f32.mrf.mxu0  ;;  %2998 = vmatprep.subr.bf16.mxu0 %v4799_v49  ;;  %v4339_v42 = vcombine.low %v377_v27, %v377_v27  ;;  %v2421_v60 = vadd.f32 %v5954_v8, %v5886_v23  ;;  %v4816_v8 = vld [vmem:[%s7172_s1 + $0x34] ss:$76 sps:$4 sm:$0xff]  }
 0x119   :  { %v6042_v54 = vpop.f32.mrf.mxu1  ;;  %3912 = vst [vmem:[%s7175_s3 + $0x260] sm:$0xff] %v3760_v3  ;;  %v3761_v7 = vmax.f32 %v2370_v0, 0.0  ;;  %v2372_v18 = vadd.f32 %v5847_v11, %v2299_v5  ;;  %v2301_v20 = vadd.f32 %v2300_v10, %v6006_v35  ;;  %v4809_v0 = vld [vmem:[%s7172_s1 + $0xc8] ss:$76 sps:$4 sm:$0xff]   ;;  %v2423_v10 = vadd.f32 %v5968_v21, %v5886_v23  ;;  %v4840_v21 = vld [vmem:[%s7172_s1 + $0x464] ss:$76 sps:$4 sm:$0xff]  }
 0x11a   :  { %3123 = vmatpush1.bf16.msra.mxu1 %v4794_v58  ;;  %v2304_v28 = vpop.f32.mrf.mxu0  ;;  %v2220_v57 = vsel %vm2182_vm0, %v4339_v42, 0  ;;  %v4828_v58 = vld [vmem:[%s7172_s1 + $0x9b4] ss:$76 sps:$4 sm:$0xff]   ;;  %v4817_v42 = vld [vmem:[%s7172_s1 + $0x918] ss:$76 sps:$4 sm:$0xff]  }
 0x11b   :  { %3124 = vmatprep.subr.bf16.mxu1 %v4802_v2  ;;  %v6058_v24 = vpop.f32.mrf.mxu1  ;;  %3913 = vst [vmem:[%s7175_s3 + $0x268] sm:$0xff] %v3761_v7  ;;  %v3779_v11 = vmax.f32 %v2372_v18, 0.0  ;;  %v2374_v30 = vadd.f32 %v5861_v19, %v2301_v20  ;;  %2999 = vmatpush2.bf16.msra.mxu0 %v4797_v6  ;;  %v2305_v52 = vadd.f32 %v2304_v28, %v6037_v61  ;;  %v4826_v18 = vld [vmem:[%s7172_s1 + $0x9b0] ss:$76 sps:$4 sm:$0xff]  }
 0x11c   :  { %v2306_v39 = vpop.f32.mrf.mxu0  ;;  %3000 = vmatprep.subr.bf16.mxu0 %v4805_v17 }
 0x11d   :  { %4374 = vmatmul.mubr.msk.bf16.gmra.mxu1 %vm2169_vm1, %v5653_v16  ;;  %3931 = vst [vmem:[%s7175_s3 + $0x2f8] sm:$0xff] %v3779_v11  ;;  %v3780_v19 = vmax.f32 %v2374_v30, 0.0  ;;  %v2378_v45 = vadd.f32 %v5878_v12, %v2305_v52  ;;  %v2307_v56 = vadd.f32 %v2306_v39, %v6037_v61  ;;  %v4811_v16 = vld [vmem:[%s7172_s1 + $0xcc] ss:$76 sps:$4 sm:$0xff]   ;;  %v6084_v47 = vpop.f32.mrf.mxu1  ;;  %v2427_v30 = vadd.f32 %v5996_v44, %v5900_v26 }
 0x11e   :  { %3125 = vmatpush1.bf16.msra.mxu1 %v4800_v48  ;;  %3105 = vmatprep.mubr.bf16.mxu1 %v4992_v1  ;;  %v2308_v34 = vpop.f32.mrf.mxu0 }
 0x11f   :  { %3126 = vmatprep.subr.bf16.mxu1 %v4808_v31  ;;  %3932 = vst [vmem:[%s7175_s3 + $0x300] sm:$0xff] %v3780_v19  ;;  %v3798_v12 = vmax.f32 %v2378_v45, 0.0  ;;  %v2380_v49 = vadd.f32 %v5894_v29, %v2307_v56  ;;  %3001 = vmatpush2.bf16.msra.mxu0 %v4803_v37  ;;  %v2309_v62 = vadd.f32 %v2308_v34, %v6068_v40  ;;  %v6110_v6 = vpop.f32.mrf.mxu1  ;;  %v4814_v31 = vld [vmem:[%s7172_s1 + $0x30] ss:$76 sps:$4 sm:$0xff]  }
 0x120   :  { %v2310_v53 = vpop.f32.mrf.mxu0  ;;  %4376 = vmatprep.subr.msk.bf16.mxu0 %vm2182_vm0, %v4340_v41  ;;  %v2431_v37 = vadd.f32 %v6011_v50, %v5916_v51  ;;  %v2433_v19 = vadd.f32 %v6027_v38, %v5916_v51  ;;  %v4822_v45 = vld [vmem:[%s7172_s1 + $0x884] ss:$76 sps:$4 sm:$0xff]  }
 0x121   :  { %3950 = vst [vmem:[%s7175_s3 + $0x390] sm:$0xff] %v3798_v12  ;;  %v3799_v29 = vmax.f32 %v2380_v49, 0.0  ;;  %v2382_v2 = vadd.f32 %v5911_v36, %v2309_v62  ;;  %v2311_v3 = vadd.f32 %v2310_v53, %v6068_v40  ;;  %v2444_v11 = vpop.f32.mrf.mxu1  ;;  %v4820_v62 = vld [vmem:[%s7172_s1 + $0x880] ss:$76 sps:$4 sm:$0xff]   ;;  %v2437_v53 = vadd.f32 %v6058_v24, %v5947_v4 }
 0x122   :  { %3127 = vmatpush1.bf16.msra.mxu1 %v4806_v55  ;;  %3003 = vmatmul.mubr.bf16.vlgmr.msra.gmra.mxu0 %v5802_v59  ;;  %v2493_v5 = vpop.f32.mrf.mxu0 }
 0x123   :  { %3128 = vmatprep.subr.bf16.mxu1 %v4811_v16  ;;  %3951 = vst [vmem:[%s7175_s3 + $0x398] sm:$0xff] %v3799_v29  ;;  %v3817_v36 = vmax.f32 %v2382_v2, 0.0  ;;  %v2384_v17 = vadd.f32 %v5926_v46, %v2311_v3  ;;  %3202 = vmatpush1.bf16.msra.mxu0 %v2220_v57  ;;  %v2494_v7 = vadd.f32 %v2493_v5, %v2421_v60  ;;  %v2446_v56 = vpop.f32.mrf.mxu1  ;;  %v4823_v5 = vld [vmem:[%s7172_s1 + $0x7e8] ss:$76 sps:$4 sm:$0xff]  }
 0x124   :  { %3012 = vmatprep.mubr.bf16.mxu0 %v5813_v63  ;;  %v2495_v20 = vpop.f32.mrf.mxu0  ;;  %3203 = vmatprep.subr.bf16.mxu0 %v4828_v58  ;;  %v2425_v46 = vadd.f32 %v5983_v32, %v5900_v26  ;;  %v4819_v32 = vld [vmem:[%s7172_s1 + $0x91c] ss:$76 sps:$4 sm:$0xff]   ;;  %v2435_v16 = vadd.f32 %v6042_v54, %v5947_v4  ;;  %v4825_v54 = vld [vmem:[%s7172_s1 + $0x7ec] ss:$76 sps:$4 sm:$0xff]   ;;  %v2441_v2 = vadd.f32 %v6084_v47, %v5978_v33  ;;  %v4831_v47 = vld [vmem:[%s7172_s1 + $0x754] ss:$76 sps:$4 sm:$0xff]  }
 0x125   :  { %4375 = vmatmul.mubr.msk.bf16.gmra.mxu1 %vm2169_vm1, %v5680_v22  ;;  %3969 = vst [vmem:[%s7175_s3 + $0x428] sm:$0xff] %v3817_v36  ;;  %v3818_v48 = vmax.f32 %v2384_v17, 0.0  ;;  %v3686_v27 = vmax.f32 %v2494_v7, 0.0  ;;  %v2496_v28 = vadd.f32 %v2495_v20, %v2423_v10  ;;  %v2450_v58 = vpop.f32.mrf.mxu1 }
 0x126   :  { %3129 = vmatpush1.bf16.msra.mxu1 %v4809_v0  ;;  %3148 = vmatprep.mubr.bf16.mxu1 %v5696_v25  ;;  %v2497_v22 = vpop.f32.mrf.mxu0 }
 0x127   :  { %3130 = vmatprep.subr.bf16.mxu1 %v4816_v8  ;;  %3970 = vst [vmem:[%s7175_s3 + $0x430] sm:$0xff] %v3818_v48  ;;  %3838 = vst [vmem:[%s7175_s3 + $0x10] sm:$0xff] %v3686_v27  ;;  %v3687_v52 = vmax.f32 %v2496_v28, 0.0  ;;  %v2498_v25 = vadd.f32 %v2497_v22, %v2425_v46  ;;  %3204 = vmatpush1.bf16.msra.mxu0 %v4826_v18  ;;  %v2443_v8 = vadd.f32 %v6110_v6, %v5978_v33  ;;  %v2452_v36 = vpop.f32.mrf.mxu1  ;;  %v4829_v46 = vld [vmem:[%s7172_s1 + $0x750] ss:$76 sps:$4 sm:$0xff]  }
 0x128   :  { %v2499_v39 = vpop.f32.mrf.mxu0  ;;  %3262 = vmatprep.subr.bf16.mxu0 %v4840_v21  ;;  %v2445_v18 = vadd.f32 %v2444_v11, %v6006_v35  ;;  %v2447_v48 = vadd.f32 %v2446_v56, %v6006_v35  ;;  %v4834_v28 = vld [vmem:[%s7172_s1 + $0x6bc] ss:$76 sps:$4 sm:$0xff]   ;;  %v2451_v11 = vadd.f32 %v2450_v58, %v6037_v61  ;;  %v4846_v58 = vld [vmem:[%s7172_s1 + $0x3cc] ss:$76 sps:$4 sm:$0xff]  }
 0x129   :  { %3839 = vst [vmem:[%s7175_s3 + $0x18] sm:$0xff] %v3687_v52  ;;  %v3705_v44 = vmax.f32 %v2498_v25, 0.0  ;;  %v2500_v41 = vadd.f32 %v2499_v39, %v2427_v30  ;;  %v2453_v39 = vadd.f32 %v2452_v36, %v6037_v61  ;;  %v4852_v36 = vld [vmem:[%s7172_s1 + $0x334] ss:$76 sps:$4 sm:$0xff]  }
 0x12a   :  { %3131 = vmatpush1.bf16.msra.mxu1 %v4814_v31  ;;  %3013 = vmatmul.mubr.bf16.gmra.mxu0 %v5841_v9  ;;  %v2503_v50 = vpop.f32.mrf.mxu0  ;;  %v2454_v31 = vpop.f32.mrf.mxu1 }
 0x12b   :  { %3132 = vmatprep.subr.bf16.mxu1 %v4819_v32  ;;  %3857 = vst [vmem:[%s7175_s3 + $0xa8] sm:$0xff] %v3705_v44  ;;  %v3706_v55 = vmax.f32 %v2500_v41, 0.0  ;;  %v2504_v34 = vadd.f32 %v2503_v50, %v2431_v37  ;;  %3022 = vmatprep.mubr.bf16.mxu0 %v5852_v13  ;;  %v4832_v37 = vld [vmem:[%s7172_s1 + $0x6b8] ss:$76 sps:$4 sm:$0xff]  }
 0x12c   :  { %v2505_v38 = vpop.f32.mrf.mxu0  ;;  %v4837_v41 = vld [vmem:[%s7172_s1 + $0x624] ss:$76 sps:$4 sm:$0xff]  }
 0x12d   :  { %3858 = vst [vmem:[%s7175_s3 + $0xb0] sm:$0xff] %v3706_v55  ;;  %v3724_v12 = vmax.f32 %v2504_v34, 0.0  ;;  %v2506_v49 = vadd.f32 %v2505_v38, %v2433_v19 }
 0x12e   :  { %3133 = vmatpush2.bf16.msra.mxu1 %v4817_v42  ;;  %v2507_v57 = vpop.f32.mrf.mxu0  ;;  %v2456_v42 = vpop.f32.mrf.mxu1 }
 0x12f   :  { %3134 = vmatprep.subr.bf16.mxu1 %v4822_v45  ;;  %3876 = vst [vmem:[%s7175_s3 + $0x140] sm:$0xff] %v3724_v12  ;;  %v3725_v60 = vmax.f32 %v2506_v49, 0.0  ;;  %v2508_v29 = vadd.f32 %v2507_v57, %v2435_v16  ;;  %v2455_v45 = vadd.f32 %v2454_v31, %v6068_v40  ;;  %v4835_v16 = vld [vmem:[%s7172_s1 + $0x620] ss:$76 sps:$4 sm:$0xff]   ;;  %v2457_v38 = vadd.f32 %v2456_v42, %v6068_v40  ;;  %v4878_v31 = vld [vmem:[%s7172_s1 + $0x9bc] ss:$76 sps:$4 sm:$0xff]  }
 0x130   :  { %v2509_v3 = vpop.f32.mrf.mxu0  ;;  %v4843_v49 = vld [vmem:[%s7172_s1 + $0x58c] ss:$76 sps:$4 sm:$0xff]  }
 0x131   :  { %3877 = vst [vmem:[%s7175_s3 + $0x148] sm:$0xff] %v3725_v60  ;;  %v3743_v24 = vmax.f32 %v2508_v29, 0.0  ;;  %v2510_v0 = vadd.f32 %v2509_v3, %v2437_v53  ;;  %v4838_v57 = vld [vmem:[%s7172_s1 + $0x460] ss:$76 sps:$4 sm:$0xff]   ;;  %v6258_v3 = vld [vmem:[%s7173_s0 + $0x8] ss:$12 sps:$4 sm:$0xff]  }
 0x132   :  { %3135 = vmatpush2.bf16.msra.mxu1 %v4820_v62  ;;  %3023 = vmatmul.mubr.bf16.gmra.mxu0 %v5872_v14  ;;  %v2513_v10 = vpop.f32.mrf.mxu0 }
 0x133   :  { %3136 = vmatprep.subr.bf16.mxu1 %v4825_v54  ;;  %3895 = vst [vmem:[%s7175_s3 + $0x1d8] sm:$0xff] %v3743_v24  ;;  %v3744_v17 = vmax.f32 %v2510_v0, 0.0  ;;  %v2514_v7 = vadd.f32 %v2513_v10, %v2441_v2  ;;  %3032 = vmatprep.mubr.bf16.mxu0 %v5883_v15  ;;  %v4841_v2 = vld [vmem:[%s7172_s1 + $0x588] ss:$76 sps:$4 sm:$0xff]  }
 0x134   :  { %v2515_v6 = vpop.f32.mrf.mxu0  ;;  %v4849_v0 = vld [vmem:[%s7172_s1 + $0x4f4] ss:$76 sps:$4 sm:$0xff]  }
 0x135   :  { %3896 = vst [vmem:[%s7175_s3 + $0x1e0] sm:$0xff] %v3744_v17  ;;  %v3762_v20 = vmax.f32 %v2514_v7, 0.0  ;;  %v2516_v21 = vadd.f32 %v2515_v6, %v2443_v8  ;;  %v4844_v8 = vld [vmem:[%s7172_s1 + $0x3c8] ss:$76 sps:$4 sm:$0xff]   ;;  %v4847_v17 = vld [vmem:[%s7172_s1 + $0x4f0] ss:$76 sps:$4 sm:$0xff]  }
 0x136   :  { %3137 = vmatpush2.bf16.msra.mxu1 %v4823_v5  ;;  %v2517_v27 = vpop.f32.mrf.mxu0  ;;  %v378_v10 = vld [vmem:[%s7172_s1 + $0xa50] sm:$0xff] }
 0x137   :  { %3138 = vmatprep.subr.bf16.mxu1 %v4831_v47  ;;  %3914 = vst [vmem:[%s7175_s3 + $0x270] sm:$0xff] %v3762_v20  ;;  %v3763_v22 = vmax.f32 %v2516_v21, 0.0  ;;  %v2518_v32 = vadd.f32 %v2517_v27, %v2445_v18  ;;  %v4342_v18 = vcombine.high %v378_v10, %v378_v10  ;;  %v4341_v6 = vcombine.low %v378_v10, %v378_v10  ;;  %v4850_v20 = vld [vmem:[%s7172_s1 + $0x330] ss:$76 sps:$4 sm:$0xff]   ;;  %v6295_v27 = vld [vmem:[%s7173_s0 + $0x20] ss:$12 sps:$4 sm:$0xff]  }
 0x138   :  { %v2519_v30 = vpop.f32.mrf.mxu0 }
 0x139   :  { %3915 = vst [vmem:[%s7175_s3 + $0x278] sm:$0xff] %v3763_v22  ;;  %v3781_v52 = vmax.f32 %v2518_v32, 0.0  ;;  %v2520_v25 = vadd.f32 %v2519_v30, %v2447_v48  ;;  %v2226_v48 = vsel %vm2182_vm0, %v4341_v6, 0  ;;  %v4853_v22 = vld [vmem:[%s7172_s1 + $0x298] ss:$76 sps:$4 sm:$0xff]  }
 0x13a   :  { %3139 = vmatpush2.bf16.msra.mxu1 %v4829_v46  ;;  %3033 = vmatmul.mubr.bf16.gmra.mxu0 %v5905_v43  ;;  %v2523_v44 = vpop.f32.mrf.mxu0  ;;  %v4855_v46 = vld [vmem:[%s7172_s1 + $0x29c] ss:$76 sps:$4 sm:$0xff]  }
 0x13b   :  { %3140 = vmatprep.subr.bf16.mxu1 %v4834_v28  ;;  %3933 = vst [vmem:[%s7175_s3 + $0x308] sm:$0xff] %v3781_v52  ;;  %v3782_v19 = vmax.f32 %v2520_v25, 0.0  ;;  %v2524_v50 = vadd.f32 %v2523_v44, %v2451_v11  ;;  %3221 = vmatprep.mubr.bf16.mxu0 %v4992_v1  ;;  %v4858_v11 = vld [vmem:[%s7172_s1 + $0x204] ss:$76 sps:$4 sm:$0xff]  }
 0x13c   :  { %v2525_v56 = vpop.f32.mrf.mxu0  ;;  %v4876_v25 = vld [vmem:[%s7172_s1 + $0x9b8] ss:$76 sps:$4 sm:$0xff]  }
 0x13d   :  { %3934 = vst [vmem:[%s7175_s3 + $0x310] sm:$0xff] %v3782_v19  ;;  %v3800_v55 = vmax.f32 %v2524_v50, 0.0  ;;  %v2526_v34 = vadd.f32 %v2525_v56, %v2453_v39  ;;  %v4861_v19 = vld [vmem:[%s7172_s1 + $0x16c] ss:$76 sps:$4 sm:$0xff]  }
 0x13e   :  { %3141 = vmatpush2.bf16.msra.mxu1 %v4832_v37  ;;  %v2527_v12 = vpop.f32.mrf.mxu0 }
 0x13f   :  { %3142 = vmatprep.subr.bf16.mxu1 %v4837_v41  ;;  %3952 = vst [vmem:[%s7175_s3 + $0x3a0] sm:$0xff] %v3800_v55  ;;  %v3801_v62 = vmax.f32 %v2526_v34, 0.0  ;;  %v2528_v53 = vadd.f32 %v2527_v12, %v2455_v45 }
 0x140   :  { %v2529_v54 = vpop.f32.mrf.mxu0 }
 0x141   :  { %3953 = vst [vmem:[%s7175_s3 + $0x3a8] sm:$0xff] %v3801_v62  ;;  %v3819_v60 = vmax.f32 %v2528_v53, 0.0  ;;  %v2530_v29 = vadd.f32 %v2529_v54, %v2457_v38  ;;  %v4859_v53 = vld [vmem:[%s7172_s1 + $0x168] ss:$76 sps:$4 sm:$0xff]  }
 0x142   :  { %3143 = vmatpush2.bf16.msra.mxu1 %v4835_v16  ;;  %4377 = vmatmul.mubr.msk.bf16.vlgmr.msra.gmra.mxu0 %vm2169_vm1, %v6258_v3  ;;  %v2639_v24 = vpop.f32.mrf.mxu0  ;;  %v6329_v16 = vld [vmem:[%s7173_s0 + $0x38] ss:$12 sps:$4 sm:$0xff]  }
 0x143   :  { %3144 = vmatprep.subr.bf16.mxu1 %v4843_v49  ;;  %3971 = vst [vmem:[%s7175_s3 + $0x438] sm:$0xff] %v3819_v60  ;;  %v3820_v5 = vmax.f32 %v2530_v29, 0.0  ;;  %3263 = vmatpush1.bf16.msra.mxu0 %v4838_v57  ;;  %v4866_v57 = vld [vmem:[%s7172_s1 + $0xd4] ss:$76 sps:$4 sm:$0xff]  }
 0x144   :  { %3231 = vmatprep.mubr.bf16.mxu0 %v4992_v1  ;;  %3264 = vmatprep.subr.bf16.mxu0 %v4846_v58  ;;  %v2641_v47 = vpop.f32.mrf.mxu0 }
 0x145   :  { %3972 = vst [vmem:[%s7175_s3 + $0x440] sm:$0xff] %v3820_v5  ;;  %v4864_v5 = vld [vmem:[%s7172_s1 + $0xd0] ss:$76 sps:$4 sm:$0xff]  }
 0x146   :  { %3145 = vmatpush2.bf16.msra.mxu1 %v4841_v2  ;;  %v2643_v7 = vpop.f32.mrf.mxu0 }
 0x147   :  { %3146 = vmatprep.subr.bf16.mxu1 %v4849_v0  ;;  %3265 = vmatpush1.bf16.msra.mxu0 %v4844_v8 }
 0x148   :  { %3266 = vmatprep.subr.bf16.mxu0 %v4852_v36  ;;  %v2645_v21 = vpop.f32.mrf.mxu0 }
 0x14a   :  { %3147 = vmatpush2.bf16.msra.mxu1 %v4847_v17  ;;  %4378 = vmatmul.mubr.msk.bf16.gmra.mxu0 %vm2169_vm1, %v6295_v27  ;;  %v2649_v28 = vpop.f32.mrf.mxu0 }
 0x14b   :  { %4381 = vmatprep.subr.msk.bf16.mxu1 %vm2182_vm0, %v4342_v18  ;;  %3267 = vmatpush1.bf16.msra.mxu0 %v4850_v20  ;;  %v6367_v20 = vld [vmem:[%s7173_s0 + $0x50] ss:$12 sps:$4 sm:$0xff]  }
 0x14c   :  { %3241 = vmatprep.mubr.bf16.mxu0 %v4992_v1  ;;  %3268 = vmatprep.subr.bf16.mxu0 %v4855_v46  ;;  %v2651_v30 = vpop.f32.mrf.mxu0 }
 0x14d   :  { %3149 = vmatmul.mubr.bf16.vlgmr.msra.gmra.mxu1 %v5802_v59  ;;  %v2566_v32 = vpop.f32.mrf.mxu1  ;;  %v4884_v59 = vld [vmem:[%s7172_s1 + $0x46c] ss:$76 sps:$4 sm:$0xff]  }
 0x14e   :  { %v2567_v52 = vadd.f32 %v2566_v32, %v5886_v23  ;;  %3158 = vmatprep.mubr.bf16.mxu1 %v5813_v63  ;;  %3348 = vmatpush1.bf16.msra.mxu1 %v2226_v48  ;;  %v2653_v39 = vpop.f32.mrf.mxu0  ;;  %v4856_v63 = vld [vmem:[%s7172_s1 + $0x200] ss:$76 sps:$4 sm:$0xff]  }
 0x14f   :  { %v2568_v37 = vpop.f32.mrf.mxu1  ;;  %3349 = vmatprep.subr.bf16.mxu1 %v4878_v31  ;;  %3269 = vmatpush1.bf16.msra.mxu0 %v4853_v22  ;;  %v6381_v31 = vld [vmem:[%s7173_s0 + $0x4] ss:$12 sps:$4 sm:$0xff]  }
 0x150   :  { %v2640_v44 = vadd.f32 %v2639_v24, %v2567_v52  ;;  %v2569_v41 = vadd.f32 %v2568_v37, %v5886_v23  ;;  %3270 = vmatprep.subr.bf16.mxu0 %v4858_v11  ;;  %v2655_v50 = vpop.f32.mrf.mxu0  ;;  %v4872_v22 = vld [vmem:[%s7172_s1 + $0x924] ss:$76 sps:$4 sm:$0xff]  }
 0x151   :  { %v2570_v42 = vpop.f32.mrf.mxu1 }
 0x152   :  { %v3688_v45 = vmax.f32 %v2640_v44, 0.0  ;;  %v2642_v56 = vadd.f32 %v2641_v47, %v2569_v41  ;;  %v2571_v55 = vadd.f32 %v2570_v42, %v5900_v26  ;;  %3350 = vmatpush1.bf16.msra.mxu1 %v4876_v25  ;;  %4379 = vmatmul.mubr.msk.bf16.gmra.mxu0 %vm2169_vm1, %v6329_v16  ;;  %v2659_v38 = vpop.f32.mrf.mxu0 }
 0x153   :  { %v2572_v34 = vpop.f32.mrf.mxu1  ;;  %3408 = vmatprep.subr.bf16.mxu1 %v4884_v59  ;;  %3271 = vmatpush1.bf16.msra.mxu0 %v4856_v63 }
 0x154   :  { %3840 = vst [vmem:[%s7175_s3 + $0x20] sm:$0xff] %v3688_v45  ;;  %v3689_v12 = vmax.f32 %v2642_v56, 0.0  ;;  %v2644_v49 = vadd.f32 %v2643_v7, %v2571_v55  ;;  %v2573_v62 = vadd.f32 %v2572_v34, %v5900_v26  ;;  %3251 = vmatprep.mubr.bf16.mxu0 %v4992_v1  ;;  %3272 = vmatprep.subr.bf16.mxu0 %v4861_v19  ;;  %v2661_v58 = vpop.f32.mrf.mxu0  ;;  %v4873_v56 = vld [vmem:[%s7172_s1 + $0x888] ss:$76 sps:$4 sm:$0xff]  }
 0x155   :  { %3159 = vmatmul.mubr.bf16.gmra.mxu1 %v5841_v9  ;;  %v2576_v54 = vpop.f32.mrf.mxu1 }
 0x156   :  { %3841 = vst [vmem:[%s7175_s3 + $0x28] sm:$0xff] %v3689_v12  ;;  %v3707_v60 = vmax.f32 %v2644_v49, 0.0  ;;  %v2646_v29 = vadd.f32 %v2645_v21, %v2573_v62  ;;  %3168 = vmatprep.mubr.bf16.mxu1 %v5852_v13  ;;  %v2577_v2 = vadd.f32 %v2576_v54, %v5916_v51  ;;  %v2663_v0 = vpop.f32.mrf.mxu0  ;;  %v4869_v13 = vld [vmem:[%s7172_s1 + $0x3c] ss:$76 sps:$4 sm:$0xff]   ;;  %v4867_v21 = vld [vmem:[%s7172_s1 + $0x38] ss:$76 sps:$4 sm:$0xff]  }
 0x157   :  { %v2578_v24 = vpop.f32.mrf.mxu1  ;;  %3273 = vmatpush1.bf16.msra.mxu0 %v4859_v53  ;;  %v4881_v12 = vld [vmem:[%s7172_s1 + $0x7f4] ss:$76 sps:$4 sm:$0xff]  }
 0x158   :  { %3859 = vst [vmem:[%s7175_s3 + $0xb8] sm:$0xff] %v3707_v60  ;;  %v3708_v9 = vmax.f32 %v2646_v29, 0.0  ;;  %v2579_v8 = vadd.f32 %v2578_v24, %v5916_v51  ;;  %v2650_v10 = vadd.f32 %v2649_v28, %v2577_v2  ;;  %3274 = vmatprep.subr.bf16.mxu0 %v4866_v57  ;;  %v2665_v6 = vpop.f32.mrf.mxu0  ;;  %v4887_v24 = vld [vmem:[%s7172_s1 + $0x75c] ss:$76 sps:$4 sm:$0xff]  }
 0x159   :  { %v2580_v47 = vpop.f32.mrf.mxu1 }
 0x15a   :  { %3860 = vst [vmem:[%s7175_s3 + $0xc0] sm:$0xff] %v3708_v9  ;;  %v3726_v36 = vmax.f32 %v2650_v10, 0.0  ;;  %v2581_v17 = vadd.f32 %v2580_v47, %v5947_v4  ;;  %v2652_v7 = vadd.f32 %v2651_v30, %v2579_v8  ;;  %4380 = vmatmul.mubr.msk.bf16.gmra.mxu0 %vm2169_vm1, %v6367_v20  ;;  %v2669_v37 = vpop.f32.mrf.mxu0  ;;  %v4882_v9 = vld [vmem:[%s7172_s1 + $0x468] ss:$76 sps:$4 sm:$0xff]  }
 0x15b   :  { %v2582_v18 = vpop.f32.mrf.mxu1  ;;  %3275 = vmatpush1.bf16.msra.mxu0 %v4864_v5  ;;  %3294 = vmatprep.mubr.bf16.mxu0 %v6381_v31 }
 0x15c   :  { %3878 = vst [vmem:[%s7175_s3 + $0x150] sm:$0xff] %v3726_v36  ;;  %v3727_v46 = vmax.f32 %v2652_v7, 0.0  ;;  %v2583_v48 = vadd.f32 %v2582_v18, %v5947_v4  ;;  %v2654_v28 = vadd.f32 %v2653_v39, %v2581_v17  ;;  %3276 = vmatprep.subr.bf16.mxu0 %v4869_v13  ;;  %v2671_v45 = vpop.f32.mrf.mxu0  ;;  %v4890_v13 = vld [vmem:[%s7172_s1 + $0x3d4] ss:$76 sps:$4 sm:$0xff]   ;;  %v4885_v17 = vld [vmem:[%s7172_s1 + $0x758] ss:$76 sps:$4 sm:$0xff]  }
 0x15d   :  { %3169 = vmatmul.mubr.bf16.gmra.mxu1 %v5872_v14  ;;  %v2586_v32 = vpop.f32.mrf.mxu1  ;;  %v4870_v14 = vld [vmem:[%s7172_s1 + $0x920] ss:$76 sps:$4 sm:$0xff]  }
 0x15e   :  { %3879 = vst [vmem:[%s7175_s3 + $0x158] sm:$0xff] %v3727_v46  ;;  %v3745_v11 = vmax.f32 %v2654_v28, 0.0  ;;  %3178 = vmatprep.mubr.bf16.mxu1 %v5883_v15  ;;  %v2587_v30 = vadd.f32 %v2586_v32, %v5978_v33  ;;  %v2656_v52 = vadd.f32 %v2655_v50, %v2583_v48  ;;  %v4875_v15 = vld [vmem:[%s7172_s1 + $0x88c] ss:$76 sps:$4 sm:$0xff]   ;;  %v4888_v48 = vld [vmem:[%s7172_s1 + $0x3d0] ss:$76 sps:$4 sm:$0xff]  }
 0x15f   :  { %v2588_v25 = vpop.f32.mrf.mxu1  ;;  %3277 = vmatpush1.bf16.msra.mxu0 %v4867_v21  ;;  %v4893_v21 = vld [vmem:[%s7172_s1 + $0x6c4] ss:$76 sps:$4 sm:$0xff]   ;;  %v4896_v32 = vld [vmem:[%s7172_s1 + $0x33c] ss:$76 sps:$4 sm:$0xff]  }
 0x160   :  { %3897 = vst [vmem:[%s7175_s3 + $0x1e8] sm:$0xff] %v3745_v11  ;;  %v3746_v39 = vmax.f32 %v2656_v52, 0.0  ;;  %v2589_v59 = vadd.f32 %v2588_v25, %v5978_v33  ;;  %v2660_v44 = vadd.f32 %v2659_v38, %v2587_v30  ;;  %3278 = vmatprep.subr.bf16.mxu0 %v4872_v22  ;;  %v4891_v30 = vld [vmem:[%s7172_s1 + $0x6c0] ss:$76 sps:$4 sm:$0xff]  }
 0x161   :  { %v2590_v41 = vpop.f32.mrf.mxu1  ;;  %v4899_v25 = vld [vmem:[%s7172_s1 + $0x62c] ss:$76 sps:$4 sm:$0xff]  }
 0x162   :  { %3898 = vst [vmem:[%s7175_s3 + $0x1f0] sm:$0xff] %v3746_v39  ;;  %v3764_v63 = vmax.f32 %v2660_v44, 0.0  ;;  %v2591_v42 = vadd.f32 %v2590_v41, %v6006_v35  ;;  %v2662_v19 = vadd.f32 %v2661_v58, %v2589_v59  ;;  %v2673_v58 = vpop.f32.mrf.mxu0  ;;  %v4902_v39 = vld [vmem:[%s7172_s1 + $0x2a4] ss:$76 sps:$4 sm:$0xff]   ;;  %v4897_v44 = vld [vmem:[%s7172_s1 + $0x628] ss:$76 sps:$4 sm:$0xff]  }
 0x163   :  { %v2592_v50 = vpop.f32.mrf.mxu1  ;;  %3279 = vmatpush2.bf16.msra.mxu0 %v4870_v14  ;;  %v4894_v14 = vld [vmem:[%s7172_s1 + $0x338] ss:$76 sps:$4 sm:$0xff]  }
 0x164   :  { %3916 = vst [vmem:[%s7175_s3 + $0x280] sm:$0xff] %v3764_v63  ;;  %v3765_v55 = vmax.f32 %v2662_v19, 0.0  ;;  %v2593_v34 = vadd.f32 %v2592_v50, %v6006_v35  ;;  %v2664_v38 = vadd.f32 %v2663_v0, %v2591_v42  ;;  %3280 = vmatprep.subr.bf16.mxu0 %v4875_v15  ;;  %v2675_v36 = vpop.f32.mrf.mxu0  ;;  %v4905_v15 = vld [vmem:[%s7172_s1 + $0x594] ss:$76 sps:$4 sm:$0xff]   ;;  %v4908_v42 = vld [vmem:[%s7172_s1 + $0x20c] ss:$76 sps:$4 sm:$0xff]  }
 0x165   :  { %3179 = vmatmul.mubr.bf16.gmra.mxu1 %v5905_v43  ;;  %v2596_v49 = vpop.f32.mrf.mxu1  ;;  %v4879_v43 = vld [vmem:[%s7172_s1 + $0x7f0] ss:$76 sps:$4 sm:$0xff]   ;;  %v4900_v63 = vld [vmem:[%s7172_s1 + $0x2a0] ss:$76 sps:$4 sm:$0xff]  }
 0x166   :  { %3917 = vst [vmem:[%s7175_s3 + $0x288] sm:$0xff] %v3765_v55  ;;  %v3783_v62 = vmax.f32 %v2664_v38, 0.0  ;;  %3367 = vmatprep.mubr.bf16.mxu1 %v4992_v1  ;;  %v2597_v53 = vadd.f32 %v2596_v49, %v6037_v61  ;;  %v2666_v57 = vadd.f32 %v2665_v6, %v2593_v34  ;;  %v4903_v19 = vld [vmem:[%s7172_s1 + $0x590] ss:$76 sps:$4 sm:$0xff]   ;;  %v4914_v34 = vld [vmem:[%s7172_s1 + $0x174] ss:$76 sps:$4 sm:$0xff]  }
 0x167   :  { %v2598_v54 = vpop.f32.mrf.mxu1  ;;  %3281 = vmatpush2.bf16.msra.mxu0 %v4873_v56  ;;  %v4911_v50 = vld [vmem:[%s7172_s1 + $0x4fc] ss:$76 sps:$4 sm:$0xff]   ;;  %v4909_v38 = vld [vmem:[%s7172_s1 + $0x4f8] ss:$76 sps:$4 sm:$0xff]  }
 0x168   :  { %3935 = vst [vmem:[%s7175_s3 + $0x318] sm:$0xff] %v3783_v62  ;;  %v3784_v60 = vmax.f32 %v2666_v57, 0.0  ;;  %v2599_v29 = vadd.f32 %v2598_v54, %v6037_v61  ;;  %v2670_v2 = vadd.f32 %v2669_v37, %v2597_v53  ;;  %3282 = vmatprep.subr.bf16.mxu0 %v4881_v12  ;;  %v4906_v56 = vld [vmem:[%s7172_s1 + $0x208] ss:$76 sps:$4 sm:$0xff]   ;;  %v379_v55 = vld [vmem:[%s7172_s1 + $0xa58] sm:$0xff] }
 0x169   :  { %v2600_v0 = vpop.f32.mrf.mxu1  ;;  %v4344_v12 = vcombine.high %v379_v55, %v379_v55  ;;  %v4343_v49 = vcombine.low %v379_v55, %v379_v55  ;;  %v4912_v53 = vld [vmem:[%s7172_s1 + $0x170] ss:$76 sps:$4 sm:$0xff]  }
 0x16a   :  { %3936 = vst [vmem:[%s7175_s3 + $0x320] sm:$0xff] %v3784_v60  ;;  %v3802_v5 = vmax.f32 %v2670_v2, 0.0  ;;  %v2601_v8 = vadd.f32 %v2600_v0, %v6068_v40  ;;  %v2672_v10 = vadd.f32 %v2671_v45, %v2599_v29  ;;  %v4917_v57 = vld [vmem:[%s7172_s1 + $0xdc] ss:$76 sps:$4 sm:$0xff]   ;;  %v4915_v60 = vld [vmem:[%s7172_s1 + $0xd8] ss:$76 sps:$4 sm:$0xff]  }
 0x16b   :  { %v2602_v47 = vpop.f32.mrf.mxu1  ;;  %3283 = vmatpush2.bf16.msra.mxu0 %v4879_v43  ;;  %v2232_v54 = vsel %vm2182_vm0, %v4343_v49, 0  ;;  %v6552_v29 = vld [vmem:[%s7173_s0] ss:$12 sps:$4 sm:$0xff]  }
 0x16c   :  { %3954 = vst [vmem:[%s7175_s3 + $0x3b0] sm:$0xff] %v3802_v5  ;;  %v3803_v7 = vmax.f32 %v2672_v10, 0.0  ;;  %v2603_v18 = vadd.f32 %v2602_v47, %v6068_v40  ;;  %v2674_v6 = vadd.f32 %v2673_v58, %v2601_v8  ;;  %3284 = vmatprep.subr.bf16.mxu0 %v4887_v24  ;;  %v4934_v58 = vld [vmem:[%s7172_s1 + $0x9c4] ss:$76 sps:$4 sm:$0xff]   ;;  %v4932_v5 = vld [vmem:[%s7172_s1 + $0x9c0] ss:$76 sps:$4 sm:$0xff]  }
 0x16d   :  { %4382 = vmatmul.mubr.msk.bf16.vlgmr.msra.gmra.mxu1 %vm2169_vm1, %v6258_v3  ;;  %v6455_v46 = vpop.f32.mrf.mxu1  ;;  %v4922_v24 = vld [vmem:[%s7172_s1 + $0x44] ss:$76 sps:$4 sm:$0xff]  }
 0x16e   :  { %3409 = vmatpush1.bf16.msra.mxu1 %v4882_v9  ;;  %3955 = vst [vmem:[%s7175_s3 + $0x3b8] sm:$0xff] %v3803_v7  ;;  %v3821_v28 = vmax.f32 %v2674_v6, 0.0  ;;  %v2676_v22 = vadd.f32 %v2675_v36, %v2603_v18  ;;  %3377 = vmatprep.mubr.bf16.mxu1 %v4992_v1  ;;  %v6562_v9 = vld [vmem:[%s7173_s0 + $0x1c] ss:$12 sps:$4 sm:$0xff]   ;;  %v4925_v18 = vld [vmem:[%s7172_s1 + $0x92c] ss:$76 sps:$4 sm:$0xff]  }
 0x16f   :  { %3410 = vmatprep.subr.bf16.mxu1 %v4890_v13  ;;  %v6467_v11 = vpop.f32.mrf.mxu1  ;;  %3285 = vmatpush2.bf16.msra.mxu0 %v4885_v17  ;;  %v4947_v13 = vld [vmem:[%s7172_s1 + $0x930] ss:$76 sps:$4 sm:$0xff]   ;;  %v4920_v17 = vld [vmem:[%s7172_s1 + $0x40] ss:$76 sps:$4 sm:$0xff]  }
 0x170   :  { %3973 = vst [vmem:[%s7175_s3 + $0x448] sm:$0xff] %v3821_v28  ;;  %v3822_v52 = vmax.f32 %v2676_v22, 0.0  ;;  %3286 = vmatprep.subr.bf16.mxu0 %v4893_v21 }
 0x171   :  { %v6478_v37 = vpop.f32.mrf.mxu1 }
 0x172   :  { %3411 = vmatpush1.bf16.msra.mxu1 %v4888_v48  ;;  %3974 = vst [vmem:[%s7175_s3 + $0x450] sm:$0xff] %v3822_v52  ;;  %v6599_v52 = vld [vmem:[%s7173_s0 + $0x18] ss:$12 sps:$4 sm:$0xff]  }
 0x173   :  { %3412 = vmatprep.subr.bf16.mxu1 %v4896_v32  ;;  %v6489_v59 = vpop.f32.mrf.mxu1  ;;  %3287 = vmatpush2.bf16.msra.mxu0 %v4891_v30 }
 0x174   :  { %3288 = vmatprep.subr.bf16.mxu0 %v4899_v25 }
 0x175   :  { %4383 = vmatmul.mubr.msk.bf16.gmra.mxu1 %vm2169_vm1, %v6295_v27  ;;  %v6499_v41 = vpop.f32.mrf.mxu1 }
 0x176   :  { %3413 = vmatpush1.bf16.msra.mxu1 %v4894_v14  ;;  %3387 = vmatprep.mubr.bf16.mxu1 %v4992_v1  ;;  %v4928_v14 = vld [vmem:[%s7172_s1 + $0x894] ss:$76 sps:$4 sm:$0xff]  }
 0x177   :  { %3414 = vmatprep.subr.bf16.mxu1 %v4902_v39  ;;  %3289 = vmatpush2.bf16.msra.mxu0 %v4897_v44  ;;  %v6514_v45 = vpop.f32.mrf.mxu1 }
 0x178   :  { %3290 = vmatprep.subr.bf16.mxu0 %v4905_v15  ;;  %v6613_v15 = vld [vmem:[%s7173_s0 + $0x34] ss:$12 sps:$4 sm:$0xff]  }
 0x179   :  { %v6528_v62 = vpop.f32.mrf.mxu1 }
 0x17a   :  { %3415 = vmatpush1.bf16.msra.mxu1 %v4900_v63 }
 0x17b   :  { %3416 = vmatprep.subr.bf16.mxu1 %v4908_v42  ;;  %3291 = vmatpush2.bf16.msra.mxu0 %v4903_v19  ;;  %v6544_v43 = vpop.f32.mrf.mxu1 }
 0x17c   :  { %3292 = vmatprep.subr.bf16.mxu0 %v4911_v50 }
 0x17d   :  { %4384 = vmatmul.mubr.msk.bf16.gmra.mxu1 %vm2169_vm1, %v6329_v16  ;;  %v6568_v10 = vpop.f32.mrf.mxu1 }
 0x17e   :  { %3417 = vmatpush1.bf16.msra.mxu1 %v4906_v56  ;;  %3397 = vmatprep.mubr.bf16.mxu1 %v4992_v1  ;;  %v4926_v56 = vld [vmem:[%s7172_s1 + $0x890] ss:$76 sps:$4 sm:$0xff]  }
 0x17f   :  { %3418 = vmatprep.subr.bf16.mxu1 %v4914_v34  ;;  %3293 = vmatpush2.bf16.msra.mxu0 %v4909_v38  ;;  %v6586_v28 = vpop.f32.mrf.mxu1  ;;  %v4931_v34 = vld [vmem:[%s7172_s1 + $0x7fc] ss:$76 sps:$4 sm:$0xff]  }
 0x180   :  { %4386 = vmatprep.subr.msk.bf16.mxu0 %vm2182_vm0, %v4344_v12 }
 0x181   :  { %v2809_v42 = vpop.f32.mrf.mxu1 }
 0x182   :  { %3419 = vmatpush1.bf16.msra.mxu1 %v4912_v53  ;;  %3295 = vmatmul.mubr.bf16.vlgmr.msra.gmra.mxu0 %v6552_v29  ;;  %v2712_v2 = vpop.f32.mrf.mxu0 }
 0x183   :  { %3420 = vmatprep.subr.bf16.mxu1 %v4917_v57  ;;  %3494 = vmatpush1.bf16.msra.mxu0 %v2232_v54  ;;  %v2713_v0 = vadd.f32 %v2712_v2, %v5886_v23  ;;  %v2811_v53 = vpop.f32.mrf.mxu1 }
 0x184   :  { %3304 = vmatprep.mubr.bf16.mxu0 %v6562_v9  ;;  %v2714_v8 = vpop.f32.mrf.mxu0  ;;  %3495 = vmatprep.subr.bf16.mxu0 %v4934_v58 }
 0x185   :  { %4385 = vmatmul.mubr.msk.bf16.gmra.mxu1 %vm2169_vm1, %v6367_v20  ;;  %v2786_v47 = vadd.f32 %v6455_v46, %v2713_v0  ;;  %v2715_v36 = vadd.f32 %v2714_v8, %v5886_v23  ;;  %v6657_v8 = vld [vmem:[%s7173_s0 + $0x4c] ss:$12 sps:$4 sm:$0xff]  }
 0x186   :  { %3421 = vmatpush1.bf16.msra.mxu1 %v4915_v60  ;;  %3440 = vmatprep.mubr.bf16.mxu1 %v6381_v31  ;;  %v2716_v7 = vpop.f32.mrf.mxu0  ;;  %v4929_v60 = vld [vmem:[%s7172_s1 + $0x7f8] ss:$76 sps:$4 sm:$0xff]  }
 0x187   :  { %3422 = vmatprep.subr.bf16.mxu1 %v4922_v24  ;;  %v3690_v6 = vmax.f32 %v2786_v47, 0.0  ;;  %v2788_v21 = vadd.f32 %v6467_v11, %v2715_v36  ;;  %v2717_v48 = vadd.f32 %v2716_v7, %v5900_v26  ;;  %3496 = vmatpush1.bf16.msra.mxu0 %v4932_v5  ;;  %v4923_v11 = vld [vmem:[%s7172_s1 + $0x928] ss:$76 sps:$4 sm:$0xff]   ;;  %v4937_v24 = vld [vmem:[%s7172_s1 + $0x764] ss:$76 sps:$4 sm:$0xff]   ;;  %v2815_v47 = vpop.f32.mrf.mxu1 }
 0x188   :  { %v2718_v46 = vpop.f32.mrf.mxu0  ;;  %4395 = vmatprep.subr.bf16.mxu0 %v4947_v13 }
 0x189   :  { %3842 = vst [vmem:[%s7175_s3 + $0x30] sm:$0xff] %v3690_v6  ;;  %v3691_v22 = vmax.f32 %v2788_v21, 0.0  ;;  %v2790_v32 = vadd.f32 %v6478_v37, %v2717_v48  ;;  %v2719_v30 = vadd.f32 %v2718_v46, %v5900_v26  ;;  %v4940_v6 = vld [vmem:[%s7172_s1 + $0x6cc] ss:$76 sps:$4 sm:$0xff]  }
 0x18a   :  { %3423 = vmatpush1.bf16.msra.mxu1 %v4920_v17  ;;  %3305 = vmatmul.mubr.bf16.gmra.mxu0 %v6599_v52  ;;  %v2722_v25 = vpop.f32.mrf.mxu0 }
 0x18b   :  { %3424 = vmatprep.subr.bf16.mxu1 %v4925_v18  ;;  %3843 = vst [vmem:[%s7175_s3 + $0x38] sm:$0xff] %v3691_v22  ;;  %v3709_v37 = vmax.f32 %v2790_v32, 0.0  ;;  %v2792_v39 = vadd.f32 %v6489_v59, %v2719_v30  ;;  %v2723_v44 = vadd.f32 %v2722_v25, %v5916_v51  ;;  %3314 = vmatprep.mubr.bf16.mxu0 %v6613_v15  ;;  %v2817_v22 = vpop.f32.mrf.mxu1  ;;  %v4938_v25 = vld [vmem:[%s7172_s1 + $0x6c8] ss:$76 sps:$4 sm:$0xff]  }
 0x18c   :  { %v2724_v63 = vpop.f32.mrf.mxu0 }
 0x18d   :  { %3861 = vst [vmem:[%s7175_s3 + $0xc8] sm:$0xff] %v3709_v37  ;;  %v3710_v19 = vmax.f32 %v2792_v39, 0.0  ;;  %v2725_v50 = vadd.f32 %v2724_v63, %v5916_v51  ;;  %v2796_v59 = vadd.f32 %v6499_v41, %v2723_v44  ;;  %v4943_v37 = vld [vmem:[%s7172_s1 + $0x634] ss:$76 sps:$4 sm:$0xff]  }
 0x18e   :  { %3425 = vmatpush2.bf16.msra.mxu1 %v4923_v11  ;;  %v2726_v55 = vpop.f32.mrf.mxu0 }
 0x18f   :  { %3426 = vmatprep.subr.bf16.mxu1 %v4928_v14  ;;  %3862 = vst [vmem:[%s7175_s3 + $0xd0] sm:$0xff] %v3710_v19  ;;  %v3728_v38 = vmax.f32 %v2796_v59, 0.0  ;;  %v2727_v12 = vadd.f32 %v2726_v55, %v5947_v4  ;;  %v2798_v49 = vadd.f32 %v6514_v45, %v2725_v50  ;;  %v6643_v45 = vld [vmem:[%s7173_s0 + $0x30] ss:$12 sps:$4 sm:$0xff]   ;;  %v6686_v14 = vld [vmem:[%s7173_s0 + $0x48] ss:$12 sps:$4 sm:$0xff]   ;;  %v2819_v19 = vpop.f32.mrf.mxu1 }
 0x190   :  { %v2728_v41 = vpop.f32.mrf.mxu0  ;;  %v4941_v55 = vld [vmem:[%s7172_s1 + $0x630] ss:$76 sps:$4 sm:$0xff]  }
 0x191   :  { %3880 = vst [vmem:[%s7175_s3 + $0x160] sm:$0xff] %v3728_v38  ;;  %v3729_v57 = vmax.f32 %v2798_v49, 0.0  ;;  %v2729_v54 = vadd.f32 %v2728_v41, %v5947_v4  ;;  %v2800_v58 = vadd.f32 %v6528_v62, %v2727_v12  ;;  %v4946_v38 = vld [vmem:[%s7172_s1 + $0x59c] ss:$76 sps:$4 sm:$0xff]  }
 0x192   :  { %3427 = vmatpush2.bf16.msra.mxu1 %v4926_v56  ;;  %3315 = vmatmul.mubr.bf16.gmra.mxu0 %v6643_v45  ;;  %v2732_v2 = vpop.f32.mrf.mxu0 }
 0x193   :  { %3428 = vmatprep.subr.bf16.mxu1 %v4931_v34  ;;  %3881 = vst [vmem:[%s7175_s3 + $0x168] sm:$0xff] %v3729_v57  ;;  %v3747_v62 = vmax.f32 %v2800_v58, 0.0  ;;  %v2733_v0 = vadd.f32 %v2732_v2, %v5978_v33  ;;  %v2802_v5 = vadd.f32 %v6544_v43, %v2729_v54  ;;  %3324 = vmatprep.mubr.bf16.mxu0 %v6657_v8  ;;  %v4935_v43 = vld [vmem:[%s7172_s1 + $0x760] ss:$76 sps:$4 sm:$0xff]   ;;  %v2821_v54 = vpop.f32.mrf.mxu1  ;;  %v4952_v58 = vld [vmem:[%s7172_s1 + $0x898] ss:$76 sps:$4 sm:$0xff]  }
 0x194   :  { %v2734_v13 = vpop.f32.mrf.mxu0 }
 0x195   :  { %3899 = vst [vmem:[%s7175_s3 + $0x1f8] sm:$0xff] %v3747_v62  ;;  %v3748_v36 = vmax.f32 %v2802_v5, 0.0  ;;  %v2735_v17 = vadd.f32 %v2734_v13, %v5978_v33  ;;  %v2806_v7 = vadd.f32 %v6568_v10, %v2733_v0  ;;  %v4944_v62 = vld [vmem:[%s7172_s1 + $0x598] ss:$76 sps:$4 sm:$0xff]  }
 0x196   :  { %3429 = vmatpush2.bf16.msra.mxu1 %v4929_v60  ;;  %v2736_v18 = vpop.f32.mrf.mxu0  ;;  %v4951_v5 = vld [vmem:[%s7172_s1 + $0x504] ss:$76 sps:$4 sm:$0xff]  }
 0x197   :  { %3430 = vmatprep.subr.bf16.mxu1 %v4937_v24  ;;  %3900 = vst [vmem:[%s7175_s3 + $0x200] sm:$0xff] %v3748_v36  ;;  %v3766_v21 = vmax.f32 %v2806_v7, 0.0  ;;  %v2737_v48 = vadd.f32 %v2736_v18, %v6006_v35  ;;  %v2808_v46 = vadd.f32 %v6586_v28, %v2735_v17  ;;  %v4953_v36 = vld [vmem:[%s7172_s1 + $0x3d8] ss:$76 sps:$4 sm:$0xff]   ;;  %v4954_v7 = vld [vmem:[%s7172_s1 + $0x800] ss:$76 sps:$4 sm:$0xff]  }
 0x198   :  { %v2738_v10 = vpop.f32.mrf.mxu0  ;;  %v4949_v18 = vld [vmem:[%s7172_s1 + $0x500] ss:$76 sps:$4 sm:$0xff]  }
 0x199   :  { %3918 = vst [vmem:[%s7175_s3 + $0x290] sm:$0xff] %v3766_v21  ;;  %v3767_v32 = vmax.f32 %v2808_v46, 0.0  ;;  %v2739_v30 = vadd.f32 %v2738_v10, %v6006_v35  ;;  %v2810_v11 = vadd.f32 %v2809_v42, %v2737_v48  ;;  %v4961_v21 = vld [vmem:[%s7172_s1 + $0xa60] ss:$0 sps:$4 sm:$0xff]   ;;  %v4956_v10 = vld [vmem:[%s7172_s1 + $0x768] ss:$76 sps:$4 sm:$0xff]  }
 0x19a   :  { %3431 = vmatpush2.bf16.msra.mxu1 %v4935_v43  ;;  %3325 = vmatmul.mubr.bf16.gmra.mxu0 %v6686_v14  ;;  %v2742_v28 = vpop.f32.mrf.mxu0  ;;  %v4955_v48 = vld [vmem:[%s7172_s1 + $0x340] ss:$76 sps:$4 sm:$0xff]  }
 0x19b   :  { %3432 = vmatprep.subr.bf16.mxu1 %v4940_v6  ;;  %3919 = vst [vmem:[%s7175_s3 + $0x298] sm:$0xff] %v3767_v32  ;;  %v3785_v39 = vmax.f32 %v2810_v11, 0.0  ;;  %v2743_v44 = vadd.f32 %v2742_v28, %v6037_v61  ;;  %v2812_v63 = vadd.f32 %v2811_v53, %v2739_v30  ;;  %3513 = vmatprep.mubr.bf16.mxu0 %v4992_v1  ;;  %v4948_v53 = vld [vmem:[%s7172_s1 + $0x470] ss:$76 sps:$4 sm:$0xff]   ;;  %v4967_v30 = vld [vmem:[%s7172_s1 + $0x9c8] ss:$76 sps:$4 sm:$0xff]  }
 0x19c   :  { %v2744_v42 = vpop.f32.mrf.mxu0  ;;  %v4957_v11 = vld [vmem:[%s7172_s1 + $0x2a8] ss:$76 sps:$4 sm:$0xff]   ;;  %v4958_v28 = vld [vmem:[%s7172_s1 + $0x6d0] ss:$76 sps:$4 sm:$0xff]  }
 0x19d   :  { %3937 = vst [vmem:[%s7175_s3 + $0x328] sm:$0xff] %v3785_v39  ;;  %v3786_v50 = vmax.f32 %v2812_v63, 0.0  ;;  %v2745_v59 = vadd.f32 %v2744_v42, %v6037_v61  ;;  %v2816_v56 = vadd.f32 %v2815_v47, %v2743_v44 }
 0x19e   :  { %3433 = vmatpush2.bf16.msra.mxu1 %v4938_v25  ;;  %v2746_v34 = vpop.f32.mrf.mxu0 }
 0x19f   :  { %3434 = vmatprep.subr.bf16.mxu1 %v4943_v37  ;;  %3938 = vst [vmem:[%s7175_s3 + $0x330] sm:$0xff] %v3786_v50  ;;  %v3804_v12 = vmax.f32 %v2816_v56, 0.0  ;;  %v2747_v49 = vadd.f32 %v2746_v34, %v6068_v40  ;;  %v2818_v41 = vadd.f32 %v2817_v22, %v2745_v59  ;;  %v2238_v22 = vsel %vm2182_vm0, %v4961_v21, 0  ;;  %v4959_v50 = vld [vmem:[%s7172_s1 + $0x210] ss:$76 sps:$4 sm:$0xff]  }
 0x1a0   :  { %v2748_v57 = vpop.f32.mrf.mxu0  ;;  %v4960_v56 = vld [vmem:[%s7172_s1 + $0x638] ss:$76 sps:$4 sm:$0xff]  }
 0x1a1   :  { %3956 = vst [vmem:[%s7175_s3 + $0x3c0] sm:$0xff] %v3804_v12  ;;  %v3805_v60 = vmax.f32 %v2818_v41, 0.0  ;;  %v2749_v2 = vadd.f32 %v2748_v57, %v6068_v40  ;;  %v2820_v24 = vadd.f32 %v2819_v19, %v2747_v49 }
 0x1a2   :  { %3435 = vmatpush2.bf16.msra.mxu1 %v4941_v55  ;;  %4387 = vmatmul.mubr.msk.bf16.vlgmr.msra.gmra.mxu0 %vm2169_vm1, %v6258_v3  ;;  %v2931_v0 = vpop.f32.mrf.mxu0 }
 0x1a3   :  { %3436 = vmatprep.subr.bf16.mxu1 %v4946_v38  ;;  %3957 = vst [vmem:[%s7175_s3 + $0x3c8] sm:$0xff] %v3805_v60  ;;  %v3823_v13 = vmax.f32 %v2820_v24, 0.0  ;;  %4396 = vmatpush3.bf16.msra.mxu0 %v4948_v53  ;;  %v2822_v47 = vadd.f32 %v2821_v54, %v2749_v2  ;;  %v4963_v2 = vld [vmem:[%s7172_s1 + $0x5a0] ss:$76 sps:$4 sm:$0xff]  }
 0x1a4   :  { %3523 = vmatprep.mubr.bf16.mxu0 %v4992_v1  ;;  %v2933_v17 = vpop.f32.mrf.mxu0  ;;  %4397 = vmatprep.subr.bf16.mxu0 %v4952_v58  ;;  %v4962_v58 = vld [vmem:[%s7172_s1 + $0x178] ss:$76 sps:$4 sm:$0xff]  }
 0x1a5   :  { %3975 = vst [vmem:[%s7175_s3 + $0x458] sm:$0xff] %v3823_v13  ;;  %v3824_v43 = vmax.f32 %v2822_v47, 0.0 }
 0x1a6   :  { %3437 = vmatpush2.bf16.msra.mxu1 %v4944_v62  ;;  %v2935_v6 = vpop.f32.mrf.mxu0 }
 0x1a7   :  { %3438 = vmatprep.subr.bf16.mxu1 %v4951_v5  ;;  %3976 = vst [vmem:[%s7175_s3 + $0x460] sm:$0xff] %v3824_v43  ;;  %4398 = vmatpush3.bf16.msra.mxu0 %v4953_v36  ;;  %v4964_v36 = vld [vmem:[%s7172_s1 + $0xe0] ss:$76 sps:$4 sm:$0xff]  }
 0x1a8   :  { %v2937_v46 = vpop.f32.mrf.mxu0  ;;  %4399 = vmatprep.subr.bf16.mxu0 %v4954_v7 }
 0x1aa   :  { %3439 = vmatpush2.bf16.msra.mxu1 %v4949_v18  ;;  %4388 = vmatmul.mubr.msk.bf16.gmra.mxu0 %vm2169_vm1, %v6295_v27  ;;  %v2941_v32 = vpop.f32.mrf.mxu0  ;;  %v4965_v18 = vld [vmem:[%s7172_s1 + $0x508] ss:$76 sps:$4 sm:$0xff]  }
 0x1ab   :  { %4453 = vmatprep.subr.msk.bf16.mxu1 %vm2182_vm0, %v4961_v21  ;;  %4400 = vmatpush3.bf16.msra.mxu0 %v4955_v48 }
 0x1ac   :  { %3533 = vmatprep.mubr.bf16.mxu0 %v4992_v1  ;;  %4401 = vmatprep.subr.bf16.mxu0 %v4956_v10  ;;  %v2943_v37 = vpop.f32.mrf.mxu0 }
 0x1ad   :  { %3441 = vmatmul.mubr.bf16.vlgmr.msra.gmra.mxu1 %v6552_v29  ;;  %v2858_v25 = vpop.f32.mrf.mxu1 }
 0x1ae   :  { %v2859_v39 = vadd.f32 %v2858_v25, %v5886_v23  ;;  %3450 = vmatprep.mubr.bf16.mxu1 %v6562_v9  ;;  %4442 = vmatpush3.bf16.msra.mxu1 %v2238_v22  ;;  %v2945_v63 = vpop.f32.mrf.mxu0 }
 0x1af   :  { %v2860_v44 = vpop.f32.mrf.mxu1  ;;  %4443 = vmatprep.subr.bf16.mxu1 %v4967_v30  ;;  %4402 = vmatpush3.bf16.msra.mxu0 %v4957_v11 }
 0x1b0   :  { %v2932_v42 = vadd.f32 %v2931_v0, %v2859_v39  ;;  %v2861_v19 = vadd.f32 %v2860_v44, %v5886_v23  ;;  %4403 = vmatprep.subr.bf16.mxu0 %v4958_v28  ;;  %v2947_v55 = vpop.f32.mrf.mxu0 }
 0x1b1   :  { %v2862_v59 = vpop.f32.mrf.mxu1 }
 0x1b2   :  { %v3692_v34 = vmax.f32 %v2932_v42, 0.0  ;;  %v2934_v38 = vadd.f32 %v2933_v17, %v2861_v19  ;;  %v2863_v12 = vadd.f32 %v2862_v59, %v5900_v26  ;;  %4444 = vmatpush3.bf16.msra.mxu1 %v4967_v30  ;;  %4389 = vmatmul.mubr.msk.bf16.gmra.mxu0 %vm2169_vm1, %v6329_v16  ;;  %v2951_v41 = vpop.f32.mrf.mxu0 }
 0x1b3   :  { %v2864_v49 = vpop.f32.mrf.mxu1  ;;  %4404 = vmatpush3.bf16.msra.mxu0 %v4959_v50  ;;  %3543 = vmatprep.mubr.bf16.mxu0 %v4992_v1 }
 0x1b4   :  { %3844 = vst [vmem:[%s7175_s3 + $0x40] sm:$0xff] %v3692_v34  ;;  %v3693_v53 = vmax.f32 %v2934_v38, 0.0  ;;  %v2936_v57 = vadd.f32 %v2935_v6, %v2863_v12  ;;  %v2865_v54 = vadd.f32 %v2864_v49, %v5900_v26  ;;  %4405 = vmatprep.subr.bf16.mxu0 %v4960_v56  ;;  %v2953_v24 = vpop.f32.mrf.mxu0 }
 0x1b5   :  { %3451 = vmatmul.mubr.bf16.gmra.mxu1 %v6599_v52  ;;  %v2868_v60 = vpop.f32.mrf.mxu1 }
 0x1b6   :  { %3845 = vst [vmem:[%s7175_s3 + $0x48] sm:$0xff] %v3693_v53  ;;  %v3711_v62 = vmax.f32 %v2936_v57, 0.0  ;;  %v2938_v0 = vadd.f32 %v2937_v46, %v2865_v54  ;;  %3460 = vmatprep.mubr.bf16.mxu1 %v6613_v15  ;;  %v2869_v5 = vadd.f32 %v2868_v60, %v5916_v51  ;;  %v2955_v13 = vpop.f32.mrf.mxu0 }
 0x1b7   :  { %v2870_v1 = vpop.f32.mrf.mxu1  ;;  %4406 = vmatpush3.bf16.msra.mxu0 %v4962_v58 }
 0x1b8   :  { %3863 = vst [vmem:[%s7175_s3 + $0xd8] sm:$0xff] %v3711_v62  ;;  %v3712_v47 = vmax.f32 %v2938_v0, 0.0  ;;  %v2871_v17 = vadd.f32 %v2870_v1, %v5916_v51  ;;  %v2942_v7 = vadd.f32 %v2941_v32, %v2869_v5  ;;  %4407 = vmatprep.subr.bf16.mxu0 %v4963_v2  ;;  %v2957_v10 = vpop.f32.mrf.mxu0  ;;  %v4966_v32 = vld [vmem:[%s7172_s1 + $0x48] ss:$76 sps:$4 sm:$0xff]  }
 0x1b9   :  { %v2872_v43 = vpop.f32.mrf.mxu1 }
 0x1ba   :  { %3864 = vst [vmem:[%s7175_s3 + $0xe0] sm:$0xff] %v3712_v47  ;;  %v3730_v6 = vmax.f32 %v2942_v7, 0.0  ;;  %v2873_v21 = vadd.f32 %v2872_v43, %v5947_v4  ;;  %v2944_v48 = vadd.f32 %v2943_v37, %v2871_v17  ;;  %4390 = vmatmul.mubr.msk.bf16.gmra.mxu0 %vm2169_vm1, %v6367_v20  ;;  %v2961_v42 = vpop.f32.mrf.mxu0 }
 0x1bb   :  { %v2874_v46 = vpop.f32.mrf.mxu1  ;;  %4408 = vmatpush3.bf16.msra.mxu0 %v4964_v36  ;;  %3586 = vmatprep.mubr.bf16.mxu0 %v6381_v31 }
 0x1bc   :  { %3882 = vst [vmem:[%s7175_s3 + $0x170] sm:$0xff] %v3730_v6  ;;  %v3731_v22 = vmax.f32 %v2944_v48, 0.0  ;;  %v2875_v30 = vadd.f32 %v2874_v46, %v5947_v4  ;;  %v2946_v11 = vadd.f32 %v2945_v63, %v2873_v21  ;;  %4409 = vmatprep.subr.bf16.mxu0 %v4965_v18  ;;  %v2963_v38 = vpop.f32.mrf.mxu0 }
 0x1bd   :  { %3461 = vmatmul.mubr.bf16.gmra.mxu1 %v6643_v45  ;;  %v2878_v25 = vpop.f32.mrf.mxu1 }
 0x1be   :  { %3883 = vst [vmem:[%s7175_s3 + $0x178] sm:$0xff] %v3731_v22  ;;  %v3749_v28 = vmax.f32 %v2946_v11, 0.0  ;;  %3470 = vmatprep.mubr.bf16.mxu1 %v6657_v8  ;;  %v2879_v37 = vadd.f32 %v2878_v25, %v5978_v33  ;;  %v2948_v39 = vadd.f32 %v2947_v55, %v2875_v30  ;;  %v2965_v60 = vpop.f32.mrf.mxu0 }
 0x1bf   :  { %v2880_v44 = vpop.f32.mrf.mxu1  ;;  %4410 = vmatpush3.bf16.msra.mxu0 %v4966_v32 }
 0x1c0   :  { %3901 = vst [vmem:[%s7175_s3 + $0x208] sm:$0xff] %v3749_v28  ;;  %v3750_v31 = vmax.f32 %v2948_v39, 0.0  ;;  %v2881_v63 = vadd.f32 %v2880_v44, %v5978_v33  ;;  %v2952_v19 = vadd.f32 %v2951_v41, %v2879_v37 }
 0x1c1   :  { %v2882_v50 = vpop.f32.mrf.mxu1 }
 0x1c2   :  { %3902 = vst [vmem:[%s7175_s3 + $0x210] sm:$0xff] %v3750_v31  ;;  %v3768_v59 = vmax.f32 %v2952_v19, 0.0  ;;  %v2883_v56 = vadd.f32 %v2882_v50, %v6006_v35  ;;  %v2954_v55 = vadd.f32 %v2953_v24, %v2881_v63  ;;  %3587 = vmatmul.mubr.bf16.vlgmr.msra.gmra.mxu0 %v6552_v29 }
 0x1c3   :  { %v2884_v34 = vpop.f32.mrf.mxu1  ;;  %3594 = vmatprep.mubr.bf16.mxu0 %v6562_v9 }
 0x1c4   :  { %3920 = vst [vmem:[%s7175_s3 + $0x2a0] sm:$0xff] %v3768_v59  ;;  %v3769_v12 = vmax.f32 %v2954_v55, 0.0  ;;  %v2885_v49 = vadd.f32 %v2884_v34, %v6006_v35  ;;  %v2956_v41 = vadd.f32 %v2955_v13, %v2883_v56  ;;  %v2967_v13 = vpop.f32.mrf.mxu0 }
 0x1c5   :  { %3471 = vmatmul.mubr.bf16.gmra.mxu1 %v6686_v14  ;;  %v2888_v53 = vpop.f32.mrf.mxu1 }
 0x1c6   :  { %3921 = vst [vmem:[%s7175_s3 + $0x2a8] sm:$0xff] %v3769_v12  ;;  %v3787_v29 = vmax.f32 %v2956_v41, 0.0  ;;  %4445 = vmatprep.mubr.msk.bf16.mxu1 %vm2169_vm1, %v6258_v3  ;;  %v2889_v57 = vadd.f32 %v2888_v53, %v6037_v61  ;;  %v2958_v54 = vadd.f32 %v2957_v10, %v2885_v49 }
 0x1c7   :  { %v2890_v58 = vpop.f32.mrf.mxu1 }
 0x1c8   :  { %3939 = vst [vmem:[%s7175_s3 + $0x338] sm:$0xff] %v3787_v29  ;;  %v3788_v9 = vmax.f32 %v2958_v54, 0.0  ;;  %v2891_v2 = vadd.f32 %v2890_v58, %v6037_v61  ;;  %v2962_v24 = vadd.f32 %v2961_v42, %v2889_v57 }
 0x1c9   :  { %v2892_v62 = vpop.f32.mrf.mxu1 }
 0x1ca   :  { %3940 = vst [vmem:[%s7175_s3 + $0x340] sm:$0xff] %v3788_v9  ;;  %v3806_v0 = vmax.f32 %v2962_v24, 0.0  ;;  %v2893_v3 = vadd.f32 %v2892_v62, %v6068_v40  ;;  %v2964_v5 = vadd.f32 %v2963_v38, %v2891_v2  ;;  %3595 = vmatmul.mubr.bf16.gmra.mxu0 %v6599_v52 }
 0x1cb   :  { %v2894_v1 = vpop.f32.mrf.mxu1  ;;  %3602 = vmatprep.mubr.bf16.mxu0 %v6613_v15 }
 0x1cc   :  { %3958 = vst [vmem:[%s7175_s3 + $0x3d0] sm:$0xff] %v3806_v0  ;;  %v3807_v47 = vmax.f32 %v2964_v5, 0.0  ;;  %v2895_v36 = vadd.f32 %v2894_v1, %v6068_v40  ;;  %v2966_v17 = vadd.f32 %v2965_v60, %v2893_v3 }
 0x1cd   :  { %4446 = vmatmul.mubr.msk.bf16.vlgmr.msra.gmra.mxu1 %vm2169_vm1, %v6295_v27  ;;  %v3077_v7 = vpop.f32.mrf.mxu1 }
 0x1ce   :  { %3959 = vst [vmem:[%s7175_s3 + $0x3d8] sm:$0xff] %v3807_v47  ;;  %v3825_v52 = vmax.f32 %v2966_v17, 0.0  ;;  %v2968_v43 = vadd.f32 %v2967_v13, %v2895_v36  ;;  %4449 = vmatprep.mubr.msk.bf16.mxu1 %vm2169_vm1, %v6329_v16 }
 0x1cf   :  { %v3079_v18 = vpop.f32.mrf.mxu1 }
 0x1d0   :  { %3977 = vst [vmem:[%s7175_s3 + $0x468] sm:$0xff] %v3825_v52  ;;  %v3826_v6 = vmax.f32 %v2968_v43, 0.0 }
 0x1d1   :  { %v3081_v15 = vpop.f32.mrf.mxu1 }
 0x1d2   :  { %3978 = vst [vmem:[%s7175_s3 + $0x470] sm:$0xff] %v3826_v6  ;;  %3603 = vmatmul.mubr.bf16.gmra.mxu0 %v6643_v45 }
 0x1d3   :  { %v3083_v27 = vpop.f32.mrf.mxu1  ;;  %3610 = vmatprep.mubr.bf16.mxu0 %v6657_v8 }
 0x1d5   :  { %4450 = vmatmul.mubr.msk.bf16.gmra.mxu1 %vm2169_vm1, %v6367_v20  ;;  %v3087_v16 = vpop.f32.mrf.mxu1 }
 0x1d7   :  { %v3089_v21 = vpop.f32.mrf.mxu1 }
 0x1d9   :  { %v3091_v48 = vpop.f32.mrf.mxu1 }
 0x1da   :  { %3611 = vmatmul.mubr.bf16.gmra.mxu0 %v6686_v14 }
 0x1db   :  { %v3093_v46 = vpop.f32.mrf.mxu1 }
 0x1dd   :  { %v3097_v30 = vpop.f32.mrf.mxu1 }
 0x1df   :  { %v3099_v39 = vpop.f32.mrf.mxu1 }
 0x1e1   :  { %v3101_v56 = vpop.f32.mrf.mxu1 }
 0x1e2   :  { %v3004_v10 = vpop.f32.mrf.mxu0 }
 0x1e3   :  { %v3005_v22 = vadd.f32 %v3004_v10, %v5886_v23  ;;  %v3103_v57 = vpop.f32.mrf.mxu1 }
 0x1e4   :  { %v3006_v32 = vpop.f32.mrf.mxu0 }
 0x1e5   :  { %v3078_v11 = vadd.f32 %v3077_v7, %v3005_v22  ;;  %v3007_v45 = vadd.f32 %v3006_v32, %v5886_v23  ;;  %v3107_v3 = vpop.f32.mrf.mxu1 }
 0x1e6   :  { %v3008_v25 = vpop.f32.mrf.mxu0 }
 0x1e7   :  { %v3694_v28 = vmax.f32 %v3078_v11, 0.0  ;;  %v3080_v8 = vadd.f32 %v3079_v18, %v3007_v45  ;;  %v3009_v37 = vadd.f32 %v3008_v25, %v5900_v26  ;;  %v3109_v43 = vpop.f32.mrf.mxu1 }
 0x1e8   :  { %v3010_v20 = vpop.f32.mrf.mxu0 }
 0x1e9   :  { %3846 = vst [vmem:[%s7175_s3 + $0x50] sm:$0xff] %v3694_v28  ;;  %v3695_v14 = vmax.f32 %v3080_v8, 0.0  ;;  %v3082_v44 = vadd.f32 %v3081_v15, %v3009_v37  ;;  %v3011_v42 = vadd.f32 %v3010_v20, %v5900_v26  ;;  %v3111_v10 = vpop.f32.mrf.mxu1 }
 0x1ea   :  { %v3014_v31 = vpop.f32.mrf.mxu0 }
 0x1eb   :  { %3847 = vst [vmem:[%s7175_s3 + $0x58] sm:$0xff] %v3695_v14  ;;  %v3713_v63 = vmax.f32 %v3082_v44, 0.0  ;;  %v3084_v19 = vadd.f32 %v3083_v27, %v3011_v42  ;;  %v3015_v50 = vadd.f32 %v3014_v31, %v5916_v51  ;;  %v3113_v37 = vpop.f32.mrf.mxu1 }
 0x1ec   :  { %v3016_v59 = vpop.f32.mrf.mxu0 }
 0x1ed   :  { %3865 = vst [vmem:[%s7175_s3 + $0xe8] sm:$0xff] %v3713_v63  ;;  %v3714_v55 = vmax.f32 %v3084_v19, 0.0  ;;  %v3017_v34 = vadd.f32 %v3016_v59, %v5916_v51  ;;  %v3088_v38 = vadd.f32 %v3087_v16, %v3015_v50 }
 0x1ee   :  { %v3018_v12 = vpop.f32.mrf.mxu0 }
 0x1ef   :  { %3866 = vst [vmem:[%s7175_s3 + $0xf0] sm:$0xff] %v3714_v55  ;;  %v3732_v49 = vmax.f32 %v3088_v38, 0.0  ;;  %v3019_v41 = vadd.f32 %v3018_v12, %v5947_v4  ;;  %v3090_v53 = vadd.f32 %v3089_v21, %v3017_v34 }
 0x1f0   :  { %v3020_v29 = vpop.f32.mrf.mxu0 }
 0x1f1   :  { %3884 = vst [vmem:[%s7175_s3 + $0x180] sm:$0xff] %v3732_v49  ;;  %v3733_v54 = vmax.f32 %v3090_v53, 0.0  ;;  %v3021_v58 = vadd.f32 %v3020_v29, %v5947_v4  ;;  %v3092_v60 = vadd.f32 %v3091_v48, %v3019_v41 }
 0x1f2   :  { %v3024_v9 = vpop.f32.mrf.mxu0 }
 0x1f3   :  { %3885 = vst [vmem:[%s7175_s3 + $0x188] sm:$0xff] %v3733_v54  ;;  %v3751_v2 = vmax.f32 %v3092_v60, 0.0  ;;  %v3025_v24 = vadd.f32 %v3024_v9, %v5978_v33  ;;  %v3094_v62 = vadd.f32 %v3093_v46, %v3021_v58 }
 0x1f4   :  { %v3026_v0 = vpop.f32.mrf.mxu0 }
 0x1f5   :  { %3903 = vst [vmem:[%s7175_s3 + $0x218] sm:$0xff] %v3751_v2  ;;  %v3752_v5 = vmax.f32 %v3094_v62, 0.0  ;;  %v3027_v1 = vadd.f32 %v3026_v0, %v5978_v33  ;;  %v3098_v13 = vadd.f32 %v3097_v30, %v3025_v24 }
 0x1f6   :  { %v3028_v47 = vpop.f32.mrf.mxu0 }
 0x1f7   :  { %3904 = vst [vmem:[%s7175_s3 + $0x220] sm:$0xff] %v3752_v5  ;;  %v3770_v36 = vmax.f32 %v3098_v13, 0.0  ;;  %v3029_v17 = vadd.f32 %v3028_v47, %v6006_v35  ;;  %v3100_v7 = vadd.f32 %v3099_v39, %v3027_v1 }
 0x1f8   :  { %v3030_v52 = vpop.f32.mrf.mxu0 }
 0x1f9   :  { %3922 = vst [vmem:[%s7175_s3 + $0x2b0] sm:$0xff] %v3770_v36  ;;  %v3771_v18 = vmax.f32 %v3100_v7, 0.0  ;;  %v3031_v6 = vadd.f32 %v3030_v52, %v6006_v35  ;;  %v3102_v15 = vadd.f32 %v3101_v56, %v3029_v17 }
 0x1fa   :  { %v3034_v27 = vpop.f32.mrf.mxu0 }
 0x1fb   :  { %3923 = vst [vmem:[%s7175_s3 + $0x2b8] sm:$0xff] %v3771_v18  ;;  %v3789_v16 = vmax.f32 %v3102_v15, 0.0  ;;  %v3035_v21 = vadd.f32 %v3034_v27, %v6037_v61  ;;  %v3104_v48 = vadd.f32 %v3103_v57, %v3031_v6 }
 0x1fc   :  { %v3036_v46 = vpop.f32.mrf.mxu0 }
 0x1fd   :  { %3941 = vst [vmem:[%s7175_s3 + $0x348] sm:$0xff] %v3789_v16  ;;  %v3790_v22 = vmax.f32 %v3104_v48, 0.0  ;;  %v3037_v32 = vadd.f32 %v3036_v46, %v6037_v61  ;;  %v3108_v30 = vadd.f32 %v3107_v3, %v3035_v21 }
 0x1fe   :  { %v3038_v11 = vpop.f32.mrf.mxu0 }
 0x1ff   :  { %3942 = vst [vmem:[%s7175_s3 + $0x350] sm:$0xff] %v3790_v22  ;;  %v3808_v45 = vmax.f32 %v3108_v30, 0.0  ;;  %v3039_v25 = vadd.f32 %v3038_v11, %v6068_v40  ;;  %v3110_v28 = vadd.f32 %v3109_v43, %v3037_v32 }
 0x200   :  { %v3040_v8 = vpop.f32.mrf.mxu0 }
 0x201   :  { %3960 = vst [vmem:[%s7175_s3 + $0x3e0] sm:$0xff] %v3808_v45  ;;  %v3809_v20 = vmax.f32 %v3110_v28, 0.0  ;;  %v3041_v39 = vadd.f32 %v3040_v8, %v6068_v40  ;;  %v3112_v14 = vadd.f32 %v3111_v10, %v3039_v25 }
 0x202   :  { %v3223_v44 = vpop.f32.mrf.mxu0 }
 0x203   :  { %3961 = vst [vmem:[%s7175_s3 + $0x3e8] sm:$0xff] %v3809_v20  ;;  %v3827_v42 = vmax.f32 %v3112_v14, 0.0  ;;  %v3114_v31 = vadd.f32 %v3113_v37, %v3041_v39 }
 0x204   :  { %v3225_v63 = vpop.f32.mrf.mxu0 }
 0x205   :  { %3979 = vst [vmem:[%s7175_s3 + $0x478] sm:$0xff] %v3827_v42  ;;  %v3828_v19 = vmax.f32 %v3114_v31, 0.0 }
 0x206   :  { %v3227_v50 = vpop.f32.mrf.mxu0 }
 0x207   :  { %3980 = vst [vmem:[%s7175_s3 + $0x480] sm:$0xff] %v3828_v19 }
 0x208   :  { %v3229_v59 = vpop.f32.mrf.mxu0 }
 0x20a   :  { %v3233_v56 = vpop.f32.mrf.mxu0 }
 0x20c   :  { %v3235_v34 = vpop.f32.mrf.mxu0 }
 0x20d   :  { %v3150_v55 = vpop.f32.mrf.mxu1 }
 0x20e   :  { %v3151_v38 = vadd.f32 %v3150_v55, %v5886_v23  ;;  %v3237_v49 = vpop.f32.mrf.mxu0 }
 0x20f   :  { %v3152_v12 = vpop.f32.mrf.mxu1 }
 0x210   :  { %v3224_v41 = vadd.f32 %v3223_v44, %v3151_v38  ;;  %v3153_v53 = vadd.f32 %v3152_v12, %v5886_v23  ;;  %v3239_v57 = vpop.f32.mrf.mxu0 }
 0x211   :  { %v3154_v29 = vpop.f32.mrf.mxu1 }
 0x212   :  { %v3696_v54 = vmax.f32 %v3224_v41, 0.0  ;;  %v3226_v58 = vadd.f32 %v3225_v63, %v3153_v53  ;;  %v3155_v60 = vadd.f32 %v3154_v29, %v5900_v26  ;;  %v3243_v2 = vpop.f32.mrf.mxu0 }
 0x213   :  { %v3156_v9 = vpop.f32.mrf.mxu1 }
 0x214   :  { %3848 = vst [vmem:[%s7175_s3 + $0x60] sm:$0xff] %v3696_v54  ;;  %v3697_v24 = vmax.f32 %v3226_v58, 0.0  ;;  %v3228_v62 = vadd.f32 %v3227_v50, %v3155_v60  ;;  %v3157_v0 = vadd.f32 %v3156_v9, %v5900_v26  ;;  %v3245_v5 = vpop.f32.mrf.mxu0 }
 0x215   :  { %v3160_v3 = vpop.f32.mrf.mxu1 }
 0x216   :  { %3849 = vst [vmem:[%s7175_s3 + $0x68] sm:$0xff] %v3697_v24  ;;  %v3715_v1 = vmax.f32 %v3228_v62, 0.0  ;;  %v3230_v13 = vadd.f32 %v3229_v59, %v3157_v0  ;;  %v3161_v47 = vadd.f32 %v3160_v3, %v5916_v51  ;;  %v3247_v17 = vpop.f32.mrf.mxu0 }
 0x217   :  { %v3162_v36 = vpop.f32.mrf.mxu1 }
 0x218   :  { %3867 = vst [vmem:[%s7175_s3 + $0xf8] sm:$0xff] %v3715_v1  ;;  %v3716_v7 = vmax.f32 %v3230_v13, 0.0  ;;  %v3163_v52 = vadd.f32 %v3162_v36, %v5916_v51  ;;  %v3234_v43 = vadd.f32 %v3233_v56, %v3161_v47  ;;  %v3249_v21 = vpop.f32.mrf.mxu0 }
 0x219   :  { %v3164_v18 = vpop.f32.mrf.mxu1 }
 0x21a   :  { %3868 = vst [vmem:[%s7175_s3 + $0x100] sm:$0xff] %v3716_v7  ;;  %v3734_v6 = vmax.f32 %v3234_v43, 0.0  ;;  %v3165_v15 = vadd.f32 %v3164_v18, %v5947_v4  ;;  %v3236_v27 = vadd.f32 %v3235_v34, %v3163_v52  ;;  %v3253_v25 = vpop.f32.mrf.mxu0 }
 0x21b   :  { %v3166_v16 = vpop.f32.mrf.mxu1 }
 0x21c   :  { %3886 = vst [vmem:[%s7175_s3 + $0x190] sm:$0xff] %v3734_v6  ;;  %v3735_v48 = vmax.f32 %v3236_v27, 0.0  ;;  %v3167_v46 = vadd.f32 %v3166_v16, %v5947_v4  ;;  %v3238_v10 = vadd.f32 %v3237_v49, %v3165_v15  ;;  %v3255_v31 = vpop.f32.mrf.mxu0 }
 0x21d   :  { %v3170_v22 = vpop.f32.mrf.mxu1 }
 0x21e   :  { %3887 = vst [vmem:[%s7175_s3 + $0x198] sm:$0xff] %v3735_v48  ;;  %v3753_v32 = vmax.f32 %v3238_v10, 0.0  ;;  %v3171_v30 = vadd.f32 %v3170_v22, %v5978_v33  ;;  %v3240_v11 = vadd.f32 %v3239_v57, %v3167_v46  ;;  %v3257_v12 = vpop.f32.mrf.mxu0 }
 0x21f   :  { %v3172_v45 = vpop.f32.mrf.mxu1 }
 0x220   :  { %3905 = vst [vmem:[%s7175_s3 + $0x228] sm:$0xff] %v3753_v32  ;;  %v3754_v28 = vmax.f32 %v3240_v11, 0.0  ;;  %v3173_v8 = vadd.f32 %v3172_v45, %v5978_v33  ;;  %v3244_v37 = vadd.f32 %v3243_v2, %v3171_v30  ;;  %v3259_v9 = vpop.f32.mrf.mxu0 }
 0x221   :  { %v3174_v20 = vpop.f32.mrf.mxu1 }
 0x222   :  { %3906 = vst [vmem:[%s7175_s3 + $0x230] sm:$0xff] %v3754_v28  ;;  %v3772_v39 = vmax.f32 %v3244_v37, 0.0  ;;  %v3175_v14 = vadd.f32 %v3174_v20, %v6006_v35  ;;  %v3246_v44 = vadd.f32 %v3245_v5, %v3173_v8 }
 0x223   :  { %v3176_v42 = vpop.f32.mrf.mxu1 }
 0x224   :  { %3924 = vst [vmem:[%s7175_s3 + $0x2c0] sm:$0xff] %v3772_v39  ;;  %v3773_v63 = vmax.f32 %v3246_v44, 0.0  ;;  %v3177_v19 = vadd.f32 %v3176_v42, %v6006_v35  ;;  %v3248_v50 = vadd.f32 %v3247_v17, %v3175_v14 }
 0x225   :  { %v3180_v59 = vpop.f32.mrf.mxu1 }
 0x226   :  { %3925 = vst [vmem:[%s7175_s3 + $0x2c8] sm:$0xff] %v3773_v63  ;;  %v3791_v56 = vmax.f32 %v3248_v50, 0.0  ;;  %v3181_v55 = vadd.f32 %v3180_v59, %v6037_v61  ;;  %v3250_v34 = vadd.f32 %v3249_v21, %v3177_v19 }
 0x227   :  { %v3182_v38 = vpop.f32.mrf.mxu1 }
 0x228   :  { %3943 = vst [vmem:[%s7175_s3 + $0x358] sm:$0xff] %v3791_v56  ;;  %v3792_v49 = vmax.f32 %v3250_v34, 0.0  ;;  %v3183_v41 = vadd.f32 %v3182_v38, %v6037_v61  ;;  %v3254_v53 = vadd.f32 %v3253_v25, %v3181_v55 }
 0x229   :  { %v3184_v29 = vpop.f32.mrf.mxu1 }
 0x22a   :  { %3944 = vst [vmem:[%s7175_s3 + $0x360] sm:$0xff] %v3792_v49  ;;  %v3810_v57 = vmax.f32 %v3254_v53, 0.0  ;;  %v3185_v54 = vadd.f32 %v3184_v29, %v6068_v40  ;;  %v3256_v58 = vadd.f32 %v3255_v31, %v3183_v41 }
 0x22b   :  { %v3186_v60 = vpop.f32.mrf.mxu1 }
 0x22c   :  { %3962 = vst [vmem:[%s7175_s3 + $0x3f0] sm:$0xff] %v3810_v57  ;;  %v3811_v2 = vmax.f32 %v3256_v58, 0.0  ;;  %v3187_v24 = vadd.f32 %v3186_v60, %v6068_v40  ;;  %v3258_v62 = vadd.f32 %v3257_v12, %v3185_v54 }
 0x22d   :  { %v3369_v0 = vpop.f32.mrf.mxu1 }
 0x22e   :  { %3963 = vst [vmem:[%s7175_s3 + $0x3f8] sm:$0xff] %v3811_v2  ;;  %v3829_v3 = vmax.f32 %v3258_v62, 0.0  ;;  %v3260_v5 = vadd.f32 %v3259_v9, %v3187_v24 }
 0x22f   :  { %v3371_v1 = vpop.f32.mrf.mxu1 }
 0x230   :  { %3981 = vst [vmem:[%s7175_s3 + $0x488] sm:$0xff] %v3829_v3  ;;  %v3830_v13 = vmax.f32 %v3260_v5, 0.0 }
 0x231   :  { %v3373_v47 = vpop.f32.mrf.mxu1 }
 0x232   :  { %3982 = vst [vmem:[%s7175_s3 + $0x490] sm:$0xff] %v3830_v13 }
 0x233   :  { %v3375_v36 = vpop.f32.mrf.mxu1 }
 0x235   :  { %v3379_v17 = vpop.f32.mrf.mxu1 }
 0x237   :  { %v3381_v7 = vpop.f32.mrf.mxu1 }
 0x239   :  { %v3383_v52 = vpop.f32.mrf.mxu1 }
 0x23b   :  { %v3385_v43 = vpop.f32.mrf.mxu1 }
 0x23d   :  { %v3389_v27 = vpop.f32.mrf.mxu1 }
 0x23f   :  { %v3391_v30 = vpop.f32.mrf.mxu1 }
 0x241   :  { %v3393_v14 = vpop.f32.mrf.mxu1 }
 0x242   :  { %v3296_v18 = vpop.f32.mrf.mxu0 }
 0x243   :  { %v3297_v6 = vadd.f32 %v3296_v18, %v5886_v23  ;;  %v3395_v55 = vpop.f32.mrf.mxu1 }
 0x244   :  { %v3298_v15 = vpop.f32.mrf.mxu0 }
 0x245   :  { %v3370_v16 = vadd.f32 %v3369_v0, %v3297_v6  ;;  %v3299_v21 = vadd.f32 %v3298_v15, %v5886_v23  ;;  %v3399_v54 = vpop.f32.mrf.mxu1 }
 0x246   :  { %v3300_v48 = vpop.f32.mrf.mxu0 }
 0x247   :  { %v3698_v46 = vmax.f32 %v3370_v16, 0.0  ;;  %v3372_v10 = vadd.f32 %v3371_v1, %v3299_v21  ;;  %v3301_v22 = vadd.f32 %v3300_v48, %v5900_v26  ;;  %v3401_v5 = vpop.f32.mrf.mxu1 }
 0x248   :  { %v3302_v32 = vpop.f32.mrf.mxu0 }
 0x249   :  { %3850 = vst [vmem:[%s7175_s3 + $0x70] sm:$0xff] %v3698_v46  ;;  %v3699_v11 = vmax.f32 %v3372_v10, 0.0  ;;  %v3374_v45 = vadd.f32 %v3373_v47, %v3301_v22  ;;  %v3303_v25 = vadd.f32 %v3302_v32, %v5900_v26  ;;  %v3403_v18 = vpop.f32.mrf.mxu1 }
 0x24a   :  { %v3306_v28 = vpop.f32.mrf.mxu0 }
 0x24b   :  { %3851 = vst [vmem:[%s7175_s3 + $0x78] sm:$0xff] %v3699_v11  ;;  %v3717_v8 = vmax.f32 %v3374_v45, 0.0  ;;  %v3376_v37 = vadd.f32 %v3375_v36, %v3303_v25  ;;  %v3307_v20 = vadd.f32 %v3306_v28, %v5916_v51  ;;  %v3405_v22 = vpop.f32.mrf.mxu1 }
 0x24c   :  { %v3308_v39 = vpop.f32.mrf.mxu0 }
 0x24d   :  { %3869 = vst [vmem:[%s7175_s3 + $0x108] sm:$0xff] %v3717_v8  ;;  %v3718_v44 = vmax.f32 %v3376_v37, 0.0  ;;  %v3309_v42 = vadd.f32 %v3308_v39, %v5916_v51  ;;  %v3380_v31 = vadd.f32 %v3379_v17, %v3307_v20 }
 0x24e   :  { %v3310_v63 = vpop.f32.mrf.mxu0 }
 0x24f   :  { %3870 = vst [vmem:[%s7175_s3 + $0x110] sm:$0xff] %v3718_v44  ;;  %v3736_v19 = vmax.f32 %v3380_v31, 0.0  ;;  %v3311_v50 = vadd.f32 %v3310_v63, %v5947_v4  ;;  %v3382_v59 = vadd.f32 %v3381_v7, %v3309_v42 }
 0x250   :  { %v3312_v56 = vpop.f32.mrf.mxu0 }
 0x251   :  { %3888 = vst [vmem:[%s7175_s3 + $0x1a0] sm:$0xff] %v3736_v19  ;;  %v3737_v34 = vmax.f32 %v3382_v59, 0.0  ;;  %v3313_v38 = vadd.f32 %v3312_v56, %v5947_v4  ;;  %v3384_v12 = vadd.f32 %v3383_v52, %v3311_v50 }
 0x252   :  { %v3316_v49 = vpop.f32.mrf.mxu0 }
 0x253   :  { %3889 = vst [vmem:[%s7175_s3 + $0x1a8] sm:$0xff] %v3737_v34  ;;  %v3755_v41 = vmax.f32 %v3384_v12, 0.0  ;;  %v3317_v53 = vadd.f32 %v3316_v49, %v5978_v33  ;;  %v3386_v29 = vadd.f32 %v3385_v43, %v3313_v38 }
 0x254   :  { %v3318_v57 = vpop.f32.mrf.mxu0 }
 0x255   :  { %3907 = vst [vmem:[%s7175_s3 + $0x238] sm:$0xff] %v3755_v41  ;;  %v3756_v58 = vmax.f32 %v3386_v29, 0.0  ;;  %v3319_v60 = vadd.f32 %v3318_v57, %v5978_v33  ;;  %v3390_v9 = vadd.f32 %v3389_v27, %v3317_v53 }
 0x256   :  { %v3320_v2 = vpop.f32.mrf.mxu0 }
 0x257   :  { %3908 = vst [vmem:[%s7175_s3 + $0x240] sm:$0xff] %v3756_v58  ;;  %v3774_v24 = vmax.f32 %v3390_v9, 0.0  ;;  %v3321_v62 = vadd.f32 %v3320_v2, %v6006_v35  ;;  %v3392_v0 = vadd.f32 %v3391_v30, %v3319_v60 }
 0x258   :  { %v3322_v3 = vpop.f32.mrf.mxu0 }
 0x259   :  { %3926 = vst [vmem:[%s7175_s3 + $0x2d0] sm:$0xff] %v3774_v24  ;;  %v3775_v1 = vmax.f32 %v3392_v0, 0.0  ;;  %v3323_v13 = vadd.f32 %v3322_v3, %v6006_v35  ;;  %v3394_v47 = vadd.f32 %v3393_v14, %v3321_v62 }
 0x25a   :  { %v3326_v36 = vpop.f32.mrf.mxu0 }
 0x25b   :  { %3927 = vst [vmem:[%s7175_s3 + $0x2d8] sm:$0xff] %v3775_v1  ;;  %v3793_v17 = vmax.f32 %v3394_v47, 0.0  ;;  %v3327_v7 = vadd.f32 %v3326_v36, %v6037_v61  ;;  %v3396_v52 = vadd.f32 %v3395_v55, %v3323_v13 }
 0x25c   :  { %v3328_v43 = vpop.f32.mrf.mxu0 }
 0x25d   :  { %3945 = vst [vmem:[%s7175_s3 + $0x368] sm:$0xff] %v3793_v17  ;;  %v3794_v6 = vmax.f32 %v3396_v52, 0.0  ;;  %v3329_v15 = vadd.f32 %v3328_v43, %v6037_v61  ;;  %v3400_v27 = vadd.f32 %v3399_v54, %v3327_v7 }
 0x25e   :  { %v3330_v16 = vpop.f32.mrf.mxu0 }
 0x25f   :  { %3946 = vst [vmem:[%s7175_s3 + $0x370] sm:$0xff] %v3794_v6  ;;  %v3812_v21 = vmax.f32 %v3400_v27, 0.0  ;;  %v3331_v48 = vadd.f32 %v3330_v16, %v6068_v40  ;;  %v3402_v46 = vadd.f32 %v3401_v5, %v3329_v15 }
 0x260   :  { %v3332_v10 = vpop.f32.mrf.mxu0 }
 0x261   :  { %3964 = vst [vmem:[%s7175_s3 + $0x400] sm:$0xff] %v3812_v21  ;;  %v3813_v32 = vmax.f32 %v3402_v46, 0.0  ;;  %v3333_v30 = vadd.f32 %v3332_v10, %v6068_v40  ;;  %v3404_v11 = vadd.f32 %v3403_v18, %v3331_v48 }
 0x262   :  { %v3515_v45 = vpop.f32.mrf.mxu0 }
 0x263   :  { %3965 = vst [vmem:[%s7175_s3 + $0x408] sm:$0xff] %v3813_v32  ;;  %v3831_v25 = vmax.f32 %v3404_v11, 0.0  ;;  %v3406_v28 = vadd.f32 %v3405_v22, %v3333_v30 }
 0x264   :  { %v3517_v8 = vpop.f32.mrf.mxu0 }
 0x265   :  { %3983 = vst [vmem:[%s7175_s3 + $0x498] sm:$0xff] %v3831_v25  ;;  %v3832_v37 = vmax.f32 %v3406_v28, 0.0 }
 0x266   :  { %v3519_v20 = vpop.f32.mrf.mxu0 }
 0x267   :  { %3984 = vst [vmem:[%s7175_s3 + $0x4a0] sm:$0xff] %v3832_v37 }
 0x268   :  { %v3521_v39 = vpop.f32.mrf.mxu0 }
 0x26a   :  { %v3525_v14 = vpop.f32.mrf.mxu0 }
 0x26c   :  { %v3527_v42 = vpop.f32.mrf.mxu0 }
 0x26d   :  { %v3442_v44 = vpop.f32.mrf.mxu1 }
 0x26e   :  { %v3443_v31 = vadd.f32 %v3442_v44, %v5886_v23  ;;  %v3529_v19 = vpop.f32.mrf.mxu0 }
 0x26f   :  { %v3444_v63 = vpop.f32.mrf.mxu1 }
 0x270   :  { %v3516_v50 = vadd.f32 %v3515_v45, %v3443_v31  ;;  %v3445_v59 = vadd.f32 %v3444_v63, %v5886_v23  ;;  %v3531_v55 = vpop.f32.mrf.mxu0 }
 0x271   :  { %v3446_v56 = vpop.f32.mrf.mxu1 }
 0x272   :  { %v3700_v34 = vmax.f32 %v3516_v50, 0.0  ;;  %v3518_v38 = vadd.f32 %v3517_v8, %v3445_v59  ;;  %v3447_v12 = vadd.f32 %v3446_v56, %v5900_v26  ;;  %v3535_v41 = vpop.f32.mrf.mxu0 }
 0x273   :  { %v3448_v49 = vpop.f32.mrf.mxu1 }
 0x274   :  { %3852 = vst [vmem:[%s7175_s3 + $0x80] sm:$0xff] %v3700_v34  ;;  %v3701_v53 = vmax.f32 %v3518_v38, 0.0  ;;  %v3520_v29 = vadd.f32 %v3519_v20, %v3447_v12  ;;  %v3449_v57 = vadd.f32 %v3448_v49, %v5900_v26  ;;  %v3537_v58 = vpop.f32.mrf.mxu0 }
 0x275   :  { %v3452_v54 = vpop.f32.mrf.mxu1 }
 0x276   :  { %3853 = vst [vmem:[%s7175_s3 + $0x88] sm:$0xff] %v3701_v53  ;;  %v3719_v60 = vmax.f32 %v3520_v29, 0.0  ;;  %v3522_v9 = vadd.f32 %v3521_v39, %v3449_v57  ;;  %v3453_v2 = vadd.f32 %v3452_v54, %v5916_v51  ;;  %v3539_v62 = vpop.f32.mrf.mxu0 }
 0x277   :  { %v3454_v24 = vpop.f32.mrf.mxu1 }
 0x278   :  { %3871 = vst [vmem:[%s7175_s3 + $0x118] sm:$0xff] %v3719_v60  ;;  %v3720_v0 = vmax.f32 %v3522_v9, 0.0  ;;  %v3526_v3 = vadd.f32 %v3525_v14, %v3453_v2  ;;  %v3455_v5 = vadd.f32 %v3454_v24, %v5916_v51  ;;  %v3541_v13 = vpop.f32.mrf.mxu0 }
 0x279   :  { %v3456_v1 = vpop.f32.mrf.mxu1 }
 0x27a   :  { %3872 = vst [vmem:[%s7175_s3 + $0x120] sm:$0xff] %v3720_v0  ;;  %v3738_v47 = vmax.f32 %v3526_v3, 0.0  ;;  %v3528_v36 = vadd.f32 %v3527_v42, %v3455_v5  ;;  %v3457_v17 = vadd.f32 %v3456_v1, %v5947_v4  ;;  %v3545_v52 = vpop.f32.mrf.mxu0 }
 0x27b   :  { %v3458_v7 = vpop.f32.mrf.mxu1 }
 0x27c   :  { %3890 = vst [vmem:[%s7175_s3 + $0x1b0] sm:$0xff] %v3738_v47  ;;  %v3739_v43 = vmax.f32 %v3528_v36, 0.0  ;;  %v3530_v18 = vadd.f32 %v3529_v19, %v3457_v17  ;;  %v3459_v6 = vadd.f32 %v3458_v7, %v5947_v4  ;;  %v3547_v27 = vpop.f32.mrf.mxu0 }
 0x27d   :  { %v3462_v15 = vpop.f32.mrf.mxu1 }
 0x27e   :  { %3891 = vst [vmem:[%s7175_s3 + $0x1b8] sm:$0xff] %v3739_v43  ;;  %v3757_v16 = vmax.f32 %v3530_v18, 0.0  ;;  %v3532_v21 = vadd.f32 %v3531_v55, %v3459_v6  ;;  %v3463_v48 = vadd.f32 %v3462_v15, %v5978_v33  ;;  %v3549_v10 = vpop.f32.mrf.mxu0 }
 0x27f   :  { %v3464_v46 = vpop.f32.mrf.mxu1 }
 0x280   :  { %3909 = vst [vmem:[%s7175_s3 + $0x248] sm:$0xff] %v3757_v16  ;;  %v3758_v22 = vmax.f32 %v3532_v21, 0.0  ;;  %v3536_v32 = vadd.f32 %v3535_v41, %v3463_v48  ;;  %v3465_v30 = vadd.f32 %v3464_v46, %v5978_v33  ;;  %v3551_v45 = vpop.f32.mrf.mxu0 }
 0x281   :  { %v3466_v11 = vpop.f32.mrf.mxu1 }
 0x282   :  { %3910 = vst [vmem:[%s7175_s3 + $0x250] sm:$0xff] %v3758_v22  ;;  %v3776_v25 = vmax.f32 %v3536_v32, 0.0  ;;  %v3538_v28 = vadd.f32 %v3537_v58, %v3465_v30  ;;  %v3467_v8 = vadd.f32 %v3466_v11, %v6006_v35  ;;  %v4411_v20 = vpop.f32.mrf.mxu0 }
 0x283   :  { %v3468_v37 = vpop.f32.mrf.mxu1 }
 0x284   :  { %3928 = vst [vmem:[%s7175_s3 + $0x2e0] sm:$0xff] %v3776_v25  ;;  %v3777_v39 = vmax.f32 %v3538_v28, 0.0  ;;  %v3540_v14 = vadd.f32 %v3539_v62, %v3467_v8  ;;  %v3469_v44 = vadd.f32 %v3468_v37, %v6006_v35  ;;  %v4412_v31 = vpop.f32.mrf.mxu0 }
 0x285   :  { %v3472_v42 = vpop.f32.mrf.mxu1  ;;  %v4413_v12 = vadd.f32 %v4412_v31, %v4411_v20 }
 0x286   :  { %3929 = vst [vmem:[%s7175_s3 + $0x2e8] sm:$0xff] %v3777_v39  ;;  %v3795_v63 = vmax.f32 %v3540_v14, 0.0  ;;  %v3542_v19 = vadd.f32 %v3541_v13, %v3469_v44  ;;  %v3473_v50 = vadd.f32 %v3472_v42, %v6037_v61  ;;  %v4414_v56 = vpop.f32.mrf.mxu0 }
 0x287   :  { %v3474_v59 = vpop.f32.mrf.mxu1  ;;  %v3589_v0 = vadd.f32 %v4413_v12, %v5886_v23 }
 0x288   :  { %3947 = vst [vmem:[%s7175_s3 + $0x378] sm:$0xff] %v3795_v63  ;;  %v3796_v55 = vmax.f32 %v3542_v19, 0.0  ;;  %v3546_v34 = vadd.f32 %v3545_v52, %v3473_v50  ;;  %v3475_v38 = vadd.f32 %v3474_v59, %v6037_v61  ;;  %v4415_v41 = vpop.f32.mrf.mxu0 }
 0x289   :  { %v3476_v49 = vpop.f32.mrf.mxu1  ;;  %v4416_v1 = vadd.f32 %v4415_v41, %v4414_v56 }
 0x28a   :  { %3948 = vst [vmem:[%s7175_s3 + $0x380] sm:$0xff] %v3796_v55  ;;  %v3814_v53 = vmax.f32 %v3546_v34, 0.0  ;;  %v3548_v29 = vadd.f32 %v3547_v27, %v3475_v38  ;;  %v3477_v57 = vadd.f32 %v3476_v49, %v6068_v40  ;;  %v4417_v58 = vpop.f32.mrf.mxu0 }
 0x28b   :  { %v3478_v54 = vpop.f32.mrf.mxu1  ;;  %v3592_v27 = vadd.f32 %v4416_v1, %v5900_v26 }
 0x28c   :  { %3966 = vst [vmem:[%s7175_s3 + $0x410] sm:$0xff] %v3814_v53  ;;  %v3815_v60 = vmax.f32 %v3548_v29, 0.0  ;;  %v3550_v9 = vadd.f32 %v3549_v10, %v3477_v57  ;;  %v3479_v2 = vadd.f32 %v3478_v54, %v6068_v40  ;;  %v4418_v62 = vpop.f32.mrf.mxu0 }
 0x28d   :  { %v4447_v24 = vpop.f32.mrf.mxu1  ;;  %v4419_v13 = vadd.f32 %v4418_v62, %v4417_v58 }
 0x28e   :  { %3967 = vst [vmem:[%s7175_s3 + $0x418] sm:$0xff] %v3815_v60  ;;  %v3833_v3 = vmax.f32 %v3550_v9, 0.0  ;;  %v3552_v5 = vadd.f32 %v3551_v45, %v3479_v2  ;;  %v4420_v36 = vpop.f32.mrf.mxu0 }
 0x28f   :  { %v3653_v47 = vpop.f32.mrf.mxu1  ;;  %v3597_v7 = vadd.f32 %v4419_v13, %v5916_v51 }
 0x290   :  { %3985 = vst [vmem:[%s7175_s3 + $0x4a8] sm:$0xff] %v3833_v3  ;;  %v3834_v17 = vmax.f32 %v3552_v5, 0.0  ;;  %v3654_v52 = vadd.f32 %v3653_v47, %v3589_v0  ;;  %v4421_v23 = vpop.f32.mrf.mxu0 }
 0x291   :  { %v4448_v43 = vpop.f32.mrf.mxu1  ;;  %v3662_v18 = vadd.f32 %v4447_v24, %v3597_v7  ;;  %v4422_v15 = vadd.f32 %v4421_v23, %v4420_v36 }
 0x292   :  { %3986 = vst [vmem:[%s7175_s3 + $0x4b0] sm:$0xff] %v3834_v17  ;;  %v3702_v6 = vmax.f32 %v3654_v52, 0.0  ;;  %v4423_v21 = vpop.f32.mrf.mxu0 }
 0x293   :  { %v3656_v16 = vpop.f32.mrf.mxu1  ;;  %v3740_v48 = vmax.f32 %v3662_v18, 0.0  ;;  %v3600_v51 = vadd.f32 %v4422_v15, %v5947_v4 }
 0x294   :  { %3854 = vst [vmem:[%s7175_s3 + $0x90] sm:$0xff] %v3702_v6  ;;  %v3657_v46 = vadd.f32 %v3656_v16, %v3592_v27  ;;  %v4424_v10 = vpop.f32.mrf.mxu0 }
 0x295   :  { %v4451_v22 = vpop.f32.mrf.mxu1  ;;  %3892 = vst [vmem:[%s7175_s3 + $0x1c0] sm:$0xff] %v3740_v48  ;;  %v3665_v32 = vadd.f32 %v4448_v43, %v3600_v51  ;;  %v4425_v11 = vadd.f32 %v4424_v10, %v4423_v21 }
 0x296   :  { %v3721_v30 = vmax.f32 %v3657_v46, 0.0  ;;  %v4426_v26 = vpop.f32.mrf.mxu0 }
 0x297   :  { %v3669_v45 = vpop.f32.mrf.mxu1  ;;  %v3759_v25 = vmax.f32 %v3665_v32, 0.0  ;;  %v3605_v28 = vadd.f32 %v4425_v11, %v5978_v33 }
 0x298   :  { %3873 = vst [vmem:[%s7175_s3 + $0x128] sm:$0xff] %v3721_v30  ;;  %v4427_v4 = vpop.f32.mrf.mxu0 }
 0x299   :  { %v4452_v8 = vpop.f32.mrf.mxu1  ;;  %3911 = vst [vmem:[%s7175_s3 + $0x258] sm:$0xff] %v3759_v25  ;;  %v4428_v37 = vadd.f32 %v4427_v4, %v4426_v26  ;;  %v3670_v20 = vadd.f32 %v3669_v45, %v3605_v28 }
 0x29a   :  { %v4429_v39 = vpop.f32.mrf.mxu0 }
 0x29b   :  { %v3672_v14 = vpop.f32.mrf.mxu1  ;;  %v3778_v44 = vmax.f32 %v3670_v20, 0.0  ;;  %v3608_v42 = vadd.f32 %v4428_v37, %v6006_v35 }
 0x29c   :  { %v4430_v31 = vpop.f32.mrf.mxu0 }
 0x29d   :  { %3930 = vst [vmem:[%s7175_s3 + $0x2f0] sm:$0xff] %v3778_v44  ;;  %v4431_v63 = vadd.f32 %v4430_v31, %v4429_v39  ;;  %v3673_v33 = vadd.f32 %v3672_v14, %v3608_v42 }
 0x29e   :  { %v4432_v19 = vpop.f32.mrf.mxu0 }
 0x29f   :  { %v3613_v50 = vadd.f32 %v4431_v63, %v6037_v61  ;;  %v3797_v59 = vmax.f32 %v3673_v33, 0.0 }
 0x2a0   :  { %v4433_v56 = vpop.f32.mrf.mxu0 }
 0x2a1   :  { %v3678_v55 = vadd.f32 %v4451_v22, %v3613_v50  ;;  %3949 = vst [vmem:[%s7175_s3 + $0x388] sm:$0xff] %v3797_v59  ;;  %v4434_v34 = vadd.f32 %v4433_v56, %v4432_v19 }
 0x2a3   :  { %v3816_v38 = vmax.f32 %v3678_v55, 0.0  ;;  %v3616_v35 = vadd.f32 %v4434_v34, %v6068_v40 }
 0x2a5   :  { %3968 = vst [vmem:[%s7175_s3 + $0x420] sm:$0xff] %v3816_v38  ;;  %v3681_v12 = vadd.f32 %v4452_v8, %v3616_v35 }
 0x2a7   :  { %v3835_v49 = vmax.f32 %v3681_v12, 0.0 }
 0x2a9   :  { %3987 = vst [vmem:[%s7175_s3 + $0x4b8] sm:$0xff] %v3835_v49 }

// kernel: feature_extractor_forward.5
= control target key start
LH: loop header
LB: loop body
LE: loop exit
PB: predicated region body
PF: predicated region fallthrough
CT: control target
= control target key end

     0   :  { %s4485_s12 = smov 0   ;;  %s4487_s13 = smov 0   ;;  %s7006_s0 = inlined_call_operand.vmem [shape: f32[128,4864], index: 0, kind: input, shape index: {}]   ;;  %s7007_s1 = inlined_call_operand.vmem [shape: f32[4864,32], index: 1, kind: input, shape index: {}]   ;;  %s7008_s2 = inlined_call_operand.vmem [shape: f32[128,1], index: 2, kind: input, shape index: {}]   ;;  %s7009_s3 = inlined_call_operand.vmem [shape: f32[128,32], index: 3, kind: output, shape index: {}]  }
   0x1   :  { %s4489_s14 = smov 0  }
   0x2 LB: > { %s25_s15 = sadd.s32 1, %s4458_s13  ;;  %p3307_p0 = scmp.ge.s32.totalorder %s4462_s14, 1  ;;  %s4462_s14 = sphi %s4489_s14, %s13_s14   ;;  %s4458_s13 = sphi %s4487_s13, %s7042_s13   ;;  %s4454_s12 = sphi %s4485_s12, %s7041_s12  }
   0x3   : > { %p27_p1 = scmp.ge.s32.totalorder %s25_s15, 2  ;;  %p173_p2 = scmp.lt.s32.totalorder %s4462_s14, 3 }
   0x5   : > { %s7044_s15 = smov (%p27_p1, %s25_s15), 0  ;;  %p174_p3 = pnand %p3307_p0, %p173_p2 }
   0x7   : > { %177 = sbr.rel (%p174_p3) target bundleno = 697 (0x2b9), region = 32 }
   0xc   : > { %v571_v0 = vld [vmem:[%s7007_s1 + $0xf8] sm:$0xff]  ;;  %v570_v4 = vld [vmem:[%s7007_s1 + $0xf0] sm:$0xff]  ;;  %v569_v8 = vld [vmem:[%s7007_s1 + $0xe8] sm:$0xff]  ;;  %s3308_s26 = sshll.u32 %s4454_s12, 3  ;;  %vm3191_vm0 = vcmask 261120  }
   0xd   : > { %v603_v1 = vld [vmem:[%s7007_s1 + $0x1f8] sm:$0xff]  ;;  %3316 = vmatprep.subr.mxu0 %v571_v0  ;;  %v602_v5 = vld [vmem:[%s7007_s1 + $0x1f0] sm:$0xff]  ;;  %v601_v9 = vld [vmem:[%s7007_s1 + $0x1e8] sm:$0xff]  ;;  %p4610_p4 = scmp.lt.s32.totalorder %s3308_s26, 15 }
   0xe   : > { %v555_v2 = vld [vmem:[%s7007_s1 + $0x78] sm:$0xff]  ;;  %3372 = vmatprep.subr.mxu1 %v603_v1  ;;  %v554_v6 = vld [vmem:[%s7007_s1 + $0x70] sm:$0xff]  ;;  %v553_v10 = vld [vmem:[%s7007_s1 + $0x68] sm:$0xff] }
   0xf   : > { %v587_v3 = vld [vmem:[%s7007_s1 + $0x178] sm:$0xff]  ;;  %3317 = vmatpush3.msra.mxu0 %v555_v2  ;;  %v586_v7 = vld [vmem:[%s7007_s1 + $0x170] sm:$0xff]  ;;  %v585_v11 = vld [vmem:[%s7007_s1 + $0x168] sm:$0xff]  ;;  %s7046_s26 = smov (!%p4610_p4, %s3308_s26), 15 }
  0x10   : > { %3373 = vmatpush3.msra.mxu1 %v587_v3  ;;  %3318 = vmatprep.subr.mxu0 %v570_v4  ;;  %v568_v12 = vld [vmem:[%s7007_s1 + $0xe0] sm:$0xff]  ;;  %v567_v16 = vld [vmem:[%s7007_s1 + $0xd8] sm:$0xff]  ;;  %v566_v20 = vld [vmem:[%s7007_s1 + $0xd0] sm:$0xff]  ;;  %s4412_s27 = smul.u32 304, %s7046_s26 }
  0x11   : > { %3374 = vmatprep.subr.mxu1 %v602_v5  ;;  %3319 = vmatpush3.msra.mxu0 %v554_v6  ;;  %v600_v13 = vld [vmem:[%s7007_s1 + $0x1e0] sm:$0xff]  ;;  %v599_v17 = vld [vmem:[%s7007_s1 + $0x1d8] sm:$0xff]  ;;  %v598_v21 = vld [vmem:[%s7007_s1 + $0x1d0] sm:$0xff] }
  0x12   : > { %3375 = vmatpush3.msra.mxu1 %v586_v7  ;;  %3320 = vmatprep.subr.mxu0 %v569_v8  ;;  %v552_v14 = vld [vmem:[%s7007_s1 + $0x60] sm:$0xff]  ;;  %v551_v18 = vld [vmem:[%s7007_s1 + $0x58] sm:$0xff]  ;;  %v550_v22 = vld [vmem:[%s7007_s1 + $0x50] sm:$0xff]  ;;  %s4696_s22 = scalar_lea.vmem %s7006_s0, %s4412_s27  ;;  %s3311_s27 = sshll.u32 %s7046_s26, 3 }
  0x13   : > { %3376 = vmatprep.subr.mxu1 %v601_v9  ;;  %v584_v15 = vld [vmem:[%s7007_s1 + $0x160] sm:$0xff]  ;;  %3321 = vmatpush3.msra.mxu0 %v553_v10  ;;  %v583_v19 = vld [vmem:[%s7007_s1 + $0x158] sm:$0xff]  ;;  %v582_v23 = vld [vmem:[%s7007_s1 + $0x150] sm:$0xff]  ;;  %s5228_s16 = scalar_lea.vmem %s7008_s2, %s3311_s27  ;;  %s6963_s29 = scalar_lea.vmem %s7009_s3, %s3311_s27 }
  0x14   : > { %3377 = vmatpush3.msra.mxu1 %v585_v11  ;;  %3322 = vmatprep.subr.mxu0 %v568_v12  ;;  %v565_v24 = vld [vmem:[%s7007_s1 + $0xc8] sm:$0xff]  ;;  %v564_v28 = vld [vmem:[%s7007_s1 + $0xc0] sm:$0xff]  ;;  %v563_v32 = vld [vmem:[%s7007_s1 + $0xb8] sm:$0xff] }
  0x15   : > { %3378 = vmatprep.subr.mxu1 %v600_v13  ;;  %3323 = vmatpush3.msra.mxu0 %v552_v14  ;;  %v597_v25 = vld [vmem:[%s7007_s1 + $0x1c8] sm:$0xff]  ;;  %v596_v29 = vld [vmem:[%s7007_s1 + $0x1c0] sm:$0xff]  ;;  %v595_v33 = vld [vmem:[%s7007_s1 + $0x1b8] sm:$0xff] }
  0x16   : > { %3379 = vmatpush3.msra.mxu1 %v584_v15  ;;  %3324 = vmatprep.subr.mxu0 %v567_v16  ;;  %v549_v26 = vld [vmem:[%s7007_s1 + $0x48] sm:$0xff]  ;;  %v548_v30 = vld [vmem:[%s7007_s1 + $0x40] sm:$0xff]  ;;  %v547_v34 = vld [vmem:[%s7007_s1 + $0x38] sm:$0xff] }
  0x17   : > { %3380 = vmatprep.subr.mxu1 %v599_v17  ;;  %3325 = vmatpush3.msra.mxu0 %v551_v18  ;;  %v581_v27 = vld [vmem:[%s7007_s1 + $0x148] sm:$0xff]  ;;  %v580_v31 = vld [vmem:[%s7007_s1 + $0x140] sm:$0xff]  ;;  %v579_v35 = vld [vmem:[%s7007_s1 + $0x138] sm:$0xff] }
  0x18   : > { %3381 = vmatpush3.msra.mxu1 %v583_v19  ;;  %3326 = vmatprep.subr.mxu0 %v566_v20  ;;  %v562_v36 = vld [vmem:[%s7007_s1 + $0xb0] sm:$0xff]  ;;  %v561_v40 = vld [vmem:[%s7007_s1 + $0xa8] sm:$0xff]  ;;  %v560_v44 = vld [vmem:[%s7007_s1 + $0xa0] sm:$0xff] }
  0x19   : > { %3382 = vmatprep.subr.mxu1 %v598_v21  ;;  %3327 = vmatpush3.msra.mxu0 %v550_v22  ;;  %v594_v37 = vld [vmem:[%s7007_s1 + $0x1b0] sm:$0xff]  ;;  %v593_v41 = vld [vmem:[%s7007_s1 + $0x1a8] sm:$0xff]  ;;  %v592_v45 = vld [vmem:[%s7007_s1 + $0x1a0] sm:$0xff] }
  0x1a   : > { %3383 = vmatpush3.msra.mxu1 %v582_v23  ;;  %3328 = vmatprep.subr.mxu0 %v565_v24  ;;  %v546_v38 = vld [vmem:[%s7007_s1 + $0x30] sm:$0xff]  ;;  %v545_v42 = vld [vmem:[%s7007_s1 + $0x28] sm:$0xff]  ;;  %v544_v46 = vld [vmem:[%s7007_s1 + $0x20] sm:$0xff] }
  0x1b   : > { %3384 = vmatprep.subr.mxu1 %v597_v25  ;;  %3329 = vmatpush3.msra.mxu0 %v549_v26  ;;  %v578_v39 = vld [vmem:[%s7007_s1 + $0x130] sm:$0xff]  ;;  %v577_v43 = vld [vmem:[%s7007_s1 + $0x128] sm:$0xff]  ;;  %v576_v47 = vld [vmem:[%s7007_s1 + $0x120] sm:$0xff] }
  0x1c   : > { %3385 = vmatpush3.msra.mxu1 %v581_v27  ;;  %3330 = vmatprep.subr.mxu0 %v564_v28  ;;  %v559_v48 = vld [vmem:[%s7007_s1 + $0x98] sm:$0xff]  ;;  %v558_v52 = vld [vmem:[%s7007_s1 + $0x90] sm:$0xff]  ;;  %v557_v56 = vld [vmem:[%s7007_s1 + $0x88] sm:$0xff] }
  0x1d   : > { %3386 = vmatprep.subr.mxu1 %v596_v29  ;;  %3331 = vmatpush3.msra.mxu0 %v548_v30  ;;  %v591_v49 = vld [vmem:[%s7007_s1 + $0x198] sm:$0xff]  ;;  %v590_v53 = vld [vmem:[%s7007_s1 + $0x190] sm:$0xff]  ;;  %v589_v57 = vld [vmem:[%s7007_s1 + $0x188] sm:$0xff] }
  0x1e   : > { %3387 = vmatpush3.msra.mxu1 %v580_v31  ;;  %3332 = vmatprep.subr.mxu0 %v563_v32  ;;  %v543_v50 = vld [vmem:[%s7007_s1 + $0x18] sm:$0xff]  ;;  %v542_v54 = vld [vmem:[%s7007_s1 + $0x10] sm:$0xff]  ;;  %v541_v58 = vld [vmem:[%s7007_s1 + $0x8] sm:$0xff] }
  0x1f   : > { %3388 = vmatprep.subr.mxu1 %v595_v33  ;;  %3333 = vmatpush3.msra.mxu0 %v547_v34  ;;  %v575_v51 = vld [vmem:[%s7007_s1 + $0x118] sm:$0xff]  ;;  %v574_v55 = vld [vmem:[%s7007_s1 + $0x110] sm:$0xff]  ;;  %v573_v59 = vld [vmem:[%s7007_s1 + $0x108] sm:$0xff] }
  0x20   : > { %3389 = vmatpush3.msra.mxu1 %v579_v35  ;;  %3334 = vmatprep.subr.mxu0 %v562_v36  ;;  %v556_v60 = vld [vmem:[%s7007_s1 + $0x80] sm:$0xff]  ;;  %v237_v63 = vld [vmem:[%s4696_s22 + $0x8] sm:$0xff]  ;;  %v239_v1 = vld [vmem:[%s4696_s22 + $0x18] sm:$0xff] }
  0x21   : > { %3390 = vmatprep.subr.mxu1 %v594_v37  ;;  %3335 = vmatpush3.msra.mxu0 %v546_v38  ;;  %v588_v61 = vld [vmem:[%s7007_s1 + $0x180] sm:$0xff]  ;;  %v238_v3 = vld [vmem:[%s4696_s22 + $0x10] sm:$0xff]  ;;  %v635_v4 = vld [vmem:[%s7007_s1 + $0x2f8] sm:$0xff] }
  0x22   : > { %3391 = vmatpush3.msra.mxu1 %v578_v39  ;;  %3336 = vmatprep.subr.mxu0 %v561_v40  ;;  %v540_v62 = vld [vmem:[%s7007_s1] sm:$0xff]  ;;  %v667_v5 = vld [vmem:[%s7007_s1 + $0x3f8] sm:$0xff]  ;;  %v634_v8 = vld [vmem:[%s7007_s1 + $0x2f0] sm:$0xff] }
  0x23   : > { %3392 = vmatprep.subr.mxu1 %v593_v41  ;;  %3337 = vmatpush3.msra.mxu0 %v545_v42  ;;  %v572_v0 = vld [vmem:[%s7007_s1 + $0x100] sm:$0xff]  ;;  %v619_v6 = vld [vmem:[%s7007_s1 + $0x278] sm:$0xff]  ;;  %v666_v9 = vld [vmem:[%s7007_s1 + $0x3f0] sm:$0xff] }
  0x24   : > { %3393 = vmatpush3.msra.mxu1 %v577_v43  ;;  %3338 = vmatprep.subr.mxu0 %v560_v44  ;;  %v236_v2 = vld [vmem:[%s4696_s22] sm:$0xff]  ;;  %v651_v7 = vld [vmem:[%s7007_s1 + $0x378] sm:$0xff]  ;;  %v277_v11 = vld [vmem:[%s4696_s22 + $0x148] sm:$0xff] }
  0x25   : > { %3394 = vmatprep.subr.mxu1 %v592_v45  ;;  %3339 = vmatpush3.msra.mxu0 %v544_v46  ;;  %v275_v10 = vld [vmem:[%s4696_s22 + $0x138] sm:$0xff]  ;;  %v618_v12 = vld [vmem:[%s7007_s1 + $0x270] sm:$0xff]  ;;  %v276_v15 = vld [vmem:[%s4696_s22 + $0x140] sm:$0xff] }
  0x26   : > { %3395 = vmatpush3.msra.mxu1 %v576_v47  ;;  %3340 = vmatprep.subr.mxu0 %v559_v48  ;;  %v650_v13 = vld [vmem:[%s7007_s1 + $0x370] sm:$0xff]  ;;  %v633_v16 = vld [vmem:[%s7007_s1 + $0x2e8] sm:$0xff]  ;;  %v632_v20 = vld [vmem:[%s7007_s1 + $0x2e0] sm:$0xff] }
  0x27   : > { %3396 = vmatprep.subr.mxu1 %v591_v49  ;;  %3341 = vmatpush3.msra.mxu0 %v543_v50  ;;  %v274_v14 = vld [vmem:[%s4696_s22 + $0x130] sm:$0xff]  ;;  %v665_v17 = vld [vmem:[%s7007_s1 + $0x3e8] sm:$0xff]  ;;  %v664_v21 = vld [vmem:[%s7007_s1 + $0x3e0] sm:$0xff] }
  0x28   : > { %3397 = vmatpush3.msra.mxu1 %v575_v51  ;;  %3342 = vmatprep.subr.mxu0 %v558_v52  ;;  %v617_v18 = vld [vmem:[%s7007_s1 + $0x268] sm:$0xff]  ;;  %v315_v23 = vld [vmem:[%s4696_s22 + $0x278] sm:$0xff]  ;;  %v616_v24 = vld [vmem:[%s7007_s1 + $0x260] sm:$0xff] }
  0x29   : > { %3398 = vmatprep.subr.mxu1 %v590_v53  ;;  %3343 = vmatpush3.msra.mxu0 %v542_v54  ;;  %v649_v19 = vld [vmem:[%s7007_s1 + $0x368] sm:$0xff]  ;;  %v648_v25 = vld [vmem:[%s7007_s1 + $0x360] sm:$0xff]  ;;  %v314_v27 = vld [vmem:[%s4696_s22 + $0x270] sm:$0xff] }
  0x2a   : > { %3399 = vmatpush3.msra.mxu1 %v574_v55  ;;  %3344 = vmatprep.subr.mxu0 %v557_v56  ;;  %v313_v22 = vld [vmem:[%s4696_s22 + $0x268] sm:$0xff]  ;;  %v312_v26 = vld [vmem:[%s4696_s22 + $0x260] sm:$0xff]  ;;  %v631_v28 = vld [vmem:[%s7007_s1 + $0x2d8] sm:$0xff] }
  0x2b   : > { %3400 = vmatprep.subr.mxu1 %v589_v57  ;;  %3345 = vmatpush3.msra.mxu0 %v541_v58  ;;  %v663_v29 = vld [vmem:[%s7007_s1 + $0x3d8] sm:$0xff]  ;;  %v630_v32 = vld [vmem:[%s7007_s1 + $0x2d0] sm:$0xff]  ;;  %v353_v35 = vld [vmem:[%s4696_s22 + $0x3a8] sm:$0xff] }
  0x2c   : > { %3401 = vmatpush3.msra.mxu1 %v573_v59  ;;  %3346 = vmatprep.subr.mxu0 %v556_v60  ;;  %v615_v30 = vld [vmem:[%s7007_s1 + $0x258] sm:$0xff]  ;;  %v662_v33 = vld [vmem:[%s7007_s1 + $0x3d0] sm:$0xff]  ;;  %v352_v39 = vld [vmem:[%s4696_s22 + $0x3a0] sm:$0xff] }
  0x2d   : > { %3402 = vmatprep.subr.mxu1 %v588_v61  ;;  %3347 = vmatpush3.msra.mxu0 %v540_v62  ;;  %v647_v31 = vld [vmem:[%s7007_s1 + $0x358] sm:$0xff]  ;;  %v614_v36 = vld [vmem:[%s7007_s1 + $0x250] sm:$0xff]  ;;  %v629_v40 = vld [vmem:[%s7007_s1 + $0x2c8] sm:$0xff] }
  0x2e   : > { %1260 = vmatprep.mubr.f32.mxu0 %v237_v63  ;;  %3403 = vmatpush3.msra.mxu1 %v572_v0  ;;  %v351_v34 = vld [vmem:[%s4696_s22 + $0x398] sm:$0xff]  ;;  %v646_v37 = vld [vmem:[%s7007_s1 + $0x350] sm:$0xff]  ;;  %v661_v41 = vld [vmem:[%s7007_s1 + $0x3c8] sm:$0xff] }
  0x2f   : > { %1365 = vmatprep.mubr.f32.mxu1 %v239_v1  ;;  %1261 = vmatmul.mubr.f32.vlgmr.msra.gmra.mxu0 %v236_v2  ;;  %v350_v38 = vld [vmem:[%s4696_s22 + $0x390] sm:$0xff]  ;;  %v613_v42 = vld [vmem:[%s7007_s1 + $0x248] sm:$0xff]  ;;  %v628_v44 = vld [vmem:[%s7007_s1 + $0x2c0] sm:$0xff] }
  0x30   : > { %1366 = vmatmul.mubr.f32.vlgmr.msra.gmra.mxu1 %v238_v3  ;;  %3428 = vmatprep.subr.mxu0 %v635_v4  ;;  %v645_v43 = vld [vmem:[%s7007_s1 + $0x348] sm:$0xff]  ;;  %v660_v45 = vld [vmem:[%s7007_s1 + $0x3c0] sm:$0xff]  ;;  %v391_v47 = vld [vmem:[%s4696_s22 + $0x4d8] sm:$0xff] }
  0x31   : > { %3484 = vmatprep.subr.mxu1 %v667_v5  ;;  %3429 = vmatpush3.msra.mxu0 %v619_v6  ;;  %v389_v46 = vld [vmem:[%s4696_s22 + $0x4c8] sm:$0xff]  ;;  %v612_v48 = vld [vmem:[%s7007_s1 + $0x240] sm:$0xff]  ;;  %v390_v51 = vld [vmem:[%s4696_s22 + $0x4d0] sm:$0xff] }
  0x32   : > { %3485 = vmatpush3.msra.mxu1 %v651_v7  ;;  %3430 = vmatprep.subr.mxu0 %v634_v8  ;;  %v644_v49 = vld [vmem:[%s7007_s1 + $0x340] sm:$0xff]  ;;  %v627_v52 = vld [vmem:[%s7007_s1 + $0x2b8] sm:$0xff]  ;;  %v626_v56 = vld [vmem:[%s7007_s1 + $0x2b0] sm:$0xff] }
  0x33   : > { %3486 = vmatprep.subr.mxu1 %v666_v9  ;;  %1265 = vmatprep.mubr.f32.mxu0 %v275_v10  ;;  %v388_v50 = vld [vmem:[%s4696_s22 + $0x4c0] sm:$0xff]  ;;  %v659_v53 = vld [vmem:[%s7007_s1 + $0x3b8] sm:$0xff]  ;;  %v658_v57 = vld [vmem:[%s7007_s1 + $0x3b0] sm:$0xff] }
  0x34   : > { %1370 = vmatprep.mubr.f32.mxu1 %v277_v11  ;;  %3431 = vmatpush3.msra.mxu0 %v618_v12  ;;  %v611_v54 = vld [vmem:[%s7007_s1 + $0x238] sm:$0xff]  ;;  %v429_v59 = vld [vmem:[%s4696_s22 + $0x608] sm:$0xff]  ;;  %v610_v60 = vld [vmem:[%s7007_s1 + $0x230] sm:$0xff] }
  0x35   : > { %3487 = vmatpush3.msra.mxu1 %v650_v13  ;;  %1266 = vmatmul.mubr.f32.gmra.mxu0 %v274_v14  ;;  %v643_v55 = vld [vmem:[%s7007_s1 + $0x338] sm:$0xff]  ;;  %v642_v61 = vld [vmem:[%s7007_s1 + $0x330] sm:$0xff]  ;;  %v428_v63 = vld [vmem:[%s4696_s22 + $0x600] sm:$0xff] }
  0x36   : > { %1371 = vmatmul.mubr.f32.gmra.mxu1 %v276_v15  ;;  %3432 = vmatprep.subr.mxu0 %v633_v16  ;;  %v427_v58 = vld [vmem:[%s4696_s22 + $0x5f8] sm:$0xff]  ;;  %v426_v62 = vld [vmem:[%s4696_s22 + $0x5f0] sm:$0xff]  ;;  %v625_v0 = vld [vmem:[%s7007_s1 + $0x2a8] sm:$0xff] }
  0x37   : > { %3488 = vmatprep.subr.mxu1 %v665_v17  ;;  %3433 = vmatpush3.msra.mxu0 %v617_v18  ;;  %v657_v1 = vld [vmem:[%s7007_s1 + $0x3a8] sm:$0xff]  ;;  %v624_v4 = vld [vmem:[%s7007_s1 + $0x2a0] sm:$0xff]  ;;  %v467_v7 = vld [vmem:[%s4696_s22 + $0x738] sm:$0xff] }
  0x38   : > { %3489 = vmatpush3.msra.mxu1 %v649_v19  ;;  %3434 = vmatprep.subr.mxu0 %v632_v20  ;;  %v609_v2 = vld [vmem:[%s7007_s1 + $0x228] sm:$0xff]  ;;  %v656_v5 = vld [vmem:[%s7007_s1 + $0x3a0] sm:$0xff]  ;;  %v466_v11 = vld [vmem:[%s4696_s22 + $0x730] sm:$0xff] }
  0x39   : > { %3490 = vmatprep.subr.mxu1 %v664_v21  ;;  %1270 = vmatprep.mubr.f32.mxu0 %v313_v22  ;;  %v641_v3 = vld [vmem:[%s7007_s1 + $0x328] sm:$0xff]  ;;  %v608_v8 = vld [vmem:[%s7007_s1 + $0x220] sm:$0xff]  ;;  %v623_v12 = vld [vmem:[%s7007_s1 + $0x298] sm:$0xff] }
  0x3a   : > { %1375 = vmatprep.mubr.f32.mxu1 %v315_v23  ;;  %3435 = vmatpush3.msra.mxu0 %v616_v24  ;;  %v465_v6 = vld [vmem:[%s4696_s22 + $0x728] sm:$0xff]  ;;  %v640_v9 = vld [vmem:[%s7007_s1 + $0x320] sm:$0xff]  ;;  %v655_v13 = vld [vmem:[%s7007_s1 + $0x398] sm:$0xff] }
  0x3b   : > { %3491 = vmatpush3.msra.mxu1 %v648_v25  ;;  %1271 = vmatmul.mubr.f32.gmra.mxu0 %v312_v26  ;;  %v464_v10 = vld [vmem:[%s4696_s22 + $0x720] sm:$0xff]  ;;  %v607_v14 = vld [vmem:[%s7007_s1 + $0x218] sm:$0xff]  ;;  %v622_v16 = vld [vmem:[%s7007_s1 + $0x290] sm:$0xff] }
  0x3c   : > { %1376 = vmatmul.mubr.f32.gmra.mxu1 %v314_v27  ;;  %3436 = vmatprep.subr.mxu0 %v631_v28  ;;  %v639_v15 = vld [vmem:[%s7007_s1 + $0x318] sm:$0xff]  ;;  %v654_v17 = vld [vmem:[%s7007_s1 + $0x390] sm:$0xff]  ;;  %v505_v19 = vld [vmem:[%s4696_s22 + $0x868] sm:$0xff] }
  0x3d   : > { %3492 = vmatprep.subr.mxu1 %v663_v29  ;;  %3437 = vmatpush3.msra.mxu0 %v615_v30  ;;  %v503_v18 = vld [vmem:[%s4696_s22 + $0x858] sm:$0xff]  ;;  %v606_v20 = vld [vmem:[%s7007_s1 + $0x210] sm:$0xff]  ;;  %v504_v23 = vld [vmem:[%s4696_s22 + $0x860] sm:$0xff] }
  0x3e   : > { %3493 = vmatpush3.msra.mxu1 %v647_v31  ;;  %3438 = vmatprep.subr.mxu0 %v630_v32  ;;  %v638_v21 = vld [vmem:[%s7007_s1 + $0x310] sm:$0xff]  ;;  %v621_v24 = vld [vmem:[%s7007_s1 + $0x288] sm:$0xff]  ;;  %v620_v28 = vld [vmem:[%s7007_s1 + $0x280] sm:$0xff] }
  0x3f   : > { %3494 = vmatprep.subr.mxu1 %v662_v33  ;;  %1275 = vmatprep.mubr.f32.mxu0 %v351_v34  ;;  %v502_v22 = vld [vmem:[%s4696_s22 + $0x850] sm:$0xff]  ;;  %v653_v25 = vld [vmem:[%s7007_s1 + $0x388] sm:$0xff]  ;;  %v652_v29 = vld [vmem:[%s7007_s1 + $0x380] sm:$0xff] }
  0x40   : > { %1380 = vmatprep.mubr.f32.mxu1 %v353_v35  ;;  %3439 = vmatpush3.msra.mxu0 %v614_v36  ;;  %v605_v26 = vld [vmem:[%s7007_s1 + $0x208] sm:$0xff]  ;;  %v604_v30 = vld [vmem:[%s7007_s1 + $0x200] sm:$0xff]  ;;  %v243_v33 = vld [vmem:[%s4696_s22 + $0x38] sm:$0xff] }
  0x41   : > { %3495 = vmatpush3.msra.mxu1 %v646_v37  ;;  %1276 = vmatmul.mubr.f32.gmra.mxu0 %v350_v38  ;;  %v637_v27 = vld [vmem:[%s7007_s1 + $0x308] sm:$0xff]  ;;  %v636_v32 = vld [vmem:[%s7007_s1 + $0x300] sm:$0xff]  ;;  %v242_v35 = vld [vmem:[%s4696_s22 + $0x30] sm:$0xff] }
  0x42   : > { %1381 = vmatmul.mubr.f32.gmra.mxu1 %v352_v39  ;;  %3440 = vmatprep.subr.mxu0 %v629_v40  ;;  %v241_v31 = vld [vmem:[%s4696_s22 + $0x28] sm:$0xff]  ;;  %v240_v34 = vld [vmem:[%s4696_s22 + $0x20] sm:$0xff]  ;;  %v699_v36 = vld [vmem:[%s7007_s1 + $0x4f8] sm:$0xff] }
  0x43   : > { %3496 = vmatprep.subr.mxu1 %v661_v41  ;;  %3441 = vmatpush3.msra.mxu0 %v613_v42  ;;  %v731_v37 = vld [vmem:[%s7007_s1 + $0x5f8] sm:$0xff]  ;;  %v698_v40 = vld [vmem:[%s7007_s1 + $0x4f0] sm:$0xff] }
  0x44   : > { %3497 = vmatpush3.msra.mxu1 %v645_v43  ;;  %3442 = vmatprep.subr.mxu0 %v628_v44  ;;  %v683_v38 = vld [vmem:[%s7007_s1 + $0x478] sm:$0xff]  ;;  %v730_v41 = vld [vmem:[%s7007_s1 + $0x5f0] sm:$0xff]  ;;  %v281_v43 = vld [vmem:[%s4696_s22 + $0x168] sm:$0xff] }
  0x45   : > { %3498 = vmatprep.subr.mxu1 %v660_v45  ;;  %1280 = vmatprep.mubr.f32.mxu0 %v389_v46  ;;  %v715_v39 = vld [vmem:[%s7007_s1 + $0x578] sm:$0xff]  ;;  %v682_v44 = vld [vmem:[%s7007_s1 + $0x470] sm:$0xff] }
  0x46   : > { %1385 = vmatprep.mubr.f32.mxu1 %v391_v47  ;;  %3443 = vmatpush3.msra.mxu0 %v612_v48  ;;  %v279_v42 = vld [vmem:[%s4696_s22 + $0x158] sm:$0xff]  ;;  %v714_v45 = vld [vmem:[%s7007_s1 + $0x570] sm:$0xff]  ;;  %v280_v47 = vld [vmem:[%s4696_s22 + $0x160] sm:$0xff] }
  0x47   : > { %3499 = vmatpush3.msra.mxu1 %v644_v49  ;;  %1281 = vmatmul.mubr.f32.gmra.mxu0 %v388_v50  ;;  %v278_v46 = vld [vmem:[%s4696_s22 + $0x150] sm:$0xff]  ;;  %v697_v48 = vld [vmem:[%s7007_s1 + $0x4e8] sm:$0xff] }
  0x48   : > { %1386 = vmatmul.mubr.f32.gmra.mxu1 %v390_v51  ;;  %3444 = vmatprep.subr.mxu0 %v627_v52  ;;  %v729_v49 = vld [vmem:[%s7007_s1 + $0x5e8] sm:$0xff]  ;;  %v696_v52 = vld [vmem:[%s7007_s1 + $0x4e0] sm:$0xff] }
  0x49   : > { %3500 = vmatprep.subr.mxu1 %v659_v53  ;;  %3445 = vmatpush3.msra.mxu0 %v611_v54  ;;  %v681_v50 = vld [vmem:[%s7007_s1 + $0x468] sm:$0xff]  ;;  %v728_v53 = vld [vmem:[%s7007_s1 + $0x5e0] sm:$0xff] }
  0x4a   : > { %3501 = vmatpush3.msra.mxu1 %v643_v55  ;;  %3446 = vmatprep.subr.mxu0 %v626_v56  ;;  %v713_v51 = vld [vmem:[%s7007_s1 + $0x568] sm:$0xff]  ;;  %v319_v55 = vld [vmem:[%s4696_s22 + $0x298] sm:$0xff]  ;;  %v680_v56 = vld [vmem:[%s7007_s1 + $0x460] sm:$0xff] }
  0x4b   : > { %3502 = vmatprep.subr.mxu1 %v658_v57  ;;  %1285 = vmatprep.mubr.f32.mxu0 %v427_v58  ;;  %v317_v54 = vld [vmem:[%s4696_s22 + $0x288] sm:$0xff]  ;;  %v712_v57 = vld [vmem:[%s7007_s1 + $0x560] sm:$0xff] }
  0x4c   : > { %1390 = vmatprep.mubr.f32.mxu1 %v429_v59  ;;  %3447 = vmatpush3.msra.mxu0 %v610_v60  ;;  %v316_v58 = vld [vmem:[%s4696_s22 + $0x280] sm:$0xff]  ;;  %v318_v59 = vld [vmem:[%s4696_s22 + $0x290] sm:$0xff]  ;;  %v695_v60 = vld [vmem:[%s7007_s1 + $0x4d8] sm:$0xff] }
  0x4d   : > { %3503 = vmatpush3.msra.mxu1 %v642_v61  ;;  %1286 = vmatmul.mubr.f32.gmra.mxu0 %v426_v62  ;;  %v727_v61 = vld [vmem:[%s7007_s1 + $0x5d8] sm:$0xff] }
  0x4e   : > { %1391 = vmatmul.mubr.f32.gmra.mxu1 %v428_v63  ;;  %3448 = vmatprep.subr.mxu0 %v625_v0  ;;  %v679_v62 = vld [vmem:[%s7007_s1 + $0x458] sm:$0xff]  ;;  %v694_v0 = vld [vmem:[%s7007_s1 + $0x4d0] sm:$0xff] }
  0x4f   : > { %3504 = vmatprep.subr.mxu1 %v657_v1  ;;  %3449 = vmatpush3.msra.mxu0 %v609_v2  ;;  %v711_v63 = vld [vmem:[%s7007_s1 + $0x558] sm:$0xff]  ;;  %v726_v1 = vld [vmem:[%s7007_s1 + $0x5d0] sm:$0xff] }
  0x50   : > { %3505 = vmatpush3.msra.mxu1 %v641_v3  ;;  %3450 = vmatprep.subr.mxu0 %v624_v4  ;;  %v355_v2 = vld [vmem:[%s4696_s22 + $0x3b8] sm:$0xff]  ;;  %v357_v3 = vld [vmem:[%s4696_s22 + $0x3c8] sm:$0xff]  ;;  %v678_v4 = vld [vmem:[%s7007_s1 + $0x450] sm:$0xff] }
  0x51   : > { %3506 = vmatprep.subr.mxu1 %v656_v5  ;;  %1290 = vmatprep.mubr.f32.mxu0 %v465_v6  ;;  %v710_v5 = vld [vmem:[%s7007_s1 + $0x550] sm:$0xff] }
  0x52   : > { %1395 = vmatprep.mubr.f32.mxu1 %v467_v7  ;;  %3451 = vmatpush3.msra.mxu0 %v608_v8  ;;  %v354_v6 = vld [vmem:[%s4696_s22 + $0x3b0] sm:$0xff]  ;;  %v356_v7 = vld [vmem:[%s4696_s22 + $0x3c0] sm:$0xff]  ;;  %v693_v8 = vld [vmem:[%s7007_s1 + $0x4c8] sm:$0xff] }
  0x53   : > { %3507 = vmatpush3.msra.mxu1 %v640_v9  ;;  %1291 = vmatmul.mubr.f32.gmra.mxu0 %v464_v10  ;;  %v725_v9 = vld [vmem:[%s7007_s1 + $0x5c8] sm:$0xff] }
  0x54   : > { %1396 = vmatmul.mubr.f32.gmra.mxu1 %v466_v11  ;;  %3452 = vmatprep.subr.mxu0 %v623_v12  ;;  %v677_v10 = vld [vmem:[%s7007_s1 + $0x448] sm:$0xff]  ;;  %v692_v12 = vld [vmem:[%s7007_s1 + $0x4c0] sm:$0xff] }
  0x55   : > { %3508 = vmatprep.subr.mxu1 %v655_v13  ;;  %3453 = vmatpush3.msra.mxu0 %v607_v14  ;;  %v709_v11 = vld [vmem:[%s7007_s1 + $0x548] sm:$0xff]  ;;  %v724_v13 = vld [vmem:[%s7007_s1 + $0x5c0] sm:$0xff] }
  0x56   : > { %3509 = vmatpush3.msra.mxu1 %v639_v15  ;;  %3454 = vmatprep.subr.mxu0 %v622_v16  ;;  %v393_v14 = vld [vmem:[%s4696_s22 + $0x4e8] sm:$0xff]  ;;  %v395_v15 = vld [vmem:[%s4696_s22 + $0x4f8] sm:$0xff]  ;;  %v676_v16 = vld [vmem:[%s7007_s1 + $0x440] sm:$0xff] }
  0x57   : > { %3510 = vmatprep.subr.mxu1 %v654_v17  ;;  %1295 = vmatprep.mubr.f32.mxu0 %v503_v18  ;;  %v708_v17 = vld [vmem:[%s7007_s1 + $0x540] sm:$0xff] }
  0x58   : > { %1400 = vmatprep.mubr.f32.mxu1 %v505_v19  ;;  %3455 = vmatpush3.msra.mxu0 %v606_v20  ;;  %v392_v18 = vld [vmem:[%s4696_s22 + $0x4e0] sm:$0xff]  ;;  %v394_v19 = vld [vmem:[%s4696_s22 + $0x4f0] sm:$0xff]  ;;  %v691_v20 = vld [vmem:[%s7007_s1 + $0x4b8] sm:$0xff] }
  0x59   : > { %3511 = vmatpush3.msra.mxu1 %v638_v21  ;;  %1296 = vmatmul.mubr.f32.gmra.mxu0 %v502_v22  ;;  %v723_v21 = vld [vmem:[%s7007_s1 + $0x5b8] sm:$0xff] }
  0x5a   : > { %1401 = vmatmul.mubr.f32.gmra.mxu1 %v504_v23  ;;  %3456 = vmatprep.subr.mxu0 %v621_v24  ;;  %v675_v22 = vld [vmem:[%s7007_s1 + $0x438] sm:$0xff]  ;;  %v690_v24 = vld [vmem:[%s7007_s1 + $0x4b0] sm:$0xff] }
  0x5b   : > { %3512 = vmatprep.subr.mxu1 %v653_v25  ;;  %3457 = vmatpush3.msra.mxu0 %v605_v26  ;;  %v707_v23 = vld [vmem:[%s7007_s1 + $0x538] sm:$0xff]  ;;  %v722_v25 = vld [vmem:[%s7007_s1 + $0x5b0] sm:$0xff] }
  0x5c   : > { %3513 = vmatpush3.msra.mxu1 %v637_v27  ;;  %3458 = vmatprep.subr.mxu0 %v620_v28  ;;  %v431_v26 = vld [vmem:[%s4696_s22 + $0x618] sm:$0xff]  ;;  %v433_v27 = vld [vmem:[%s4696_s22 + $0x628] sm:$0xff]  ;;  %v674_v28 = vld [vmem:[%s7007_s1 + $0x430] sm:$0xff] }
  0x5d   : > { %3514 = vmatprep.subr.mxu1 %v652_v29  ;;  %3459 = vmatpush3.msra.mxu0 %v604_v30  ;;  %v706_v29 = vld [vmem:[%s7007_s1 + $0x530] sm:$0xff] }
  0x5e   : > { %1470 = vmatprep.mubr.f32.mxu0 %v241_v31  ;;  %3515 = vmatpush3.msra.mxu1 %v636_v32  ;;  %v430_v30 = vld [vmem:[%s4696_s22 + $0x610] sm:$0xff]  ;;  %v432_v31 = vld [vmem:[%s4696_s22 + $0x620] sm:$0xff]  ;;  %v689_v32 = vld [vmem:[%s7007_s1 + $0x4a8] sm:$0xff] }
  0x5f   : > { %1575 = vmatprep.mubr.f32.mxu1 %v243_v33  ;;  %1471 = vmatmul.mubr.f32.vlgmr.msra.gmra.mxu0 %v240_v34  ;;  %v721_v33 = vld [vmem:[%s7007_s1 + $0x5a8] sm:$0xff] }
  0x60   : > { %1576 = vmatmul.mubr.f32.vlgmr.msra.gmra.mxu1 %v242_v35  ;;  %3540 = vmatprep.subr.mxu0 %v699_v36  ;;  %v673_v34 = vld [vmem:[%s7007_s1 + $0x428] sm:$0xff]  ;;  %v688_v36 = vld [vmem:[%s7007_s1 + $0x4a0] sm:$0xff] }
  0x61   : > { %3596 = vmatprep.subr.mxu1 %v731_v37  ;;  %3541 = vmatpush3.msra.mxu0 %v683_v38  ;;  %v705_v35 = vld [vmem:[%s7007_s1 + $0x528] sm:$0xff]  ;;  %v720_v37 = vld [vmem:[%s7007_s1 + $0x5a0] sm:$0xff] }
  0x62   : > { %3597 = vmatpush3.msra.mxu1 %v715_v39  ;;  %3542 = vmatprep.subr.mxu0 %v698_v40  ;;  %v469_v38 = vld [vmem:[%s4696_s22 + $0x748] sm:$0xff]  ;;  %v471_v39 = vld [vmem:[%s4696_s22 + $0x758] sm:$0xff]  ;;  %v672_v40 = vld [vmem:[%s7007_s1 + $0x420] sm:$0xff] }
  0x63   : > { %3598 = vmatprep.subr.mxu1 %v730_v41  ;;  %1475 = vmatprep.mubr.f32.mxu0 %v279_v42  ;;  %v704_v41 = vld [vmem:[%s7007_s1 + $0x520] sm:$0xff] }
  0x64   : > { %1580 = vmatprep.mubr.f32.mxu1 %v281_v43  ;;  %3543 = vmatpush3.msra.mxu0 %v682_v44  ;;  %v468_v42 = vld [vmem:[%s4696_s22 + $0x740] sm:$0xff]  ;;  %v470_v43 = vld [vmem:[%s4696_s22 + $0x750] sm:$0xff]  ;;  %v687_v44 = vld [vmem:[%s7007_s1 + $0x498] sm:$0xff] }
  0x65   : > { %3599 = vmatpush3.msra.mxu1 %v714_v45  ;;  %1476 = vmatmul.mubr.f32.gmra.mxu0 %v278_v46  ;;  %v719_v45 = vld [vmem:[%s7007_s1 + $0x598] sm:$0xff] }
  0x66   : > { %1581 = vmatmul.mubr.f32.gmra.mxu1 %v280_v47  ;;  %3544 = vmatprep.subr.mxu0 %v697_v48  ;;  %v671_v46 = vld [vmem:[%s7007_s1 + $0x418] sm:$0xff]  ;;  %v686_v48 = vld [vmem:[%s7007_s1 + $0x490] sm:$0xff] }
  0x67   : > { %3600 = vmatprep.subr.mxu1 %v729_v49  ;;  %3545 = vmatpush3.msra.mxu0 %v681_v50  ;;  %v703_v47 = vld [vmem:[%s7007_s1 + $0x518] sm:$0xff]  ;;  %v718_v49 = vld [vmem:[%s7007_s1 + $0x590] sm:$0xff] }
  0x68   : > { %3601 = vmatpush3.msra.mxu1 %v713_v51  ;;  %3546 = vmatprep.subr.mxu0 %v696_v52  ;;  %v507_v50 = vld [vmem:[%s4696_s22 + $0x878] sm:$0xff]  ;;  %v509_v51 = vld [vmem:[%s4696_s22 + $0x888] sm:$0xff]  ;;  %v670_v52 = vld [vmem:[%s7007_s1 + $0x410] sm:$0xff] }
  0x69   : > { %3602 = vmatprep.subr.mxu1 %v728_v53  ;;  %1480 = vmatprep.mubr.f32.mxu0 %v317_v54  ;;  %v702_v53 = vld [vmem:[%s7007_s1 + $0x510] sm:$0xff] }
  0x6a   : > { %1585 = vmatprep.mubr.f32.mxu1 %v319_v55  ;;  %3547 = vmatpush3.msra.mxu0 %v680_v56  ;;  %v506_v54 = vld [vmem:[%s4696_s22 + $0x870] sm:$0xff]  ;;  %v508_v55 = vld [vmem:[%s4696_s22 + $0x880] sm:$0xff]  ;;  %v685_v56 = vld [vmem:[%s7007_s1 + $0x488] sm:$0xff] }
  0x6b   : > { %3603 = vmatpush3.msra.mxu1 %v712_v57  ;;  %1481 = vmatmul.mubr.f32.gmra.mxu0 %v316_v58  ;;  %v717_v57 = vld [vmem:[%s7007_s1 + $0x588] sm:$0xff] }
  0x6c   : > { %1586 = vmatmul.mubr.f32.gmra.mxu1 %v318_v59  ;;  %3548 = vmatprep.subr.mxu0 %v695_v60  ;;  %v669_v58 = vld [vmem:[%s7007_s1 + $0x408] sm:$0xff]  ;;  %v684_v60 = vld [vmem:[%s7007_s1 + $0x480] sm:$0xff] }
  0x6d   : > { %3604 = vmatprep.subr.mxu1 %v727_v61  ;;  %3549 = vmatpush3.msra.mxu0 %v679_v62  ;;  %v701_v59 = vld [vmem:[%s7007_s1 + $0x508] sm:$0xff]  ;;  %v716_v61 = vld [vmem:[%s7007_s1 + $0x580] sm:$0xff] }
  0x6e   : > { %3605 = vmatpush3.msra.mxu1 %v711_v63  ;;  %3550 = vmatprep.subr.mxu0 %v694_v0  ;;  %v668_v62 = vld [vmem:[%s7007_s1 + $0x400] sm:$0xff]  ;;  %v245_v63 = vld [vmem:[%s4696_s22 + $0x48] sm:$0xff] }
  0x6f   : > { %3606 = vmatprep.subr.mxu1 %v726_v1  ;;  %1485 = vmatprep.mubr.f32.mxu0 %v355_v2  ;;  %v700_v0 = vld [vmem:[%s7007_s1 + $0x500] sm:$0xff]  ;;  %v247_v1 = vld [vmem:[%s4696_s22 + $0x58] sm:$0xff] }
  0x70   : > { %1590 = vmatprep.mubr.f32.mxu1 %v357_v3  ;;  %3551 = vmatpush3.msra.mxu0 %v678_v4  ;;  %v244_v2 = vld [vmem:[%s4696_s22 + $0x40] sm:$0xff]  ;;  %v246_v3 = vld [vmem:[%s4696_s22 + $0x50] sm:$0xff]  ;;  %v763_v4 = vld [vmem:[%s7007_s1 + $0x6f8] sm:$0xff] }
  0x71   : > { %3607 = vmatpush3.msra.mxu1 %v710_v5  ;;  %1486 = vmatmul.mubr.f32.gmra.mxu0 %v354_v6  ;;  %v795_v5 = vld [vmem:[%s7007_s1 + $0x7f8] sm:$0xff] }
  0x72   : > { %1591 = vmatmul.mubr.f32.gmra.mxu1 %v356_v7  ;;  %3552 = vmatprep.subr.mxu0 %v693_v8  ;;  %v747_v6 = vld [vmem:[%s7007_s1 + $0x678] sm:$0xff]  ;;  %v762_v8 = vld [vmem:[%s7007_s1 + $0x6f0] sm:$0xff] }
  0x73   : > { %3608 = vmatprep.subr.mxu1 %v725_v9  ;;  %3553 = vmatpush3.msra.mxu0 %v677_v10  ;;  %v779_v7 = vld [vmem:[%s7007_s1 + $0x778] sm:$0xff]  ;;  %v794_v9 = vld [vmem:[%s7007_s1 + $0x7f0] sm:$0xff] }
  0x74   : > { %3609 = vmatpush3.msra.mxu1 %v709_v11  ;;  %3554 = vmatprep.subr.mxu0 %v692_v12  ;;  %v283_v10 = vld [vmem:[%s4696_s22 + $0x178] sm:$0xff]  ;;  %v285_v11 = vld [vmem:[%s4696_s22 + $0x188] sm:$0xff]  ;;  %v746_v12 = vld [vmem:[%s7007_s1 + $0x670] sm:$0xff] }
  0x75   : > { %3610 = vmatprep.subr.mxu1 %v724_v13  ;;  %1490 = vmatprep.mubr.f32.mxu0 %v393_v14  ;;  %v778_v13 = vld [vmem:[%s7007_s1 + $0x770] sm:$0xff] }
  0x76   : > { %1595 = vmatprep.mubr.f32.mxu1 %v395_v15  ;;  %3555 = vmatpush3.msra.mxu0 %v676_v16  ;;  %v282_v14 = vld [vmem:[%s4696_s22 + $0x170] sm:$0xff]  ;;  %v284_v15 = vld [vmem:[%s4696_s22 + $0x180] sm:$0xff]  ;;  %v761_v16 = vld [vmem:[%s7007_s1 + $0x6e8] sm:$0xff] }
  0x77   : > { %3611 = vmatpush3.msra.mxu1 %v708_v17  ;;  %1491 = vmatmul.mubr.f32.gmra.mxu0 %v392_v18  ;;  %v793_v17 = vld [vmem:[%s7007_s1 + $0x7e8] sm:$0xff] }
  0x78   : > { %1596 = vmatmul.mubr.f32.gmra.mxu1 %v394_v19  ;;  %3556 = vmatprep.subr.mxu0 %v691_v20  ;;  %v745_v18 = vld [vmem:[%s7007_s1 + $0x668] sm:$0xff]  ;;  %v760_v20 = vld [vmem:[%s7007_s1 + $0x6e0] sm:$0xff] }
  0x79   : > { %3612 = vmatprep.subr.mxu1 %v723_v21  ;;  %3557 = vmatpush3.msra.mxu0 %v675_v22  ;;  %v777_v19 = vld [vmem:[%s7007_s1 + $0x768] sm:$0xff]  ;;  %v792_v21 = vld [vmem:[%s7007_s1 + $0x7e0] sm:$0xff] }
  0x7a   : > { %3613 = vmatpush3.msra.mxu1 %v707_v23  ;;  %3558 = vmatprep.subr.mxu0 %v690_v24  ;;  %v321_v22 = vld [vmem:[%s4696_s22 + $0x2a8] sm:$0xff]  ;;  %v323_v23 = vld [vmem:[%s4696_s22 + $0x2b8] sm:$0xff]  ;;  %v744_v24 = vld [vmem:[%s7007_s1 + $0x660] sm:$0xff] }
  0x7b   : > { %3614 = vmatprep.subr.mxu1 %v722_v25  ;;  %1495 = vmatprep.mubr.f32.mxu0 %v431_v26  ;;  %v776_v25 = vld [vmem:[%s7007_s1 + $0x760] sm:$0xff] }
  0x7c   : > { %1600 = vmatprep.mubr.f32.mxu1 %v433_v27  ;;  %3559 = vmatpush3.msra.mxu0 %v674_v28  ;;  %v320_v26 = vld [vmem:[%s4696_s22 + $0x2a0] sm:$0xff]  ;;  %v322_v27 = vld [vmem:[%s4696_s22 + $0x2b0] sm:$0xff]  ;;  %v759_v28 = vld [vmem:[%s7007_s1 + $0x6d8] sm:$0xff] }
  0x7d   : > { %3615 = vmatpush3.msra.mxu1 %v706_v29  ;;  %1496 = vmatmul.mubr.f32.gmra.mxu0 %v430_v30  ;;  %v791_v29 = vld [vmem:[%s7007_s1 + $0x7d8] sm:$0xff]  ;;  %v1148_v30 = vld [vmem:[%s5228_s16] sm:$0xff] }
  0x7e   : > { %1601 = vmatmul.mubr.f32.gmra.mxu1 %v432_v31  ;;  %3560 = vmatprep.subr.mxu0 %v689_v32  ;;  %v4464_v31 = vmov 0   ;;  %v743_v32 = vld [vmem:[%s7007_s1 + $0x658] sm:$0xff] }
  0x7f   : > { %3616 = vmatprep.subr.mxu1 %v721_v33  ;;  %3561 = vmatpush3.msra.mxu0 %v673_v34  ;;  %v775_v33 = vld [vmem:[%s7007_s1 + $0x758] sm:$0xff]  ;;  %v758_v34 = vld [vmem:[%s7007_s1 + $0x6d0] sm:$0xff] }
  0x80   : > { %3617 = vmatpush3.msra.mxu1 %v705_v35  ;;  %3562 = vmatprep.subr.mxu0 %v688_v36  ;;  %v790_v35 = vld [vmem:[%s7007_s1 + $0x7d0] sm:$0xff]  ;;  %v359_v36 = vld [vmem:[%s4696_s22 + $0x3d8] sm:$0xff] }
  0x81   : > { %3618 = vmatprep.subr.mxu1 %v720_v37  ;;  %1500 = vmatprep.mubr.f32.mxu0 %v469_v38  ;;  %v361_v37 = vld [vmem:[%s4696_s22 + $0x3e8] sm:$0xff]  ;;  %v742_v38 = vld [vmem:[%s7007_s1 + $0x650] sm:$0xff] }
  0x82   : > { %1605 = vmatprep.mubr.f32.mxu1 %v471_v39  ;;  %3563 = vmatpush3.msra.mxu0 %v672_v40  ;;  %v774_v39 = vld [vmem:[%s7007_s1 + $0x750] sm:$0xff] }
  0x83   : > { %3619 = vmatpush3.msra.mxu1 %v704_v41  ;;  %1501 = vmatmul.mubr.f32.gmra.mxu0 %v468_v42  ;;  %v358_v40 = vld [vmem:[%s4696_s22 + $0x3d0] sm:$0xff]  ;;  %v360_v41 = vld [vmem:[%s4696_s22 + $0x3e0] sm:$0xff]  ;;  %v757_v42 = vld [vmem:[%s7007_s1 + $0x6c8] sm:$0xff] }
  0x84   : > { %1606 = vmatmul.mubr.f32.gmra.mxu1 %v470_v43  ;;  %3564 = vmatprep.subr.mxu0 %v687_v44  ;;  %v789_v43 = vld [vmem:[%s7007_s1 + $0x7c8] sm:$0xff] }
  0x85   : > { %3620 = vmatprep.subr.mxu1 %v719_v45  ;;  %3565 = vmatpush3.msra.mxu0 %v671_v46  ;;  %v1149_v44 = vld [vmem:[%s5228_s16 + $0x8] sm:$0xff] }
  0x86   : > { %3621 = vmatpush3.msra.mxu1 %v703_v47  ;;  %3566 = vmatprep.subr.mxu0 %v686_v48  ;;  %v741_v45 = vld [vmem:[%s7007_s1 + $0x648] sm:$0xff]  ;;  %v756_v47 = vld [vmem:[%s7007_s1 + $0x6c0] sm:$0xff] }
  0x87   : > { %3622 = vmatprep.subr.mxu1 %v718_v49  ;;  %1505 = vmatprep.mubr.f32.mxu0 %v507_v50  ;;  %v773_v46 = vld [vmem:[%s7007_s1 + $0x748] sm:$0xff]  ;;  %v788_v48 = vld [vmem:[%s7007_s1 + $0x7c0] sm:$0xff]  ;;  %v399_v50 = vld [vmem:[%s4696_s22 + $0x518] sm:$0xff] }
  0x88   : > { %1610 = vmatprep.mubr.f32.mxu1 %v509_v51  ;;  %3567 = vmatpush3.msra.mxu0 %v670_v52  ;;  %v397_v49 = vld [vmem:[%s4696_s22 + $0x508] sm:$0xff]  ;;  %v740_v51 = vld [vmem:[%s7007_s1 + $0x640] sm:$0xff] }
  0x89   : > { %3623 = vmatpush3.msra.mxu1 %v702_v53  ;;  %1506 = vmatmul.mubr.f32.gmra.mxu0 %v506_v54  ;;  %v772_v52 = vld [vmem:[%s7007_s1 + $0x740] sm:$0xff]  ;;  %v398_v54 = vld [vmem:[%s4696_s22 + $0x510] sm:$0xff] }
  0x8a   : > { %1611 = vmatmul.mubr.f32.gmra.mxu1 %v508_v55  ;;  %3568 = vmatprep.subr.mxu0 %v685_v56  ;;  %v396_v53 = vld [vmem:[%s4696_s22 + $0x500] sm:$0xff]  ;;  %v755_v55 = vld [vmem:[%s7007_s1 + $0x6b8] sm:$0xff] }
  0x8b   : > { %3624 = vmatprep.subr.mxu1 %v717_v57  ;;  %3569 = vmatpush3.msra.mxu0 %v669_v58  ;;  %v787_v56 = vld [vmem:[%s7007_s1 + $0x7b8] sm:$0xff]  ;;  %v1150_v57 = vld [vmem:[%s5228_s16 + $0x10] sm:$0xff] }
  0x8c   : > { %3625 = vmatpush3.msra.mxu1 %v701_v59  ;;  %3570 = vmatprep.subr.mxu0 %v684_v60  ;;  %v739_v58 = vld [vmem:[%s7007_s1 + $0x638] sm:$0xff]  ;;  %v754_v60 = vld [vmem:[%s7007_s1 + $0x6b0] sm:$0xff] }
  0x8d   : > { %3626 = vmatprep.subr.mxu1 %v716_v61  ;;  %3571 = vmatpush3.msra.mxu0 %v668_v62  ;;  %v771_v59 = vld [vmem:[%s7007_s1 + $0x738] sm:$0xff]  ;;  %v786_v61 = vld [vmem:[%s7007_s1 + $0x7b0] sm:$0xff] }
  0x8e   : > { %1680 = vmatprep.mubr.f32.mxu0 %v245_v63  ;;  %3627 = vmatpush3.msra.mxu1 %v700_v0  ;;  %v435_v62 = vld [vmem:[%s4696_s22 + $0x638] sm:$0xff]  ;;  %v437_v63 = vld [vmem:[%s4696_s22 + $0x648] sm:$0xff]  ;;  %v738_v0 = vld [vmem:[%s7007_s1 + $0x630] sm:$0xff] }
  0x8f   : > { %1785 = vmatprep.mubr.f32.mxu1 %v247_v1  ;;  %1681 = vmatmul.mubr.f32.vlgmr.msra.gmra.mxu0 %v244_v2  ;;  %v770_v1 = vld [vmem:[%s7007_s1 + $0x730] sm:$0xff] }
  0x90   : > { %1786 = vmatmul.mubr.f32.vlgmr.msra.gmra.mxu1 %v246_v3  ;;  %3652 = vmatprep.subr.mxu0 %v763_v4  ;;  %v434_v2 = vld [vmem:[%s4696_s22 + $0x630] sm:$0xff]  ;;  %v436_v3 = vld [vmem:[%s4696_s22 + $0x640] sm:$0xff]  ;;  %v753_v4 = vld [vmem:[%s7007_s1 + $0x6a8] sm:$0xff] }
  0x91   : > { %3708 = vmatprep.subr.mxu1 %v795_v5  ;;  %3653 = vmatpush3.msra.mxu0 %v747_v6  ;;  %v785_v5 = vld [vmem:[%s7007_s1 + $0x7a8] sm:$0xff]  ;;  %v1151_v6 = vld [vmem:[%s5228_s16 + $0x18] sm:$0xff] }
  0x92   : > { %3709 = vmatpush3.msra.mxu1 %v779_v7  ;;  %3654 = vmatprep.subr.mxu0 %v762_v8  ;;  %v737_v7 = vld [vmem:[%s7007_s1 + $0x628] sm:$0xff] }
  0x93   : > { %3710 = vmatprep.subr.mxu1 %v794_v9  ;;  %1685 = vmatprep.mubr.f32.mxu0 %v283_v10  ;;  %v769_v8 = vld [vmem:[%s7007_s1 + $0x728] sm:$0xff]  ;;  %v752_v9 = vld [vmem:[%s7007_s1 + $0x6a0] sm:$0xff] }
  0x94   : > { %1790 = vmatprep.mubr.f32.mxu1 %v285_v11  ;;  %3655 = vmatpush3.msra.mxu0 %v746_v12  ;;  %v784_v10 = vld [vmem:[%s7007_s1 + $0x7a0] sm:$0xff]  ;;  %v473_v11 = vld [vmem:[%s4696_s22 + $0x768] sm:$0xff]  ;;  %v475_v12 = vld [vmem:[%s4696_s22 + $0x778] sm:$0xff] }
  0x95   : > { %3711 = vmatpush3.msra.mxu1 %v778_v13  ;;  %1686 = vmatmul.mubr.f32.gmra.mxu0 %v282_v14  ;;  %v736_v13 = vld [vmem:[%s7007_s1 + $0x620] sm:$0xff] }
  0x96   : > { %1791 = vmatmul.mubr.f32.gmra.mxu1 %v284_v15  ;;  %3656 = vmatprep.subr.mxu0 %v761_v16  ;;  %v768_v14 = vld [vmem:[%s7007_s1 + $0x720] sm:$0xff]  ;;  %v474_v16 = vld [vmem:[%s4696_s22 + $0x770] sm:$0xff] }
  0x97   : > { %3712 = vmatprep.subr.mxu1 %v793_v17  ;;  %3657 = vmatpush3.msra.mxu0 %v745_v18  ;;  %v472_v15 = vld [vmem:[%s4696_s22 + $0x760] sm:$0xff]  ;;  %v751_v17 = vld [vmem:[%s7007_s1 + $0x698] sm:$0xff] }
  0x98   : > { %3713 = vmatpush3.msra.mxu1 %v777_v19  ;;  %3658 = vmatprep.subr.mxu0 %v760_v20  ;;  %v783_v18 = vld [vmem:[%s7007_s1 + $0x798] sm:$0xff]  ;;  %v1152_v19 = vld [vmem:[%s5228_s16 + $0x20] sm:$0xff] }
  0x99   : > { %3714 = vmatprep.subr.mxu1 %v792_v21  ;;  %1690 = vmatprep.mubr.f32.mxu0 %v321_v22  ;;  %v735_v20 = vld [vmem:[%s7007_s1 + $0x618] sm:$0xff]  ;;  %v750_v22 = vld [vmem:[%s7007_s1 + $0x690] sm:$0xff] }
  0x9a   : > { %1795 = vmatprep.mubr.f32.mxu1 %v323_v23  ;;  %3659 = vmatpush3.msra.mxu0 %v744_v24  ;;  %v767_v21 = vld [vmem:[%s7007_s1 + $0x718] sm:$0xff]  ;;  %v782_v23 = vld [vmem:[%s7007_s1 + $0x790] sm:$0xff] }
  0x9b   : > { %3715 = vmatpush3.msra.mxu1 %v776_v25  ;;  %4438 = vset.pattern.permute.xlu0 %v4464_v31  ;;  %v511_v24 = vld [vmem:[%s4696_s22 + $0x898] sm:$0xff]  ;;  %v513_v25 = vld [vmem:[%s4696_s22 + $0x8a8] sm:$0xff] }
  0x9c   : > { %1691 = vmatmul.mubr.f32.gmra.mxu0 %v320_v26  ;;  %1796 = vmatmul.mubr.f32.gmra.mxu1 %v322_v27  ;;  %v734_v26 = vld [vmem:[%s7007_s1 + $0x610] sm:$0xff] }
  0x9d   : > { %3660 = vmatprep.subr.mxu0 %v759_v28  ;;  %3716 = vmatprep.subr.mxu1 %v791_v29  ;;  %v766_v27 = vld [vmem:[%s7007_s1 + $0x710] sm:$0xff]  ;;  %v512_v29 = vld [vmem:[%s4696_s22 + $0x8a0] sm:$0xff] }
  0x9e   : > { %1158 = vperm.xlu0 %4438, %v1148_v30   ;;  %3661 = vmatpush3.msra.mxu0 %v743_v32  ;;  %v510_v28 = vld [vmem:[%s4696_s22 + $0x890] sm:$0xff]  ;;  %v749_v30 = vld [vmem:[%s7007_s1 + $0x688] sm:$0xff] }
  0x9f   : > { %3717 = vmatpush3.msra.mxu1 %v775_v33  ;;  %3662 = vmatprep.subr.mxu0 %v758_v34  ;;  %v1153_v32 = vld [vmem:[%s5228_s16 + $0x28] sm:$0xff] }
  0xa0   : > { %3718 = vmatprep.subr.mxu1 %v790_v35  ;;  %1695 = vmatprep.mubr.f32.mxu0 %v359_v36  ;;  %v733_v33 = vld [vmem:[%s7007_s1 + $0x608] sm:$0xff]  ;;  %v748_v35 = vld [vmem:[%s7007_s1 + $0x680] sm:$0xff] }
  0xa1   : > { %1800 = vmatprep.mubr.f32.mxu1 %v361_v37  ;;  %3663 = vmatpush3.msra.mxu0 %v742_v38  ;;  %v765_v34 = vld [vmem:[%s7007_s1 + $0x708] sm:$0xff]  ;;  %v780_v36 = vld [vmem:[%s7007_s1 + $0x780] sm:$0xff] }
  0xa2   : > { %3719 = vmatpush3.msra.mxu1 %v774_v39  ;;  %1696 = vmatmul.mubr.f32.gmra.mxu0 %v358_v40  ;;  %v732_v37 = vld [vmem:[%s7007_s1 + $0x600] sm:$0xff]  ;;  %v249_v38 = vld [vmem:[%s4696_s22 + $0x68] sm:$0xff]  ;;  %v251_v40 = vld [vmem:[%s4696_s22 + $0x78] sm:$0xff] }
  0xa3   : > { %1801 = vmatmul.mubr.f32.gmra.mxu1 %v360_v41  ;;  %3664 = vmatprep.subr.mxu0 %v757_v42  ;;  %v764_v39 = vld [vmem:[%s7007_s1 + $0x700] sm:$0xff]  ;;  %v250_v42 = vld [vmem:[%s4696_s22 + $0x70] sm:$0xff] }
  0xa4   : > { %3720 = vmatprep.subr.mxu1 %v789_v43  ;;  %1163 = vperm.xlu0 %4438, %v1149_v44   ;;  %v248_v41 = vld [vmem:[%s4696_s22 + $0x60] sm:$0xff]  ;;  %v827_v43 = vld [vmem:[%s7007_s1 + $0x8f8] sm:$0xff] }
  0xa5   : > { %3665 = vmatpush3.msra.mxu0 %v741_v45  ;;  %3721 = vmatpush3.msra.mxu1 %v773_v46  ;;  %v859_v44 = vld [vmem:[%s7007_s1 + $0x9f8] sm:$0xff]  ;;  %v1154_v45 = vld [vmem:[%s5228_s16 + $0x30] sm:$0xff] }
  0xa6   : > { %3666 = vmatprep.subr.mxu0 %v756_v47  ;;  %3722 = vmatprep.subr.mxu1 %v788_v48  ;;  %v811_v46 = vld [vmem:[%s7007_s1 + $0x878] sm:$0xff]  ;;  %v826_v48 = vld [vmem:[%s7007_s1 + $0x8f0] sm:$0xff] }
  0xa7   : > { %1700 = vmatprep.mubr.f32.mxu0 %v397_v49  ;;  %1805 = vmatprep.mubr.f32.mxu1 %v399_v50  ;;  %v843_v47 = vld [vmem:[%s7007_s1 + $0x978] sm:$0xff]  ;;  %v858_v49 = vld [vmem:[%s7007_s1 + $0x9f0] sm:$0xff] }
  0xa8   : > { %3667 = vmatpush3.msra.mxu0 %v740_v51  ;;  %3723 = vmatpush3.msra.mxu1 %v772_v52  ;;  %v287_v50 = vld [vmem:[%s4696_s22 + $0x198] sm:$0xff]  ;;  %v289_v51 = vld [vmem:[%s4696_s22 + $0x1a8] sm:$0xff]  ;;  %v810_v52 = vld [vmem:[%s7007_s1 + $0x870] sm:$0xff] }
  0xa9   : > { %4439 = vset.pattern.permute.xlu1 %v4464_v31  ;;  %1701 = vmatmul.mubr.f32.gmra.mxu0 %v396_v53  ;;  %v781_v31 = vld [vmem:[%s7007_s1 + $0x788] sm:$0xff]  ;;  %v842_v53 = vld [vmem:[%s7007_s1 + $0x970] sm:$0xff] }
  0xaa   : > { %1806 = vmatmul.mubr.f32.gmra.mxu1 %v398_v54  ;;  %3668 = vmatprep.subr.mxu0 %v755_v55  ;;  %v286_v54 = vld [vmem:[%s4696_s22 + $0x190] sm:$0xff]  ;;  %v288_v55 = vld [vmem:[%s4696_s22 + $0x1a0] sm:$0xff] }
  0xab   : > { %3724 = vmatprep.subr.mxu1 %v787_v56  ;;  %1168 = vperm.xlu1 %4439, %v1150_v57   ;;  %v825_v56 = vld [vmem:[%s7007_s1 + $0x8e8] sm:$0xff] }
  0xac   : > { %3669 = vmatpush3.msra.mxu0 %v739_v58  ;;  %3725 = vmatpush3.msra.mxu1 %v771_v59  ;;  %v857_v57 = vld [vmem:[%s7007_s1 + $0x9e8] sm:$0xff]  ;;  %v1155_v58 = vld [vmem:[%s5228_s16 + $0x38] sm:$0xff] }
  0xad   : > { %3670 = vmatprep.subr.mxu0 %v754_v60  ;;  %3726 = vmatprep.subr.mxu1 %v786_v61  ;;  %v809_v59 = vld [vmem:[%s7007_s1 + $0x868] sm:$0xff]  ;;  %v824_v61 = vld [vmem:[%s7007_s1 + $0x8e0] sm:$0xff] }
  0xae   : > { %1705 = vmatprep.mubr.f32.mxu0 %v435_v62  ;;  %1810 = vmatprep.mubr.f32.mxu1 %v437_v63  ;;  %v841_v60 = vld [vmem:[%s7007_s1 + $0x968] sm:$0xff]  ;;  %v856_v62 = vld [vmem:[%s7007_s1 + $0x9e0] sm:$0xff] }
  0xaf   : > { %3671 = vmatpush3.msra.mxu0 %v738_v0  ;;  %3727 = vmatpush3.msra.mxu1 %v770_v1  ;;  %v325_v63 = vld [vmem:[%s4696_s22 + $0x2c8] sm:$0xff]  ;;  %v327_v0 = vld [vmem:[%s4696_s22 + $0x2d8] sm:$0xff]  ;;  %v808_v1 = vld [vmem:[%s7007_s1 + $0x860] sm:$0xff] }
  0xb0   : > { %1706 = vmatmul.mubr.f32.gmra.mxu0 %v434_v2  ;;  %1811 = vmatmul.mubr.f32.gmra.mxu1 %v436_v3  ;;  %v840_v2 = vld [vmem:[%s7007_s1 + $0x960] sm:$0xff] }
  0xb1   : > { %3672 = vmatprep.subr.mxu0 %v753_v4  ;;  %3728 = vmatprep.subr.mxu1 %v785_v5  ;;  %v324_v3 = vld [vmem:[%s4696_s22 + $0x2c0] sm:$0xff]  ;;  %v326_v4 = vld [vmem:[%s4696_s22 + $0x2d0] sm:$0xff]  ;;  %v823_v5 = vld [vmem:[%s7007_s1 + $0x8d8] sm:$0xff] }
  0xb2   : > { %1173 = vperm.xlu1 %4439, %v1151_v6   ;;  %3673 = vmatpush3.msra.mxu0 %v737_v7  ;;  %v855_v6 = vld [vmem:[%s7007_s1 + $0x9d8] sm:$0xff] }
  0xb3   : > { %3729 = vmatpush3.msra.mxu1 %v769_v8  ;;  %3674 = vmatprep.subr.mxu0 %v752_v9  ;;  %v807_v7 = vld [vmem:[%s7007_s1 + $0x858] sm:$0xff]  ;;  %v822_v9 = vld [vmem:[%s7007_s1 + $0x8d0] sm:$0xff] }
  0xb4   : > { %3730 = vmatprep.subr.mxu1 %v784_v10  ;;  %1710 = vmatprep.mubr.f32.mxu0 %v473_v11  ;;  %v839_v8 = vld [vmem:[%s7007_s1 + $0x958] sm:$0xff]  ;;  %v854_v10 = vld [vmem:[%s7007_s1 + $0x9d0] sm:$0xff] }
  0xb5   : > { %1815 = vmatprep.mubr.f32.mxu1 %v475_v12  ;;  %3675 = vmatpush3.msra.mxu0 %v736_v13  ;;  %v363_v11 = vld [vmem:[%s4696_s22 + $0x3f8] sm:$0xff]  ;;  %v365_v12 = vld [vmem:[%s4696_s22 + $0x408] sm:$0xff]  ;;  %v806_v13 = vld [vmem:[%s7007_s1 + $0x850] sm:$0xff] }
  0xb6   : > { %3731 = vmatpush3.msra.mxu1 %v768_v14  ;;  %1711 = vmatmul.mubr.f32.gmra.mxu0 %v472_v15  ;;  %v838_v14 = vld [vmem:[%s7007_s1 + $0x950] sm:$0xff] }
  0xb7   : > { %1816 = vmatmul.mubr.f32.gmra.mxu1 %v474_v16  ;;  %3676 = vmatprep.subr.mxu0 %v751_v17  ;;  %v362_v15 = vld [vmem:[%s4696_s22 + $0x3f0] sm:$0xff]  ;;  %v364_v16 = vld [vmem:[%s4696_s22 + $0x400] sm:$0xff]  ;;  %v821_v17 = vld [vmem:[%s7007_s1 + $0x8c8] sm:$0xff] }
  0xb8   : > { %3732 = vmatprep.subr.mxu1 %v783_v18  ;;  %1178 = vperm.xlu0 %4438, %v1152_v19   ;;  %v853_v18 = vld [vmem:[%s7007_s1 + $0x9c8] sm:$0xff] }
  0xb9   : > { %3677 = vmatpush3.msra.mxu0 %v735_v20  ;;  %3733 = vmatpush3.msra.mxu1 %v767_v21  ;;  %v805_v19 = vld [vmem:[%s7007_s1 + $0x848] sm:$0xff]  ;;  %v820_v21 = vld [vmem:[%s7007_s1 + $0x8c0] sm:$0xff] }
  0xba   : > { %3678 = vmatprep.subr.mxu0 %v750_v22  ;;  %3734 = vmatprep.subr.mxu1 %v782_v23  ;;  %v837_v20 = vld [vmem:[%s7007_s1 + $0x948] sm:$0xff]  ;;  %v852_v22 = vld [vmem:[%s7007_s1 + $0x9c0] sm:$0xff] }
  0xbb   : > { %1715 = vmatprep.mubr.f32.mxu0 %v511_v24  ;;  %1820 = vmatprep.mubr.f32.mxu1 %v513_v25  ;;  %v401_v23 = vld [vmem:[%s4696_s22 + $0x528] sm:$0xff]  ;;  %v403_v24 = vld [vmem:[%s4696_s22 + $0x538] sm:$0xff]  ;;  %v804_v25 = vld [vmem:[%s7007_s1 + $0x840] sm:$0xff] }
  0xbc   : > { %3679 = vmatpush3.msra.mxu0 %v734_v26  ;;  %3735 = vmatpush3.msra.mxu1 %v766_v27  ;;  %v836_v26 = vld [vmem:[%s7007_s1 + $0x940] sm:$0xff] }
  0xbd   : > { %1716 = vmatmul.mubr.f32.gmra.mxu0 %v510_v28  ;;  %1821 = vmatmul.mubr.f32.gmra.mxu1 %v512_v29  ;;  %v400_v27 = vld [vmem:[%s4696_s22 + $0x520] sm:$0xff]  ;;  %v402_v28 = vld [vmem:[%s4696_s22 + $0x530] sm:$0xff]  ;;  %v819_v29 = vld [vmem:[%s7007_s1 + $0x8b8] sm:$0xff] }
  0xbe   : > { %3680 = vmatprep.subr.mxu0 %v749_v30  ;;  %3736 = vmatprep.subr.mxu1 %v781_v31  ;;  %v851_v30 = vld [vmem:[%s7007_s1 + $0x9b8] sm:$0xff] }
  0xbf   : > { %1183 = vperm.xlu1 %4439, %v1153_v32   ;;  %3681 = vmatpush3.msra.mxu0 %v733_v33  ;;  %v803_v31 = vld [vmem:[%s7007_s1 + $0x838] sm:$0xff]  ;;  %v818_v33 = vld [vmem:[%s7007_s1 + $0x8b0] sm:$0xff] }
  0xc0   : > { %3737 = vmatpush3.msra.mxu1 %v765_v34  ;;  %3682 = vmatprep.subr.mxu0 %v748_v35  ;;  %v835_v32 = vld [vmem:[%s7007_s1 + $0x938] sm:$0xff]  ;;  %v850_v34 = vld [vmem:[%s7007_s1 + $0x9b0] sm:$0xff] }
  0xc1   : > { %3738 = vmatprep.subr.mxu1 %v780_v36  ;;  %3683 = vmatpush3.msra.mxu0 %v732_v37  ;;  %v439_v35 = vld [vmem:[%s4696_s22 + $0x658] sm:$0xff]  ;;  %v441_v36 = vld [vmem:[%s4696_s22 + $0x668] sm:$0xff]  ;;  %v802_v37 = vld [vmem:[%s7007_s1 + $0x830] sm:$0xff] }
  0xc2   : > { %1890 = vmatprep.mubr.f32.mxu0 %v249_v38  ;;  %3739 = vmatpush3.msra.mxu1 %v764_v39  ;;  %v834_v38 = vld [vmem:[%s7007_s1 + $0x930] sm:$0xff] }
  0xc3   : > { %1995 = vmatprep.mubr.f32.mxu1 %v251_v40  ;;  %1891 = vmatmul.mubr.f32.vlgmr.msra.gmra.mxu0 %v248_v41  ;;  %v438_v39 = vld [vmem:[%s4696_s22 + $0x650] sm:$0xff]  ;;  %v440_v40 = vld [vmem:[%s4696_s22 + $0x660] sm:$0xff]  ;;  %v817_v41 = vld [vmem:[%s7007_s1 + $0x8a8] sm:$0xff] }
  0xc4   : > { %1996 = vmatmul.mubr.f32.vlgmr.msra.gmra.mxu1 %v250_v42  ;;  %3764 = vmatprep.subr.mxu0 %v827_v43  ;;  %v849_v42 = vld [vmem:[%s7007_s1 + $0x9a8] sm:$0xff] }
  0xc5   : > { %3820 = vmatprep.subr.mxu1 %v859_v44  ;;  %1188 = vperm.xlu0 %4438, %v1154_v45   ;;  %v801_v43 = vld [vmem:[%s7007_s1 + $0x828] sm:$0xff]  ;;  %v816_v45 = vld [vmem:[%s7007_s1 + $0x8a0] sm:$0xff] }
  0xc6   : > { %3765 = vmatpush3.msra.mxu0 %v811_v46  ;;  %3821 = vmatpush3.msra.mxu1 %v843_v47  ;;  %v833_v44 = vld [vmem:[%s7007_s1 + $0x928] sm:$0xff]  ;;  %v848_v46 = vld [vmem:[%s7007_s1 + $0x9a0] sm:$0xff] }
  0xc7   : > { %3766 = vmatprep.subr.mxu0 %v826_v48  ;;  %3822 = vmatprep.subr.mxu1 %v858_v49  ;;  %v477_v47 = vld [vmem:[%s4696_s22 + $0x788] sm:$0xff]  ;;  %v479_v48 = vld [vmem:[%s4696_s22 + $0x798] sm:$0xff]  ;;  %v800_v49 = vld [vmem:[%s7007_s1 + $0x820] sm:$0xff] }
  0xc8   : > { %1895 = vmatprep.mubr.f32.mxu0 %v287_v50  ;;  %2000 = vmatprep.mubr.f32.mxu1 %v289_v51  ;;  %v832_v50 = vld [vmem:[%s7007_s1 + $0x920] sm:$0xff] }
  0xc9   : > { %3767 = vmatpush3.msra.mxu0 %v810_v52  ;;  %3823 = vmatpush3.msra.mxu1 %v842_v53  ;;  %v476_v51 = vld [vmem:[%s4696_s22 + $0x780] sm:$0xff]  ;;  %v478_v52 = vld [vmem:[%s4696_s22 + $0x790] sm:$0xff]  ;;  %v815_v53 = vld [vmem:[%s7007_s1 + $0x898] sm:$0xff] }
  0xca   : > { %1896 = vmatmul.mubr.f32.gmra.mxu0 %v286_v54  ;;  %2001 = vmatmul.mubr.f32.gmra.mxu1 %v288_v55  ;;  %v847_v54 = vld [vmem:[%s7007_s1 + $0x998] sm:$0xff] }
  0xcb   : > { %3768 = vmatprep.subr.mxu0 %v825_v56  ;;  %3824 = vmatprep.subr.mxu1 %v857_v57  ;;  %v799_v55 = vld [vmem:[%s7007_s1 + $0x818] sm:$0xff]  ;;  %v814_v57 = vld [vmem:[%s7007_s1 + $0x890] sm:$0xff] }
  0xcc   : > { %1193 = vperm.xlu1 %4439, %v1155_v58   ;;  %3769 = vmatpush3.msra.mxu0 %v809_v59  ;;  %v831_v56 = vld [vmem:[%s7007_s1 + $0x918] sm:$0xff]  ;;  %v846_v58 = vld [vmem:[%s7007_s1 + $0x990] sm:$0xff] }
  0xcd   : > { %3825 = vmatpush3.msra.mxu1 %v841_v60  ;;  %3770 = vmatprep.subr.mxu0 %v824_v61  ;;  %v515_v59 = vld [vmem:[%s4696_s22 + $0x8b8] sm:$0xff]  ;;  %v517_v60 = vld [vmem:[%s4696_s22 + $0x8c8] sm:$0xff]  ;;  %v798_v61 = vld [vmem:[%s7007_s1 + $0x810] sm:$0xff] }
  0xce   : > { %3826 = vmatprep.subr.mxu1 %v856_v62  ;;  %1900 = vmatprep.mubr.f32.mxu0 %v325_v63  ;;  %v830_v62 = vld [vmem:[%s7007_s1 + $0x910] sm:$0xff] }
  0xcf   : > { %2005 = vmatprep.mubr.f32.mxu1 %v327_v0  ;;  %3771 = vmatpush3.msra.mxu0 %v808_v1  ;;  %v514_v63 = vld [vmem:[%s4696_s22 + $0x8b0] sm:$0xff]  ;;  %v516_v0 = vld [vmem:[%s4696_s22 + $0x8c0] sm:$0xff]  ;;  %v813_v1 = vld [vmem:[%s7007_s1 + $0x888] sm:$0xff] }
  0xd0   : > { %3827 = vmatpush3.msra.mxu1 %v840_v2  ;;  %1901 = vmatmul.mubr.f32.gmra.mxu0 %v324_v3  ;;  %v845_v2 = vld [vmem:[%s7007_s1 + $0x988] sm:$0xff] }
  0xd1   : > { %2006 = vmatmul.mubr.f32.gmra.mxu1 %v326_v4  ;;  %3772 = vmatprep.subr.mxu0 %v823_v5  ;;  %v797_v3 = vld [vmem:[%s7007_s1 + $0x808] sm:$0xff]  ;;  %v812_v5 = vld [vmem:[%s7007_s1 + $0x880] sm:$0xff] }
  0xd2   : > { %3828 = vmatprep.subr.mxu1 %v855_v6  ;;  %3773 = vmatpush3.msra.mxu0 %v807_v7  ;;  %v829_v4 = vld [vmem:[%s7007_s1 + $0x908] sm:$0xff]  ;;  %v844_v6 = vld [vmem:[%s7007_s1 + $0x980] sm:$0xff] }
  0xd3   : > { %3829 = vmatpush3.msra.mxu1 %v839_v8  ;;  %3774 = vmatprep.subr.mxu0 %v822_v9  ;;  %v796_v7 = vld [vmem:[%s7007_s1 + $0x800] sm:$0xff]  ;;  %v253_v8 = vld [vmem:[%s4696_s22 + $0x88] sm:$0xff] }
  0xd4   : > { %3830 = vmatprep.subr.mxu1 %v854_v10  ;;  %1905 = vmatprep.mubr.f32.mxu0 %v363_v11  ;;  %v828_v11 = vld [vmem:[%s7007_s1 + $0x900] sm:$0xff] }
  0xd5   : > { %2010 = vmatprep.mubr.f32.mxu1 %v365_v12  ;;  %3775 = vmatpush3.msra.mxu0 %v806_v13  ;;  %v255_v12 = vld [vmem:[%s4696_s22 + $0x98] sm:$0xff]  ;;  %v252_v13 = vld [vmem:[%s4696_s22 + $0x80] sm:$0xff] }
  0xd6   : > { %3831 = vmatpush3.msra.mxu1 %v838_v14  ;;  %1906 = vmatmul.mubr.f32.gmra.mxu0 %v362_v15  ;;  %v254_v14 = vld [vmem:[%s4696_s22 + $0x90] sm:$0xff] }
  0xd7   : > { %2011 = vmatmul.mubr.f32.gmra.mxu1 %v364_v16  ;;  %3776 = vmatprep.subr.mxu0 %v821_v17  ;;  %v891_v17 = vld [vmem:[%s7007_s1 + $0xaf8] sm:$0xff] }
  0xd8   : > { %3832 = vmatprep.subr.mxu1 %v853_v18  ;;  %3777 = vmatpush3.msra.mxu0 %v805_v19  ;;  %v923_v18 = vld [vmem:[%s7007_s1 + $0xbf8] sm:$0xff] }
  0xd9   : > { %3833 = vmatpush3.msra.mxu1 %v837_v20  ;;  %3778 = vmatprep.subr.mxu0 %v820_v21  ;;  %v875_v19 = vld [vmem:[%s7007_s1 + $0xa78] sm:$0xff]  ;;  %v890_v21 = vld [vmem:[%s7007_s1 + $0xaf0] sm:$0xff] }
  0xda   : > { %3834 = vmatprep.subr.mxu1 %v852_v22  ;;  %1910 = vmatprep.mubr.f32.mxu0 %v401_v23  ;;  %v907_v20 = vld [vmem:[%s7007_s1 + $0xb78] sm:$0xff]  ;;  %v922_v22 = vld [vmem:[%s7007_s1 + $0xbf0] sm:$0xff] }
  0xdb   : > { %2015 = vmatprep.mubr.f32.mxu1 %v403_v24  ;;  %3779 = vmatpush3.msra.mxu0 %v804_v25  ;;  %v291_v23 = vld [vmem:[%s4696_s22 + $0x1b8] sm:$0xff]  ;;  %v293_v24 = vld [vmem:[%s4696_s22 + $0x1c8] sm:$0xff] }
  0xdc   : > { %3835 = vmatpush3.msra.mxu1 %v836_v26  ;;  %1911 = vmatmul.mubr.f32.gmra.mxu0 %v400_v27  ;;  %v874_v27 = vld [vmem:[%s7007_s1 + $0xa70] sm:$0xff] }
  0xdd   : > { %2016 = vmatmul.mubr.f32.gmra.mxu1 %v402_v28  ;;  %3780 = vmatprep.subr.mxu0 %v819_v29  ;;  %v906_v28 = vld [vmem:[%s7007_s1 + $0xb70] sm:$0xff] }
  0xde   : > { %3836 = vmatprep.subr.mxu1 %v851_v30  ;;  %3781 = vmatpush3.msra.mxu0 %v803_v31  ;;  %v290_v29 = vld [vmem:[%s4696_s22 + $0x1b0] sm:$0xff]  ;;  %v292_v30 = vld [vmem:[%s4696_s22 + $0x1c0] sm:$0xff] }
  0xdf   : > { %3837 = vmatpush3.msra.mxu1 %v835_v32  ;;  %3782 = vmatprep.subr.mxu0 %v818_v33  ;;  %v889_v33 = vld [vmem:[%s7007_s1 + $0xae8] sm:$0xff] }
  0xe0   : > { %3838 = vmatprep.subr.mxu1 %v850_v34  ;;  %1915 = vmatprep.mubr.f32.mxu0 %v439_v35  ;;  %v921_v34 = vld [vmem:[%s7007_s1 + $0xbe8] sm:$0xff] }
  0xe1   : > { %2020 = vmatprep.mubr.f32.mxu1 %v441_v36  ;;  %3783 = vmatpush3.msra.mxu0 %v802_v37  ;;  %v873_v35 = vld [vmem:[%s7007_s1 + $0xa68] sm:$0xff]  ;;  %v888_v37 = vld [vmem:[%s7007_s1 + $0xae0] sm:$0xff] }
  0xe2   : > { %3839 = vmatpush3.msra.mxu1 %v834_v38  ;;  %1916 = vmatmul.mubr.f32.gmra.mxu0 %v438_v39  ;;  %v905_v36 = vld [vmem:[%s7007_s1 + $0xb68] sm:$0xff]  ;;  %v920_v38 = vld [vmem:[%s7007_s1 + $0xbe0] sm:$0xff] }
  0xe3   : > { %2021 = vmatmul.mubr.f32.gmra.mxu1 %v440_v40  ;;  %3784 = vmatprep.subr.mxu0 %v817_v41  ;;  %v329_v39 = vld [vmem:[%s4696_s22 + $0x2e8] sm:$0xff]  ;;  %v331_v40 = vld [vmem:[%s4696_s22 + $0x2f8] sm:$0xff] }
  0xe4   : > { %3840 = vmatprep.subr.mxu1 %v849_v42  ;;  %3785 = vmatpush3.msra.mxu0 %v801_v43  ;;  %v872_v43 = vld [vmem:[%s7007_s1 + $0xa60] sm:$0xff] }
  0xe5   : > { %3841 = vmatpush3.msra.mxu1 %v833_v44  ;;  %3786 = vmatprep.subr.mxu0 %v816_v45  ;;  %v904_v44 = vld [vmem:[%s7007_s1 + $0xb60] sm:$0xff] }
  0xe6   : > { %3842 = vmatprep.subr.mxu1 %v848_v46  ;;  %1920 = vmatprep.mubr.f32.mxu0 %v477_v47  ;;  %v328_v45 = vld [vmem:[%s4696_s22 + $0x2e0] sm:$0xff]  ;;  %v330_v46 = vld [vmem:[%s4696_s22 + $0x2f0] sm:$0xff] }
  0xe7   : > { %2025 = vmatprep.mubr.f32.mxu1 %v479_v48  ;;  %3787 = vmatpush3.msra.mxu0 %v800_v49  ;;  %v887_v49 = vld [vmem:[%s7007_s1 + $0xad8] sm:$0xff] }
  0xe8   : > { %3843 = vmatpush3.msra.mxu1 %v832_v50  ;;  %1921 = vmatmul.mubr.f32.gmra.mxu0 %v476_v51  ;;  %v919_v50 = vld [vmem:[%s7007_s1 + $0xbd8] sm:$0xff] }
  0xe9   : > { %2026 = vmatmul.mubr.f32.gmra.mxu1 %v478_v52  ;;  %3788 = vmatprep.subr.mxu0 %v815_v53  ;;  %v871_v51 = vld [vmem:[%s7007_s1 + $0xa58] sm:$0xff]  ;;  %v886_v53 = vld [vmem:[%s7007_s1 + $0xad0] sm:$0xff] }
  0xea   : > { %3844 = vmatprep.subr.mxu1 %v847_v54  ;;  %3789 = vmatpush3.msra.mxu0 %v799_v55  ;;  %v903_v52 = vld [vmem:[%s7007_s1 + $0xb58] sm:$0xff]  ;;  %v918_v54 = vld [vmem:[%s7007_s1 + $0xbd0] sm:$0xff] }
  0xeb   : > { %3845 = vmatpush3.msra.mxu1 %v831_v56  ;;  %3790 = vmatprep.subr.mxu0 %v814_v57  ;;  %v367_v55 = vld [vmem:[%s4696_s22 + $0x418] sm:$0xff]  ;;  %v369_v56 = vld [vmem:[%s4696_s22 + $0x428] sm:$0xff] }
  0xec   : > { %3846 = vmatprep.subr.mxu1 %v846_v58  ;;  %1925 = vmatprep.mubr.f32.mxu0 %v515_v59  ;;  %v870_v59 = vld [vmem:[%s7007_s1 + $0xa50] sm:$0xff] }
  0xed   : > { %2030 = vmatprep.mubr.f32.mxu1 %v517_v60  ;;  %3791 = vmatpush3.msra.mxu0 %v798_v61  ;;  %v902_v60 = vld [vmem:[%s7007_s1 + $0xb50] sm:$0xff] }
  0xee   : > { %3847 = vmatpush3.msra.mxu1 %v830_v62  ;;  %1926 = vmatmul.mubr.f32.gmra.mxu0 %v514_v63  ;;  %v366_v61 = vld [vmem:[%s4696_s22 + $0x410] sm:$0xff]  ;;  %v368_v62 = vld [vmem:[%s4696_s22 + $0x420] sm:$0xff] }
  0xef   : > { %2031 = vmatmul.mubr.f32.gmra.mxu1 %v516_v0  ;;  %3792 = vmatprep.subr.mxu0 %v813_v1  ;;  %v5626_v9 = vpop.f32.mrf.mxu0  ;;  %v885_v1 = vld [vmem:[%s7007_s1 + $0xac8] sm:$0xff] }
  0xf0   : > { %3848 = vmatprep.subr.mxu1 %v845_v2  ;;  %v5628_v10 = vpop.f32.mrf.mxu1  ;;  %3793 = vmatpush3.msra.mxu0 %v797_v3  ;;  %v917_v2 = vld [vmem:[%s7007_s1 + $0xbc8] sm:$0xff] }
  0xf1   : > { %3849 = vmatpush3.msra.mxu1 %v829_v4  ;;  %3794 = vmatprep.subr.mxu0 %v812_v5  ;;  %v5636_v15 = vpop.f32.mrf.mxu0  ;;  %v869_v3 = vld [vmem:[%s7007_s1 + $0xa48] sm:$0xff]  ;;  %v884_v5 = vld [vmem:[%s7007_s1 + $0xac0] sm:$0xff] }
  0xf2   : > { %3850 = vmatprep.subr.mxu1 %v844_v6  ;;  %v5638_v16 = vpop.f32.mrf.mxu1  ;;  %3795 = vmatpush3.msra.mxu0 %v796_v7  ;;  %v901_v4 = vld [vmem:[%s7007_s1 + $0xb48] sm:$0xff]  ;;  %v916_v6 = vld [vmem:[%s7007_s1 + $0xbc0] sm:$0xff] }
  0xf3   : > { %2100 = vmatprep.mubr.f32.mxu0 %v253_v8  ;;  %3851 = vmatpush3.msra.mxu1 %v828_v11  ;;  %v405_v7 = vld [vmem:[%s4696_s22 + $0x548] sm:$0xff]  ;;  %v407_v8 = vld [vmem:[%s4696_s22 + $0x558] sm:$0xff] }
  0xf4   : > { %2205 = vmatprep.mubr.f32.mxu1 %v255_v12  ;;  %2101 = vmatmul.mubr.f32.vlgmr.msra.gmra.mxu0 %v252_v13  ;;  %v868_v13 = vld [vmem:[%s7007_s1 + $0xa40] sm:$0xff] }
  0xf5   : > { %2206 = vmatmul.mubr.f32.vlgmr.msra.gmra.mxu1 %v254_v14  ;;  %3876 = vmatprep.subr.mxu0 %v891_v17  ;;  %v5660_v25 = vpop.f32.mrf.mxu0  ;;  %v900_v14 = vld [vmem:[%s7007_s1 + $0xb40] sm:$0xff] }
  0xf6   : > { %3932 = vmatprep.subr.mxu1 %v923_v18  ;;  %v5662_v26 = vpop.f32.mrf.mxu1  ;;  %3877 = vmatpush3.msra.mxu0 %v875_v19  ;;  %v404_v17 = vld [vmem:[%s4696_s22 + $0x540] sm:$0xff]  ;;  %v406_v18 = vld [vmem:[%s4696_s22 + $0x550] sm:$0xff] }
  0xf7   : > { %3933 = vmatpush3.msra.mxu1 %v907_v20  ;;  %3878 = vmatprep.subr.mxu0 %v890_v21  ;;  %v5672_v31 = vpop.f32.mrf.mxu0  ;;  %v883_v21 = vld [vmem:[%s7007_s1 + $0xab8] sm:$0xff] }
  0xf8   : > { %3934 = vmatprep.subr.mxu1 %v922_v22  ;;  %v5674_v32 = vpop.f32.mrf.mxu1  ;;  %2105 = vmatprep.mubr.f32.mxu0 %v291_v23  ;;  %v915_v22 = vld [vmem:[%s7007_s1 + $0xbb8] sm:$0xff] }
  0xf9   : > { %2210 = vmatprep.mubr.f32.mxu1 %v293_v24  ;;  %3879 = vmatpush3.msra.mxu0 %v874_v27  ;;  %v867_v23 = vld [vmem:[%s7007_s1 + $0xa38] sm:$0xff]  ;;  %v882_v27 = vld [vmem:[%s7007_s1 + $0xab0] sm:$0xff] }
  0xfa   : > { %3935 = vmatpush3.msra.mxu1 %v906_v28  ;;  %2106 = vmatmul.mubr.f32.gmra.mxu0 %v290_v29  ;;  %v899_v24 = vld [vmem:[%s7007_s1 + $0xb38] sm:$0xff]  ;;  %v914_v28 = vld [vmem:[%s7007_s1 + $0xbb0] sm:$0xff] }
  0xfb   : > { %2211 = vmatmul.mubr.f32.gmra.mxu1 %v292_v30  ;;  %3880 = vmatprep.subr.mxu0 %v889_v33  ;;  %v5696_v41 = vpop.f32.mrf.mxu0  ;;  %v443_v29 = vld [vmem:[%s4696_s22 + $0x678] sm:$0xff]  ;;  %v445_v30 = vld [vmem:[%s4696_s22 + $0x688] sm:$0xff] }
  0xfc   : > { %3936 = vmatprep.subr.mxu1 %v921_v34  ;;  %v5698_v42 = vpop.f32.mrf.mxu1  ;;  %3881 = vmatpush3.msra.mxu0 %v873_v35  ;;  %v866_v35 = vld [vmem:[%s7007_s1 + $0xa30] sm:$0xff] }
  0xfd   : > { %3937 = vmatpush3.msra.mxu1 %v905_v36  ;;  %3882 = vmatprep.subr.mxu0 %v888_v37  ;;  %v5708_v47 = vpop.f32.mrf.mxu0  ;;  %v898_v36 = vld [vmem:[%s7007_s1 + $0xb30] sm:$0xff] }
  0xfe   : > { %3938 = vmatprep.subr.mxu1 %v920_v38  ;;  %v5710_v48 = vpop.f32.mrf.mxu1  ;;  %2110 = vmatprep.mubr.f32.mxu0 %v329_v39  ;;  %v442_v37 = vld [vmem:[%s4696_s22 + $0x670] sm:$0xff]  ;;  %v444_v38 = vld [vmem:[%s4696_s22 + $0x680] sm:$0xff] }
  0xff   : > { %2215 = vmatprep.mubr.f32.mxu1 %v331_v40  ;;  %3883 = vmatpush3.msra.mxu0 %v872_v43  ;;  %v881_v43 = vld [vmem:[%s7007_s1 + $0xaa8] sm:$0xff] }
 0x100   : > { %3939 = vmatpush3.msra.mxu1 %v904_v44  ;;  %2111 = vmatmul.mubr.f32.gmra.mxu0 %v328_v45  ;;  %v913_v44 = vld [vmem:[%s7007_s1 + $0xba8] sm:$0xff] }
 0x101   : > { %2216 = vmatmul.mubr.f32.gmra.mxu1 %v330_v46  ;;  %3884 = vmatprep.subr.mxu0 %v887_v49  ;;  %v5732_v57 = vpop.f32.mrf.mxu0  ;;  %v865_v45 = vld [vmem:[%s7007_s1 + $0xa28] sm:$0xff]  ;;  %v880_v49 = vld [vmem:[%s7007_s1 + $0xaa0] sm:$0xff] }
 0x102   : > { %3940 = vmatprep.subr.mxu1 %v919_v50  ;;  %v5734_v58 = vpop.f32.mrf.mxu1  ;;  %3885 = vmatpush3.msra.mxu0 %v871_v51  ;;  %v897_v46 = vld [vmem:[%s7007_s1 + $0xb28] sm:$0xff]  ;;  %v912_v50 = vld [vmem:[%s7007_s1 + $0xba0] sm:$0xff] }
 0x103   : > { %3941 = vmatpush3.msra.mxu1 %v903_v52  ;;  %3886 = vmatprep.subr.mxu0 %v886_v53  ;;  %v5744_v63 = vpop.f32.mrf.mxu0  ;;  %v481_v51 = vld [vmem:[%s4696_s22 + $0x7a8] sm:$0xff]  ;;  %v483_v52 = vld [vmem:[%s4696_s22 + $0x7b8] sm:$0xff] }
 0x104   : > { %3942 = vmatprep.subr.mxu1 %v918_v54  ;;  %v5746_v0 = vpop.f32.mrf.mxu1  ;;  %2115 = vmatprep.mubr.f32.mxu0 %v367_v55  ;;  %v864_v55 = vld [vmem:[%s7007_s1 + $0xa20] sm:$0xff] }
 0x105   : > { %2220 = vmatprep.mubr.f32.mxu1 %v369_v56  ;;  %3887 = vmatpush3.msra.mxu0 %v870_v59  ;;  %v896_v56 = vld [vmem:[%s7007_s1 + $0xb20] sm:$0xff] }
 0x106   : > { %3943 = vmatpush3.msra.mxu1 %v902_v60  ;;  %2116 = vmatmul.mubr.f32.gmra.mxu0 %v366_v61  ;;  %v480_v59 = vld [vmem:[%s4696_s22 + $0x7a0] sm:$0xff]  ;;  %v482_v60 = vld [vmem:[%s4696_s22 + $0x7b0] sm:$0xff]  ;;  %v3350_v61 = vadd.f32 %v5636_v15, %v5626_v9  ;;  %v863_v9 = vld [vmem:[%s7007_s1 + $0xa18] sm:$0xff] }
 0x107   : > { %2221 = vmatmul.mubr.f32.gmra.mxu1 %v368_v62  ;;  %3888 = vmatprep.subr.mxu0 %v885_v1  ;;  %v5768_v11 = vpop.f32.mrf.mxu0  ;;  %v895_v15 = vld [vmem:[%s7007_s1 + $0xb18] sm:$0xff] }
 0x108   : > { %3944 = vmatprep.subr.mxu1 %v917_v2  ;;  %v5770_v12 = vpop.f32.mrf.mxu1  ;;  %3889 = vmatpush3.msra.mxu0 %v869_v3  ;;  %v879_v2 = vld [vmem:[%s7007_s1 + $0xa98] sm:$0xff] }
 0x109   : > { %3945 = vmatpush3.msra.mxu1 %v901_v4  ;;  %3890 = vmatprep.subr.mxu0 %v884_v5  ;;  %v5780_v19 = vpop.f32.mrf.mxu0  ;;  %v911_v3 = vld [vmem:[%s7007_s1 + $0xb98] sm:$0xff]  ;;  %v878_v4 = vld [vmem:[%s7007_s1 + $0xa90] sm:$0xff] }
 0x10a   : > { %3946 = vmatprep.subr.mxu1 %v916_v6  ;;  %v5782_v20 = vpop.f32.mrf.mxu1  ;;  %2120 = vmatprep.mubr.f32.mxu0 %v405_v7  ;;  %v910_v5 = vld [vmem:[%s7007_s1 + $0xb90] sm:$0xff]  ;;  %v519_v7 = vld [vmem:[%s4696_s22 + $0x8d8] sm:$0xff] }
 0x10b   : > { %2225 = vmatprep.mubr.f32.mxu1 %v407_v8  ;;  %3891 = vmatpush3.msra.mxu0 %v868_v13  ;;  %v521_v8 = vld [vmem:[%s4696_s22 + $0x8e8] sm:$0xff]  ;;  %v3406_v13 = vadd.f32 %v5638_v16, %v5628_v10 }
 0x10c   : > { %3947 = vmatpush3.msra.mxu1 %v900_v14  ;;  %2121 = vmatmul.mubr.f32.gmra.mxu0 %v404_v17 }
 0x10d   : > { %2226 = vmatmul.mubr.f32.gmra.mxu1 %v406_v18  ;;  %3892 = vmatprep.subr.mxu0 %v883_v21  ;;  %v5804_v33 = vpop.f32.mrf.mxu0  ;;  %v862_v21 = vld [vmem:[%s7007_s1 + $0xa10] sm:$0xff] }
 0x10e   : > { %3948 = vmatprep.subr.mxu1 %v915_v22  ;;  %v5806_v34 = vpop.f32.mrf.mxu1  ;;  %3893 = vmatpush3.msra.mxu0 %v867_v23  ;;  %v894_v22 = vld [vmem:[%s7007_s1 + $0xb10] sm:$0xff] }
 0x10f   : > { %3949 = vmatpush3.msra.mxu1 %v899_v24  ;;  %3894 = vmatprep.subr.mxu0 %v882_v27  ;;  %v5816_v39 = vpop.f32.mrf.mxu0  ;;  %v518_v23 = vld [vmem:[%s4696_s22 + $0x8d0] sm:$0xff]  ;;  %v520_v24 = vld [vmem:[%s4696_s22 + $0x8e0] sm:$0xff]  ;;  %v877_v27 = vld [vmem:[%s7007_s1 + $0xa88] sm:$0xff] }
 0x110   : > { %3950 = vmatprep.subr.mxu1 %v914_v28  ;;  %v5818_v40 = vpop.f32.mrf.mxu1  ;;  %2125 = vmatprep.mubr.f32.mxu0 %v443_v29  ;;  %v909_v28 = vld [vmem:[%s7007_s1 + $0xb88] sm:$0xff]  ;;  %v3353_v29 = vadd.f32 %v5672_v31, %v5660_v25  ;;  %v908_v25 = vld [vmem:[%s7007_s1 + $0xb80] sm:$0xff] }
 0x111   : > { %2230 = vmatprep.mubr.f32.mxu1 %v445_v30  ;;  %3895 = vmatpush3.msra.mxu0 %v866_v35  ;;  %v861_v35 = vld [vmem:[%s7007_s1 + $0xa08] sm:$0xff]  ;;  %v860_v31 = vld [vmem:[%s7007_s1 + $0xa00] sm:$0xff] }
 0x112   : > { %3951 = vmatpush3.msra.mxu1 %v898_v36  ;;  %2126 = vmatmul.mubr.f32.gmra.mxu0 %v442_v37  ;;  %v893_v36 = vld [vmem:[%s7007_s1 + $0xb08] sm:$0xff]  ;;  %v876_v37 = vld [vmem:[%s7007_s1 + $0xa80] sm:$0xff] }
 0x113   : > { %2231 = vmatmul.mubr.f32.gmra.mxu1 %v444_v38  ;;  %3896 = vmatprep.subr.mxu0 %v881_v43  ;;  %v5840_v53 = vpop.f32.mrf.mxu0  ;;  %v257_v38 = vld [vmem:[%s4696_s22 + $0xa8] sm:$0xff] }
 0x114   : > { %3952 = vmatprep.subr.mxu1 %v913_v44  ;;  %v5842_v54 = vpop.f32.mrf.mxu1  ;;  %3897 = vmatpush3.msra.mxu0 %v865_v45  ;;  %v892_v45 = vld [vmem:[%s7007_s1 + $0xb00] sm:$0xff] }
 0x115   : > { %3953 = vmatpush3.msra.mxu1 %v897_v46  ;;  %3898 = vmatprep.subr.mxu0 %v880_v49  ;;  %v5854_v62 = vpop.f32.mrf.mxu0  ;;  %v259_v46 = vld [vmem:[%s4696_s22 + $0xb8] sm:$0xff]  ;;  %v3409_v49 = vadd.f32 %v5674_v32, %v5662_v26 }
 0x116   : > { %3954 = vmatprep.subr.mxu1 %v912_v50  ;;  %v5856_v1 = vpop.f32.mrf.mxu1  ;;  %2130 = vmatprep.mubr.f32.mxu0 %v481_v51 }
 0x117   : > { %2235 = vmatprep.mubr.f32.mxu1 %v483_v52  ;;  %3899 = vmatpush3.msra.mxu0 %v864_v55  ;;  %v256_v52 = vld [vmem:[%s4696_s22 + $0xa0] sm:$0xff]  ;;  %v258_v55 = vld [vmem:[%s4696_s22 + $0xb0] sm:$0xff] }
 0x118   : > { %3955 = vmatpush3.msra.mxu1 %v896_v56  ;;  %2131 = vmatmul.mubr.f32.gmra.mxu0 %v480_v59  ;;  %v955_v59 = vld [vmem:[%s7007_s1 + $0xcf8] sm:$0xff] }
 0x119   : > { %2236 = vmatmul.mubr.f32.gmra.mxu1 %v482_v60  ;;  %v1159_v6 = vpop.permute.xlu0 %1158  ;;  %3900 = vmatprep.subr.mxu0 %v879_v2  ;;  %v5880_v17 = vpop.f32.mrf.mxu0  ;;  %v987_v60 = vld [vmem:[%s7007_s1 + $0xdf8] sm:$0xff] }
 0x11a   : > { %3956 = vmatprep.subr.mxu1 %v911_v3  ;;  %v1263_v14 = vadd.f32 %v3350_v61, %v1159_v6  ;;  %v5882_v18 = vpop.f32.mrf.mxu1  ;;  %3901 = vmatpush3.msra.mxu0 %v863_v9  ;;  %v939_v2 = vld [vmem:[%s7007_s1 + $0xc78] sm:$0xff]  ;;  %v3356_v9 = vadd.f32 %v5708_v47, %v5696_v41  ;;  %v938_v47 = vld [vmem:[%s7007_s1 + $0xc70] sm:$0xff] }
 0x11b   : > { %3957 = vmatpush3.msra.mxu1 %v895_v15  ;;  %3902 = vmatprep.subr.mxu0 %v878_v4  ;;  %v5892_v16 = vpop.f32.mrf.mxu0  ;;  %v971_v3 = vld [vmem:[%s7007_s1 + $0xd78] sm:$0xff]  ;;  %v954_v15 = vld [vmem:[%s7007_s1 + $0xcf0] sm:$0xff] }
 0x11c   : > { %3958 = vmatprep.subr.mxu1 %v910_v5  ;;  %v1368_v10 = vadd.f32 %v3406_v13, %v1263_v14  ;;  %2135 = vmatprep.mubr.f32.mxu0 %v519_v7  ;;  %v5902_v30 = vpop.f32.mrf.mxu1  ;;  %v986_v4 = vld [vmem:[%s7007_s1 + $0xdf0] sm:$0xff]  ;;  %v295_v7 = vld [vmem:[%s4696_s22 + $0x1d8] sm:$0xff] }
 0x11d   : > { %2240 = vmatprep.mubr.f32.mxu1 %v521_v8  ;;  %3903 = vmatpush3.msra.mxu0 %v862_v21  ;;  %v297_v8 = vld [vmem:[%s4696_s22 + $0x1e8] sm:$0xff]  ;;  %v970_v14 = vld [vmem:[%s7007_s1 + $0xd70] sm:$0xff] }
 0x11e   : > { %3959 = vmatpush3.msra.mxu1 %v894_v22  ;;  %2136 = vmatmul.mubr.f32.gmra.mxu0 %v518_v23  ;;  %v294_v23 = vld [vmem:[%s4696_s22 + $0x1d0] sm:$0xff] }
 0x11f   : > { %2241 = vmatmul.mubr.f32.gmra.mxu1 %v520_v24  ;;  %3904 = vmatprep.subr.mxu0 %v877_v27  ;;  %v1164_v43 = vpop.permute.xlu0 %1163  ;;  %v3460_v44 = vpop.f32.mrf.mxu0  ;;  %v296_v24 = vld [vmem:[%s4696_s22 + $0x1e0] sm:$0xff] }
 0x120   : > { %3960 = vmatprep.subr.mxu1 %v909_v28  ;;  %3905 = vmatpush3.msra.mxu0 %v861_v35  ;;  %v1268_v50 = vadd.f32 %v3353_v29, %v1164_v43  ;;  %v3516_v51 = vpop.f32.mrf.mxu1  ;;  %v953_v35 = vld [vmem:[%s7007_s1 + $0xce8] sm:$0xff]  ;;  %v984_v43 = vld [vmem:[%s7007_s1 + $0xde0] sm:$0xff] }
 0x121   : > { %3961 = vmatpush3.msra.mxu1 %v893_v36  ;;  %3906 = vmatprep.subr.mxu0 %v876_v37  ;;  %v3461_v56 = vpop.f32.mrf.mxu0  ;;  %v985_v36 = vld [vmem:[%s7007_s1 + $0xde8] sm:$0xff] }
 0x122   : > { %3962 = vmatprep.subr.mxu1 %v908_v25  ;;  %3907 = vmatpush3.msra.mxu0 %v860_v31  ;;  %v1373_v61 = vadd.f32 %v3409_v49, %v1268_v50  ;;  %v3462_v26 = vadd.f32 %v3461_v56, %v3460_v44  ;;  %v3517_v32 = vpop.f32.mrf.mxu1  ;;  %v3359_v31 = vadd.f32 %v5744_v63, %v5732_v57  ;;  %v335_v49 = vld [vmem:[%s4696_s22 + $0x318] sm:$0xff]  ;;  %v936_v63 = vld [vmem:[%s7007_s1 + $0xc60] sm:$0xff] }
 0x123   : > { %2310 = vmatprep.mubr.f32.mxu0 %v257_v38  ;;  %3963 = vmatpush3.msra.mxu1 %v892_v45  ;;  %v3518_v6 = vadd.f32 %v3517_v32, %v3516_v51  ;;  %v952_v38 = vld [vmem:[%s7007_s1 + $0xce0] sm:$0xff] }
 0x124   : > { %2415 = vmatprep.mubr.f32.mxu1 %v259_v46  ;;  %2311 = vmatmul.mubr.f32.vlgmr.msra.gmra.mxu0 %v256_v52  ;;  %v1473_v5 = vadd.f32 %v3462_v26, %v1368_v10  ;;  %v3412_v10 = vadd.f32 %v5710_v48, %v5698_v42  ;;  %v937_v42 = vld [vmem:[%s7007_s1 + $0xc68] sm:$0xff]  ;;  %v968_v51 = vld [vmem:[%s7007_s1 + $0xd60] sm:$0xff] }
 0x125   : > { %2416 = vmatmul.mubr.f32.vlgmr.msra.gmra.mxu1 %v258_v55  ;;  %3988 = vmatprep.subr.mxu0 %v955_v59  ;;  %v3463_v13 = vpop.f32.mrf.mxu0  ;;  %v969_v48 = vld [vmem:[%s7007_s1 + $0xd68] sm:$0xff]  ;;  %v332_v56 = vld [vmem:[%s4696_s22 + $0x300] sm:$0xff]  ;;  %v334_v59 = vld [vmem:[%s4696_s22 + $0x310] sm:$0xff] }
 0x126   : > { %4044 = vmatprep.subr.mxu1 %v987_v60  ;;  %v3519_v41 = vpop.f32.mrf.mxu1  ;;  %3989 = vmatpush3.msra.mxu0 %v939_v2  ;;  %v1169_v21 = vpop.permute.xlu1 %1168  ;;  %v5956_v22 = vadd.f32 %v3518_v6, %v1473_v5  ;;  %v333_v46 = vld [vmem:[%s4696_s22 + $0x308] sm:$0xff]  ;;  %v3415_v60 = vadd.f32 %v5746_v0, %v5734_v58  ;;  %v951_v2 = vld [vmem:[%s7007_s1 + $0xcd8] sm:$0xff]  ;;  %v982_v5 = vld [vmem:[%s7007_s1 + $0xdd0] sm:$0xff]  ;;  %v3362_v6 = vadd.f32 %v5780_v19, %v5768_v11 }
 0x127   : > { %4045 = vmatpush3.msra.mxu1 %v971_v3  ;;  %3990 = vmatprep.subr.mxu0 %v954_v15  ;;  %v1273_v27 = vadd.f32 %v3356_v9, %v1169_v21  ;;  %v3464_v28 = vpop.f32.mrf.mxu0  ;;  %v983_v3 = vld [vmem:[%s7007_s1 + $0xdd8] sm:$0xff]  ;;  %v934_v21 = vld [vmem:[%s7007_s1 + $0xc50] sm:$0xff] }
 0x128   : > { %4046 = vmatprep.subr.mxu1 %v986_v4  ;;  %v3520_v29 = vpop.f32.mrf.mxu1  ;;  %2315 = vmatprep.mubr.f32.mxu0 %v295_v7  ;;  %v3465_v37 = vadd.f32 %v3464_v28, %v3463_v13  ;;  %v935_v58 = vld [vmem:[%s7007_s1 + $0xc58] sm:$0xff]  ;;  %v950_v4 = vld [vmem:[%s7007_s1 + $0xcd0] sm:$0xff]  ;;  %v949_v28 = vld [vmem:[%s7007_s1 + $0xcc8] sm:$0xff] }
 0x129   : > { %2420 = vmatprep.mubr.f32.mxu1 %v297_v8  ;;  %3991 = vmatpush3.msra.mxu0 %v938_v47  ;;  %v1378_v25 = vadd.f32 %v3412_v10, %v1273_v27  ;;  %v3521_v45 = vadd.f32 %v3520_v29, %v3519_v41  ;;  %v967_v0 = vld [vmem:[%s7007_s1 + $0xd58] sm:$0xff]  ;;  %v373_v41 = vld [vmem:[%s4696_s22 + $0x448] sm:$0xff]  ;;  %v966_v11 = vld [vmem:[%s7007_s1 + $0xd50] sm:$0xff] }
 0x12a   : > { %4047 = vmatpush3.msra.mxu1 %v970_v14  ;;  %2316 = vmatmul.mubr.f32.gmra.mxu0 %v294_v23  ;;  %v1478_v44 = vadd.f32 %v3465_v37, %v1373_v61  ;;  %v371_v13 = vld [vmem:[%s4696_s22 + $0x438] sm:$0xff]  ;;  %v370_v23 = vld [vmem:[%s4696_s22 + $0x430] sm:$0xff]  ;;  %v981_v29 = vld [vmem:[%s7007_s1 + $0xdc8] sm:$0xff] }
 0x12b   : > { %2421 = vmatmul.mubr.f32.gmra.mxu1 %v296_v24  ;;  %3992 = vmatprep.subr.mxu0 %v953_v35  ;;  %v3466_v50 = vpop.f32.mrf.mxu0  ;;  %v372_v24 = vld [vmem:[%s4696_s22 + $0x440] sm:$0xff]  ;;  %v3418_v35 = vadd.f32 %v5782_v20, %v5770_v12 }
 0x12c   : > { %4048 = vmatprep.subr.mxu1 %v985_v36  ;;  %v3522_v57 = vpop.f32.mrf.mxu1  ;;  %3993 = vmatpush3.msra.mxu0 %v937_v42  ;;  %v5990_v55 = vadd.f32 %v3521_v45, %v1478_v44  ;;  %v948_v12 = vld [vmem:[%s7007_s1 + $0xcc0] sm:$0xff]  ;;  %v409_v45 = vld [vmem:[%s4696_s22 + $0x568] sm:$0xff] }
 0x12d   : > { %4049 = vmatpush3.msra.mxu1 %v969_v48  ;;  %v1174_v52 = vpop.permute.xlu1 %1173  ;;  %3994 = vmatprep.subr.mxu0 %v952_v38  ;;  %v3467_v26 = vpop.f32.mrf.mxu0  ;;  %v933_v48 = vld [vmem:[%s7007_s1 + $0xc48] sm:$0xff]  ;;  %v980_v20 = vld [vmem:[%s7007_s1 + $0xdc0] sm:$0xff] }
 0x12e   : > { %4050 = vmatprep.subr.mxu1 %v984_v43  ;;  %v1278_v61 = vadd.f32 %v3359_v31, %v1174_v52  ;;  %v3523_v32 = vpop.f32.mrf.mxu1  ;;  %2320 = vmatprep.mubr.f32.mxu0 %v333_v46  ;;  %v3468_v9 = vadd.f32 %v3467_v26, %v3466_v50  ;;  %v3365_v31 = vadd.f32 %v5816_v39, %v5804_v33  ;;  %v411_v46 = vld [vmem:[%s4696_s22 + $0x578] sm:$0xff]  ;;  %v964_v50 = vld [vmem:[%s7007_s1 + $0xd40] sm:$0xff] }
 0x12f   : > { %2425 = vmatprep.mubr.f32.mxu1 %v335_v49  ;;  %3995 = vmatpush3.msra.mxu0 %v936_v63  ;;  %v3524_v8 = vadd.f32 %v3523_v32, %v3522_v57  ;;  %v932_v49 = vld [vmem:[%s7007_s1 + $0xc40] sm:$0xff] }
 0x130   : > { %4051 = vmatpush3.msra.mxu1 %v968_v51  ;;  %v1383_v15 = vadd.f32 %v3415_v60, %v1278_v61  ;;  %2321 = vmatmul.mubr.f32.gmra.mxu0 %v332_v56  ;;  %v1483_v7 = vadd.f32 %v3468_v9, %v1378_v25  ;;  %v965_v25 = vld [vmem:[%s7007_s1 + $0xd48] sm:$0xff]  ;;  %v408_v63 = vld [vmem:[%s4696_s22 + $0x560] sm:$0xff]  ;;  %v410_v51 = vld [vmem:[%s4696_s22 + $0x570] sm:$0xff]  ;;  %v3421_v61 = vadd.f32 %v5818_v40, %v5806_v34 }
 0x131   : > { %2426 = vmatmul.mubr.f32.gmra.mxu1 %v334_v59  ;;  %3996 = vmatprep.subr.mxu0 %v951_v2  ;;  %v3469_v47 = vpop.f32.mrf.mxu0  ;;  %v947_v59 = vld [vmem:[%s7007_s1 + $0xcb8] sm:$0xff]  ;;  %v946_v34 = vld [vmem:[%s7007_s1 + $0xcb0] sm:$0xff] }
 0x132   : > { %4052 = vmatprep.subr.mxu1 %v983_v3  ;;  %v3525_v14 = vpop.f32.mrf.mxu1  ;;  %3997 = vmatpush3.msra.mxu0 %v935_v58  ;;  %v6024_v19 = vadd.f32 %v3524_v8, %v1483_v7  ;;  %v979_v60 = vld [vmem:[%s7007_s1 + $0xdb8] sm:$0xff]  ;;  %v978_v40 = vld [vmem:[%s7007_s1 + $0xdb0] sm:$0xff] }
 0x133   : > { %4053 = vmatpush3.msra.mxu1 %v967_v0  ;;  %3998 = vmatprep.subr.mxu0 %v950_v4  ;;  %v1179_v10 = vpop.permute.xlu0 %1178  ;;  %v3470_v27 = vpop.f32.mrf.mxu0  ;;  %v931_v3 = vld [vmem:[%s7007_s1 + $0xc38] sm:$0xff] }
 0x134   : > { %4054 = vmatprep.subr.mxu1 %v982_v5  ;;  %2325 = vmatprep.mubr.f32.mxu0 %v371_v13  ;;  %v1283_v36 = vadd.f32 %v3362_v6, %v1179_v10  ;;  %v3471_v37 = vadd.f32 %v3470_v27, %v3469_v47  ;;  %v3526_v42 = vpop.f32.mrf.mxu1  ;;  %v963_v9 = vld [vmem:[%s7007_s1 + $0xd38] sm:$0xff]  ;;  %v449_v5 = vld [vmem:[%s4696_s22 + $0x6a8] sm:$0xff]  ;;  %v3368_v6 = vadd.f32 %v5854_v62, %v5840_v53  ;;  %v930_v13 = vld [vmem:[%s7007_s1 + $0xc30] sm:$0xff] }
 0x135   : > { %2430 = vmatprep.mubr.f32.mxu1 %v373_v41  ;;  %3999 = vmatpush3.msra.mxu0 %v934_v21  ;;  %v3527_v44 = vadd.f32 %v3526_v42, %v3525_v14  ;;  %v447_v4 = vld [vmem:[%s4696_s22 + $0x698] sm:$0xff]  ;;  %v962_v41 = vld [vmem:[%s7007_s1 + $0xd30] sm:$0xff]  ;;  %v448_v21 = vld [vmem:[%s4696_s22 + $0x6a0] sm:$0xff] }
 0x136   : > { %4055 = vmatpush3.msra.mxu1 %v966_v11  ;;  %2326 = vmatmul.mubr.f32.gmra.mxu0 %v370_v23  ;;  %v1388_v38 = vadd.f32 %v3418_v35, %v1283_v36  ;;  %v1488_v43 = vadd.f32 %v3471_v37, %v1383_v15  ;;  %v446_v14 = vld [vmem:[%s4696_s22 + $0x690] sm:$0xff]  ;;  %v945_v62 = vld [vmem:[%s7007_s1 + $0xca8] sm:$0xff]  ;;  %v944_v36 = vld [vmem:[%s7007_s1 + $0xca0] sm:$0xff] }
 0x137   : > { %2431 = vmatmul.mubr.f32.gmra.mxu1 %v372_v24  ;;  %4000 = vmatprep.subr.mxu0 %v949_v28  ;;  %v3472_v33 = vpop.f32.mrf.mxu0  ;;  %v977_v23 = vld [vmem:[%s7007_s1 + $0xda8] sm:$0xff]  ;;  %v976_v37 = vld [vmem:[%s7007_s1 + $0xda0] sm:$0xff] }
 0x138   : > { %4056 = vmatprep.subr.mxu1 %v981_v29  ;;  %v3528_v39 = vpop.f32.mrf.mxu1  ;;  %4001 = vmatpush3.msra.mxu0 %v933_v48  ;;  %v6058_v57 = vadd.f32 %v3527_v44, %v1488_v43  ;;  %v929_v27 = vld [vmem:[%s7007_s1 + $0xc28] sm:$0xff]  ;;  %v3424_v29 = vadd.f32 %v5856_v1, %v5842_v54  ;;  %v3371_v1 = vadd.f32 %v5892_v16, %v5880_v17  ;;  %v960_v43 = vld [vmem:[%s7007_s1 + $0xd20] sm:$0xff]  ;;  %v943_v16 = vld [vmem:[%s7007_s1 + $0xc98] sm:$0xff] }
 0x139   : > { %4057 = vmatpush3.msra.mxu1 %v965_v25  ;;  %4002 = vmatprep.subr.mxu0 %v948_v12  ;;  %v3473_v56 = vpop.f32.mrf.mxu0  ;;  %v961_v28 = vld [vmem:[%s7007_s1 + $0xd28] sm:$0xff] }
 0x13a   : > { %4058 = vmatprep.subr.mxu1 %v980_v20  ;;  %v1184_v52 = vpop.permute.xlu1 %1183  ;;  %2330 = vmatprep.mubr.f32.mxu0 %v409_v45  ;;  %v3474_v32 = vadd.f32 %v3473_v56, %v3472_v33  ;;  %v3529_v2 = vpop.f32.mrf.mxu1  ;;  %v485_v25 = vld [vmem:[%s4696_s22 + $0x7c8] sm:$0xff]  ;;  %v484_v45 = vld [vmem:[%s4696_s22 + $0x7c0] sm:$0xff] }
 0x13b   : > { %2435 = vmatprep.mubr.f32.mxu1 %v411_v46  ;;  %v1288_v26 = vadd.f32 %v3365_v31, %v1184_v52  ;;  %4003 = vmatpush3.msra.mxu0 %v932_v49  ;;  %v3530_v15 = vadd.f32 %v3529_v2, %v3528_v39  ;;  %v487_v31 = vld [vmem:[%s4696_s22 + $0x7d8] sm:$0xff]  ;;  %v486_v46 = vld [vmem:[%s4696_s22 + $0x7d0] sm:$0xff]  ;;  %v3427_v52 = vadd.f32 %v5902_v30, %v5882_v18  ;;  %v525_v2 = vld [vmem:[%s4696_s22 + $0x908] sm:$0xff] }
 0x13c   : > { %4059 = vmatpush3.msra.mxu1 %v964_v50  ;;  %2331 = vmatmul.mubr.f32.gmra.mxu0 %v408_v63  ;;  %v1493_v0 = vadd.f32 %v3474_v32, %v1388_v38  ;;  %v928_v38 = vld [vmem:[%s7007_s1 + $0xc20] sm:$0xff]  ;;  %v975_v39 = vld [vmem:[%s7007_s1 + $0xd98] sm:$0xff] }
 0x13d   : > { %2436 = vmatmul.mubr.f32.gmra.mxu1 %v410_v51  ;;  %v1393_v58 = vadd.f32 %v3421_v61, %v1288_v26  ;;  %4004 = vmatprep.subr.mxu0 %v947_v59  ;;  %v3475_v7 = vpop.f32.mrf.mxu0  ;;  %v927_v63 = vld [vmem:[%s7007_s1 + $0xc18] sm:$0xff]  ;;  %v942_v59 = vld [vmem:[%s7007_s1 + $0xc90] sm:$0xff] }
 0x13e   : > { %4060 = vmatprep.subr.mxu1 %v979_v60  ;;  %v3531_v8 = vpop.f32.mrf.mxu1  ;;  %4005 = vmatpush3.msra.mxu0 %v931_v3  ;;  %v6092_v47 = vadd.f32 %v3530_v15, %v1493_v0  ;;  %v959_v51 = vld [vmem:[%s7007_s1 + $0xd18] sm:$0xff]  ;;  %v974_v60 = vld [vmem:[%s7007_s1 + $0xd90] sm:$0xff]  ;;  %v524_v0 = vld [vmem:[%s4696_s22 + $0x900] sm:$0xff] }
 0x13f   : > { %4061 = vmatpush3.msra.mxu1 %v963_v9  ;;  %4006 = vmatprep.subr.mxu0 %v946_v34  ;;  %v3476_v11 = vpop.f32.mrf.mxu0  ;;  %v523_v32 = vld [vmem:[%s4696_s22 + $0x8f8] sm:$0xff]  ;;  %v926_v9 = vld [vmem:[%s7007_s1 + $0xc10] sm:$0xff] }
 0x140   : > { %4062 = vmatprep.subr.mxu1 %v978_v40  ;;  %v3532_v53 = vpop.f32.mrf.mxu1  ;;  %2335 = vmatprep.mubr.f32.mxu0 %v447_v4  ;;  %v1189_v24 = vpop.permute.xlu0 %1188  ;;  %v3477_v10 = vadd.f32 %v3476_v11, %v3475_v7  ;;  %v958_v34 = vld [vmem:[%s7007_s1 + $0xd10] sm:$0xff] }
 0x141   : > { %2440 = vmatprep.mubr.f32.mxu1 %v449_v5  ;;  %4007 = vmatpush3.msra.mxu0 %v930_v13  ;;  %v1293_v35 = vadd.f32 %v3368_v6, %v1189_v24  ;;  %v3533_v48 = vadd.f32 %v3532_v53, %v3531_v8  ;;  %v941_v5 = vld [vmem:[%s7007_s1 + $0xc88] sm:$0xff]  ;;  %v924_v53 = vld [vmem:[%s7007_s1 + $0xc00] sm:$0xff] }
 0x142   : > { %4063 = vmatpush3.msra.mxu1 %v962_v41  ;;  %2336 = vmatmul.mubr.f32.gmra.mxu0 %v446_v14  ;;  %v1498_v42 = vadd.f32 %v3477_v10, %v1393_v58  ;;  %v522_v58 = vld [vmem:[%s4696_s22 + $0x8f0] sm:$0xff]  ;;  %v973_v6 = vld [vmem:[%s7007_s1 + $0xd88] sm:$0xff]  ;;  %v940_v41 = vld [vmem:[%s7007_s1 + $0xc80] sm:$0xff] }
 0x143   : > { %2441 = vmatmul.mubr.f32.gmra.mxu1 %v448_v21  ;;  %4008 = vmatprep.subr.mxu0 %v945_v62  ;;  %v1398_v54 = vadd.f32 %v3424_v29, %v1293_v35  ;;  %v3478_v12 = vpop.f32.mrf.mxu0  ;;  %v925_v8 = vld [vmem:[%s7007_s1 + $0xc08] sm:$0xff]  ;;  %v972_v14 = vld [vmem:[%s7007_s1 + $0xd80] sm:$0xff]  ;;  %v262_v35 = vld [vmem:[%s4696_s22 + $0xd0] sm:$0xff] }
 0x144   : > { %4064 = vmatprep.subr.mxu1 %v977_v23  ;;  %v3534_v20 = vpop.f32.mrf.mxu1  ;;  %4009 = vmatpush3.msra.mxu0 %v929_v27  ;;  %v6126_v44 = vadd.f32 %v3533_v48, %v1498_v42  ;;  %v957_v13 = vld [vmem:[%s7007_s1 + $0xd08] sm:$0xff]  ;;  %v956_v10 = vld [vmem:[%s7007_s1 + $0xd00] sm:$0xff]  ;;  %v263_v27 = vld [vmem:[%s4696_s22 + $0xd8] sm:$0xff] }
 0x145   : > { %4065 = vmatpush3.msra.mxu1 %v961_v28  ;;  %4010 = vmatprep.subr.mxu0 %v944_v36  ;;  %v3479_v33 = vpop.f32.mrf.mxu0  ;;  %v261_v62 = vld [vmem:[%s4696_s22 + $0xc8] sm:$0xff]  ;;  %v260_v29 = vld [vmem:[%s4696_s22 + $0xc0] sm:$0xff]  ;;  %v1019_v42 = vld [vmem:[%s7007_s1 + $0xef8] sm:$0xff] }
 0x146   : > { %4066 = vmatprep.subr.mxu1 %v976_v37  ;;  %v3535_v17 = vpop.f32.mrf.mxu1  ;;  %2340 = vmatprep.mubr.f32.mxu0 %v485_v25  ;;  %v3480_v50 = vadd.f32 %v3479_v33, %v3478_v12  ;;  %v1051_v48 = vld [vmem:[%s7007_s1 + $0xff8] sm:$0xff]  ;;  %v1050_v12 = vld [vmem:[%s7007_s1 + $0xff0] sm:$0xff] }
 0x147   : > { %2445 = vmatprep.mubr.f32.mxu1 %v487_v31  ;;  %v1194_v49 = vpop.permute.xlu1 %1193  ;;  %4011 = vmatpush3.msra.mxu0 %v928_v38  ;;  %v3536_v26 = vadd.f32 %v3535_v17, %v3534_v20  ;;  %v1003_v31 = vld [vmem:[%s7007_s1 + $0xe78] sm:$0xff]  ;;  %v1002_v17 = vld [vmem:[%s7007_s1 + $0xe70] sm:$0xff] }
 0x148   : > { %4067 = vmatpush3.msra.mxu1 %v960_v43  ;;  %v1298_v56 = vadd.f32 %v3371_v1, %v1194_v49  ;;  %2341 = vmatmul.mubr.f32.gmra.mxu0 %v484_v45  ;;  %v1503_v61 = vadd.f32 %v3480_v50, %v1398_v54  ;;  %v1035_v54 = vld [vmem:[%s7007_s1 + $0xf78] sm:$0xff]  ;;  %v1018_v1 = vld [vmem:[%s7007_s1 + $0xef0] sm:$0xff]  ;;  %v301_v45 = vld [vmem:[%s4696_s22 + $0x208] sm:$0xff] }
 0x149   : > { %2446 = vmatmul.mubr.f32.gmra.mxu1 %v486_v46  ;;  %4012 = vmatprep.subr.mxu0 %v943_v16  ;;  %v3481_v30 = vpop.f32.mrf.mxu0  ;;  %v299_v43 = vld [vmem:[%s4696_s22 + $0x1f8] sm:$0xff]  ;;  %v1034_v16 = vld [vmem:[%s7007_s1 + $0xf70] sm:$0xff]  ;;  %v300_v49 = vld [vmem:[%s4696_s22 + $0x200] sm:$0xff] }
 0x14a   : > { %4068 = vmatprep.subr.mxu1 %v975_v39  ;;  %v1403_v18 = vadd.f32 %v3427_v52, %v1298_v56  ;;  %v3537_v3 = vpop.f32.mrf.mxu1  ;;  %4013 = vmatpush3.msra.mxu0 %v927_v63  ;;  %v6158_v40 = vadd.f32 %v3536_v26, %v1503_v61  ;;  %v1049_v52 = vld [vmem:[%s7007_s1 + $0xfe8] sm:$0xff]  ;;  %v1016_v61 = vld [vmem:[%s7007_s1 + $0xee0] sm:$0xff] }
 0x14b   : > { %4069 = vmatpush3.msra.mxu1 %v959_v51  ;;  %4014 = vmatprep.subr.mxu0 %v942_v59  ;;  %v3482_v15 = vpop.f32.mrf.mxu0  ;;  %v1017_v51 = vld [vmem:[%s7007_s1 + $0xee8] sm:$0xff]  ;;  %v1048_v26 = vld [vmem:[%s7007_s1 + $0xfe0] sm:$0xff] }
 0x14c   : > { %4070 = vmatprep.subr.mxu1 %v974_v60  ;;  %v3538_v4 = vpop.f32.mrf.mxu1  ;;  %2345 = vmatprep.mubr.f32.mxu0 %v523_v32  ;;  %v3483_v7 = vadd.f32 %v3482_v15, %v3481_v30  ;;  %v1001_v59 = vld [vmem:[%s7007_s1 + $0xe68] sm:$0xff]  ;;  %v339_v30 = vld [vmem:[%s4696_s22 + $0x338] sm:$0xff]  ;;  %v338_v15 = vld [vmem:[%s4696_s22 + $0x330] sm:$0xff] }
 0x14d   : > { %2450 = vmatprep.mubr.f32.mxu1 %v525_v2  ;;  %4015 = vmatpush3.msra.mxu0 %v926_v9  ;;  %v3539_v11 = vadd.f32 %v3538_v4, %v3537_v3  ;;  %v1033_v60 = vld [vmem:[%s7007_s1 + $0xf68] sm:$0xff]  ;;  %v1000_v9 = vld [vmem:[%s7007_s1 + $0xe60] sm:$0xff] }
 0x14e   : > { %4071 = vmatpush3.msra.mxu1 %v958_v34  ;;  %2346 = vmatmul.mubr.f32.gmra.mxu0 %v522_v58  ;;  %v1508_v21 = vadd.f32 %v3483_v7, %v1403_v18  ;;  %v337_v18 = vld [vmem:[%s4696_s22 + $0x328] sm:$0xff]  ;;  %v1032_v34 = vld [vmem:[%s7007_s1 + $0xf60] sm:$0xff] }
 0x14f   : > { %2451 = vmatmul.mubr.f32.gmra.mxu1 %v524_v0  ;;  %4016 = vmatprep.subr.mxu0 %v941_v5  ;;  %v3572_v23 = vpop.f32.mrf.mxu0  ;;  %v336_v0 = vld [vmem:[%s4696_s22 + $0x320] sm:$0xff]  ;;  %v1015_v5 = vld [vmem:[%s7007_s1 + $0xed8] sm:$0xff] }
 0x150   : > { %4072 = vmatprep.subr.mxu1 %v973_v6  ;;  %v3628_v24 = vpop.f32.mrf.mxu1  ;;  %4017 = vmatpush3.msra.mxu0 %v925_v8  ;;  %v6188_v28 = vadd.f32 %v3539_v11, %v1508_v21  ;;  %v1047_v6 = vld [vmem:[%s7007_s1 + $0xfd8] sm:$0xff]  ;;  %v1046_v21 = vld [vmem:[%s7007_s1 + $0xfd0] sm:$0xff] }
 0x151   : > { %4073 = vmatpush3.msra.mxu1 %v957_v13  ;;  %4018 = vmatprep.subr.mxu0 %v940_v41  ;;  %v3573_v36 = vpop.f32.mrf.mxu0  ;;  %v999_v13 = vld [vmem:[%s7007_s1 + $0xe58] sm:$0xff] }
 0x152   : > { %4074 = vmatprep.subr.mxu1 %v972_v14  ;;  %v3629_v37 = vpop.f32.mrf.mxu1  ;;  %4019 = vmatpush3.msra.mxu0 %v924_v53  ;;  %v3574_v25 = vadd.f32 %v3573_v36, %v3572_v23  ;;  %v1031_v41 = vld [vmem:[%s7007_s1 + $0xf58] sm:$0xff]  ;;  %v1014_v14 = vld [vmem:[%s7007_s1 + $0xed0] sm:$0xff]  ;;  %v377_v23 = vld [vmem:[%s4696_s22 + $0x468] sm:$0xff] }
 0x153   : > { %2520 = vmatprep.mubr.f32.mxu0 %v261_v62  ;;  %4075 = vmatpush3.msra.mxu1 %v956_v10  ;;  %v3630_v38 = vadd.f32 %v3629_v37, %v3628_v24  ;;  %v375_v62 = vld [vmem:[%s4696_s22 + $0x458] sm:$0xff]  ;;  %v998_v24 = vld [vmem:[%s7007_s1 + $0xe50] sm:$0xff]  ;;  %v376_v36 = vld [vmem:[%s4696_s22 + $0x460] sm:$0xff] }
 0x154   : > { %2625 = vmatprep.mubr.f32.mxu1 %v263_v27  ;;  %2521 = vmatmul.mubr.f32.vlgmr.msra.gmra.mxu0 %v260_v29  ;;  %v1683_v20 = vadd.f32 %v3574_v25, %v5956_v22  ;;  %v298_v22 = vld [vmem:[%s4696_s22 + $0x1f0] sm:$0xff]  ;;  %v1013_v37 = vld [vmem:[%s7007_s1 + $0xec8] sm:$0xff] }
 0x155   : > { %2626 = vmatmul.mubr.f32.vlgmr.msra.gmra.mxu1 %v262_v35  ;;  %4100 = vmatprep.subr.mxu0 %v1019_v42  ;;  %v3575_v46 = vpop.f32.mrf.mxu0  ;;  %v1030_v10 = vld [vmem:[%s7007_s1 + $0xf50] sm:$0xff]  ;;  %v1045_v42 = vld [vmem:[%s7007_s1 + $0xfc8] sm:$0xff] }
 0x156   : > { %4156 = vmatprep.subr.mxu1 %v1051_v48  ;;  %v3631_v33 = vpop.f32.mrf.mxu1  ;;  %4101 = vmatpush3.msra.mxu0 %v1003_v31  ;;  %v6219_v39 = vadd.f32 %v3630_v38, %v1683_v20  ;;  %v374_v35 = vld [vmem:[%s4696_s22 + $0x450] sm:$0xff]  ;;  %v997_v31 = vld [vmem:[%s7007_s1 + $0xe48] sm:$0xff]  ;;  %v1044_v20 = vld [vmem:[%s7007_s1 + $0xfc0] sm:$0xff] }
 0x157   : > { %4157 = vmatpush3.msra.mxu1 %v1035_v54  ;;  %4102 = vmatprep.subr.mxu0 %v1018_v1  ;;  %v3576_v50 = vpop.f32.mrf.mxu0  ;;  %v1029_v54 = vld [vmem:[%s7007_s1 + $0xf48] sm:$0xff] }
 0x158   : > { %4158 = vmatprep.subr.mxu1 %v1050_v12  ;;  %v3632_v63 = vpop.f32.mrf.mxu1  ;;  %2525 = vmatprep.mubr.f32.mxu0 %v299_v43  ;;  %v3577_v56 = vadd.f32 %v3576_v50, %v3575_v46  ;;  %v1012_v12 = vld [vmem:[%s7007_s1 + $0xec0] sm:$0xff]  ;;  %v413_v38 = vld [vmem:[%s4696_s22 + $0x588] sm:$0xff]  ;;  %v415_v43 = vld [vmem:[%s4696_s22 + $0x598] sm:$0xff] }
 0x159   : > { %2630 = vmatprep.mubr.f32.mxu1 %v301_v45  ;;  %4103 = vmatpush3.msra.mxu0 %v1002_v17  ;;  %v3633_v2 = vadd.f32 %v3632_v63, %v3631_v33  ;;  %v996_v33 = vld [vmem:[%s7007_s1 + $0xe40] sm:$0xff] }
 0x15a   : > { %4159 = vmatpush3.msra.mxu1 %v1034_v16  ;;  %2526 = vmatmul.mubr.f32.gmra.mxu0 %v298_v22  ;;  %v1688_v32 = vadd.f32 %v3577_v56, %v5990_v55  ;;  %v1028_v17 = vld [vmem:[%s7007_s1 + $0xf40] sm:$0xff]  ;;  %v414_v22 = vld [vmem:[%s4696_s22 + $0x590] sm:$0xff]  ;;  %v1027_v56 = vld [vmem:[%s7007_s1 + $0xf38] sm:$0xff] }
 0x15b   : > { %2631 = vmatmul.mubr.f32.gmra.mxu1 %v300_v49  ;;  %4104 = vmatprep.subr.mxu0 %v1017_v51  ;;  %v412_v16 = vld [vmem:[%s4696_s22 + $0x580] sm:$0xff]  ;;  %v1043_v51 = vld [vmem:[%s7007_s1 + $0xfb8] sm:$0xff] }
 0x15c   : > { %4160 = vmatprep.subr.mxu1 %v1049_v52  ;;  %v3578_v3 = vpop.f32.mrf.mxu0  ;;  %4105 = vmatpush3.msra.mxu0 %v1001_v59  ;;  %v6250_v58 = vadd.f32 %v3633_v2, %v1688_v32  ;;  %v3634_v55 = vpop.f32.mrf.mxu1  ;;  %v995_v52 = vld [vmem:[%s7007_s1 + $0xe38] sm:$0xff] }
 0x15d   : > { %4161 = vmatpush3.msra.mxu1 %v1033_v60  ;;  %4106 = vmatprep.subr.mxu0 %v1016_v61  ;;  %v1010_v61 = vld [vmem:[%s7007_s1 + $0xeb0] sm:$0xff] }
 0x15e   : > { %4162 = vmatprep.subr.mxu1 %v1048_v26  ;;  %v3579_v4 = vpop.f32.mrf.mxu0  ;;  %2530 = vmatprep.mubr.f32.mxu0 %v337_v18  ;;  %v3635_v8 = vpop.f32.mrf.mxu1  ;;  %v1042_v26 = vld [vmem:[%s7007_s1 + $0xfb0] sm:$0xff]  ;;  %v451_v18 = vld [vmem:[%s4696_s22 + $0x6b8] sm:$0xff] }
 0x15f   : > { %2635 = vmatprep.mubr.f32.mxu1 %v339_v30  ;;  %v3580_v7 = vadd.f32 %v3579_v4, %v3578_v3  ;;  %4107 = vmatpush3.msra.mxu0 %v1000_v9  ;;  %v3636_v53 = vadd.f32 %v3635_v8, %v3634_v55  ;;  %v453_v30 = vld [vmem:[%s4696_s22 + $0x6c8] sm:$0xff]  ;;  %v994_v3 = vld [vmem:[%s7007_s1 + $0xe30] sm:$0xff] }
 0x160   : > { %4163 = vmatpush3.msra.mxu1 %v1032_v34  ;;  %2531 = vmatmul.mubr.f32.gmra.mxu0 %v336_v0  ;;  %v1026_v9 = vld [vmem:[%s7007_s1 + $0xf30] sm:$0xff]  ;;  %v452_v0 = vld [vmem:[%s4696_s22 + $0x6c0] sm:$0xff]  ;;  %v1009_v4 = vld [vmem:[%s7007_s1 + $0xea8] sm:$0xff] }
 0x161   : > { %2636 = vmatmul.mubr.f32.gmra.mxu1 %v338_v15  ;;  %v1693_v11 = vadd.f32 %v3580_v7, %v6024_v19  ;;  %4108 = vmatprep.subr.mxu0 %v1015_v5  ;;  %v450_v55 = vld [vmem:[%s4696_s22 + $0x6b0] sm:$0xff]  ;;  %v1041_v5 = vld [vmem:[%s7007_s1 + $0xfa8] sm:$0xff] }
 0x162   : > { %4164 = vmatprep.subr.mxu1 %v1047_v6  ;;  %4109 = vmatpush3.msra.mxu0 %v999_v13  ;;  %v3581_v29 = vpop.f32.mrf.mxu0  ;;  %v993_v7 = vld [vmem:[%s7007_s1 + $0xe28] sm:$0xff] }
 0x163   : > { %4165 = vmatpush3.msra.mxu1 %v1031_v41  ;;  %v6281_v27 = vadd.f32 %v3636_v53, %v1693_v11  ;;  %v3637_v19 = vpop.f32.mrf.mxu1  ;;  %4110 = vmatprep.subr.mxu0 %v1014_v14  ;;  %v1025_v8 = vld [vmem:[%s7007_s1 + $0xf28] sm:$0xff]  ;;  %v1008_v41 = vld [vmem:[%s7007_s1 + $0xea0] sm:$0xff] }
 0x164   : > { %4166 = vmatprep.subr.mxu1 %v1046_v21  ;;  %2535 = vmatprep.mubr.f32.mxu0 %v375_v62  ;;  %v3582_v48 = vpop.f32.mrf.mxu0  ;;  %v1040_v14 = vld [vmem:[%s7007_s1 + $0xfa0] sm:$0xff]  ;;  %v489_v53 = vld [vmem:[%s4696_s22 + $0x7e8] sm:$0xff]  ;;  %v491_v62 = vld [vmem:[%s4696_s22 + $0x7f8] sm:$0xff] }
 0x165   : > { %2640 = vmatprep.mubr.f32.mxu1 %v377_v23  ;;  %v3638_v25 = vpop.f32.mrf.mxu1  ;;  %4111 = vmatpush3.msra.mxu0 %v998_v24  ;;  %v3583_v1 = vadd.f32 %v3582_v48, %v3581_v29  ;;  %v992_v24 = vld [vmem:[%s7007_s1 + $0xe20] sm:$0xff] }
 0x166   : > { %4167 = vmatpush3.msra.mxu1 %v1030_v10  ;;  %2536 = vmatmul.mubr.f32.gmra.mxu0 %v374_v35  ;;  %v3639_v46 = vadd.f32 %v3638_v25, %v3637_v19  ;;  %v1024_v10 = vld [vmem:[%s7007_s1 + $0xf20] sm:$0xff]  ;;  %v490_v35 = vld [vmem:[%s4696_s22 + $0x7f0] sm:$0xff]  ;;  %v991_v25 = vld [vmem:[%s7007_s1 + $0xe18] sm:$0xff] }
 0x167   : > { %2641 = vmatmul.mubr.f32.gmra.mxu1 %v376_v36  ;;  %4112 = vmatprep.subr.mxu0 %v1013_v37  ;;  %v1698_v45 = vadd.f32 %v3583_v1, %v6058_v57  ;;  %v1011_v57 = vld [vmem:[%s7007_s1 + $0xeb8] sm:$0xff]  ;;  %v488_v19 = vld [vmem:[%s4696_s22 + $0x7e0] sm:$0xff]  ;;  %v1038_v1 = vld [vmem:[%s7007_s1 + $0xf90] sm:$0xff] }
 0x168   : > { %4168 = vmatprep.subr.mxu1 %v1045_v42  ;;  %4113 = vmatpush3.msra.mxu0 %v997_v31  ;;  %v1007_v36 = vld [vmem:[%s7007_s1 + $0xe98] sm:$0xff] }
 0x169   : > { %4169 = vmatpush3.msra.mxu1 %v1029_v54  ;;  %4114 = vmatprep.subr.mxu0 %v1012_v12  ;;  %v6314_v49 = vadd.f32 %v3639_v46, %v1698_v45  ;;  %v3584_v50 = vpop.f32.mrf.mxu0  ;;  %v1039_v37 = vld [vmem:[%s7007_s1 + $0xf98] sm:$0xff]  ;;  %v1006_v54 = vld [vmem:[%s7007_s1 + $0xe90] sm:$0xff] }
 0x16a   : > { %4170 = vmatprep.subr.mxu1 %v1044_v20  ;;  %v3640_v63 = vpop.f32.mrf.mxu1  ;;  %2540 = vmatprep.mubr.f32.mxu0 %v413_v38  ;;  %v1023_v31 = vld [vmem:[%s7007_s1 + $0xf18] sm:$0xff] }
 0x16b   : > { %2645 = vmatprep.mubr.f32.mxu1 %v415_v43  ;;  %4115 = vmatpush3.msra.mxu0 %v996_v33  ;;  %v3585_v59 = vpop.f32.mrf.mxu0  ;;  %v527_v38 = vld [vmem:[%s4696_s22 + $0x918] sm:$0xff]  ;;  %v529_v43 = vld [vmem:[%s4696_s22 + $0x928] sm:$0xff]  ;;  %v990_v33 = vld [vmem:[%s7007_s1 + $0xe10] sm:$0xff] }
 0x16c   : > { %4171 = vmatpush3.msra.mxu1 %v1028_v17  ;;  %v3641_v60 = vpop.f32.mrf.mxu1  ;;  %2541 = vmatmul.mubr.f32.gmra.mxu0 %v412_v16  ;;  %v3586_v32 = vadd.f32 %v3585_v59, %v3584_v50  ;;  %v1022_v17 = vld [vmem:[%s7007_s1 + $0xf10] sm:$0xff] }
 0x16d   : > { %2646 = vmatmul.mubr.f32.gmra.mxu1 %v414_v22  ;;  %v3642_v2 = vadd.f32 %v3641_v60, %v3640_v63  ;;  %4116 = vmatprep.subr.mxu0 %v1011_v57  ;;  %v526_v16 = vld [vmem:[%s4696_s22 + $0x910] sm:$0xff]  ;;  %v528_v22 = vld [vmem:[%s4696_s22 + $0x920] sm:$0xff]  ;;  %v1005_v63 = vld [vmem:[%s7007_s1 + $0xe88] sm:$0xff] }
 0x16e   : > { %4172 = vmatprep.subr.mxu1 %v1043_v51  ;;  %4117 = vmatpush3.msra.mxu0 %v995_v52  ;;  %v1703_v34 = vadd.f32 %v3586_v32, %v6092_v47  ;;  %v1037_v57 = vld [vmem:[%s7007_s1 + $0xf88] sm:$0xff]  ;;  %v1004_v60 = vld [vmem:[%s7007_s1 + $0xe80] sm:$0xff] }
 0x16f   : > { %4173 = vmatpush3.msra.mxu1 %v1027_v56  ;;  %4118 = vmatprep.subr.mxu0 %v1010_v61  ;;  %v989_v52 = vld [vmem:[%s7007_s1 + $0xe08] sm:$0xff]  ;;  %v1036_v61 = vld [vmem:[%s7007_s1 + $0xf80] sm:$0xff] }
 0x170   : > { %4174 = vmatprep.subr.mxu1 %v1042_v26  ;;  %v3587_v15 = vpop.f32.mrf.mxu0  ;;  %2545 = vmatprep.mubr.f32.mxu0 %v451_v18  ;;  %v6351_v6 = vadd.f32 %v3642_v2, %v1703_v34  ;;  %v3643_v47 = vpop.f32.mrf.mxu1  ;;  %v988_v32 = vld [vmem:[%s7007_s1 + $0xe00] sm:$0xff]  ;;  %v265_v2 = vld [vmem:[%s4696_s22 + $0xe8] sm:$0xff] }
 0x171   : > { %2650 = vmatprep.mubr.f32.mxu1 %v453_v30  ;;  %4119 = vmatpush3.msra.mxu0 %v994_v3  ;;  %v1020_v3 = vld [vmem:[%s7007_s1 + $0xf00] sm:$0xff] }
 0x172   : > { %4175 = vmatpush3.msra.mxu1 %v1026_v9  ;;  %v3588_v13 = vpop.f32.mrf.mxu0  ;;  %2546 = vmatmul.mubr.f32.gmra.mxu0 %v450_v55  ;;  %v3644_v11 = vpop.f32.mrf.mxu1  ;;  %v267_v9 = vld [vmem:[%s4696_s22 + $0xf8] sm:$0xff]  ;;  %v264_v55 = vld [vmem:[%s4696_s22 + $0xe0] sm:$0xff] }
 0x173   : > { %2651 = vmatmul.mubr.f32.gmra.mxu1 %v452_v0  ;;  %v3589_v21 = vadd.f32 %v3588_v13, %v3587_v15  ;;  %4120 = vmatprep.subr.mxu0 %v1009_v4  ;;  %v3645_v23 = vadd.f32 %v3644_v11, %v3643_v47  ;;  %v266_v0 = vld [vmem:[%s4696_s22 + $0xf0] sm:$0xff]  ;;  %v1083_v4 = vld [vmem:[%s7007_s1 + $0x10f8] sm:$0xff]  ;;  %v305_v11 = vld [vmem:[%s4696_s22 + $0x228] sm:$0xff] }
 0x174   : > { %4176 = vmatprep.subr.mxu1 %v1041_v5  ;;  %4121 = vmatpush3.msra.mxu0 %v993_v7  ;;  %v1115_v5 = vld [vmem:[%s7007_s1 + $0x11f8] sm:$0xff] }
 0x175   : > { %4177 = vmatpush3.msra.mxu1 %v1025_v8  ;;  %v1708_v29 = vadd.f32 %v3589_v21, %v6126_v44  ;;  %4122 = vmatprep.subr.mxu0 %v1008_v41  ;;  %v1067_v47 = vld [vmem:[%s7007_s1 + $0x1078] sm:$0xff]  ;;  %v1082_v41 = vld [vmem:[%s7007_s1 + $0x10f0] sm:$0xff] }
 0x176   : > { %4178 = vmatprep.subr.mxu1 %v1040_v14  ;;  %2550 = vmatprep.mubr.f32.mxu0 %v489_v53  ;;  %v3590_v48 = vpop.f32.mrf.mxu0  ;;  %v1114_v14 = vld [vmem:[%s7007_s1 + $0x11f0] sm:$0xff]  ;;  %v303_v21 = vld [vmem:[%s4696_s22 + $0x218] sm:$0xff] }
 0x177   : > { %2655 = vmatprep.mubr.f32.mxu1 %v491_v62  ;;  %v6382_v42 = vadd.f32 %v3645_v23, %v1708_v29  ;;  %v3646_v44 = vpop.f32.mrf.mxu1  ;;  %4123 = vmatpush3.msra.mxu0 %v992_v24  ;;  %v1066_v23 = vld [vmem:[%s7007_s1 + $0x1070] sm:$0xff] }
 0x178   : > { %4179 = vmatpush3.msra.mxu1 %v1024_v10  ;;  %2551 = vmatmul.mubr.f32.gmra.mxu0 %v488_v19  ;;  %v3591_v12 = vpop.f32.mrf.mxu0  ;;  %v1098_v24 = vld [vmem:[%s7007_s1 + $0x1170] sm:$0xff] }
 0x179   : > { %2656 = vmatmul.mubr.f32.gmra.mxu1 %v490_v35  ;;  %v3647_v20 = vpop.f32.mrf.mxu1  ;;  %4124 = vmatprep.subr.mxu0 %v1007_v36  ;;  %v3592_v45 = vadd.f32 %v3591_v12, %v3590_v48  ;;  %v302_v19 = vld [vmem:[%s4696_s22 + $0x210] sm:$0xff]  ;;  %v304_v35 = vld [vmem:[%s4696_s22 + $0x220] sm:$0xff]  ;;  %v1081_v36 = vld [vmem:[%s7007_s1 + $0x10e8] sm:$0xff] }
 0x17a   : > { %4180 = vmatprep.subr.mxu1 %v1039_v37  ;;  %v3648_v46 = vadd.f32 %v3647_v20, %v3646_v44  ;;  %4125 = vmatpush3.msra.mxu0 %v991_v25  ;;  %v1113_v37 = vld [vmem:[%s7007_s1 + $0x11e8] sm:$0xff] }
 0x17b   : > { %4181 = vmatpush3.msra.mxu1 %v1023_v31  ;;  %4126 = vmatprep.subr.mxu0 %v1006_v54  ;;  %v1713_v50 = vadd.f32 %v3592_v45, %v6158_v40  ;;  %v1021_v40 = vld [vmem:[%s7007_s1 + $0xf08] sm:$0xff]  ;;  %v1080_v54 = vld [vmem:[%s7007_s1 + $0x10e0] sm:$0xff] }
 0x17c   : > { %4182 = vmatprep.subr.mxu1 %v1038_v1  ;;  %2555 = vmatprep.mubr.f32.mxu0 %v527_v38  ;;  %v1065_v44 = vld [vmem:[%s7007_s1 + $0x1068] sm:$0xff]  ;;  %v343_v38 = vld [vmem:[%s4696_s22 + $0x358] sm:$0xff]  ;;  %v1064_v45 = vld [vmem:[%s7007_s1 + $0x1060] sm:$0xff] }
 0x17d   : > { %2660 = vmatprep.mubr.f32.mxu1 %v529_v43  ;;  %v3593_v51 = vpop.f32.mrf.mxu0  ;;  %4127 = vmatpush3.msra.mxu0 %v990_v33  ;;  %v6419_v56 = vadd.f32 %v3648_v46, %v1713_v50  ;;  %v3649_v59 = vpop.f32.mrf.mxu1  ;;  %v1097_v25 = vld [vmem:[%s7007_s1 + $0x1168] sm:$0xff]  ;;  %v1096_v46 = vld [vmem:[%s7007_s1 + $0x1160] sm:$0xff] }
 0x17e   : > { %4183 = vmatpush3.msra.mxu1 %v1022_v17  ;;  %2556 = vmatmul.mubr.f32.gmra.mxu0 %v526_v16  ;;  %v341_v20 = vld [vmem:[%s4696_s22 + $0x348] sm:$0xff]  ;;  %v340_v16 = vld [vmem:[%s4696_s22 + $0x340] sm:$0xff] }
 0x17f   : > { %2661 = vmatmul.mubr.f32.gmra.mxu1 %v528_v22  ;;  %v3594_v26 = vpop.f32.mrf.mxu0  ;;  %4128 = vmatprep.subr.mxu0 %v1005_v63  ;;  %v3650_v30 = vpop.f32.mrf.mxu1  ;;  %v342_v22 = vld [vmem:[%s4696_s22 + $0x350] sm:$0xff]  ;;  %v1079_v63 = vld [vmem:[%s7007_s1 + $0x10d8] sm:$0xff] }
 0x180   : > { %4184 = vmatprep.subr.mxu1 %v1037_v57  ;;  %v3595_v18 = vadd.f32 %v3594_v26, %v3593_v51  ;;  %4129 = vmatpush3.msra.mxu0 %v989_v52  ;;  %v3651_v34 = vadd.f32 %v3650_v30, %v3649_v59  ;;  %v1111_v57 = vld [vmem:[%s7007_s1 + $0x11d8] sm:$0xff]  ;;  %v1078_v59 = vld [vmem:[%s7007_s1 + $0x10d0] sm:$0xff] }
 0x181   : > { %4185 = vmatpush3.msra.mxu1 %v1021_v40  ;;  %4130 = vmatprep.subr.mxu0 %v1004_v60  ;;  %v1063_v52 = vld [vmem:[%s7007_s1 + $0x1058] sm:$0xff]  ;;  %v1094_v30 = vld [vmem:[%s7007_s1 + $0x1150] sm:$0xff] }
 0x182   : > { %4186 = vmatprep.subr.mxu1 %v1036_v61  ;;  %v1718_v15 = vadd.f32 %v3595_v18, %v6188_v28  ;;  %4131 = vmatpush3.msra.mxu0 %v988_v32  ;;  %v1099_v28 = vld [vmem:[%s7007_s1 + $0x1178] sm:$0xff]  ;;  %v1062_v18 = vld [vmem:[%s7007_s1 + $0x1050] sm:$0xff] }
 0x183   : > { %2730 = vmatprep.mubr.f32.mxu0 %v265_v2  ;;  %4187 = vmatpush3.msra.mxu1 %v1020_v3  ;;  %v3684_v8 = vpop.f32.mrf.mxu0  ;;  %v1095_v40 = vld [vmem:[%s7007_s1 + $0x1158] sm:$0xff]  ;;  %v381_v2 = vld [vmem:[%s4696_s22 + $0x488] sm:$0xff] }
 0x184   : > { %2835 = vmatprep.mubr.f32.mxu1 %v267_v9  ;;  %v6450_v7 = vadd.f32 %v3651_v34, %v1718_v15  ;;  %v3740_v13 = vpop.f32.mrf.mxu1  ;;  %2731 = vmatmul.mubr.f32.vlgmr.msra.gmra.mxu0 %v264_v55  ;;  %v379_v32 = vld [vmem:[%s4696_s22 + $0x478] sm:$0xff]  ;;  %v378_v34 = vld [vmem:[%s4696_s22 + $0x470] sm:$0xff]  ;;  %v380_v55 = vld [vmem:[%s4696_s22 + $0x480] sm:$0xff] }
 0x185   : > { %2836 = vmatmul.mubr.f32.vlgmr.msra.gmra.mxu1 %v266_v0  ;;  %4212 = vmatprep.subr.mxu0 %v1083_v4  ;;  %v3685_v53 = vpop.f32.mrf.mxu0  ;;  %v1077_v4 = vld [vmem:[%s7007_s1 + $0x10c8] sm:$0xff] }
 0x186   : > { %4268 = vmatprep.subr.mxu1 %v1115_v5  ;;  %v3741_v62 = vpop.f32.mrf.mxu1  ;;  %4213 = vmatpush3.msra.mxu0 %v1067_v47  ;;  %v3686_v10 = vadd.f32 %v3685_v53, %v3684_v8  ;;  %v1109_v5 = vld [vmem:[%s7007_s1 + $0x11c8] sm:$0xff]  ;;  %v419_v53 = vld [vmem:[%s4696_s22 + $0x5b8] sm:$0xff] }
 0x187   : > { %4269 = vmatpush3.msra.mxu1 %v1099_v28  ;;  %v3742_v29 = vadd.f32 %v3741_v62, %v3740_v13  ;;  %4214 = vmatprep.subr.mxu0 %v1082_v41  ;;  %v1061_v47 = vld [vmem:[%s7007_s1 + $0x1048] sm:$0xff]  ;;  %v1076_v13 = vld [vmem:[%s7007_s1 + $0x10c0] sm:$0xff] }
 0x188   : > { %4270 = vmatprep.subr.mxu1 %v1114_v14  ;;  %2735 = vmatprep.mubr.f32.mxu0 %v303_v21  ;;  %v1893_v48 = vadd.f32 %v3686_v10, %v6219_v39  ;;  %v1112_v39 = vld [vmem:[%s7007_s1 + $0x11e0] sm:$0xff]  ;;  %v1093_v28 = vld [vmem:[%s7007_s1 + $0x1148] sm:$0xff] }
 0x189   : > { %2840 = vmatprep.mubr.f32.mxu1 %v305_v11  ;;  %4215 = vmatpush3.msra.mxu0 %v1066_v23  ;;  %v1108_v41 = vld [vmem:[%s7007_s1 + $0x11c0] sm:$0xff]  ;;  %v417_v11 = vld [vmem:[%s4696_s22 + $0x5a8] sm:$0xff] }
 0x18a   : > { %4271 = vmatpush3.msra.mxu1 %v1098_v24  ;;  %v3687_v31 = vpop.f32.mrf.mxu0  ;;  %2736 = vmatmul.mubr.f32.gmra.mxu0 %v302_v19  ;;  %v6487_v1 = vadd.f32 %v3742_v29, %v1893_v48  ;;  %v3743_v12 = vpop.f32.mrf.mxu1  ;;  %v1092_v23 = vld [vmem:[%s7007_s1 + $0x1140] sm:$0xff]  ;;  %v418_v19 = vld [vmem:[%s4696_s22 + $0x5b0] sm:$0xff]  ;;  %v1107_v48 = vld [vmem:[%s7007_s1 + $0x11b8] sm:$0xff] }
 0x18b   : > { %2841 = vmatmul.mubr.f32.gmra.mxu1 %v304_v35  ;;  %4216 = vmatprep.subr.mxu0 %v1081_v36  ;;  %v416_v29 = vld [vmem:[%s4696_s22 + $0x5a0] sm:$0xff] }
 0x18c   : > { %4272 = vmatprep.subr.mxu1 %v1113_v37  ;;  %v3688_v43 = vpop.f32.mrf.mxu0  ;;  %4217 = vmatpush3.msra.mxu0 %v1065_v44  ;;  %v3744_v17 = vpop.f32.mrf.mxu1  ;;  %v1075_v37 = vld [vmem:[%s7007_s1 + $0x10b8] sm:$0xff] }
 0x18d   : > { %4273 = vmatpush3.msra.mxu1 %v1097_v25  ;;  %v3689_v33 = vadd.f32 %v3688_v43, %v3687_v31  ;;  %4218 = vmatprep.subr.mxu0 %v1080_v54  ;;  %v3745_v50 = vadd.f32 %v3744_v17, %v3743_v12  ;;  %v1059_v44 = vld [vmem:[%s7007_s1 + $0x1038] sm:$0xff]  ;;  %v1074_v54 = vld [vmem:[%s7007_s1 + $0x10b0] sm:$0xff]  ;;  %v457_v43 = vld [vmem:[%s4696_s22 + $0x6e8] sm:$0xff] }
 0x18e   : > { %4274 = vmatprep.subr.mxu1 %v1112_v39  ;;  %2740 = vmatprep.mubr.f32.mxu0 %v341_v20  ;;  %v1091_v25 = vld [vmem:[%s7007_s1 + $0x1138] sm:$0xff]  ;;  %v1106_v39 = vld [vmem:[%s7007_s1 + $0x11b0] sm:$0xff] }
 0x18f   : > { %2845 = vmatprep.mubr.f32.mxu1 %v343_v38  ;;  %v1898_v51 = vadd.f32 %v3689_v33, %v6250_v58  ;;  %4219 = vmatpush3.msra.mxu0 %v1064_v45  ;;  %v1110_v58 = vld [vmem:[%s7007_s1 + $0x11d0] sm:$0xff]  ;;  %v455_v38 = vld [vmem:[%s4696_s22 + $0x6d8] sm:$0xff] }
 0x190   : > { %4275 = vmatpush3.msra.mxu1 %v1096_v46  ;;  %2741 = vmatmul.mubr.f32.gmra.mxu0 %v340_v16  ;;  %v3690_v61 = vpop.f32.mrf.mxu0  ;;  %v1090_v46 = vld [vmem:[%s7007_s1 + $0x1130] sm:$0xff] }
 0x191   : > { %2846 = vmatmul.mubr.f32.gmra.mxu1 %v342_v22  ;;  %v6518_v60 = vadd.f32 %v3745_v50, %v1898_v51  ;;  %v3746_v26 = vpop.f32.mrf.mxu1  ;;  %4220 = vmatprep.subr.mxu0 %v1079_v63  ;;  %v454_v16 = vld [vmem:[%s4696_s22 + $0x6d0] sm:$0xff]  ;;  %v456_v22 = vld [vmem:[%s4696_s22 + $0x6e0] sm:$0xff]  ;;  %v1105_v51 = vld [vmem:[%s7007_s1 + $0x11a8] sm:$0xff] }
 0x192   : > { %4276 = vmatprep.subr.mxu1 %v1111_v57  ;;  %4221 = vmatpush3.msra.mxu0 %v1063_v52  ;;  %v3691_v3 = vpop.f32.mrf.mxu0  ;;  %v1073_v57 = vld [vmem:[%s7007_s1 + $0x10a8] sm:$0xff] }
 0x193   : > { %4277 = vmatpush3.msra.mxu1 %v1095_v40  ;;  %v3747_v9 = vpop.f32.mrf.mxu1  ;;  %4222 = vmatprep.subr.mxu0 %v1078_v59  ;;  %v3692_v0 = vadd.f32 %v3691_v3, %v3690_v61  ;;  %v1057_v52 = vld [vmem:[%s7007_s1 + $0x1028] sm:$0xff]  ;;  %v1104_v61 = vld [vmem:[%s7007_s1 + $0x11a0] sm:$0xff] }
 0x194   : > { %4278 = vmatprep.subr.mxu1 %v1110_v58  ;;  %v3748_v15 = vadd.f32 %v3747_v9, %v3746_v26  ;;  %2745 = vmatprep.mubr.f32.mxu0 %v379_v32  ;;  %v1089_v40 = vld [vmem:[%s7007_s1 + $0x1128] sm:$0xff]  ;;  %v1072_v58 = vld [vmem:[%s7007_s1 + $0x10a0] sm:$0xff] }
 0x195   : > { %2850 = vmatprep.mubr.f32.mxu1 %v381_v2  ;;  %4223 = vmatpush3.msra.mxu0 %v1062_v18  ;;  %v1903_v8 = vadd.f32 %v3692_v0, %v6281_v27  ;;  %v1060_v27 = vld [vmem:[%s7007_s1 + $0x1040] sm:$0xff]  ;;  %v493_v2 = vld [vmem:[%s4696_s22 + $0x808] sm:$0xff]  ;;  %v495_v18 = vld [vmem:[%s4696_s22 + $0x818] sm:$0xff] }
 0x196   : > { %4279 = vmatpush3.msra.mxu1 %v1094_v30  ;;  %2746 = vmatmul.mubr.f32.gmra.mxu0 %v378_v34  ;;  %v3693_v14 = vpop.f32.mrf.mxu0  ;;  %v1088_v3 = vld [vmem:[%s7007_s1 + $0x1120] sm:$0xff]  ;;  %v494_v0 = vld [vmem:[%s4696_s22 + $0x810] sm:$0xff] }
 0x197   : > { %2851 = vmatmul.mubr.f32.gmra.mxu1 %v380_v55  ;;  %v3749_v21 = vpop.f32.mrf.mxu1  ;;  %4224 = vmatprep.subr.mxu0 %v1077_v4  ;;  %v6551_v62 = vadd.f32 %v3748_v15, %v1903_v8  ;;  %v492_v55 = vld [vmem:[%s4696_s22 + $0x800] sm:$0xff]  ;;  %v1087_v8 = vld [vmem:[%s7007_s1 + $0x1118] sm:$0xff] }
 0x198   : > { %4280 = vmatprep.subr.mxu1 %v1109_v5  ;;  %4225 = vmatpush3.msra.mxu0 %v1061_v47  ;;  %v3694_v24 = vpop.f32.mrf.mxu0  ;;  %v1071_v5 = vld [vmem:[%s7007_s1 + $0x1098] sm:$0xff] }
 0x199   : > { %4281 = vmatpush3.msra.mxu1 %v1093_v28  ;;  %v3750_v10 = vpop.f32.mrf.mxu1  ;;  %4226 = vmatprep.subr.mxu0 %v1076_v13  ;;  %v3695_v35 = vadd.f32 %v3694_v24, %v3693_v14  ;;  %v1103_v47 = vld [vmem:[%s7007_s1 + $0x1198] sm:$0xff]  ;;  %v1102_v14 = vld [vmem:[%s7007_s1 + $0x1190] sm:$0xff] }
 0x19a   : > { %4282 = vmatprep.subr.mxu1 %v1108_v41  ;;  %v3751_v36 = vadd.f32 %v3750_v10, %v3749_v21  ;;  %2750 = vmatprep.mubr.f32.mxu0 %v417_v11  ;;  %v1055_v28 = vld [vmem:[%s7007_s1 + $0x1018] sm:$0xff]  ;;  %v1070_v41 = vld [vmem:[%s7007_s1 + $0x1090] sm:$0xff] }
 0x19b   : > { %2855 = vmatprep.mubr.f32.mxu1 %v419_v53  ;;  %4227 = vmatpush3.msra.mxu0 %v1060_v27  ;;  %v1908_v31 = vadd.f32 %v3695_v35, %v6314_v49  ;;  %v1058_v49 = vld [vmem:[%s7007_s1 + $0x1030] sm:$0xff]  ;;  %v531_v53 = vld [vmem:[%s4696_s22 + $0x938] sm:$0xff]  ;;  %v533_v27 = vld [vmem:[%s4696_s22 + $0x948] sm:$0xff] }
 0x19c   : > { %4283 = vmatpush3.msra.mxu1 %v1092_v23  ;;  %2751 = vmatmul.mubr.f32.gmra.mxu0 %v416_v29  ;;  %v3696_v12 = vpop.f32.mrf.mxu0  ;;  %v1086_v24 = vld [vmem:[%s7007_s1 + $0x1110] sm:$0xff]  ;;  %v532_v35 = vld [vmem:[%s4696_s22 + $0x940] sm:$0xff] }
 0x19d   : > { %2856 = vmatmul.mubr.f32.gmra.mxu1 %v418_v19  ;;  %v3752_v20 = vpop.f32.mrf.mxu1  ;;  %4228 = vmatprep.subr.mxu0 %v1075_v37  ;;  %v6582_v45 = vadd.f32 %v3751_v36, %v1908_v31  ;;  %v530_v19 = vld [vmem:[%s4696_s22 + $0x930] sm:$0xff]  ;;  %v1085_v31 = vld [vmem:[%s7007_s1 + $0x1108] sm:$0xff] }
 0x19e   : > { %4284 = vmatprep.subr.mxu1 %v1107_v48  ;;  %4229 = vmatpush3.msra.mxu0 %v1059_v44  ;;  %v3697_v33 = vpop.f32.mrf.mxu0  ;;  %v1069_v48 = vld [vmem:[%s7007_s1 + $0x1088] sm:$0xff] }
 0x19f   : > { %4285 = vmatpush3.msra.mxu1 %v1091_v25  ;;  %v3753_v17 = vpop.f32.mrf.mxu1  ;;  %4230 = vmatprep.subr.mxu0 %v1074_v54  ;;  %v3698_v50 = vadd.f32 %v3697_v33, %v3696_v12  ;;  %v1101_v44 = vld [vmem:[%s7007_s1 + $0x1188] sm:$0xff]  ;;  %v1100_v12 = vld [vmem:[%s7007_s1 + $0x1180] sm:$0xff]  ;;  %v271_v33 = vld [vmem:[%s4696_s22 + $0x118] sm:$0xff] }
 0x1a0   : > { %4286 = vmatprep.subr.mxu1 %v1106_v39  ;;  %v3754_v63 = vadd.f32 %v3753_v17, %v3752_v20  ;;  %2755 = vmatprep.mubr.f32.mxu0 %v455_v38  ;;  %v1053_v25 = vld [vmem:[%s7007_s1 + $0x1008] sm:$0xff]  ;;  %v1068_v39 = vld [vmem:[%s7007_s1 + $0x1080] sm:$0xff] }
 0x1a1   : > { %2860 = vmatprep.mubr.f32.mxu1 %v457_v43  ;;  %4231 = vmatpush3.msra.mxu0 %v1058_v49  ;;  %v1913_v59 = vadd.f32 %v3698_v50, %v6351_v6  ;;  %v1056_v6 = vld [vmem:[%s7007_s1 + $0x1020] sm:$0xff]  ;;  %v269_v43 = vld [vmem:[%s4696_s22 + $0x108] sm:$0xff]  ;;  %v270_v50 = vld [vmem:[%s4696_s22 + $0x110] sm:$0xff] }
 0x1a2   : > { %4287 = vmatpush3.msra.mxu1 %v1090_v46  ;;  %2756 = vmatmul.mubr.f32.gmra.mxu0 %v454_v16  ;;  %v3699_v26 = vpop.f32.mrf.mxu0  ;;  %v1084_v46 = vld [vmem:[%s7007_s1 + $0x1100] sm:$0xff] }
 0x1a3   : > { %2861 = vmatmul.mubr.f32.gmra.mxu1 %v456_v22  ;;  %v3755_v32 = vpop.f32.mrf.mxu1  ;;  %4232 = vmatprep.subr.mxu0 %v1073_v57  ;;  %v6613_v30 = vadd.f32 %v3754_v63, %v1913_v59  ;;  %v268_v22 = vld [vmem:[%s4696_s22 + $0x100] sm:$0xff]  ;;  %v1146_v59 = vld [vmem:[%s7007_s1 + $0x12f0] sm:$0xff] }
 0x1a4   : > { %4288 = vmatprep.subr.mxu1 %v1105_v51  ;;  %4233 = vmatpush3.msra.mxu0 %v1057_v52  ;;  %v3700_v9 = vpop.f32.mrf.mxu0  ;;  %v1147_v51 = vld [vmem:[%s7007_s1 + $0x12f8] sm:$0xff] }
 0x1a5   : > { %4289 = vmatpush3.msra.mxu1 %v1089_v40  ;;  %v3756_v34 = vpop.f32.mrf.mxu1  ;;  %4234 = vmatprep.subr.mxu0 %v1072_v58  ;;  %v3701_v15 = vadd.f32 %v3700_v9, %v3699_v26  ;;  %v1131_v52 = vld [vmem:[%s7007_s1 + $0x1278] sm:$0xff]  ;;  %v308_v9 = vld [vmem:[%s4696_s22 + $0x240] sm:$0xff] }
 0x1a6   : > { %4290 = vmatprep.subr.mxu1 %v1104_v61  ;;  %v3757_v4 = vadd.f32 %v3756_v34, %v3755_v32  ;;  %2760 = vmatprep.mubr.f32.mxu0 %v493_v2  ;;  %v307_v26 = vld [vmem:[%s4696_s22 + $0x238] sm:$0xff]  ;;  %v309_v32 = vld [vmem:[%s4696_s22 + $0x248] sm:$0xff] }
 0x1a7   : > { %2865 = vmatprep.mubr.f32.mxu1 %v495_v18  ;;  %4235 = vmatpush3.msra.mxu0 %v1056_v6  ;;  %v1918_v13 = vadd.f32 %v3701_v15, %v6382_v42  ;;  %v1054_v42 = vld [vmem:[%s7007_s1 + $0x1010] sm:$0xff]  ;;  %v1129_v15 = vld [vmem:[%s7007_s1 + $0x1268] sm:$0xff] }
 0x1a8   : > { %4291 = vmatpush3.msra.mxu1 %v1088_v3  ;;  %2761 = vmatmul.mubr.f32.gmra.mxu0 %v492_v55  ;;  %v3702_v21 = vpop.f32.mrf.mxu0  ;;  %v306_v3 = vld [vmem:[%s4696_s22 + $0x230] sm:$0xff] }
 0x1a9   : > { %2866 = vmatmul.mubr.f32.gmra.mxu1 %v494_v0  ;;  %v3758_v11 = vpop.f32.mrf.mxu1  ;;  %4236 = vmatprep.subr.mxu0 %v1071_v5  ;;  %v6644_v23 = vadd.f32 %v3757_v4, %v1918_v13  ;;  %v1145_v0 = vld [vmem:[%s7007_s1 + $0x12e8] sm:$0xff]  ;;  %v1144_v5 = vld [vmem:[%s7007_s1 + $0x12e0] sm:$0xff]  ;;  %v347_v13 = vld [vmem:[%s4696_s22 + $0x378] sm:$0xff] }
 0x1aa   : > { %4292 = vmatprep.subr.mxu1 %v1103_v47  ;;  %4237 = vmatpush3.msra.mxu0 %v1055_v28  ;;  %v3703_v10 = vpop.f32.mrf.mxu0 }
 0x1ab   : > { %4293 = vmatpush3.msra.mxu1 %v1087_v8  ;;  %v3759_v29 = vpop.f32.mrf.mxu1  ;;  %4238 = vmatprep.subr.mxu0 %v1070_v41  ;;  %v3704_v36 = vadd.f32 %v3703_v10, %v3702_v21  ;;  %v345_v8 = vld [vmem:[%s4696_s22 + $0x368] sm:$0xff]  ;;  %v1127_v10 = vld [vmem:[%s7007_s1 + $0x1258] sm:$0xff] }
 0x1ac   : > { %4294 = vmatprep.subr.mxu1 %v1102_v14  ;;  %v3760_v37 = vadd.f32 %v3759_v29, %v3758_v11  ;;  %2765 = vmatprep.mubr.f32.mxu0 %v531_v53  ;;  %v344_v11 = vld [vmem:[%s4696_s22 + $0x360] sm:$0xff]  ;;  %v346_v53 = vld [vmem:[%s4696_s22 + $0x370] sm:$0xff] }
 0x1ad   : > { %2870 = vmatprep.mubr.f32.mxu1 %v533_v27  ;;  %4239 = vmatpush3.msra.mxu0 %v1054_v42  ;;  %v1923_v54 = vadd.f32 %v3704_v36, %v6419_v56  ;;  %v1052_v56 = vld [vmem:[%s7007_s1 + $0x1000] sm:$0xff] }
 0x1ae   : > { %4295 = vmatpush3.msra.mxu1 %v1086_v24  ;;  %2766 = vmatmul.mubr.f32.gmra.mxu0 %v530_v19  ;;  %v3705_v20 = vpop.f32.mrf.mxu0  ;;  %v1143_v24 = vld [vmem:[%s7007_s1 + $0x12d8] sm:$0xff]  ;;  %v1142_v19 = vld [vmem:[%s7007_s1 + $0x12d0] sm:$0xff] }
 0x1af   : > { %2871 = vmatmul.mubr.f32.gmra.mxu1 %v532_v35  ;;  %v3761_v38 = vpop.f32.mrf.mxu1  ;;  %4240 = vmatprep.subr.mxu0 %v1069_v48  ;;  %v6677_v49 = vadd.f32 %v3760_v37, %v1923_v54  ;;  %v383_v37 = vld [vmem:[%s4696_s22 + $0x498] sm:$0xff]  ;;  %v385_v48 = vld [vmem:[%s4696_s22 + $0x4a8] sm:$0xff]  ;;  %v382_v54 = vld [vmem:[%s4696_s22 + $0x490] sm:$0xff] }
 0x1b0   : > { %4296 = vmatprep.subr.mxu1 %v1101_v44  ;;  %4241 = vmatpush3.msra.mxu0 %v1053_v25  ;;  %v3706_v17 = vpop.f32.mrf.mxu0 }
 0x1b1   : > { %4297 = vmatpush3.msra.mxu1 %v1085_v31  ;;  %v3762_v16 = vpop.f32.mrf.mxu1  ;;  %4242 = vmatprep.subr.mxu0 %v1068_v39  ;;  %v3707_v63 = vadd.f32 %v3706_v17, %v3705_v20  ;;  %v384_v39 = vld [vmem:[%s4696_s22 + $0x4a0] sm:$0xff] }
 0x1b2   : > { %4298 = vmatprep.subr.mxu1 %v1100_v12  ;;  %v3763_v57 = vadd.f32 %v3762_v16, %v3761_v38  ;;  %4243 = vmatpush3.msra.mxu0 %v1052_v56  ;;  %v1141_v38 = vld [vmem:[%s7007_s1 + $0x12c8] sm:$0xff] }
 0x1b3   : > { %2940 = vmatprep.mubr.f32.mxu0 %v269_v43  ;;  %4299 = vmatpush3.msra.mxu1 %v1084_v46  ;;  %v1928_v40 = vadd.f32 %v3707_v63, %v6450_v7  ;;  %v1130_v7 = vld [vmem:[%s7007_s1 + $0x1270] sm:$0xff]  ;;  %v1125_v56 = vld [vmem:[%s7007_s1 + $0x1248] sm:$0xff]  ;;  %v1140_v46 = vld [vmem:[%s7007_s1 + $0x12c0] sm:$0xff] }
 0x1b4   : > { %3045 = vmatprep.mubr.f32.mxu1 %v271_v33  ;;  %2941 = vmatmul.mubr.f32.vlgmr.msra.gmra.mxu0 %v268_v22  ;;  %v3796_v58 = vpop.f32.mrf.mxu0  ;;  %v421_v16 = vld [vmem:[%s4696_s22 + $0x5c8] sm:$0xff]  ;;  %v423_v22 = vld [vmem:[%s4696_s22 + $0x5d8] sm:$0xff] }
 0x1b5   : > { %3046 = vmatmul.mubr.f32.vlgmr.msra.gmra.mxu1 %v270_v50  ;;  %v3852_v61 = vpop.f32.mrf.mxu1  ;;  %4324 = vmatprep.subr.mxu0 %v1147_v51  ;;  %v6697_v2 = vadd.f32 %v3763_v57, %v1928_v40 }
 0x1b6   : > { %4380 = vmatprep.subr.mxu1 %v1147_v51  ;;  %4325 = vmatpush3.msra.mxu0 %v1131_v52  ;;  %v3797_v18 = vpop.f32.mrf.mxu0  ;;  %v420_v51 = vld [vmem:[%s4696_s22 + $0x5c0] sm:$0xff] }
 0x1b7   : > { %4396 = vmatpush3.msra.mxu1 %v1131_v52  ;;  %v3853_v6 = vpop.f32.mrf.mxu1  ;;  %4326 = vmatprep.subr.mxu0 %v1146_v59  ;;  %v3798_v34 = vadd.f32 %v3797_v18, %v3796_v58  ;;  %v422_v52 = vld [vmem:[%s4696_s22 + $0x5d0] sm:$0xff]  ;;  %v1139_v58 = vld [vmem:[%s7007_s1 + $0x12b8] sm:$0xff] }
 0x1b8   : > { %4381 = vmatprep.subr.mxu1 %v1146_v59  ;;  %v3854_v55 = vadd.f32 %v3853_v6, %v3852_v61  ;;  %2945 = vmatprep.mubr.f32.mxu0 %v307_v26  ;;  %v1123_v61 = vld [vmem:[%s7007_s1 + $0x1238] sm:$0xff] }
 0x1b9   : > { %3050 = vmatprep.mubr.f32.mxu1 %v309_v32  ;;  %4327 = vmatpush3.msra.mxu0 %v1130_v7  ;;  %v2103_v4 = vadd.f32 %v3798_v34, %v6487_v1  ;;  %v1128_v1 = vld [vmem:[%s7007_s1 + $0x1260] sm:$0xff]  ;;  %v1138_v32 = vld [vmem:[%s7007_s1 + $0x12b0] sm:$0xff]  ;;  %v459_v6 = vld [vmem:[%s4696_s22 + $0x6f8] sm:$0xff] }
 0x1ba   : > { %4397 = vmatpush3.msra.mxu1 %v1130_v7  ;;  %2946 = vmatmul.mubr.f32.gmra.mxu0 %v306_v3  ;;  %v3799_v47 = vpop.f32.mrf.mxu0  ;;  %v461_v3 = vld [vmem:[%s4696_s22 + $0x708] sm:$0xff] }
 0x1bb   : > { %3051 = vmatmul.mubr.f32.gmra.mxu1 %v308_v9  ;;  %v3855_v28 = vpop.f32.mrf.mxu1  ;;  %4328 = vmatprep.subr.mxu0 %v1145_v0  ;;  %v6716_v41 = vadd.f32 %v3854_v55, %v2103_v4 }
 0x1bc   : > { %4382 = vmatprep.subr.mxu1 %v1145_v0  ;;  %4329 = vmatpush3.msra.mxu0 %v1129_v15  ;;  %v3800_v14 = vpop.f32.mrf.mxu0  ;;  %v458_v0 = vld [vmem:[%s4696_s22 + $0x6f0] sm:$0xff] }
 0x1bd   : > { %4398 = vmatpush3.msra.mxu1 %v1129_v15  ;;  %v3856_v21 = vpop.f32.mrf.mxu1  ;;  %4330 = vmatprep.subr.mxu0 %v1144_v5  ;;  %v3801_v27 = vadd.f32 %v3800_v14, %v3799_v47  ;;  %v460_v15 = vld [vmem:[%s4696_s22 + $0x700] sm:$0xff]  ;;  %v1137_v47 = vld [vmem:[%s7007_s1 + $0x12a8] sm:$0xff] }
 0x1be   : > { %4383 = vmatprep.subr.mxu1 %v1144_v5  ;;  %v3857_v42 = vadd.f32 %v3856_v21, %v3855_v28  ;;  %2950 = vmatprep.mubr.f32.mxu0 %v345_v8  ;;  %v1121_v28 = vld [vmem:[%s7007_s1 + $0x1228] sm:$0xff] }
 0x1bf   : > { %3055 = vmatprep.mubr.f32.mxu1 %v347_v13  ;;  %4331 = vmatpush3.msra.mxu0 %v1128_v1  ;;  %v2108_v29 = vadd.f32 %v3801_v27, %v6518_v60  ;;  %v1126_v60 = vld [vmem:[%s7007_s1 + $0x1250] sm:$0xff]  ;;  %v1136_v13 = vld [vmem:[%s7007_s1 + $0x12a0] sm:$0xff]  ;;  %v497_v21 = vld [vmem:[%s4696_s22 + $0x828] sm:$0xff] }
 0x1c0   : > { %4399 = vmatpush3.msra.mxu1 %v1128_v1  ;;  %2951 = vmatmul.mubr.f32.gmra.mxu0 %v344_v11  ;;  %v3802_v35 = vpop.f32.mrf.mxu0  ;;  %v499_v11 = vld [vmem:[%s4696_s22 + $0x838] sm:$0xff] }
 0x1c1   : > { %3056 = vmatmul.mubr.f32.gmra.mxu1 %v346_v53  ;;  %v3858_v36 = vpop.f32.mrf.mxu1  ;;  %4332 = vmatprep.subr.mxu0 %v1143_v24  ;;  %v6735_v44 = vadd.f32 %v3857_v42, %v2108_v29 }
 0x1c2   : > { %4384 = vmatprep.subr.mxu1 %v1143_v24  ;;  %4333 = vmatpush3.msra.mxu0 %v1127_v10  ;;  %v3803_v25 = vpop.f32.mrf.mxu0  ;;  %v496_v24 = vld [vmem:[%s4696_s22 + $0x820] sm:$0xff] }
 0x1c3   : > { %4400 = vmatpush3.msra.mxu1 %v1127_v10  ;;  %v3859_v31 = vpop.f32.mrf.mxu1  ;;  %4334 = vmatprep.subr.mxu0 %v1142_v19  ;;  %v3804_v12 = vadd.f32 %v3803_v25, %v3802_v35  ;;  %v498_v10 = vld [vmem:[%s4696_s22 + $0x830] sm:$0xff]  ;;  %v1135_v35 = vld [vmem:[%s7007_s1 + $0x1298] sm:$0xff] }
 0x1c4   : > { %4385 = vmatprep.subr.mxu1 %v1142_v19  ;;  %v3860_v20 = vadd.f32 %v3859_v31, %v3858_v36  ;;  %2955 = vmatprep.mubr.f32.mxu0 %v383_v37  ;;  %v1119_v36 = vld [vmem:[%s7007_s1 + $0x1218] sm:$0xff] }
 0x1c5   : > { %3060 = vmatprep.mubr.f32.mxu1 %v385_v48  ;;  %4335 = vmatpush3.msra.mxu0 %v1126_v60  ;;  %v2113_v43 = vadd.f32 %v3804_v12, %v6551_v62  ;;  %v1124_v62 = vld [vmem:[%s7007_s1 + $0x1240] sm:$0xff]  ;;  %v1134_v48 = vld [vmem:[%s7007_s1 + $0x1290] sm:$0xff]  ;;  %v535_v31 = vld [vmem:[%s4696_s22 + $0x958] sm:$0xff] }
 0x1c6   : > { %4401 = vmatpush3.msra.mxu1 %v1126_v60  ;;  %2956 = vmatmul.mubr.f32.gmra.mxu0 %v382_v54  ;;  %v3805_v33 = vpop.f32.mrf.mxu0  ;;  %v537_v54 = vld [vmem:[%s4696_s22 + $0x968] sm:$0xff] }
 0x1c7   : > { %3061 = vmatmul.mubr.f32.gmra.mxu1 %v384_v39  ;;  %v3861_v17 = vpop.f32.mrf.mxu1  ;;  %4336 = vmatprep.subr.mxu0 %v1141_v38  ;;  %v6754_v50 = vadd.f32 %v3860_v20, %v2113_v43 }
 0x1c8   : > { %4386 = vmatprep.subr.mxu1 %v1141_v38  ;;  %4337 = vmatpush3.msra.mxu0 %v1125_v56  ;;  %v3806_v63 = vpop.f32.mrf.mxu0  ;;  %v534_v38 = vld [vmem:[%s4696_s22 + $0x950] sm:$0xff] }
 0x1c9   : > { %4402 = vmatpush3.msra.mxu1 %v1125_v56  ;;  %v3862_v57 = vpop.f32.mrf.mxu1  ;;  %4338 = vmatprep.subr.mxu0 %v1140_v46  ;;  %v3807_v40 = vadd.f32 %v3806_v63, %v3805_v33  ;;  %v536_v56 = vld [vmem:[%s4696_s22 + $0x960] sm:$0xff]  ;;  %v1133_v33 = vld [vmem:[%s7007_s1 + $0x1288] sm:$0xff] }
 0x1ca   : > { %4387 = vmatprep.subr.mxu1 %v1140_v46  ;;  %v3863_v59 = vadd.f32 %v3862_v57, %v3861_v17  ;;  %2960 = vmatprep.mubr.f32.mxu0 %v421_v16  ;;  %v1117_v17 = vld [vmem:[%s7007_s1 + $0x1208] sm:$0xff]  ;;  %v1116_v57 = vld [vmem:[%s7007_s1 + $0x1200] sm:$0xff] }
 0x1cb   : > { %3065 = vmatprep.mubr.f32.mxu1 %v423_v22  ;;  %4339 = vmatpush3.msra.mxu0 %v1124_v62  ;;  %v2118_v26 = vadd.f32 %v3807_v40, %v6582_v45  ;;  %v1122_v45 = vld [vmem:[%s7007_s1 + $0x1230] sm:$0xff]  ;;  %v1132_v22 = vld [vmem:[%s7007_s1 + $0x1280] sm:$0xff] }
 0x1cc   : > { %4403 = vmatpush3.msra.mxu1 %v1124_v62  ;;  %2961 = vmatmul.mubr.f32.gmra.mxu0 %v420_v51  ;;  %v3808_v7 = vpop.f32.mrf.mxu0 }
 0x1cd   : > { %3066 = vmatmul.mubr.f32.gmra.mxu1 %v422_v52  ;;  %v3864_v18 = vpop.f32.mrf.mxu1  ;;  %4340 = vmatprep.subr.mxu0 %v1139_v58  ;;  %v6773_v9 = vadd.f32 %v3863_v59, %v2118_v26  ;;  %v425_v52 = vld [vmem:[%s4696_s22 + $0x5e8] sm:$0xff] }
 0x1ce   : > { %4388 = vmatprep.subr.mxu1 %v1139_v58  ;;  %4341 = vmatpush3.msra.mxu0 %v1123_v61  ;;  %v3809_v34 = vpop.f32.mrf.mxu0  ;;  %v272_v58 = vld [vmem:[%s4696_s22 + $0x120] sm:$0xff] }
 0x1cf   : > { %4404 = vmatpush3.msra.mxu1 %v1123_v61  ;;  %v3865_v55 = vpop.f32.mrf.mxu1  ;;  %4342 = vmatprep.subr.mxu0 %v1138_v32  ;;  %v3810_v4 = vadd.f32 %v3809_v34, %v3808_v7  ;;  %v424_v61 = vld [vmem:[%s4696_s22 + $0x5e0] sm:$0xff]  ;;  %v311_v7 = vld [vmem:[%s4696_s22 + $0x258] sm:$0xff]  ;;  %v310_v34 = vld [vmem:[%s4696_s22 + $0x250] sm:$0xff] }
 0x1d0   : > { %4389 = vmatprep.subr.mxu1 %v1138_v32  ;;  %v3866_v5 = vadd.f32 %v3865_v55, %v3864_v18  ;;  %2965 = vmatprep.mubr.f32.mxu0 %v459_v6  ;;  %v463_v18 = vld [vmem:[%s4696_s22 + $0x718] sm:$0xff]  ;;  %v462_v55 = vld [vmem:[%s4696_s22 + $0x710] sm:$0xff] }
 0x1d1   : > { %3070 = vmatprep.mubr.f32.mxu1 %v461_v3  ;;  %4343 = vmatpush3.msra.mxu0 %v1122_v45  ;;  %v2123_v8 = vadd.f32 %v3810_v4, %v6613_v30  ;;  %v1120_v30 = vld [vmem:[%s7007_s1 + $0x1220] sm:$0xff]  ;;  %v501_v4 = vld [vmem:[%s4696_s22 + $0x848] sm:$0xff] }
 0x1d2   : > { %4405 = vmatpush3.msra.mxu1 %v1122_v45  ;;  %2966 = vmatmul.mubr.f32.gmra.mxu0 %v458_v0  ;;  %v3811_v1 = vpop.f32.mrf.mxu0 }
 0x1d3   : > { %3071 = vmatmul.mubr.f32.gmra.mxu1 %v460_v15  ;;  %v3867_v14 = vpop.f32.mrf.mxu1  ;;  %4344 = vmatprep.subr.mxu0 %v1137_v47  ;;  %v6792_v53 = vadd.f32 %v3866_v5, %v2123_v8  ;;  %v349_v15 = vld [vmem:[%s4696_s22 + $0x388] sm:$0xff]  ;;  %v348_v8 = vld [vmem:[%s4696_s22 + $0x380] sm:$0xff] }
 0x1d4   : > { %4390 = vmatprep.subr.mxu1 %v1137_v47  ;;  %4345 = vmatpush3.msra.mxu0 %v1121_v28  ;;  %v3812_v27 = vpop.f32.mrf.mxu0 }
 0x1d5   : > { %4406 = vmatpush3.msra.mxu1 %v1121_v28  ;;  %v3868_v42 = vpop.f32.mrf.mxu1  ;;  %4346 = vmatprep.subr.mxu0 %v1136_v13  ;;  %v3813_v29 = vadd.f32 %v3812_v27, %v3811_v1 }
 0x1d6   : > { %4391 = vmatprep.subr.mxu1 %v1136_v13  ;;  %v3869_v19 = vadd.f32 %v3868_v42, %v3867_v14  ;;  %2970 = vmatprep.mubr.f32.mxu0 %v497_v21  ;;  %v500_v13 = vld [vmem:[%s4696_s22 + $0x840] sm:$0xff]  ;;  %v387_v14 = vld [vmem:[%s4696_s22 + $0x4b8] sm:$0xff] }
 0x1d7   : > { %3075 = vmatprep.mubr.f32.mxu1 %v499_v11  ;;  %4347 = vmatpush3.msra.mxu0 %v1120_v30  ;;  %v2128_v37 = vadd.f32 %v3813_v29, %v6644_v23  ;;  %v1118_v23 = vld [vmem:[%s7007_s1 + $0x1210] sm:$0xff]  ;;  %v539_v21 = vld [vmem:[%s4696_s22 + $0x978] sm:$0xff] }
 0x1d8   : > { %4407 = vmatpush3.msra.mxu1 %v1120_v30  ;;  %2971 = vmatmul.mubr.f32.gmra.mxu0 %v496_v24  ;;  %v3814_v60 = vpop.f32.mrf.mxu0  ;;  %v538_v29 = vld [vmem:[%s4696_s22 + $0x970] sm:$0xff] }
 0x1d9   : > { %3076 = vmatmul.mubr.f32.gmra.mxu1 %v498_v10  ;;  %v3870_v25 = vpop.f32.mrf.mxu1  ;;  %4348 = vmatprep.subr.mxu0 %v1135_v35  ;;  %v6811_v39 = vadd.f32 %v3869_v19, %v2128_v37  ;;  %v386_v10 = vld [vmem:[%s4696_s22 + $0x4b0] sm:$0xff] }
 0x1da   : > { %4392 = vmatprep.subr.mxu1 %v1135_v35  ;;  %4349 = vmatpush3.msra.mxu0 %v1119_v36  ;;  %v3815_v12 = vpop.f32.mrf.mxu0 }
 0x1db   : > { %4408 = vmatpush3.msra.mxu1 %v1119_v36  ;;  %v3871_v20 = vpop.f32.mrf.mxu1  ;;  %4350 = vmatprep.subr.mxu0 %v1134_v48  ;;  %v3816_v43 = vadd.f32 %v3815_v12, %v3814_v60 }
 0x1dc   : > { %4393 = vmatprep.subr.mxu1 %v1134_v48  ;;  %v3872_v46 = vadd.f32 %v3871_v20, %v3870_v25  ;;  %2975 = vmatprep.mubr.f32.mxu0 %v535_v31 }
 0x1dd   : > { %3080 = vmatprep.mubr.f32.mxu1 %v537_v54  ;;  %4351 = vmatpush3.msra.mxu0 %v1118_v23  ;;  %v2133_v16 = vadd.f32 %v3816_v43, %v6677_v49  ;;  %v273_v49 = vld [vmem:[%s4696_s22 + $0x128] sm:$0xff] }
 0x1de   : > { %4409 = vmatpush3.msra.mxu1 %v1118_v23  ;;  %2976 = vmatmul.mubr.f32.gmra.mxu0 %v534_v38  ;;  %v3817_v62 = vpop.f32.mrf.mxu0 }
 0x1df   : > { %3081 = vmatmul.mubr.f32.gmra.mxu1 %v536_v56  ;;  %v3873_v63 = vpop.f32.mrf.mxu1  ;;  %4352 = vmatprep.subr.mxu0 %v1133_v33  ;;  %v6831_v51 = vadd.f32 %v3872_v46, %v2133_v16 }
 0x1e0   : > { %4394 = vmatprep.subr.mxu1 %v1133_v33  ;;  %4353 = vmatpush3.msra.mxu0 %v1117_v17  ;;  %v3818_v40 = vpop.f32.mrf.mxu0 }
 0x1e1   : > { %4410 = vmatpush3.msra.mxu1 %v1117_v17  ;;  %v3874_v59 = vpop.f32.mrf.mxu1  ;;  %4354 = vmatprep.subr.mxu0 %v1132_v22  ;;  %v3819_v26 = vadd.f32 %v3818_v40, %v3817_v62 }
 0x1e2   : > { %4395 = vmatprep.subr.mxu1 %v1132_v22  ;;  %v3875_v32 = vadd.f32 %v3874_v59, %v3873_v63  ;;  %4355 = vmatpush3.msra.mxu0 %v1116_v57 }
 0x1e3   : > { %4411 = vmatpush3.msra.mxu1 %v1116_v57  ;;  %3150 = vmatprep.mubr.f32.mxu0 %v273_v49  ;;  %v2138_v6 = vadd.f32 %v3819_v26, %v6697_v2 }
 0x1e4   : > { %3170 = vmatprep.mubr.f32.mxu1 %v425_v52  ;;  %3151 = vmatmul.mubr.f32.vlgmr.msra.gmra.mxu0 %v272_v58  ;;  %v3908_v3 = vpop.f32.mrf.mxu0 }
 0x1e5   : > { %3171 = vmatmul.mubr.f32.vlgmr.msra.gmra.mxu1 %v424_v61  ;;  %v3964_v45 = vpop.f32.mrf.mxu1  ;;  %3155 = vmatprep.mubr.f32.mxu0 %v311_v7  ;;  %v6842_v0 = vadd.f32 %v3875_v32, %v2138_v6 }
 0x1e6   : > { %3175 = vmatprep.mubr.f32.mxu1 %v463_v18  ;;  %v3909_v5 = vpop.f32.mrf.mxu0 }
 0x1e7   : > { %v3965_v47 = vpop.f32.mrf.mxu1  ;;  %v3910_v28 = vadd.f32 %v3909_v5, %v3908_v3 }
 0x1e8   : > { %v3966_v2 = vadd.f32 %v3965_v47, %v3964_v45  ;;  %3156 = vmatmul.mubr.f32.gmra.mxu0 %v310_v34 }
 0x1e9   : > { %3176 = vmatmul.mubr.f32.gmra.mxu1 %v462_v55  ;;  %3160 = vmatprep.mubr.f32.mxu0 %v349_v15  ;;  %v2313_v1 = vadd.f32 %v3910_v28, %v6716_v41 }
 0x1ea   : > { %3180 = vmatprep.mubr.f32.mxu1 %v501_v4  ;;  %v3911_v11 = vpop.f32.mrf.mxu0 }
 0x1eb   : > { %v3967_v30 = vpop.f32.mrf.mxu1  ;;  %v6851_v27 = vadd.f32 %v3966_v2, %v2313_v1 }
 0x1ec   : > { %3161 = vmatmul.mubr.f32.gmra.mxu0 %v348_v8  ;;  %v3912_v42 = vpop.f32.mrf.mxu0 }
 0x1ed   : > { %3181 = vmatmul.mubr.f32.gmra.mxu1 %v500_v13  ;;  %v3968_v24 = vpop.f32.mrf.mxu1  ;;  %3165 = vmatprep.mubr.f32.mxu0 %v387_v14  ;;  %v3913_v19 = vadd.f32 %v3912_v42, %v3911_v11 }
 0x1ee   : > { %3185 = vmatprep.mubr.f32.mxu1 %v539_v21  ;;  %v3969_v35 = vadd.f32 %v3968_v24, %v3967_v30 }
 0x1ef   : > { %v2318_v36 = vadd.f32 %v3913_v19, %v6735_v44 }
 0x1f0   : > { %3166 = vmatmul.mubr.f32.gmra.mxu0 %v386_v10  ;;  %v3914_v41 = vpop.f32.mrf.mxu0 }
 0x1f1   : > { %3186 = vmatmul.mubr.f32.gmra.mxu1 %v538_v29  ;;  %v3970_v37 = vpop.f32.mrf.mxu1  ;;  %v2423_v48 = vadd.f32 %v3969_v35, %v2318_v36 }
 0x1f2   : > { %v3915_v60 = vpop.f32.mrf.mxu0 }
 0x1f3   : > { %v3971_v25 = vpop.f32.mrf.mxu1  ;;  %v3916_v31 = vadd.f32 %v3915_v60, %v3914_v41 }
 0x1f4   : > { %v3972_v54 = vadd.f32 %v3971_v25, %v3970_v37 }
 0x1f5   : > { %v2323_v23 = vadd.f32 %v3916_v31, %v6754_v50 }
 0x1f6   : > { %v3917_v12 = vpop.f32.mrf.mxu0 }
 0x1f7   : > { %v3973_v20 = vpop.f32.mrf.mxu1  ;;  %v2428_v38 = vadd.f32 %v3972_v54, %v2323_v23 }
 0x1f8   : > { %v3918_v56 = vpop.f32.mrf.mxu0 }
 0x1f9   : > { %v3974_v43 = vpop.f32.mrf.mxu1  ;;  %v3919_v46 = vadd.f32 %v3918_v56, %v3917_v12 }
 0x1fa   : > { %v3975_v33 = vadd.f32 %v3974_v43, %v3973_v20 }
 0x1fb   : > { %v2328_v44 = vadd.f32 %v3919_v46, %v6773_v9 }
 0x1fc   : > { %v3920_v17 = vpop.f32.mrf.mxu0 }
 0x1fd   : > { %v3976_v16 = vpop.f32.mrf.mxu1  ;;  %v2433_v22 = vadd.f32 %v3975_v33, %v2328_v44 }
 0x1fe   : > { %v3921_v62 = vpop.f32.mrf.mxu0 }
 0x1ff   : > { %v3977_v63 = vpop.f32.mrf.mxu1  ;;  %v3922_v57 = vadd.f32 %v3921_v62, %v3920_v17 }
 0x200   : > { %v3978_v49 = vadd.f32 %v3977_v63, %v3976_v16 }
 0x201   : > { %v2333_v52 = vadd.f32 %v3922_v57, %v6792_v53 }
 0x202   : > { %v3923_v40 = vpop.f32.mrf.mxu0 }
 0x203   : > { %v3979_v50 = vpop.f32.mrf.mxu1  ;;  %v2438_v59 = vadd.f32 %v3978_v49, %v2333_v52 }
 0x204   : > { %v3924_v58 = vpop.f32.mrf.mxu0 }
 0x205   : > { %v3980_v61 = vpop.f32.mrf.mxu1  ;;  %v3925_v26 = vadd.f32 %v3924_v58, %v3923_v40 }
 0x206   : > { %v3981_v32 = vadd.f32 %v3980_v61, %v3979_v50 }
 0x207   : > { %v2338_v7 = vadd.f32 %v3925_v26, %v6811_v39 }
 0x208   : > { %v3926_v18 = vpop.f32.mrf.mxu0 }
 0x209   : > { %v3982_v9 = vpop.f32.mrf.mxu1  ;;  %v2443_v6 = vadd.f32 %v3981_v32, %v2338_v7 }
 0x20a   : > { %v3927_v3 = vpop.f32.mrf.mxu0 }
 0x20b   : > { %v3983_v45 = vpop.f32.mrf.mxu1  ;;  %v3928_v34 = vadd.f32 %v3927_v3, %v3926_v18 }
 0x20c   : > { %v3984_v55 = vadd.f32 %v3983_v45, %v3982_v9 }
 0x20d   : > { %v2343_v15 = vadd.f32 %v3928_v34, %v6831_v51 }
 0x20e   : > { %v3929_v4 = vpop.f32.mrf.mxu0 }
 0x20f   : > { %v3985_v53 = vpop.f32.mrf.mxu1  ;;  %v2448_v5 = vadd.f32 %v3984_v55, %v2343_v15 }
 0x210   : > { %v3930_v47 = vpop.f32.mrf.mxu0 }
 0x211   : > { %v3986_v28 = vpop.f32.mrf.mxu1  ;;  %v3931_v2 = vadd.f32 %v3930_v47, %v3929_v4 }
 0x212   : > { %v3987_v8 = vadd.f32 %v3986_v28, %v3985_v53 }
 0x213   : > { %v2348_v13 = vadd.f32 %v3931_v2, %v6842_v0 }
 0x214   : > { %v4020_v1 = vpop.f32.mrf.mxu0 }
 0x215   : > { %v4076_v39 = vpop.f32.mrf.mxu1  ;;  %v2453_v14 = vadd.f32 %v3987_v8, %v2348_v13 }
 0x216   : > { %v4021_v21 = vpop.f32.mrf.mxu0 }
 0x217   : > { %v4077_v11 = vpop.f32.mrf.mxu1  ;;  %v4022_v30 = vadd.f32 %v4021_v21, %v4020_v1 }
 0x218   : > { %v4078_v42 = vadd.f32 %v4077_v11, %v4076_v39 }
 0x219   : > { %v2523_v24 = vadd.f32 %v4022_v30, %v6851_v27 }
 0x21a   : > { %v4023_v10 = vpop.f32.mrf.mxu0 }
 0x21b   : > { %v4079_v51 = vpop.f32.mrf.mxu1  ;;  %v6863_v29 = vadd.f32 %v4078_v42, %v2523_v24 }
 0x21c   : > { %v4024_v19 = vpop.f32.mrf.mxu0 }
 0x21d   : > { %v4080_v35 = vpop.f32.mrf.mxu1  ;;  %v4025_v36 = vadd.f32 %v4024_v19, %v4023_v10 }
 0x21e   : > { %v4081_v41 = vadd.f32 %v4080_v35, %v4079_v51 }
 0x21f   : > { %v2528_v37 = vadd.f32 %v4025_v36, %v2423_v48 }
 0x220   : > { %v4026_v60 = vpop.f32.mrf.mxu0 }
 0x221   : > { %v4082_v0 = vpop.f32.mrf.mxu1  ;;  %v6865_v25 = vadd.f32 %v4081_v41, %v2528_v37 }
 0x222   : > { %v4027_v31 = vpop.f32.mrf.mxu0 }
 0x223   : > { %v4083_v54 = vpop.f32.mrf.mxu1  ;;  %v4028_v23 = vadd.f32 %v4027_v31, %v4026_v60 }
 0x224   : > { %v4084_v12 = vadd.f32 %v4083_v54, %v4082_v0 }
 0x225   : > { %v2533_v20 = vadd.f32 %v4028_v23, %v2428_v38 }
 0x226   : > { %v4029_v56 = vpop.f32.mrf.mxu0 }
 0x227   : > { %v4085_v27 = vpop.f32.mrf.mxu1  ;;  %v6867_v43 = vadd.f32 %v4084_v12, %v2533_v20 }
 0x228   : > { %v4030_v46 = vpop.f32.mrf.mxu0 }
 0x229   : > { %v4086_v33 = vpop.f32.mrf.mxu1  ;;  %v4031_v44 = vadd.f32 %v4030_v46, %v4029_v56 }
 0x22a   : > { %v4087_v17 = vadd.f32 %v4086_v33, %v4085_v27 }
 0x22b   : > { %v2538_v16 = vadd.f32 %v4031_v44, %v2433_v22 }
 0x22c   : > { %v4032_v62 = vpop.f32.mrf.mxu0 }
 0x22d   : > { %v4088_v48 = vpop.f32.mrf.mxu1  ;;  %v6869_v63 = vadd.f32 %v4087_v17, %v2538_v16 }
 0x22e   : > { %v4033_v57 = vpop.f32.mrf.mxu0 }
 0x22f   : > { %7011 = vst [vmem:[#allocation2_spill] sm:$0xff] %v6869_v63  ;;  %v4089_v49 = vpop.f32.mrf.mxu1  ;;  %v4034_v52 = vadd.f32 %v4033_v57, %v4032_v62 }
 0x230   : > { %v4090_v40 = vadd.f32 %v4089_v49, %v4088_v48 }
 0x231   : > { %v2543_v50 = vadd.f32 %v4034_v52, %v2438_v59 }
 0x232   : > { %v4035_v58 = vpop.f32.mrf.mxu0 }
 0x233   : > { %v4091_v38 = vpop.f32.mrf.mxu1  ;;  %v6871_v61 = vadd.f32 %v4090_v40, %v2543_v50 }
 0x234   : > { %v4036_v26 = vpop.f32.mrf.mxu0 }
 0x235   : > { %v4092_v32 = vpop.f32.mrf.mxu1  ;;  %v4037_v7 = vadd.f32 %v4036_v26, %v4035_v58 }
 0x236   : > { %v4093_v18 = vadd.f32 %v4092_v32, %v4091_v38 }
 0x237   : > { %v2548_v9 = vadd.f32 %v4037_v7, %v2443_v6 }
 0x238   : > { %v4038_v3 = vpop.f32.mrf.mxu0 }
 0x239   : > { %v4094_v22 = vpop.f32.mrf.mxu1  ;;  %v6873_v45 = vadd.f32 %v4093_v18, %v2548_v9 }
 0x23a   : > { %v4039_v34 = vpop.f32.mrf.mxu0 }
 0x23b   : > { %v4095_v55 = vpop.f32.mrf.mxu1  ;;  %v4040_v15 = vadd.f32 %v4039_v34, %v4038_v3 }
 0x23c   : > { %v4096_v4 = vadd.f32 %v4095_v55, %v4094_v22 }
 0x23d   : > { %v2553_v53 = vadd.f32 %v4040_v15, %v2448_v5 }
 0x23e   : > { %v4041_v47 = vpop.f32.mrf.mxu0 }
 0x23f   : > { %v4097_v59 = vpop.f32.mrf.mxu1  ;;  %v6875_v28 = vadd.f32 %v4096_v4, %v2553_v53 }
 0x240   : > { %v4042_v2 = vpop.f32.mrf.mxu0 }
 0x241   : > { %v4098_v8 = vpop.f32.mrf.mxu1  ;;  %v4043_v13 = vadd.f32 %v4042_v2, %v4041_v47 }
 0x242   : > { %v4099_v1 = vadd.f32 %v4098_v8, %v4097_v59 }
 0x243   : > { %v2558_v39 = vadd.f32 %v4043_v13, %v2453_v14 }
 0x244   : > { %v4132_v21 = vpop.f32.mrf.mxu0 }
 0x245   : > { %v6877_v6 = vpop.f32.mrf.mxu1  ;;  %v6879_v11 = vadd.f32 %v4099_v1, %v2558_v39 }
 0x246   : > { %v4133_v30 = vpop.f32.mrf.mxu0 }
 0x247   : > { %7012 = vst [vmem:[#allocation3_spill] sm:$0xff] %v6879_v11  ;;  %v6881_v42 = vpop.f32.mrf.mxu1 }
 0x248   : > { %v4190_v63 = vadd.f32 %v6881_v42, %v6877_v6 }
 0x24a   : > { %v4135_v24 = vpop.f32.mrf.mxu0 }
 0x24b   : > { %v6883_v10 = vpop.f32.mrf.mxu1 }
 0x24c   : > { %v4136_v5 = vpop.f32.mrf.mxu0 }
 0x24d   : > { %v6885_v51 = vpop.f32.mrf.mxu1 }
 0x250   : > { %v4138_v19 = vpop.f32.mrf.mxu0 }
 0x251   : > { %v6887_v35 = vpop.f32.mrf.mxu1 }
 0x252   : > { %v4139_v36 = vpop.f32.mrf.mxu0 }
 0x253   : > { %v6889_v41 = vpop.f32.mrf.mxu1 }
 0x254   : > { %v4196_v6 = vadd.f32 %v6889_v41, %v6887_v35 }
 0x256   : > { %v6891_v14 = vpop.f32.mrf.mxu0 }
 0x257   : > { %v6893_v37 = vpop.f32.mrf.mxu1 }
 0x258   : > { %v6895_v60 = vpop.f32.mrf.mxu0 }
 0x259   : > { %v6897_v0 = vpop.f32.mrf.mxu1 }
 0x25a   : > { %v4199_v35 = vadd.f32 %v6897_v0, %v6893_v37  ;;  %v7028_v37 = vld [vmem:[#allocation2_spill] sm:$0xff] }
 0x25c   : > { %v4144_v31 = vpop.f32.mrf.mxu0 }
 0x25d   : > { %v4200_v54 = vpop.f32.mrf.mxu1 }
 0x25e   : > { %v4145_v23 = vpop.f32.mrf.mxu0 }
 0x25f   : > { %v4201_v12 = vpop.f32.mrf.mxu1 }
 0x262   : > { %v4147_v20 = vpop.f32.mrf.mxu0 }
 0x263   : > { %v4203_v56 = vpop.f32.mrf.mxu1 }
 0x264   : > { %v4148_v27 = vpop.f32.mrf.mxu0 }
 0x265   : > { %v4204_v46 = vpop.f32.mrf.mxu1 }
 0x268   : > { %v4150_v33 = vpop.f32.mrf.mxu0 }
 0x269   : > { %v6899_v44 = vpop.f32.mrf.mxu1 }
 0x26a   : > { %v4151_v17 = vpop.f32.mrf.mxu0 }
 0x26b   : > { %v6901_v16 = vpop.f32.mrf.mxu1 }
 0x26c   : > { %v4208_v41 = vadd.f32 %v6901_v16, %v6899_v44 }
 0x26e   : > { %v6903_v62 = vpop.f32.mrf.mxu0 }
 0x26f   : > { %v6905_v48 = vpop.f32.mrf.mxu1 }
 0x270   : > { %7013 = vst [vmem:[#allocation4_spill] sm:$0xff] %v6905_v48  ;;  %v6907_v57 = vpop.f32.mrf.mxu0 }
 0x271   : > { %7014 = vst [vmem:[#allocation5_spill] sm:$0xff] %v6907_v57  ;;  %v6909_v49 = vpop.f32.mrf.mxu1 }
 0x272   : > { %7015 = vst [vmem:[#allocation6_spill] sm:$0xff] %v6909_v49 }
 0x274   : > { %v4244_v52 = vpop.f32.mrf.mxu0 }
 0x275   : > { %v4300_v40 = vpop.f32.mrf.mxu1 }
 0x276   : > { %v4245_v50 = vpop.f32.mrf.mxu0 }
 0x277   : > { %v4301_v58 = vpop.f32.mrf.mxu1 }
 0x27a   : > { %v4247_v38 = vpop.f32.mrf.mxu0 }
 0x27b   : > { %v6911_v26 = vpop.f32.mrf.mxu1 }
 0x27c   : > { %7016 = vst [vmem:[#allocation7_spill] sm:$0xff] %v6911_v26  ;;  %v4248_v32 = vpop.f32.mrf.mxu0 }
 0x27d   : > { %v6913_v7 = vpop.f32.mrf.mxu1 }
 0x27e   : > { %7017 = vst [vmem:[#allocation8_spill] sm:$0xff] %v6913_v7  ;;  %v4149_v7 = vadd.f32 %v4148_v27, %v4147_v20  ;;  %v4205_v20 = vadd.f32 %v4204_v46, %v4203_v56  ;;  %v4249_v27 = vadd.f32 %v4248_v32, %v4247_v38  ;;  %v7026_v56 = vld [vmem:[#allocation5_spill] sm:$0xff] }
 0x280   : > { %v6915_v18 = vpop.f32.mrf.mxu0 }
 0x281   : > { %7018 = vst [vmem:[#allocation9_spill] sm:$0xff] %v6915_v18  ;;  %v6917_v9 = vpop.f32.mrf.mxu1  ;;  %v4246_v18 = vadd.f32 %v4245_v50, %v4244_v52  ;;  %v4302_v52 = vadd.f32 %v4301_v58, %v4300_v40 }
 0x282   : > { %7019 = vst [vmem:[#allocation10_spill] sm:$0xff] %v6917_v9  ;;  %v4251_v3 = vpop.f32.mrf.mxu0  ;;  %v4134_v9 = vadd.f32 %v4133_v30, %v4132_v21 }
 0x283   : > { %v6919_v22 = vpop.f32.mrf.mxu1  ;;  %v7029_v16 = vld [vmem:[#allocation7_spill] sm:$0xff] }
 0x284   : > { %7020 = vst [vmem:[#allocation11_spill] sm:$0xff] %v6919_v22  ;;  %v4146_v22 = vadd.f32 %v4145_v23, %v4144_v31  ;;  %v4202_v23 = vadd.f32 %v4201_v12, %v4200_v54 }
 0x286   : > { %v6921_v34 = vpop.f32.mrf.mxu0  ;;  %v2753_v26 = vadd.f32 %v4146_v22, %v6871_v61  ;;  %v4193_v61 = vadd.f32 %v6885_v51, %v6883_v10 }
 0x287   : > { %7021 = vst [vmem:[#allocation12_spill] sm:$0xff] %v6921_v34  ;;  %v6923_v55 = vpop.f32.mrf.mxu1 }
 0x288   : > { %7022 = vst [vmem:[#allocation13_spill] sm:$0xff] %v6923_v55  ;;  %v6925_v15 = vpop.f32.mrf.mxu0  ;;  %v4137_v55 = vadd.f32 %v4136_v5, %v4135_v24  ;;  %v2758_v5 = vadd.f32 %v4149_v7, %v6873_v45  ;;  %v2858_v42 = vadd.f32 %v4202_v23, %v2753_v26  ;;  %v4143_v45 = vadd.f32 %v6895_v60, %v6891_v14  ;;  %v7027_v14 = vld [vmem:[#allocation9_spill] sm:$0xff] }
 0x289   : > { %7023 = vst [vmem:[#allocation14_spill] sm:$0xff] %v6925_v15  ;;  %v6927_v4 = vpop.f32.mrf.mxu1  ;;  %v4140_v15 = vadd.f32 %v4139_v36, %v4138_v19  ;;  %v4252_v60 = vadd.f32 %v4251_v3, %v7027_v14 }
 0x28a   : > { %7024 = vst [vmem:[#allocation15_spill] sm:$0xff] %v6927_v4  ;;  %v2733_v4 = vadd.f32 %v4134_v9, %v6863_v29  ;;  %v2738_v30 = vadd.f32 %v4137_v55, %v6865_v25  ;;  %v4152_v29 = vadd.f32 %v4151_v17, %v4150_v33  ;;  %v2863_v33 = vadd.f32 %v4205_v20, %v2758_v5 }
 0x28b   : > { %v2743_v31 = vadd.f32 %v4140_v15, %v6867_v43  ;;  %v2748_v0 = vadd.f32 %v4143_v45, %v7028_v37  ;;  %v7032_v15 = vld [vmem:[#allocation4_spill] sm:$0xff]  ;;  %v7037_v20 = vld [vmem:[#allocation11_spill] sm:$0xff] }
 0x28c   : > { %v4256_v53 = vpop.f32.mrf.mxu0  ;;  %v2838_v24 = vadd.f32 %v4190_v63, %v2733_v4  ;;  %v2843_v54 = vadd.f32 %v4193_v61, %v2738_v30  ;;  %v2763_v17 = vadd.f32 %v4152_v29, %v6875_v28  ;;  %v7033_v4 = vld [vmem:[#allocation6_spill] sm:$0xff] }
 0x28d   : > { %v4312_v47 = vpop.f32.mrf.mxu1  ;;  %v2848_v12 = vadd.f32 %v4196_v6, %v2743_v31  ;;  %v2853_v6 = vadd.f32 %v4199_v35, %v2748_v0 }
 0x28e   : > { %v4257_v59 = vpop.f32.mrf.mxu0  ;;  %v2943_v25 = vadd.f32 %v4246_v18, %v2838_v24  ;;  %v2948_v38 = vadd.f32 %v4249_v27, %v2843_v54  ;;  %v2868_v44 = vadd.f32 %v4208_v41, %v2763_v17 }
 0x28f   : > { %v4313_v2 = vpop.f32.mrf.mxu1 }
 0x290   : > { %v4314_v46 = vadd.f32 %v4313_v2, %v4312_v47  ;;  %v3048_v50 = vadd.f32 %v4302_v52, %v2943_v25  ;;  %v7035_v30 = vld [vmem:[#allocation14_spill] sm:$0xff] }
 0x292   : > { %v4259_v8 = vpop.f32.mrf.mxu0 }
 0x293   : > { %v4315_v13 = vpop.f32.mrf.mxu1 }
 0x294   : > { %v4260_v1 = vpop.f32.mrf.mxu0 }
 0x295   : > { %v4316_v39 = vpop.f32.mrf.mxu1  ;;  %v4261_v43 = vadd.f32 %v4260_v1, %v4259_v8  ;;  %v2953_v8 = vadd.f32 %v4252_v60, %v2848_v12  ;;  %v7034_v1 = vld [vmem:[#allocation12_spill] sm:$0xff] }
 0x296   : > { %v4317_v3 = vadd.f32 %v4316_v39, %v4315_v13  ;;  %v4255_v31 = vadd.f32 %v7035_v30, %v7034_v1 }
 0x297   : > { %v2968_v26 = vadd.f32 %v4261_v43, %v2863_v33 }
 0x298   : > { %v4262_v49 = vpop.f32.mrf.mxu0  ;;  %v2958_v33 = vadd.f32 %v4255_v31, %v2853_v6 }
 0x299   : > { %v6929_v48 = vpop.f32.mrf.mxu1  ;;  %v3073_v23 = vadd.f32 %v4317_v3, %v2968_v26 }
 0x29a   : > { %v4263_v34 = vpop.f32.mrf.mxu0 }
 0x29b   : > { %v6931_v11 = vpop.f32.mrf.mxu1  ;;  %v4264_v32 = vadd.f32 %v4263_v34, %v4262_v49  ;;  %v7031_v49 = vld [vmem:[#allocation3_spill] sm:$0xff] }
 0x29c   : > { %7025 = vst [vmem:[#allocation16_spill] sm:$0xff] %v6931_v11  ;;  %v4258_v11 = vadd.f32 %v4257_v59, %v4256_v53  ;;  %v4211_v53 = vadd.f32 %v7033_v4, %v7032_v15 }
 0x29d   : > { %v2973_v29 = vadd.f32 %v4264_v32, %v2868_v44 }
 0x29e   : > { %v4265_v57 = vpop.f32.mrf.mxu0  ;;  %v2963_v63 = vadd.f32 %v4258_v11, %v2858_v42  ;;  %v4155_v11 = vadd.f32 %v7026_v56, %v6903_v62  ;;  %v7030_v62 = vld [vmem:[#allocation8_spill] sm:$0xff]  ;;  %v7036_v42 = vld [vmem:[#allocation10_spill] sm:$0xff] }
 0x29f   : > { %v6937_v21 = vpop.f32.mrf.mxu1  ;;  %v4305_v9 = vadd.f32 %v7030_v62, %v7029_v16  ;;  %v4308_v25 = vadd.f32 %v7037_v20, %v7036_v42 }
 0x2a0   : > { %v4266_v19 = vpop.f32.mrf.mxu0  ;;  %v3068_v58 = vadd.f32 %v4314_v46, %v2963_v63  ;;  %v2768_v34 = vadd.f32 %v4155_v11, %v7031_v49  ;;  %v7040_v46 = vld [vmem:[#allocation15_spill] sm:$0xff] }
 0x2a1   : > { %v6942_v36 = vpop.f32.mrf.mxu1  ;;  %v3053_v2 = vadd.f32 %v4305_v9, %v2948_v38  ;;  %v4267_v13 = vadd.f32 %v4266_v19, %v4265_v57  ;;  %v3058_v19 = vadd.f32 %v4308_v25, %v2953_v8 }
 0x2a2   : > { %v2873_v54 = vadd.f32 %v4211_v53, %v2768_v34  ;;  %v4323_v38 = vadd.f32 %v6942_v36, %v6937_v21 }
 0x2a3   : > { %v7038_v12 = vld [vmem:[#allocation16_spill] sm:$0xff] }
 0x2a4   : > { %v4356_v10 = vpop.f32.mrf.mxu0  ;;  %v4320_v63 = vadd.f32 %v7038_v12, %v6929_v48  ;;  %v7039_v48 = vld [vmem:[#allocation13_spill] sm:$0xff] }
 0x2a5   : > { %v4368_v51 = vpop.f32.mrf.mxu1 }
 0x2a6   : > { %v4357_v28 = vpop.f32.mrf.mxu0 }
 0x2a7   : > { %v4369_v40 = vpop.f32.mrf.mxu1  ;;  %v4358_v7 = vadd.f32 %v4357_v28, %v4356_v10  ;;  %v3078_v10 = vadd.f32 %v4320_v63, %v2973_v29 }
 0x2a8   : > { %v4370_v18 = vadd.f32 %v4369_v40, %v4368_v51  ;;  %v4359_v22 = vpop.f32.mrf.mxu0  ;;  %v2978_v51 = vadd.f32 %v4267_v13, %v2873_v54 }
 0x2a9   : > { %v4371_v55 = vpop.f32.mrf.mxu1  ;;  %v3153_v47 = vadd.f32 %v4358_v7, %v3048_v50  ;;  %v4311_v50 = vadd.f32 %v7040_v46, %v7039_v48 }
 0x2aa   : > { %v3173_v59 = vadd.f32 %v4370_v18, %v3068_v58  ;;  %v4360_v24 = vpop.f32.mrf.mxu0  ;;  %v3083_v58 = vadd.f32 %v4323_v38, %v2978_v51 }
 0x2ab   : > { %v4372_v5 = vpop.f32.mrf.mxu1  ;;  %3192 = vst.msk [vmem:[%s6963_s29] sm:$0xff] %vm3191_vm0, %v3153_v47  ;;  %v4361_v39 = vadd.f32 %v4360_v24, %v4359_v22  ;;  %v3063_v40 = vadd.f32 %v4311_v50, %v2958_v33 }
 0x2ac   : > { %3196 = vst.msk [vmem:[%s6963_s29 + $0x20] sm:$0xff] %vm3191_vm0, %v3173_v59  ;;  %v4373_v61 = vadd.f32 %v4372_v5, %v4371_v55  ;;  %v4362_v27 = vpop.f32.mrf.mxu0 }
 0x2ad   : > { %v4374_v43 = vpop.f32.mrf.mxu1  ;;  %v3158_v45 = vadd.f32 %v4361_v39, %v3053_v2 }
 0x2ae   : > { %v3178_v57 = vadd.f32 %v4373_v61, %v3073_v23  ;;  %v4363_v17 = vpop.f32.mrf.mxu0 }
 0x2af   : > { %v4375_v52 = vpop.f32.mrf.mxu1  ;;  %3193 = vst.msk [vmem:[%s6963_s29 + $0x8] sm:$0xff] %vm3191_vm0, %v3158_v45  ;;  %v4364_v35 = vadd.f32 %v4363_v17, %v4362_v27 }
 0x2b0   : > { %3197 = vst.msk [vmem:[%s6963_s29 + $0x28] sm:$0xff] %vm3191_vm0, %v3178_v57  ;;  %v4376_v41 = vadd.f32 %v4375_v52, %v4374_v43  ;;  %v4365_v56 = vpop.f32.mrf.mxu0 }
 0x2b1   : > { %v4377_v11 = vpop.f32.mrf.mxu1  ;;  %v3163_v14 = vadd.f32 %v4364_v35, %v3058_v19 }
 0x2b2   : > { %v3183_v60 = vadd.f32 %v4376_v41, %v3078_v10  ;;  %v4366_v26 = vpop.f32.mrf.mxu0 }
 0x2b3   : > { %v4378_v28 = vpop.f32.mrf.mxu1  ;;  %3194 = vst.msk [vmem:[%s6963_s29 + $0x10] sm:$0xff] %vm3191_vm0, %v3163_v14  ;;  %v4367_v32 = vadd.f32 %v4366_v26, %v4365_v56 }
 0x2b4   : > { %3198 = vst.msk [vmem:[%s6963_s29 + $0x30] sm:$0xff] %vm3191_vm0, %v3183_v60  ;;  %v4379_v7 = vadd.f32 %v4378_v28, %v4377_v11 }
 0x2b5   : > { %v3168_v18 = vadd.f32 %v4367_v32, %v3063_v40 }
 0x2b6   : > { %v3188_v37 = vadd.f32 %v4379_v7, %v3083_v58 }
 0x2b7   : > { %3195 = vst.msk [vmem:[%s6963_s29 + $0x18] sm:$0xff] %vm3191_vm0, %v3168_v18 }
 0x2b8   : > { %3199 = vst.msk [vmem:[%s6963_s29 + $0x38] sm:$0xff] %vm3191_vm0, %v3188_v37 }
 0x2b9 PF: > { %s13_s14 = sadd.s32 1, %s4462_s14   ;;  %s7041_s12 = smov %s4458_s13 }
 0x2ba   : > { %p10_p5 = scmp.ge.s32.totalorder %s13_s14, 4   ;;  %s7042_s13 = smov %s7044_s15 }
 0x2bc   :  { %12 = sbr.rel (!%p10_p5) target bundleno = 2 (0x2), region = 68 }

</bundles_post_ra>
